<compile_context>
chip_gen: v7x
topology: tpu7x:2x2x1
jax: 0.10.0
libtpu: 0.0.40
codegen_flags: <defaults>
</compile_context>

<pallas_src>
import functools
import math

import jax
import jax.numpy as jnp
from jax.experimental import pallas as pl
from jax.experimental.pallas import tpu as pltpu


# ----------------------------------------------------------------------------
# small helpers
# ----------------------------------------------------------------------------

def _round_up(x, m):
    return ((x + m - 1) // m) * m


def _pad2(x, rows, cols):
    r, c = x.shape
    if r == rows and c == cols:
        return x
    return jnp.pad(x, ((0, rows - r), (0, cols - c)))


def _pick_tile(padded, cap, quantum):
    t = max(quantum, (min(cap, padded) // quantum) * quantum)
    while t > quantum and padded % t != 0:
        t -= quantum
    return t


def _tiles(M, N, K, tm_cap, tn_cap, tk_cap):
    Mp, Np, Kp = _round_up(M, 16), _round_up(N, 128), _round_up(K, 128)
    tm = _pick_tile(Mp, tm_cap, 16)
    tn = _pick_tile(Np, tn_cap, 128)
    tk = _pick_tile(Kp, tk_cap, 128)
    # v7x megacore: prefer >= 2 parallel output blocks when M allows it.
    if (Mp // tm) * (Np // tn) < 2:
        t = tm - 16
        while t >= 16:
            if Mp % t == 0:
                tm = t
                break
            t -= 16
    return Mp, Np, Kp, tm, tn, tk


_MM_VMEM_LIMIT = 32 * 1024 * 1024   # safe within the scoped default on v5e/v6e/v7x


# ----------------------------------------------------------------------------
# Tiled matmul kernels (bf16 MXU operands, f32 accumulation, fused epilogues)
# ----------------------------------------------------------------------------

def _make_mm_kernel(has_bias, activation):
    def kernel(*refs):
        if has_bias:
            a_ref, b_ref, bias_ref, o_ref, acc_ref = refs
        else:
            a_ref, b_ref, o_ref, acc_ref = refs
        k = pl.program_id(2)

        @pl.when(k == 0)
        def _():
            acc_ref[...] = jnp.zeros_like(acc_ref)

        acc_ref[...] += jnp.dot(a_ref[...], b_ref[...],
                                preferred_element_type=jnp.float32)

        @pl.when(k == pl.num_programs(2) - 1)
        def _():
            acc = acc_ref[...]
            if has_bias:
                acc = acc + bias_ref[...]
            if activation == "relu":
                acc = jnp.maximum(acc, 0.0)
            o_ref[...] = acc.astype(o_ref.dtype)

    return kernel


def matmul_bias(a, b, bias=None, activation="none", out_dtype=jnp.float32,
                tm_cap=256, tn_cap=256, tk_cap=1024):
    """act(a @ b + bias).  a:[M,K]; b:[K,N] (pre-transposed); bias:[N] or None."""
    M, K = a.shape
    K2, N = b.shape
    assert K == K2
    Mp, Np, Kp, tm, tn, tk = _tiles(M, N, K, tm_cap, tn_cap, tk_cap)

    a_p = _pad2(a.astype(jnp.bfloat16), Mp, Kp)
    b_p = _pad2(b.astype(jnp.bfloat16), Kp, Np)
    in_specs = [pl.BlockSpec((tm, tk), lambda i, j, k: (i, k)),
                pl.BlockSpec((tk, tn), lambda i, j, k: (k, j))]
    args = [a_p, b_p]
    if bias is not None:
        bias_p = _pad2(bias.reshape(1, N).astype(jnp.float32), 1, Np)
        in_specs.append(pl.BlockSpec((1, tn), lambda i, j, k: (0, j)))
        args.append(bias_p)

    out = pl.pallas_call(
        _make_mm_kernel(bias is not None, activation),
        out_shape=jax.ShapeDtypeStruct((Mp, Np), out_dtype),
        grid=(Mp // tm, Np // tn, Kp // tk),
        in_specs=in_specs,
        out_specs=pl.BlockSpec((tm, tn), lambda i, j, k: (i, j)),
        scratch_shapes=[pltpu.VMEM((tm, tn), jnp.float32)],
        compiler_params=pltpu.CompilerParams(
            dimension_semantics=("parallel", "parallel", "arbitrary"),
            vmem_limit_bytes=_MM_VMEM_LIMIT),
    )(*args)
    return out[:M, :N]


def _mm_glu_kernel(a_ref, bg_ref, bs_ref, biasg_ref, biass_ref, o_ref,
                   accg_ref, accs_ref):
    k = pl.program_id(2)

    @pl.when(k == 0)
    def _():
        accg_ref[...] = jnp.zeros_like(accg_ref)
        accs_ref[...] = jnp.zeros_like(accs_ref)

    a = a_ref[...]
    accg_ref[...] += jnp.dot(a, bg_ref[...], preferred_element_type=jnp.float32)
    accs_ref[...] += jnp.dot(a, bs_ref[...], preferred_element_type=jnp.float32)

    @pl.when(k == pl.num_programs(2) - 1)
    def _():
        g = accg_ref[...] + biasg_ref[...]
        s = accs_ref[...] + biass_ref[...]
        o_ref[...] = (g * jax.nn.sigmoid(s)).astype(o_ref.dtype)


def matmul_bias_glu(a, b, bias, out_dtype=jnp.bfloat16,
                    tm_cap=256, tn_cap=256, tk_cap=1024):
    """GLU(a @ b + bias) along the output-channel axis (PyTorch nn.GLU(1))."""
    M, K = a.shape
    K2, N = b.shape
    assert K == K2 and N % 2 == 0
    half = N // 2
    bg, bs = b[:, :half], b[:, half:]
    biasg, biass = bias[:half], bias[half:]
    Mp, Hp, Kp, tm, tn, tk = _tiles(M, half, K, tm_cap, tn_cap, tk_cap)

    a_p = _pad2(a.astype(jnp.bfloat16), Mp, Kp)
    bg_p = _pad2(bg.astype(jnp.bfloat16), Kp, Hp)
    bs_p = _pad2(bs.astype(jnp.bfloat16), Kp, Hp)
    biasg_p = _pad2(biasg.reshape(1, half).astype(jnp.float32), 1, Hp)
    biass_p = _pad2(biass.reshape(1, half).astype(jnp.float32), 1, Hp)

    out = pl.pallas_call(
        _mm_glu_kernel,
        out_shape=jax.ShapeDtypeStruct((Mp, Hp), out_dtype),
        grid=(Mp // tm, Hp // tn, Kp // tk),
        in_specs=[pl.BlockSpec((tm, tk), lambda i, j, k: (i, k)),
                  pl.BlockSpec((tk, tn), lambda i, j, k: (k, j)),
                  pl.BlockSpec((tk, tn), lambda i, j, k: (k, j)),
                  pl.BlockSpec((1, tn), lambda i, j, k: (0, j)),
                  pl.BlockSpec((1, tn), lambda i, j, k: (0, j))],
        out_specs=pl.BlockSpec((tm, tn), lambda i, j, k: (i, j)),
        scratch_shapes=[pltpu.VMEM((tm, tn), jnp.float32),
                        pltpu.VMEM((tm, tn), jnp.float32)],
        compiler_params=pltpu.CompilerParams(
            dimension_semantics=("parallel", "parallel", "arbitrary"),
            vmem_limit_bytes=_MM_VMEM_LIMIT),
    )(a_p, bg_p, bs_p, biasg_p, biass_p)
    return out[:M, :half]


def _mm_res_ln_kernel(a_ref, b_ref, bias_ref, res_ref, g_ref, be_ref, o_ref,
                      acc_ref, *, true_n, eps):
    k = pl.program_id(1)

    @pl.when(k == 0)
    def _():
        acc_ref[...] = jnp.zeros_like(acc_ref)

    acc_ref[...] += jnp.dot(a_ref[...], b_ref[...],
                            preferred_element_type=jnp.float32)

    @pl.when(k == pl.num_programs(1) - 1)
    def _():
        x = acc_ref[...] + bias_ref[...] + res_ref[...].astype(jnp.float32)
        inv_n = 1.0 / true_n
        mu = jnp.sum(x, axis=-1, keepdims=True) * inv_n
        msq = jnp.sum(x * x, axis=-1, keepdims=True) * inv_n
        var = jnp.maximum(msq - mu * mu, 0.0)
        y = (x - mu) * jax.lax.rsqrt(var + eps)
        o_ref[...] = (y * g_ref[...] + be_ref[...]).astype(o_ref.dtype)


def matmul_res_layernorm(a, b, bias, residual, gamma, beta, eps=1e-5,
                         out_dtype=jnp.bfloat16, tm_cap=256, tk_cap=1024):
    """LayerNorm((a @ b + bias) + residual), LN fused into the matmul writeback.

    The whole feature dimension lives in one lane tile; padded weight / bias /
    gamma / beta / residual columns are zero so statistics with 1/true_n stay
    exact and padded output columns are exactly zero."""
    M, K = a.shape
    K2, N = b.shape
    assert K == K2
    Mp, Kp = _round_up(M, 16), _round_up(K, 128)
    Np = _round_up(N, 128)
    tn = Np                                    # full row resident for the reduction
    tm = _pick_tile(Mp, tm_cap, 16)
    tk = _pick_tile(Kp, tk_cap, 128)
    if Mp // tm < 2:                           # v7x megacore
        t = tm - 16
        while t >= 16:
            if Mp % t == 0:
                tm = t
                break
            t -= 16

    a_p = _pad2(a.astype(jnp.bfloat16), Mp, Kp)
    b_p = _pad2(b.astype(jnp.bfloat16), Kp, Np)
    res_p = _pad2(residual.astype(jnp.bfloat16), Mp, Np)
    bias_p = _pad2(bias.reshape(1, N).astype(jnp.float32), 1, Np)
    g_p = _pad2(gamma.reshape(1, N).astype(jnp.float32), 1, Np)
    be_p = _pad2(beta.reshape(1, N).astype(jnp.float32), 1, Np)

    out = pl.pallas_call(
        functools.partial(_mm_res_ln_kernel, true_n=N, eps=eps),
        out_shape=jax.ShapeDtypeStruct((Mp, Np), out_dtype),
        grid=(Mp // tm, Kp // tk),
        in_specs=[pl.BlockSpec((tm, tk), lambda i, k: (i, k)),
                  pl.BlockSpec((tk, tn), lambda i, k: (k, 0)),
                  pl.BlockSpec((1, tn), lambda i, k: (0, 0)),
                  pl.BlockSpec((tm, tn), lambda i, k: (i, 0)),
                  pl.BlockSpec((1, tn), lambda i, k: (0, 0)),
                  pl.BlockSpec((1, tn), lambda i, k: (0, 0))],
        out_specs=pl.BlockSpec((tm, tn), lambda i, k: (i, 0)),
        scratch_shapes=[pltpu.VMEM((tm, tn), jnp.float32)],
        compiler_params=pltpu.CompilerParams(
            dimension_semantics=("parallel", "arbitrary"),
            vmem_limit_bytes=_MM_VMEM_LIMIT),
    )(a_p, b_p, bias_p, res_p, g_p, be_p)
    return out[:M, :N]


# ----------------------------------------------------------------------------
# Attention: fused-QKV in, lane-dense [B, S, D] out, heads handled in-kernel
# ----------------------------------------------------------------------------

def _attn_kernel(qkv_ref, o_ref, *, nhead, dh, scale):
    qkv = qkv_ref[0]                                   # [S, 3D] bf16
    D = nhead * dh
    outs = []
    for h in range(nhead):
        q = qkv[:, h * dh:(h + 1) * dh]
        k = qkv[:, D + h * dh: D + (h + 1) * dh]
        v = qkv[:, 2 * D + h * dh: 2 * D + (h + 1) * dh]
        s = jnp.dot(q, k.T, preferred_element_type=jnp.float32) * scale
        m = jnp.max(s, axis=-1, keepdims=True)
        p = jnp.exp(s - m)
        denom = jnp.sum(p, axis=-1, keepdims=True)
        p = p * pl.reciprocal(denom, approx=True)      # EUP, keeps VPU slot free
        outs.append(jnp.dot(p.astype(v.dtype), v,
                            preferred_element_type=jnp.float32))
    o_ref[0] = jnp.concatenate(outs, axis=-1).astype(o_ref.dtype)   # [S, D]


def attention(qkv, nhead):
    """qkv: [B, S, 3D] bf16 (fused projection) -> [B, S, D] bf16."""
    B, S, threeD = qkv.shape
    D = threeD // 3
    dh = D // nhead
    return pl.pallas_call(
        functools.partial(_attn_kernel, nhead=nhead, dh=dh,
                          scale=1.0 / math.sqrt(dh)),
        out_shape=jax.ShapeDtypeStruct((B, S, D), jnp.bfloat16),
        grid=(B,),
        in_specs=[pl.BlockSpec((1, S, threeD), lambda b: (b, 0, 0))],
        out_specs=pl.BlockSpec((1, S, D), lambda b: (b, 0, 0)),
        compiler_params=pltpu.CompilerParams(
            dimension_semantics=("parallel",)),
    )(qkv)


# ----------------------------------------------------------------------------
# Conv / resample helpers (channels-last; strided-slice im2col feeds the matmul)
# ----------------------------------------------------------------------------

def _im2col_cl(x, K, stride):
    """x: [B, Lpad, Cin] -> [B, lout, K*Cin] via K static strided slices."""
    B, L, Cin = x.shape
    lout = (L - K) // stride + 1
    span = (lout - 1) * stride + 1
    cols = [x[:, kk: kk + span: stride, :] for kk in range(K)]
    return jnp.concatenate(cols, axis=-1), lout


def conv1d_cl(x, w2d, b, stride, padding, activation="none",
              out_dtype=jnp.bfloat16):
    """x: [B, L, Cin]; w2d: [K*Cin, Cout] pre-transposed (Cout*2 for GLU)."""
    B, L, Cin = x.shape
    K = w2d.shape[0] // Cin
    if padding:
        x = jnp.pad(x, ((0, 0), (padding, padding), (0, 0)))
        L = L + 2 * padding
    if K == 1 and stride == 1:                         # 1x1 conv = plain matmul
        lout = L
        a2d = x.reshape(B * L, Cin)
    else:
        patches, lout = _im2col_cl(x, K, stride)
        a2d = patches.reshape(B * lout, K * Cin)
    if activation == "glu":
        out = matmul_bias_glu(a2d, w2d, b, out_dtype=out_dtype)
    else:
        out = matmul_bias(a2d, w2d, b, activation, out_dtype=out_dtype)
    return out.reshape(B, lout, out.shape[-1])


def conv_transpose1d_cl(x, w2d, b, stride, padding, K):
    """x: [B, L, Cin]; w2d: [Cin, Cout*K] pre-reshaped from PyTorch [Cin, Cout, K]."""
    B, L, Cin = x.shape
    Cout = w2d.shape[1] // K
    out = matmul_bias(x.reshape(B * L, Cin), w2d, out_dtype=jnp.float32)
    contrib = out.reshape(B, L, Cout, K)
    full = (L - 1) * stride + K
    if K % stride == 0:
        # stride-phase overlap-add: only K//stride contiguous adds needed.
        R = K // stride
        c = contrib.reshape(B, L, Cout, R, stride).transpose(0, 1, 3, 4, 2)
        y4 = jnp.zeros((B, L + R - 1, stride, Cout), jnp.float32)
        for j in range(R):
            y4 = y4.at[:, j:j + L].add(c[:, :, j])
        y = y4.reshape(B, full, Cout)
    else:                                              # general fallback
        y = jnp.zeros((B, full, Cout), jnp.float32)
        pos = jnp.arange(L) * stride
        for kk in range(K):
            y = y.at[:, pos + kk, :].add(contrib[:, :, :, kk])
    y = y + b[None, None, :]
    return y[:, padding: full - padding, :]


def make_resample_kernel(orig_freq, new_freq, lowpass_filter_width=6, rolloff=0.99):
    """torchaudio sinc_interp_hann resample kernel."""
    g = math.gcd(orig_freq, new_freq)
    orig, new = orig_freq // g, new_freq // g
    base = min(orig, new) * rolloff
    width = int(math.ceil(lowpass_filter_width * orig / base))
    idx = jnp.arange(-width, width + orig, dtype=jnp.float32) / orig
    t = (-jnp.arange(new, dtype=jnp.float32)[:, None] / new + idx[None, :]) * base
    t = jnp.clip(t, -lowpass_filter_width, lowpass_filter_width)
    window = jnp.cos(t * math.pi / lowpass_filter_width / 2.0) ** 2
    t_pi = t * math.pi
    safe = jnp.where(t_pi == 0, 1.0, t_pi)
    kernel = jnp.where(t_pi == 0, 1.0, jnp.sin(safe) / safe) * window * (base / orig)
    return kernel, width, orig, new                    # kernel: [new, 2*width+orig]


def resample(x, kernel, width, orig, new):
    """x: [B, C, L] -> [B, C, ceil(new*L/orig)] (sinc interpolation).

    TODO(synk): peripheral op deliberately left to an XLA strided conv — the
    output-phase dimension (new = 5/16) is far below one 128-lane tile, so a
    Pallas matmul here would be >90% padding."""
    B, C, L = x.shape
    xf = x.reshape(B * C, 1, L).astype(jnp.float32)
    xf = jnp.pad(xf, ((0, 0), (0, 0), (width, width + orig)))
    y = jax.lax.conv_general_dilated(
        xf, kernel[:, None, :], window_strides=(orig,), padding="VALID",
        dimension_numbers=("NCH", "OIH", "NCH"))       # [B*C, new, f]
    f = y.shape[-1]
    y = y.transpose(0, 2, 1).reshape(B * C, f * new)
    target = -(-(new * L) // orig)
    return y[:, :target].reshape(B, C, target)


# ----------------------------------------------------------------------------
# Transformer encoder layer (PyTorch TransformerEncoderLayer, post-norm, relu)
# ----------------------------------------------------------------------------

def transformer_encoder_layer(x2, p, nhead, B, S):
    """x2: [B*S, D] bf16 -> [B*S, D] bf16 (eval mode, dropout = identity)."""
    D = x2.shape[-1]
    qkv = matmul_bias(x2, p["in_w"], p["in_b"], out_dtype=jnp.bfloat16)
    o = attention(qkv.reshape(B, S, 3 * D), nhead)                 # [B, S, D]
    x2 = matmul_res_layernorm(o.reshape(B * S, D), p["out_w"], p["out_b"],
                              x2, p["ln1_g"], p["ln1_b"])
    h = matmul_bias(x2, p["lin1_w"], p["lin1_b"], "relu", out_dtype=jnp.bfloat16)
    x2 = matmul_res_layernorm(h, p["lin2_w"], p["lin2_b"],
                              x2, p["ln2_g"], p["ln2_b"])
    return x2


# ----------------------------------------------------------------------------
# Parameter initialization (deterministic, synthetic; weights pre-transposed)
# ----------------------------------------------------------------------------

def make_sinusoidal_pe(max_len, d):
    pos = jnp.arange(max_len, dtype=jnp.float32)[:, None]
    div = jnp.exp(jnp.arange(0, d, 2, dtype=jnp.float32) * (-math.log(10000.0) / d))
    pe = jnp.zeros((max_len, d), jnp.float32)
    pe = pe.at[:, 0::2].set(jnp.sin(pos * div))
    pe = pe.at[:, 1::2].set(jnp.cos(pos * div))
    return pe


def init_params(key, cfg):
    D = cfg["embed_dim"]
    vdim = cfg["video_dim"]
    ks = cfg["kernel_size"]
    keys = iter(jax.random.split(key, 256))

    def nrm(shape, scale=0.05, dtype=jnp.bfloat16):
        return (scale * jax.random.normal(next(keys), shape, jnp.float32)).astype(dtype)

    p = {}
    # ----- U-Net encoder / decoder (demucs-style); weights stored [K*Cin, Cout]
    chin, chout, hidden = 1, 1, cfg["hidden"]
    enc, dec, dec_relu = [], [], []
    for i in range(cfg["depth"]):
        enc.append({"w1": nrm((ks * chin, hidden)),
                    "b1": jnp.zeros((hidden,), jnp.float32),
                    "w2": nrm((hidden, 2 * hidden)),
                    "b2": jnp.zeros((2 * hidden,), jnp.float32)})
        dec.append({"w1": nrm((hidden, 2 * hidden)),
                    "b1": jnp.zeros((2 * hidden,), jnp.float32),
                    "wt": nrm((hidden, chout * ks)),        # [Cin, Cout*K]
                    "bt": jnp.zeros((chout,), jnp.float32)})
        dec_relu.append(i > 0)
        chout = hidden
        chin = hidden
        hidden = min(int(cfg["growth"] * hidden), cfg["max_hidden"])
    p["encoder"] = enc
    p["decoder"] = dec[::-1]              # nn.ModuleList.insert(0, ...) ordering
    cfg["dec_relu"] = dec_relu[::-1]
    c_enc = chin
    cfg["c_enc"] = c_enc

    # ----- projections (already transposed to [in, out]) -----
    p["audio_proj_w"] = nrm((c_enc, D))
    p["audio_proj_b"] = jnp.zeros((D,), jnp.float32)
    # TODO(synk): VideoPreprocessingService (pretrained lipreading ResNet+DenseTCN)
    # has no clean Pallas equivalent; replaced by a deterministic linear stub.
    p["video_stub_w"] = nrm((96 * 96, vdim), 0.01, jnp.float32)
    p["video_stub_b"] = jnp.zeros((vdim,), jnp.float32)
    p["video_proj_w"] = nrm((vdim, D), dtype=jnp.float32)
    p["video_proj_b"] = jnp.zeros((D,), jnp.float32)

    # ----- InternalAVTransformer -----
    p["pe"] = make_sinusoidal_pe(cfg["max_seq_length"], D)
    p["audio_mod"] = nrm((1, 1, D), 1.0, jnp.float32)
    p["video_mod"] = nrm((1, 1, D), 1.0, jnp.float32)
    layers = []
    for _ in range(cfg["num_layers"]):
        layers.append({
            "in_w": nrm((D, 3 * D)), "in_b": jnp.zeros((3 * D,), jnp.float32),
            "out_w": nrm((D, D)), "out_b": jnp.zeros((D,), jnp.float32),
            "ln1_g": jnp.ones((D,), jnp.float32), "ln1_b": jnp.zeros((D,), jnp.float32),
            "lin1_w": nrm((D, cfg["dim_feedforward"])),
            "lin1_b": jnp.zeros((cfg["dim_feedforward"],), jnp.float32),
            "lin2_w": nrm((cfg["dim_feedforward"], D)),
            "lin2_b": jnp.zeros((D,), jnp.float32),
            "ln2_g": jnp.ones((D,), jnp.float32), "ln2_b": jnp.zeros((D,), jnp.float32),
        })
    p["layers"] = layers

    # proj_back: in PyTorch this Conv1d is freshly (randomly) created in forward();
    # here it is initialized once, deterministically.  Stored as [D, c_enc].
    p["proj_back_w"] = nrm((D, c_enc))
    p["proj_back_b"] = jnp.zeros((c_enc,), jnp.float32)

    # ----- resampling kernels (torchaudio-style sinc interpolation) -----
    up_k, up_w, up_o, up_n = make_resample_kernel(cfg["orig_sr"], cfg["up_sr"])
    dn_k, dn_w, dn_o, dn_n = make_resample_kernel(cfg["up_sr"], cfg["orig_sr"])
    p["up_kernel"], p["down_kernel"] = up_k, dn_k
    cfg.update(up_width=up_w, up_orig=up_o, up_new=up_n,
               down_width=dn_w, down_orig=dn_o, down_new=dn_n)
    return p


# ----------------------------------------------------------------------------
# Full forward pass
# ----------------------------------------------------------------------------

def avtransformer_forward(params, audio, video, cfg):
    if audio.ndim == 2:
        audio = audio[:, None, :]
    B = audio.shape[0]
    D = cfg["embed_dim"]
    ks = cfg["kernel_size"]

    # --- upsample audio ---
    a = resample(audio, params["up_kernel"], cfg["up_width"],
                 cfg["up_orig"], cfg["up_new"])               # [B, 1, L_up]

    # --- U-Net encoder (channels-last, bf16 between kernels) ---
    x = a.transpose(0, 2, 1)                                  # [B, L_up, 1]
    skips = []
    for lvl in params["encoder"]:
        x = conv1d_cl(x, lvl["w1"], lvl["b1"], cfg["stride"], cfg["padding"], "relu")
        x = conv1d_cl(x, lvl["w2"], lvl["b2"], 1, 0, "glu")
        skips.append(x)
    audio_enc = x                                             # [B, T, C_enc] bf16
    T = audio_enc.shape[1]
    c_enc = audio_enc.shape[2]

    # --- audio projection ---
    audio_tokens = matmul_bias(audio_enc.reshape(B * T, c_enc),
                               params["audio_proj_w"], params["audio_proj_b"],
                               out_dtype=jnp.float32).reshape(B, T, D)

    # --- video preprocessing (stub) + projection (tiny; left to XLA) ---
    F = video.shape[1]
    venc = (video.reshape(B * F, -1).astype(jnp.float32) @ params["video_stub_w"]
            + params["video_stub_b"])
    video_tokens = (venc @ params["video_proj_w"]
                    + params["video_proj_b"]).reshape(B, F, D)

    # --- InternalAVTransformer ---
    # note: x + PositionalEncoder(x) + ModalityEncoder(x)  ==  2*x + pe + modality
    pe = params["pe"]
    at = 2.0 * audio_tokens + pe[None, :T, :] + params["audio_mod"]
    vt = 2.0 * video_tokens + pe[None, :F, :] + params["video_mod"]
    fused = jnp.concatenate([at, vt], axis=1)                 # [B, T+F, D]
    S = T + F
    x2 = fused.reshape(B * S, D).astype(jnp.bfloat16)
    for lp in params["layers"]:
        x2 = transformer_encoder_layer(x2, lp, cfg["nhead"], B, S)
    audio_out = x2.reshape(B, S, D)[:, :T, :]                 # audio part only

    # --- proj_back: Conv1d(D -> C_enc, k=1) == plain matmul (channels-last) ---
    x = conv1d_cl(audio_out, params["proj_back_w"], params["proj_back_b"], 1, 0)

    # --- U-Net decoder with skip connections (channels-last) ---
    for lvl, use_relu in zip(params["decoder"], cfg["dec_relu"]):
        skip = skips.pop(-1)
        L = min(x.shape[1], skip.shape[1])
        x = x[:, :L, :] + skip[:, :L, :]
        x = conv1d_cl(x, lvl["w1"], lvl["b1"], 1, 0, "glu")
        x = conv_transpose1d_cl(x, lvl["wt"], lvl["bt"], cfg["stride"],
                                cfg["padding"], ks)
        if use_relu:
            x = jnp.maximum(x, 0.0)

    # --- downsample back to the original sample rate ---
    out = resample(x.transpose(0, 2, 1), params["down_kernel"],
                   cfg["down_width"], cfg["down_orig"], cfg["down_new"])
    return out


# ----------------------------------------------------------------------------
if __name__ == "__main__":
    cfg = dict(
        depth=3, hidden=8, growth=2, max_hidden=10000,
        kernel_size=8, stride=4, padding=2,
        embed_dim=64, nhead=8, num_layers=3, dim_feedforward=532,
        video_dim=16, max_seq_length=64,
        orig_sr=16000, up_sr=51200,
    )

    key = jax.random.PRNGKey(0)
    pkey, akey, vkey = jax.random.split(key, 3)
    params = init_params(pkey, cfg)

    B, L, FRAMES = 2, 400, 4
    audio = 0.1 * jax.random.normal(akey, (B, 1, L), jnp.float32)
    video = jax.random.normal(vkey, (B, FRAMES, 96, 96), jnp.float32)

    fwd = jax.jit(lambda p, a, v: avtransformer_forward(p, a, v, cfg))
    out = fwd(params, audio, video)
    out = jax.block_until_ready(out)

    assert out.shape == (B, 1, L), out.shape
    assert bool(jnp.all(jnp.isfinite(out)))
    print("KERNEL_OK")
</pallas_src>

<mosaic_0001>
module attributes {stable_mosaic.version = 11 : i64} {
  func.func @kernel(%arg0: i32, %arg1: i32, %arg2: i32, %arg3: memref<160x128xbf16, #tpu.memory_space<vmem>>, %arg4: memref<128x128xbf16, #tpu.memory_space<vmem>>, %arg5: memref<1x128xf32, #tpu.memory_space<vmem>>, %arg6: memref<160x128xbf16, #tpu.memory_space<vmem>>, %arg7: memref<160x128xf32, #tpu.memory_space<vmem>>) attributes {dimension_semantics = [#tpu.dimension_semantics<parallel>, #tpu.dimension_semantics<parallel>, #tpu.dimension_semantics<arbitrary>], iteration_bounds = array<i64: 4, 1, 1>, scalar_prefetch = 0 : i64, scratch_operands = 1 : i64, tpu.core_type = #tpu.core_type<tc>, window_params = [{transform_indices = @transform_0, window_bounds = array<i64: 160, 128>}, {transform_indices = @transform_1, window_bounds = array<i64: 128, 128>}, {transform_indices = @transform_2, window_bounds = array<i64: 1, 128>}, {transform_indices = @transform_3, window_bounds = array<i64: 160, 128>}]} {
    %c0_i32 = arith.constant 0 : i32
    %0 = arith.cmpi eq, %arg2, %c0_i32 : i32
    %1 = arith.extui %0 : i1 to i32
    %c0_i32_0 = arith.constant 0 : i32
    %2 = arith.cmpi ne, %1, %c0_i32_0 : i32
    scf.if %2 {
      %cst_10 = arith.constant 0.000000e+00 : f32
      %12 = vector.broadcast %cst_10 : f32 to vector<160x128xf32>
      %c0_11 = arith.constant 0 : index
      %c0_12 = arith.constant 0 : index
      %13 = vector.load %arg7[%c0_11, %c0_12] : memref<160x128xf32, #tpu.memory_space<vmem>>, vector<160x128xf32>
      tpu.vector_store %arg7[%c0_11, %c0_12], %12 {strides = array<i32>} : memref<160x128xf32, #tpu.memory_space<vmem>>, vector<160x128xf32>,
    } else {
    }
    %c0 = arith.constant 0 : index
    %c0_1 = arith.constant 0 : index
    %3 = vector.load %arg7[%c0, %c0_1] : memref<160x128xf32, #tpu.memory_space<vmem>>, vector<160x128xf32>
    %c0_2 = arith.constant 0 : index
    %c0_3 = arith.constant 0 : index
    %4 = vector.load %arg3[%c0_2, %c0_3] : memref<160x128xbf16, #tpu.memory_space<vmem>>, vector<160x128xbf16>
    %c0_4 = arith.constant 0 : index
    %c0_5 = arith.constant 0 : index
    %5 = vector.load %arg4[%c0_4, %c0_5] : memref<128x128xbf16, #tpu.memory_space<vmem>>, vector<128x128xbf16>
    %cst = arith.constant dense<0.000000e+00> : vector<160x128xf32>
    %6 = tpu.matmul %4, %5, %cst {dimension_numbers = #tpu.dot_dimension_numbers<[1], [0], [0], [1], [0, 0, 1, 1], [], []>} : vector<160x128xbf16>, vector<128x128xbf16>, vector<160x128xf32> -> vector<160x128xf32>
    %7 = arith.addf %3, %6 : vector<160x128xf32>
    %c0_6 = arith.constant 0 : index
    %c0_7 = arith.constant 0 : index
    %8 = vector.load %arg7[%c0_6, %c0_7] : memref<160x128xf32, #tpu.memory_space<vmem>>, vector<160x128xf32>
    tpu.vector_store %arg7[%c0_6, %c0_7], %7 {strides = array<i32>} : memref<160x128xf32, #tpu.memory_space<vmem>>, vector<160x128xf32>,
    %c0_i32_8 = arith.constant 0 : i32
    %9 = arith.cmpi eq, %arg2, %c0_i32_8 : i32
    %10 = arith.extui %9 : i1 to i32
    %c0_i32_9 = arith.constant 0 : i32
    %11 = arith.cmpi ne, %10, %c0_i32_9 : i32
    scf.if %11 {
      %c0_10 = arith.constant 0 : index
      %c0_11 = arith.constant 0 : index
      %12 = vector.load %arg7[%c0_10, %c0_11] : memref<160x128xf32, #tpu.memory_space<vmem>>, vector<160x128xf32>
      %c0_12 = arith.constant 0 : index
      %c0_13 = arith.constant 0 : index
      %13 = vector.load %arg5[%c0_12, %c0_13] : memref<1x128xf32, #tpu.memory_space<vmem>>, vector<1x128xf32>
      %14 = vector.broadcast %13 : vector<1x128xf32> to vector<160x128xf32>
      %15 = arith.addf %12, %14 : vector<160x128xf32>
      %cst_14 = arith.constant 0.000000e+00 : f32
      %16 = vector.broadcast %cst_14 : f32 to vector<160x128xf32>
      %17 = arith.maximumf %15, %16 : vector<160x128xf32>
      %18 = arith.truncf %17 : vector<160x128xf32> to vector<160x128xbf16>
      %c0_15 = arith.constant 0 : index
      %c0_16 = arith.constant 0 : index
      %19 = vector.load %arg6[%c0_15, %c0_16] : memref<160x128xbf16, #tpu.memory_space<vmem>>, vector<160x128xbf16>
      tpu.vector_store %arg6[%c0_15, %c0_16], %18 {strides = array<i32>} : memref<160x128xbf16, #tpu.memory_space<vmem>>, vector<160x128xbf16>,
    } else {
    }
    return
  }
  func.func @transform_0(%arg0: i32, %arg1: i32, %arg2: i32) -> (i32, i32) {
    %c0_i32 = arith.constant 0 : i32
    return %arg0, %arg2 : i32, i32
  }
  func.func @transform_1(%arg0: i32, %arg1: i32, %arg2: i32) -> (i32, i32) {
    %c0_i32 = arith.constant 0 : i32
    return %arg2, %arg1 : i32, i32
  }
  func.func @transform_2(%arg0: i32, %arg1: i32, %arg2: i32) -> (i32, i32) {
    %c0_i32 = arith.constant 0 : i32
    %c0_i32_0 = arith.constant 0 : i32
    return %c0_i32, %arg1 : i32, i32
  }
  func.func @transform_3(%arg0: i32, %arg1: i32, %arg2: i32) -> (i32, i32) {
    %c0_i32 = arith.constant 0 : i32
    return %arg0, %arg1 : i32, i32
  }
}

module attributes {stable_mosaic.version = 11 : i64} {
  func.func @_mm_glu_kernel(%arg0: i32, %arg1: i32, %arg2: i32, %arg3: memref<160x128xbf16, #tpu.memory_space<vmem>>, %arg4: memref<128x128xbf16, #tpu.memory_space<vmem>>, %arg5: memref<128x128xbf16, #tpu.memory_space<vmem>>, %arg6: memref<1x128xf32, #tpu.memory_space<vmem>>, %arg7: memref<1x128xf32, #tpu.memory_space<vmem>>, %arg8: memref<160x128xbf16, #tpu.memory_space<vmem>>, %arg9: memref<160x128xf32, #tpu.memory_space<vmem>>, %arg10: memref<160x128xf32, #tpu.memory_space<vmem>>) attributes {dimension_semantics = [#tpu.dimension_semantics<parallel>, #tpu.dimension_semantics<parallel>, #tpu.dimension_semantics<arbitrary>], iteration_bounds = array<i64: 4, 1, 1>, scalar_prefetch = 0 : i64, scratch_operands = 2 : i64, tpu.core_type = #tpu.core_type<tc>, window_params = [{transform_indices = @transform_0, window_bounds = array<i64: 160, 128>}, {transform_indices = @transform_1, window_bounds = array<i64: 128, 128>}, {transform_indices = @transform_2, window_bounds = array<i64: 128, 128>}, {transform_indices = @transform_3, window_bounds = array<i64: 1, 128>}, {transform_indices = @transform_4, window_bounds = array<i64: 1, 128>}, {transform_indices = @transform_5, window_bounds = array<i64: 160, 128>}]} {
    %c0_i32 = arith.constant 0 : i32
    %0 = arith.cmpi eq, %arg2, %c0_i32 : i32
    %1 = arith.extui %0 : i1 to i32
    %c0_i32_0 = arith.constant 0 : i32
    %2 = arith.cmpi ne, %1, %c0_i32_0 : i32
    scf.if %2 {
      %cst_17 = arith.constant 0.000000e+00 : f32
      %17 = vector.broadcast %cst_17 : f32 to vector<160x128xf32>
      %c0_18 = arith.constant 0 : index
      %c0_19 = arith.constant 0 : index
      %18 = vector.load %arg9[%c0_18, %c0_19] : memref<160x128xf32, #tpu.memory_space<vmem>>, vector<160x128xf32>
      tpu.vector_store %arg9[%c0_18, %c0_19], %17 {strides = array<i32>} : memref<160x128xf32, #tpu.memory_space<vmem>>, vector<160x128xf32>,
      %cst_20 = arith.constant 0.000000e+00 : f32
      %19 = vector.broadcast %cst_20 : f32 to vector<160x128xf32>
      %c0_21 = arith.constant 0 : index
      %c0_22 = arith.constant 0 : index
      %20 = vector.load %arg10[%c0_21, %c0_22] : memref<160x128xf32, #tpu.memory_space<vmem>>, vector<160x128xf32>
      tpu.vector_store %arg10[%c0_21, %c0_22], %19 {strides = array<i32>} : memref<160x128xf32, #tpu.memory_space<vmem>>, vector<160x128xf32>,
    } else {
    }
    %c0 = arith.constant 0 : index
    %c0_1 = arith.constant 0 : index
    %3 = vector.load %arg3[%c0, %c0_1] : memref<160x128xbf16, #tpu.memory_space<vmem>>, vector<160x128xbf16>
    %c0_2 = arith.constant 0 : index
    %c0_3 = arith.constant 0 : index
    %4 = vector.load %arg9[%c0_2, %c0_3] : memref<160x128xf32, #tpu.memory_space<vmem>>, vector<160x128xf32>
    %c0_4 = arith.constant 0 : index
    %c0_5 = arith.constant 0 : index
    %5 = vector.load %arg4[%c0_4, %c0_5] : memref<128x128xbf16, #tpu.memory_space<vmem>>, vector<128x128xbf16>
    %cst = arith.constant dense<0.000000e+00> : vector<160x128xf32>
    %6 = tpu.matmul %3, %5, %cst {dimension_numbers = #tpu.dot_dimension_numbers<[1], [0], [0], [1], [0, 0, 1, 1], [], []>} : vector<160x128xbf16>, vector<128x128xbf16>, vector<160x128xf32> -> vector<160x128xf32>
    %7 = arith.addf %4, %6 : vector<160x128xf32>
    %c0_6 = arith.constant 0 : index
    %c0_7 = arith.constant 0 : index
    %8 = vector.load %arg9[%c0_6, %c0_7] : memref<160x128xf32, #tpu.memory_space<vmem>>, vector<160x128xf32>
    tpu.vector_store %arg9[%c0_6, %c0_7], %7 {strides = array<i32>} : memref<160x128xf32, #tpu.memory_space<vmem>>, vector<160x128xf32>,
    %c0_8 = arith.constant 0 : index
    %c0_9 = arith.constant 0 : index
    %9 = vector.load %arg10[%c0_8, %c0_9] : memref<160x128xf32, #tpu.memory_space<vmem>>, vector<160x128xf32>
    %c0_10 = arith.constant 0 : index
    %c0_11 = arith.constant 0 : index
    %10 = vector.load %arg5[%c0_10, %c0_11] : memref<128x128xbf16, #tpu.memory_space<vmem>>, vector<128x128xbf16>
    %cst_12 = arith.constant dense<0.000000e+00> : vector<160x128xf32>
    %11 = tpu.matmul %3, %10, %cst_12 {dimension_numbers = #tpu.dot_dimension_numbers<[1], [0], [0], [1], [0, 0, 1, 1], [], []>} : vector<160x128xbf16>, vector<128x128xbf16>, vector<160x128xf32> -> vector<160x128xf32>
    %12 = arith.addf %9, %11 : vector<160x128xf32>
    %c0_13 = arith.constant 0 : index
    %c0_14 = arith.constant 0 : index
    %13 = vector.load %arg10[%c0_13, %c0_14] : memref<160x128xf32, #tpu.memory_space<vmem>>, vector<160x128xf32>
    tpu.vector_store %arg10[%c0_13, %c0_14], %12 {strides = array<i32>} : memref<160x128xf32, #tpu.memory_space<vmem>>, vector<160x128xf32>,
    %c0_i32_15 = arith.constant 0 : i32
    %14 = arith.cmpi eq, %arg2, %c0_i32_15 : i32
    %15 = arith.extui %14 : i1 to i32
    %c0_i32_16 = arith.constant 0 : i32
    %16 = arith.cmpi ne, %15, %c0_i32_16 : i32
    scf.if %16 {
      %c0_17 = arith.constant 0 : index
      %c0_18 = arith.constant 0 : index
      %17 = vector.load %arg9[%c0_17, %c0_18] : memref<160x128xf32, #tpu.memory_space<vmem>>, vector<160x128xf32>
      %c0_19 = arith.constant 0 : index
      %c0_20 = arith.constant 0 : index
      %18 = vector.load %arg6[%c0_19, %c0_20] : memref<1x128xf32, #tpu.memory_space<vmem>>, vector<1x128xf32>
      %19 = vector.broadcast %18 : vector<1x128xf32> to vector<160x128xf32>
      %20 = arith.addf %17, %19 : vector<160x128xf32>
      %c0_21 = arith.constant 0 : index
      %c0_22 = arith.constant 0 : index
      %21 = vector.load %arg10[%c0_21, %c0_22] : memref<160x128xf32, #tpu.memory_space<vmem>>, vector<160x128xf32>
      %c0_23 = arith.constant 0 : index
      %c0_24 = arith.constant 0 : index
      %22 = vector.load %arg7[%c0_23, %c0_24] : memref<1x128xf32, #tpu.memory_space<vmem>>, vector<1x128xf32>
      %23 = vector.broadcast %22 : vector<1x128xf32> to vector<160x128xf32>
      %24 = arith.addf %21, %23 : vector<160x128xf32>
      %25 = arith.negf %24 : vector<160x128xf32>
      %26 = math.exp %25 : vector<160x128xf32>
      %cst_25 = arith.constant 1.000000e+00 : f32
      %27 = vector.broadcast %cst_25 : f32 to vector<160x128xf32>
      %28 = arith.addf %27, %26 : vector<160x128xf32>
      %29 = arith.divf %27, %28 : vector<160x128xf32>
      %30 = arith.mulf %20, %29 : vector<160x128xf32>
      %31 = arith.truncf %30 : vector<160x128xf32> to vector<160x128xbf16>
      %c0_26 = arith.constant 0 : index
      %c0_27 = arith.constant 0 : index
      %32 = vector.load %arg8[%c0_26, %c0_27] : memref<160x128xbf16, #tpu.memory_space<vmem>>, vector<160x128xbf16>
      tpu.vector_store %arg8[%c0_26, %c0_27], %31 {strides = array<i32>} : memref<160x128xbf16, #tpu.memory_space<vmem>>, vector<160x128xbf16>,
    } else {
    }
    return
  }
  func.func @transform_0(%arg0: i32, %arg1: i32, %arg2: i32) -> (i32, i32) {
    %c0_i32 = arith.constant 0 : i32
    return %arg0, %arg2 : i32, i32
  }
  func.func @transform_1(%arg0: i32, %arg1: i32, %arg2: i32) -> (i32, i32) {
    %c0_i32 = arith.constant 0 : i32
    return %arg2, %arg1 : i32, i32
  }
  func.func @transform_2(%arg0: i32, %arg1: i32, %arg2: i32) -> (i32, i32) {
    %c0_i32 = arith.constant 0 : i32
    return %arg2, %arg1 : i32, i32
  }
  func.func @transform_3(%arg0: i32, %arg1: i32, %arg2: i32) -> (i32, i32) {
    %c0_i32 = arith.constant 0 : i32
    %c0_i32_0 = arith.constant 0 : i32
    return %c0_i32, %arg1 : i32, i32
  }
  func.func @transform_4(%arg0: i32, %arg1: i32, %arg2: i32) -> (i32, i32) {
    %c0_i32 = arith.constant 0 : i32
    %c0_i32_0 = arith.constant 0 : i32
    return %c0_i32, %arg1 : i32, i32
  }
  func.func @transform_5(%arg0: i32, %arg1: i32, %arg2: i32) -> (i32, i32) {
    %c0_i32 = arith.constant 0 : i32
    return %arg0, %arg1 : i32, i32
  }
}

module attributes {stable_mosaic.version = 11 : i64} {
  func.func @kernel(%arg0: i32, %arg1: i32, %arg2: i32, %arg3: memref<80x128xbf16, #tpu.memory_space<vmem>>, %arg4: memref<128x128xbf16, #tpu.memory_space<vmem>>, %arg5: memref<1x128xf32, #tpu.memory_space<vmem>>, %arg6: memref<80x128xbf16, #tpu.memory_space<vmem>>, %arg7: memref<80x128xf32, #tpu.memory_space<vmem>>) attributes {dimension_semantics = [#tpu.dimension_semantics<parallel>, #tpu.dimension_semantics<parallel>, #tpu.dimension_semantics<arbitrary>], iteration_bounds = array<i64: 2, 1, 1>, scalar_prefetch = 0 : i64, scratch_operands = 1 : i64, tpu.core_type = #tpu.core_type<tc>, window_params = [{transform_indices = @transform_0, window_bounds = array<i64: 80, 128>}, {transform_indices = @transform_1, window_bounds = array<i64: 128, 128>}, {transform_indices = @transform_2, window_bounds = array<i64: 1, 128>}, {transform_indices = @transform_3, window_bounds = array<i64: 80, 128>}]} {
    %c0_i32 = arith.constant 0 : i32
    %0 = arith.cmpi eq, %arg2, %c0_i32 : i32
    %1 = arith.extui %0 : i1 to i32
    %c0_i32_0 = arith.constant 0 : i32
    %2 = arith.cmpi ne, %1, %c0_i32_0 : i32
    scf.if %2 {
      %cst_10 = arith.constant 0.000000e+00 : f32
      %12 = vector.broadcast %cst_10 : f32 to vector<80x128xf32>
      %c0_11 = arith.constant 0 : index
      %c0_12 = arith.constant 0 : index
      %13 = vector.load %arg7[%c0_11, %c0_12] : memref<80x128xf32, #tpu.memory_space<vmem>>, vector<80x128xf32>
      tpu.vector_store %arg7[%c0_11, %c0_12], %12 {strides = array<i32>} : memref<80x128xf32, #tpu.memory_space<vmem>>, vector<80x128xf32>,
    } else {
    }
    %c0 = arith.constant 0 : index
    %c0_1 = arith.constant 0 : index
    %3 = vector.load %arg7[%c0, %c0_1] : memref<80x128xf32, #tpu.memory_space<vmem>>, vector<80x128xf32>
    %c0_2 = arith.constant 0 : index
    %c0_3 = arith.constant 0 : index
    %4 = vector.load %arg3[%c0_2, %c0_3] : memref<80x128xbf16, #tpu.memory_space<vmem>>, vector<80x128xbf16>
    %c0_4 = arith.constant 0 : index
    %c0_5 = arith.constant 0 : index
    %5 = vector.load %arg4[%c0_4, %c0_5] : memref<128x128xbf16, #tpu.memory_space<vmem>>, vector<128x128xbf16>
    %cst = arith.constant dense<0.000000e+00> : vector<80x128xf32>
    %6 = tpu.matmul %4, %5, %cst {dimension_numbers = #tpu.dot_dimension_numbers<[1], [0], [0], [1], [0, 0, 1, 1], [], []>} : vector<80x128xbf16>, vector<128x128xbf16>, vector<80x128xf32> -> vector<80x128xf32>
    %7 = arith.addf %3, %6 : vector<80x128xf32>
    %c0_6 = arith.constant 0 : index
    %c0_7 = arith.constant 0 : index
    %8 = vector.load %arg7[%c0_6, %c0_7] : memref<80x128xf32, #tpu.memory_space<vmem>>, vector<80x128xf32>
    tpu.vector_store %arg7[%c0_6, %c0_7], %7 {strides = array<i32>} : memref<80x128xf32, #tpu.memory_space<vmem>>, vector<80x128xf32>,
    %c0_i32_8 = arith.constant 0 : i32
    %9 = arith.cmpi eq, %arg2, %c0_i32_8 : i32
    %10 = arith.extui %9 : i1 to i32
    %c0_i32_9 = arith.constant 0 : i32
    %11 = arith.cmpi ne, %10, %c0_i32_9 : i32
    scf.if %11 {
      %c0_10 = arith.constant 0 : index
      %c0_11 = arith.constant 0 : index
      %12 = vector.load %arg7[%c0_10, %c0_11] : memref<80x128xf32, #tpu.memory_space<vmem>>, vector<80x128xf32>
      %c0_12 = arith.constant 0 : index
      %c0_13 = arith.constant 0 : index
      %13 = vector.load %arg5[%c0_12, %c0_13] : memref<1x128xf32, #tpu.memory_space<vmem>>, vector<1x128xf32>
      %14 = vector.broadcast %13 : vector<1x128xf32> to vector<80x128xf32>
      %15 = arith.addf %12, %14 : vector<80x128xf32>
      %cst_14 = arith.constant 0.000000e+00 : f32
      %16 = vector.broadcast %cst_14 : f32 to vector<80x128xf32>
      %17 = arith.maximumf %15, %16 : vector<80x128xf32>
      %18 = arith.truncf %17 : vector<80x128xf32> to vector<80x128xbf16>
      %c0_15 = arith.constant 0 : index
      %c0_16 = arith.constant 0 : index
      %19 = vector.load %arg6[%c0_15, %c0_16] : memref<80x128xbf16, #tpu.memory_space<vmem>>, vector<80x128xbf16>
      tpu.vector_store %arg6[%c0_15, %c0_16], %18 {strides = array<i32>} : memref<80x128xbf16, #tpu.memory_space<vmem>>, vector<80x128xbf16>,
    } else {
    }
    return
  }
  func.func @transform_0(%arg0: i32, %arg1: i32, %arg2: i32) -> (i32, i32) {
    %c0_i32 = arith.constant 0 : i32
    return %arg0, %arg2 : i32, i32
  }
  func.func @transform_1(%arg0: i32, %arg1: i32, %arg2: i32) -> (i32, i32) {
    %c0_i32 = arith.constant 0 : i32
    return %arg2, %arg1 : i32, i32
  }
  func.func @transform_2(%arg0: i32, %arg1: i32, %arg2: i32) -> (i32, i32) {
    %c0_i32 = arith.constant 0 : i32
    %c0_i32_0 = arith.constant 0 : i32
    return %c0_i32, %arg1 : i32, i32
  }
  func.func @transform_3(%arg0: i32, %arg1: i32, %arg2: i32) -> (i32, i32) {
    %c0_i32 = arith.constant 0 : i32
    return %arg0, %arg1 : i32, i32
  }
}

module attributes {stable_mosaic.version = 11 : i64} {
  func.func @_mm_glu_kernel(%arg0: i32, %arg1: i32, %arg2: i32, %arg3: memref<80x128xbf16, #tpu.memory_space<vmem>>, %arg4: memref<128x128xbf16, #tpu.memory_space<vmem>>, %arg5: memref<128x128xbf16, #tpu.memory_space<vmem>>, %arg6: memref<1x128xf32, #tpu.memory_space<vmem>>, %arg7: memref<1x128xf32, #tpu.memory_space<vmem>>, %arg8: memref<80x128xbf16, #tpu.memory_space<vmem>>, %arg9: memref<80x128xf32, #tpu.memory_space<vmem>>, %arg10: memref<80x128xf32, #tpu.memory_space<vmem>>) attributes {dimension_semantics = [#tpu.dimension_semantics<parallel>, #tpu.dimension_semantics<parallel>, #tpu.dimension_semantics<arbitrary>], iteration_bounds = array<i64: 2, 1, 1>, scalar_prefetch = 0 : i64, scratch_operands = 2 : i64, tpu.core_type = #tpu.core_type<tc>, window_params = [{transform_indices = @transform_0, window_bounds = array<i64: 80, 128>}, {transform_indices = @transform_1, window_bounds = array<i64: 128, 128>}, {transform_indices = @transform_2, window_bounds = array<i64: 128, 128>}, {transform_indices = @transform_3, window_bounds = array<i64: 1, 128>}, {transform_indices = @transform_4, window_bounds = array<i64: 1, 128>}, {transform_indices = @transform_5, window_bounds = array<i64: 80, 128>}]} {
    %c0_i32 = arith.constant 0 : i32
    %0 = arith.cmpi eq, %arg2, %c0_i32 : i32
    %1 = arith.extui %0 : i1 to i32
    %c0_i32_0 = arith.constant 0 : i32
    %2 = arith.cmpi ne, %1, %c0_i32_0 : i32
    scf.if %2 {
      %cst_17 = arith.constant 0.000000e+00 : f32
      %17 = vector.broadcast %cst_17 : f32 to vector<80x128xf32>
      %c0_18 = arith.constant 0 : index
      %c0_19 = arith.constant 0 : index
      %18 = vector.load %arg9[%c0_18, %c0_19] : memref<80x128xf32, #tpu.memory_space<vmem>>, vector<80x128xf32>
      tpu.vector_store %arg9[%c0_18, %c0_19], %17 {strides = array<i32>} : memref<80x128xf32, #tpu.memory_space<vmem>>, vector<80x128xf32>,
      %cst_20 = arith.constant 0.000000e+00 : f32
      %19 = vector.broadcast %cst_20 : f32 to vector<80x128xf32>
      %c0_21 = arith.constant 0 : index
      %c0_22 = arith.constant 0 : index
      %20 = vector.load %arg10[%c0_21, %c0_22] : memref<80x128xf32, #tpu.memory_space<vmem>>, vector<80x128xf32>
      tpu.vector_store %arg10[%c0_21, %c0_22], %19 {strides = array<i32>} : memref<80x128xf32, #tpu.memory_space<vmem>>, vector<80x128xf32>,
    } else {
    }
    %c0 = arith.constant 0 : index
    %c0_1 = arith.constant 0 : index
    %3 = vector.load %arg3[%c0, %c0_1] : memref<80x128xbf16, #tpu.memory_space<vmem>>, vector<80x128xbf16>
    %c0_2 = arith.constant 0 : index
    %c0_3 = arith.constant 0 : index
    %4 = vector.load %arg9[%c0_2, %c0_3] : memref<80x128xf32, #tpu.memory_space<vmem>>, vector<80x128xf32>
    %c0_4 = arith.constant 0 : index
    %c0_5 = arith.constant 0 : index
    %5 = vector.load %arg4[%c0_4, %c0_5] : memref<128x128xbf16, #tpu.memory_space<vmem>>, vector<128x128xbf16>
    %cst = arith.constant dense<0.000000e+00> : vector<80x128xf32>
    %6 = tpu.matmul %3, %5, %cst {dimension_numbers = #tpu.dot_dimension_numbers<[1], [0], [0], [1], [0, 0, 1, 1], [], []>} : vector<80x128xbf16>, vector<128x128xbf16>, vector<80x128xf32> -> vector<80x128xf32>
    %7 = arith.addf %4, %6 : vector<80x128xf32>
    %c0_6 = arith.constant 0 : index
    %c0_7 = arith.constant 0 : index
    %8 = vector.load %arg9[%c0_6, %c0_7] : memref<80x128xf32, #tpu.memory_space<vmem>>, vector<80x128xf32>
    tpu.vector_store %arg9[%c0_6, %c0_7], %7 {strides = array<i32>} : memref<80x128xf32, #tpu.memory_space<vmem>>, vector<80x128xf32>,
    %c0_8 = arith.constant 0 : index
    %c0_9 = arith.constant 0 : index
    %9 = vector.load %arg10[%c0_8, %c0_9] : memref<80x128xf32, #tpu.memory_space<vmem>>, vector<80x128xf32>
    %c0_10 = arith.constant 0 : index
    %c0_11 = arith.constant 0 : index
    %10 = vector.load %arg5[%c0_10, %c0_11] : memref<128x128xbf16, #tpu.memory_space<vmem>>, vector<128x128xbf16>
    %cst_12 = arith.constant dense<0.000000e+00> : vector<80x128xf32>
    %11 = tpu.matmul %3, %10, %cst_12 {dimension_numbers = #tpu.dot_dimension_numbers<[1], [0], [0], [1], [0, 0, 1, 1], [], []>} : vector<80x128xbf16>, vector<128x128xbf16>, vector<80x128xf32> -> vector<80x128xf32>
    %12 = arith.addf %9, %11 : vector<80x128xf32>
    %c0_13 = arith.constant 0 : index
    %c0_14 = arith.constant 0 : index
    %13 = vector.load %arg10[%c0_13, %c0_14] : memref<80x128xf32, #tpu.memory_space<vmem>>, vector<80x128xf32>
    tpu.vector_store %arg10[%c0_13, %c0_14], %12 {strides = array<i32>} : memref<80x128xf32, #tpu.memory_space<vmem>>, vector<80x128xf32>,
    %c0_i32_15 = arith.constant 0 : i32
    %14 = arith.cmpi eq, %arg2, %c0_i32_15 : i32
    %15 = arith.extui %14 : i1 to i32
    %c0_i32_16 = arith.constant 0 : i32
    %16 = arith.cmpi ne, %15, %c0_i32_16 : i32
    scf.if %16 {
      %c0_17 = arith.constant 0 : index
      %c0_18 = arith.constant 0 : index
      %17 = vector.load %arg9[%c0_17, %c0_18] : memref<80x128xf32, #tpu.memory_space<vmem>>, vector<80x128xf32>
      %c0_19 = arith.constant 0 : index
      %c0_20 = arith.constant 0 : index
      %18 = vector.load %arg6[%c0_19, %c0_20] : memref<1x128xf32, #tpu.memory_space<vmem>>, vector<1x128xf32>
      %19 = vector.broadcast %18 : vector<1x128xf32> to vector<80x128xf32>
      %20 = arith.addf %17, %19 : vector<80x128xf32>
      %c0_21 = arith.constant 0 : index
      %c0_22 = arith.constant 0 : index
      %21 = vector.load %arg10[%c0_21, %c0_22] : memref<80x128xf32, #tpu.memory_space<vmem>>, vector<80x128xf32>
      %c0_23 = arith.constant 0 : index
      %c0_24 = arith.constant 0 : index
      %22 = vector.load %arg7[%c0_23, %c0_24] : memref<1x128xf32, #tpu.memory_space<vmem>>, vector<1x128xf32>
      %23 = vector.broadcast %22 : vector<1x128xf32> to vector<80x128xf32>
      %24 = arith.addf %21, %23 : vector<80x128xf32>
      %25 = arith.negf %24 : vector<80x128xf32>
      %26 = math.exp %25 : vector<80x128xf32>
      %cst_25 = arith.constant 1.000000e+00 : f32
      %27 = vector.broadcast %cst_25 : f32 to vector<80x128xf32>
      %28 = arith.addf %27, %26 : vector<80x128xf32>
      %29 = arith.divf %27, %28 : vector<80x128xf32>
      %30 = arith.mulf %20, %29 : vector<80x128xf32>
      %31 = arith.truncf %30 : vector<80x128xf32> to vector<80x128xbf16>
      %c0_26 = arith.constant 0 : index
      %c0_27 = arith.constant 0 : index
      %32 = vector.load %arg8[%c0_26, %c0_27] : memref<80x128xbf16, #tpu.memory_space<vmem>>, vector<80x128xbf16>
      tpu.vector_store %arg8[%c0_26, %c0_27], %31 {strides = array<i32>} : memref<80x128xbf16, #tpu.memory_space<vmem>>, vector<80x128xbf16>,
    } else {
    }
    return
  }
  func.func @transform_0(%arg0: i32, %arg1: i32, %arg2: i32) -> (i32, i32) {
    %c0_i32 = arith.constant 0 : i32
    return %arg0, %arg2 : i32, i32
  }
  func.func @transform_1(%arg0: i32, %arg1: i32, %arg2: i32) -> (i32, i32) {
    %c0_i32 = arith.constant 0 : i32
    return %arg2, %arg1 : i32, i32
  }
  func.func @transform_2(%arg0: i32, %arg1: i32, %arg2: i32) -> (i32, i32) {
    %c0_i32 = arith.constant 0 : i32
    return %arg2, %arg1 : i32, i32
  }
  func.func @transform_3(%arg0: i32, %arg1: i32, %arg2: i32) -> (i32, i32) {
    %c0_i32 = arith.constant 0 : i32
    %c0_i32_0 = arith.constant 0 : i32
    return %c0_i32, %arg1 : i32, i32
  }
  func.func @transform_4(%arg0: i32, %arg1: i32, %arg2: i32) -> (i32, i32) {
    %c0_i32 = arith.constant 0 : i32
    %c0_i32_0 = arith.constant 0 : i32
    return %c0_i32, %arg1 : i32, i32
  }
  func.func @transform_5(%arg0: i32, %arg1: i32, %arg2: i32) -> (i32, i32) {
    %c0_i32 = arith.constant 0 : i32
    return %arg0, %arg1 : i32, i32
  }
}

module attributes {stable_mosaic.version = 11 : i64} {
  func.func @kernel(%arg0: i32, %arg1: i32, %arg2: i32, %arg3: memref<16x128xbf16, #tpu.memory_space<vmem>>, %arg4: memref<128x128xbf16, #tpu.memory_space<vmem>>, %arg5: memref<1x128xf32, #tpu.memory_space<vmem>>, %arg6: memref<16x128xbf16, #tpu.memory_space<vmem>>, %arg7: memref<16x128xf32, #tpu.memory_space<vmem>>) attributes {dimension_semantics = [#tpu.dimension_semantics<parallel>, #tpu.dimension_semantics<parallel>, #tpu.dimension_semantics<arbitrary>], iteration_bounds = array<i64: 3, 1, 1>, scalar_prefetch = 0 : i64, scratch_operands = 1 : i64, tpu.core_type = #tpu.core_type<tc>, window_params = [{transform_indices = @transform_0, window_bounds = array<i64: 16, 128>}, {transform_indices = @transform_1, window_bounds = array<i64: 128, 128>}, {transform_indices = @transform_2, window_bounds = array<i64: 1, 128>}, {transform_indices = @transform_3, window_bounds = array<i64: 16, 128>}]} {
    %c0_i32 = arith.constant 0 : i32
    %0 = arith.cmpi eq, %arg2, %c0_i32 : i32
    %1 = arith.extui %0 : i1 to i32
    %c0_i32_0 = arith.constant 0 : i32
    %2 = arith.cmpi ne, %1, %c0_i32_0 : i32
    scf.if %2 {
      %cst_10 = arith.constant 0.000000e+00 : f32
      %12 = vector.broadcast %cst_10 : f32 to vector<16x128xf32>
      %c0_11 = arith.constant 0 : index
      %c0_12 = arith.constant 0 : index
      %13 = vector.load %arg7[%c0_11, %c0_12] : memref<16x128xf32, #tpu.memory_space<vmem>>, vector<16x128xf32>
      tpu.vector_store %arg7[%c0_11, %c0_12], %12 {strides = array<i32>} : memref<16x128xf32, #tpu.memory_space<vmem>>, vector<16x128xf32>,
    } else {
    }
    %c0 = arith.constant 0 : index
    %c0_1 = arith.constant 0 : index
    %3 = vector.load %arg7[%c0, %c0_1] : memref<16x128xf32, #tpu.memory_space<vmem>>, vector<16x128xf32>
    %c0_2 = arith.constant 0 : index
    %c0_3 = arith.constant 0 : index
    %4 = vector.load %arg3[%c0_2, %c0_3] : memref<16x128xbf16, #tpu.memory_space<vmem>>, vector<16x128xbf16>
    %c0_4 = arith.constant 0 : index
    %c0_5 = arith.constant 0 : index
    %5 = vector.load %arg4[%c0_4, %c0_5] : memref<128x128xbf16, #tpu.memory_space<vmem>>, vector<128x128xbf16>
    %cst = arith.constant dense<0.000000e+00> : vector<16x128xf32>
    %6 = tpu.matmul %4, %5, %cst {dimension_numbers = #tpu.dot_dimension_numbers<[1], [0], [0], [1], [0, 0, 1, 1], [], []>} : vector<16x128xbf16>, vector<128x128xbf16>, vector<16x128xf32> -> vector<16x128xf32>
    %7 = arith.addf %3, %6 : vector<16x128xf32>
    %c0_6 = arith.constant 0 : index
    %c0_7 = arith.constant 0 : index
    %8 = vector.load %arg7[%c0_6, %c0_7] : memref<16x128xf32, #tpu.memory_space<vmem>>, vector<16x128xf32>
    tpu.vector_store %arg7[%c0_6, %c0_7], %7 {strides = array<i32>} : memref<16x128xf32, #tpu.memory_space<vmem>>, vector<16x128xf32>,
    %c0_i32_8 = arith.constant 0 : i32
    %9 = arith.cmpi eq, %arg2, %c0_i32_8 : i32
    %10 = arith.extui %9 : i1 to i32
    %c0_i32_9 = arith.constant 0 : i32
    %11 = arith.cmpi ne, %10, %c0_i32_9 : i32
    scf.if %11 {
      %c0_10 = arith.constant 0 : index
      %c0_11 = arith.constant 0 : index
      %12 = vector.load %arg7[%c0_10, %c0_11] : memref<16x128xf32, #tpu.memory_space<vmem>>, vector<16x128xf32>
      %c0_12 = arith.constant 0 : index
      %c0_13 = arith.constant 0 : index
      %13 = vector.load %arg5[%c0_12, %c0_13] : memref<1x128xf32, #tpu.memory_space<vmem>>, vector<1x128xf32>
      %14 = vector.broadcast %13 : vector<1x128xf32> to vector<16x128xf32>
      %15 = arith.addf %12, %14 : vector<16x128xf32>
      %cst_14 = arith.constant 0.000000e+00 : f32
      %16 = vector.broadcast %cst_14 : f32 to vector<16x128xf32>
      %17 = arith.maximumf %15, %16 : vector<16x128xf32>
      %18 = arith.truncf %17 : vector<16x128xf32> to vector<16x128xbf16>
      %c0_15 = arith.constant 0 : index
      %c0_16 = arith.constant 0 : index
      %19 = vector.load %arg6[%c0_15, %c0_16] : memref<16x128xbf16, #tpu.memory_space<vmem>>, vector<16x128xbf16>
      tpu.vector_store %arg6[%c0_15, %c0_16], %18 {strides = array<i32>} : memref<16x128xbf16, #tpu.memory_space<vmem>>, vector<16x128xbf16>,
    } else {
    }
    return
  }
  func.func @transform_0(%arg0: i32, %arg1: i32, %arg2: i32) -> (i32, i32) {
    %c0_i32 = arith.constant 0 : i32
    return %arg0, %arg2 : i32, i32
  }
  func.func @transform_1(%arg0: i32, %arg1: i32, %arg2: i32) -> (i32, i32) {
    %c0_i32 = arith.constant 0 : i32
    return %arg2, %arg1 : i32, i32
  }
  func.func @transform_2(%arg0: i32, %arg1: i32, %arg2: i32) -> (i32, i32) {
    %c0_i32 = arith.constant 0 : i32
    %c0_i32_0 = arith.constant 0 : i32
    return %c0_i32, %arg1 : i32, i32
  }
  func.func @transform_3(%arg0: i32, %arg1: i32, %arg2: i32) -> (i32, i32) {
    %c0_i32 = arith.constant 0 : i32
    return %arg0, %arg1 : i32, i32
  }
}

module attributes {stable_mosaic.version = 11 : i64} {
  func.func @kernel(%arg0: i32, %arg1: i32, %arg2: i32, %arg3: memref<16x128xbf16, #tpu.memory_space<vmem>>, %arg4: memref<128x128xbf16, #tpu.memory_space<vmem>>, %arg5: memref<1x128xf32, #tpu.memory_space<vmem>>, %arg6: memref<16x128xf32, #tpu.memory_space<vmem>>, %arg7: memref<16x128xf32, #tpu.memory_space<vmem>>) attributes {dimension_semantics = [#tpu.dimension_semantics<parallel>, #tpu.dimension_semantics<parallel>, #tpu.dimension_semantics<arbitrary>], iteration_bounds = array<i64: 3, 1, 1>, scalar_prefetch = 0 : i64, scratch_operands = 1 : i64, tpu.core_type = #tpu.core_type<tc>, window_params = [{transform_indices = @transform_0, window_bounds = array<i64: 16, 128>}, {transform_indices = @transform_1, window_bounds = array<i64: 128, 128>}, {transform_indices = @transform_2, window_bounds = array<i64: 1, 128>}, {transform_indices = @transform_3, window_bounds = array<i64: 16, 128>}]} {
    %c0_i32 = arith.constant 0 : i32
    %0 = arith.cmpi eq, %arg2, %c0_i32 : i32
    %1 = arith.extui %0 : i1 to i32
    %c0_i32_0 = arith.constant 0 : i32
    %2 = arith.cmpi ne, %1, %c0_i32_0 : i32
    scf.if %2 {
      %cst_10 = arith.constant 0.000000e+00 : f32
      %12 = vector.broadcast %cst_10 : f32 to vector<16x128xf32>
      %c0_11 = arith.constant 0 : index
      %c0_12 = arith.constant 0 : index
      %13 = vector.load %arg7[%c0_11, %c0_12] : memref<16x128xf32, #tpu.memory_space<vmem>>, vector<16x128xf32>
      tpu.vector_store %arg7[%c0_11, %c0_12], %12 {strides = array<i32>} : memref<16x128xf32, #tpu.memory_space<vmem>>, vector<16x128xf32>,
    } else {
    }
    %c0 = arith.constant 0 : index
    %c0_1 = arith.constant 0 : index
    %3 = vector.load %arg7[%c0, %c0_1] : memref<16x128xf32, #tpu.memory_space<vmem>>, vector<16x128xf32>
    %c0_2 = arith.constant 0 : index
    %c0_3 = arith.constant 0 : index
    %4 = vector.load %arg3[%c0_2, %c0_3] : memref<16x128xbf16, #tpu.memory_space<vmem>>, vector<16x128xbf16>
    %c0_4 = arith.constant 0 : index
    %c0_5 = arith.constant 0 : index
    %5 = vector.load %arg4[%c0_4, %c0_5] : memref<128x128xbf16, #tpu.memory_space<vmem>>, vector<128x128xbf16>
    %cst = arith.constant dense<0.000000e+00> : vector<16x128xf32>
    %6 = tpu.matmul %4, %5, %cst {dimension_numbers = #tpu.dot_dimension_numbers<[1], [0], [0], [1], [0, 0, 1, 1], [], []>} : vector<16x128xbf16>, vector<128x128xbf16>, vector<16x128xf32> -> vector<16x128xf32>
    %7 = arith.addf %3, %6 : vector<16x128xf32>
    %c0_6 = arith.constant 0 : index
    %c0_7 = arith.constant 0 : index
    %8 = vector.load %arg7[%c0_6, %c0_7] : memref<16x128xf32, #tpu.memory_space<vmem>>, vector<16x128xf32>
    tpu.vector_store %arg7[%c0_6, %c0_7], %7 {strides = array<i32>} : memref<16x128xf32, #tpu.memory_space<vmem>>, vector<16x128xf32>,
    %c0_i32_8 = arith.constant 0 : i32
    %9 = arith.cmpi eq, %arg2, %c0_i32_8 : i32
    %10 = arith.extui %9 : i1 to i32
    %c0_i32_9 = arith.constant 0 : i32
    %11 = arith.cmpi ne, %10, %c0_i32_9 : i32
    scf.if %11 {
      %c0_10 = arith.constant 0 : index
      %c0_11 = arith.constant 0 : index
      %12 = vector.load %arg7[%c0_10, %c0_11] : memref<16x128xf32, #tpu.memory_space<vmem>>, vector<16x128xf32>
      %c0_12 = arith.constant 0 : index
      %c0_13 = arith.constant 0 : index
      %13 = vector.load %arg5[%c0_12, %c0_13] : memref<1x128xf32, #tpu.memory_space<vmem>>, vector<1x128xf32>
      %14 = vector.broadcast %13 : vector<1x128xf32> to vector<16x128xf32>
      %15 = arith.addf %12, %14 : vector<16x128xf32>
      %c0_14 = arith.constant 0 : index
      %c0_15 = arith.constant 0 : index
      %16 = vector.load %arg6[%c0_14, %c0_15] : memref<16x128xf32, #tpu.memory_space<vmem>>, vector<16x128xf32>
      tpu.vector_store %arg6[%c0_14, %c0_15], %15 {strides = array<i32>} : memref<16x128xf32, #tpu.memory_space<vmem>>, vector<16x128xf32>,
    } else {
    }
    return
  }
  func.func @transform_0(%arg0: i32, %arg1: i32, %arg2: i32) -> (i32, i32) {
    %c0_i32 = arith.constant 0 : i32
    return %arg0, %arg2 : i32, i32
  }
  func.func @transform_1(%arg0: i32, %arg1: i32, %arg2: i32) -> (i32, i32) {
    %c0_i32 = arith.constant 0 : i32
    return %arg2, %arg1 : i32, i32
  }
  func.func @transform_2(%arg0: i32, %arg1: i32, %arg2: i32) -> (i32, i32) {
    %c0_i32 = arith.constant 0 : i32
    %c0_i32_0 = arith.constant 0 : i32
    return %c0_i32, %arg1 : i32, i32
  }
  func.func @transform_3(%arg0: i32, %arg1: i32, %arg2: i32) -> (i32, i32) {
    %c0_i32 = arith.constant 0 : i32
    return %arg0, %arg1 : i32, i32
  }
}

module attributes {stable_mosaic.version = 11 : i64} {
  func.func @_mm_glu_kernel(%arg0: i32, %arg1: i32, %arg2: i32, %arg3: memref<16x128xbf16, #tpu.memory_space<vmem>>, %arg4: memref<128x128xbf16, #tpu.memory_space<vmem>>, %arg5: memref<128x128xbf16, #tpu.memory_space<vmem>>, %arg6: memref<1x128xf32, #tpu.memory_space<vmem>>, %arg7: memref<1x128xf32, #tpu.memory_space<vmem>>, %arg8: memref<16x128xbf16, #tpu.memory_space<vmem>>, %arg9: memref<16x128xf32, #tpu.memory_space<vmem>>, %arg10: memref<16x128xf32, #tpu.memory_space<vmem>>) attributes {dimension_semantics = [#tpu.dimension_semantics<parallel>, #tpu.dimension_semantics<parallel>, #tpu.dimension_semantics<arbitrary>], iteration_bounds = array<i64: 3, 1, 1>, scalar_prefetch = 0 : i64, scratch_operands = 2 : i64, tpu.core_type = #tpu.core_type<tc>, window_params = [{transform_indices = @transform_0, window_bounds = array<i64: 16, 128>}, {transform_indices = @transform_1, window_bounds = array<i64: 128, 128>}, {transform_indices = @transform_2, window_bounds = array<i64: 128, 128>}, {transform_indices = @transform_3, window_bounds = array<i64: 1, 128>}, {transform_indices = @transform_4, window_bounds = array<i64: 1, 128>}, {transform_indices = @transform_5, window_bounds = array<i64: 16, 128>}]} {
    %c0_i32 = arith.constant 0 : i32
    %0 = arith.cmpi eq, %arg2, %c0_i32 : i32
    %1 = arith.extui %0 : i1 to i32
    %c0_i32_0 = arith.constant 0 : i32
    %2 = arith.cmpi ne, %1, %c0_i32_0 : i32
    scf.if %2 {
      %cst_17 = arith.constant 0.000000e+00 : f32
      %17 = vector.broadcast %cst_17 : f32 to vector<16x128xf32>
      %c0_18 = arith.constant 0 : index
      %c0_19 = arith.constant 0 : index
      %18 = vector.load %arg9[%c0_18, %c0_19] : memref<16x128xf32, #tpu.memory_space<vmem>>, vector<16x128xf32>
      tpu.vector_store %arg9[%c0_18, %c0_19], %17 {strides = array<i32>} : memref<16x128xf32, #tpu.memory_space<vmem>>, vector<16x128xf32>,
      %cst_20 = arith.constant 0.000000e+00 : f32
      %19 = vector.broadcast %cst_20 : f32 to vector<16x128xf32>
      %c0_21 = arith.constant 0 : index
      %c0_22 = arith.constant 0 : index
      %20 = vector.load %arg10[%c0_21, %c0_22] : memref<16x128xf32, #tpu.memory_space<vmem>>, vector<16x128xf32>
      tpu.vector_store %arg10[%c0_21, %c0_22], %19 {strides = array<i32>} : memref<16x128xf32, #tpu.memory_space<vmem>>, vector<16x128xf32>,
    } else {
    }
    %c0 = arith.constant 0 : index
    %c0_1 = arith.constant 0 : index
    %3 = vector.load %arg3[%c0, %c0_1] : memref<16x128xbf16, #tpu.memory_space<vmem>>, vector<16x128xbf16>
    %c0_2 = arith.constant 0 : index
    %c0_3 = arith.constant 0 : index
    %4 = vector.load %arg9[%c0_2, %c0_3] : memref<16x128xf32, #tpu.memory_space<vmem>>, vector<16x128xf32>
    %c0_4 = arith.constant 0 : index
    %c0_5 = arith.constant 0 : index
    %5 = vector.load %arg4[%c0_4, %c0_5] : memref<128x128xbf16, #tpu.memory_space<vmem>>, vector<128x128xbf16>
    %cst = arith.constant dense<0.000000e+00> : vector<16x128xf32>
    %6 = tpu.matmul %3, %5, %cst {dimension_numbers = #tpu.dot_dimension_numbers<[1], [0], [0], [1], [0, 0, 1, 1], [], []>} : vector<16x128xbf16>, vector<128x128xbf16>, vector<16x128xf32> -> vector<16x128xf32>
    %7 = arith.addf %4, %6 : vector<16x128xf32>
    %c0_6 = arith.constant 0 : index
    %c0_7 = arith.constant 0 : index
    %8 = vector.load %arg9[%c0_6, %c0_7] : memref<16x128xf32, #tpu.memory_space<vmem>>, vector<16x128xf32>
    tpu.vector_store %arg9[%c0_6, %c0_7], %7 {strides = array<i32>} : memref<16x128xf32, #tpu.memory_space<vmem>>, vector<16x128xf32>,
    %c0_8 = arith.constant 0 : index
    %c0_9 = arith.constant 0 : index
    %9 = vector.load %arg10[%c0_8, %c0_9] : memref<16x128xf32, #tpu.memory_space<vmem>>, vector<16x128xf32>
    %c0_10 = arith.constant 0 : index
    %c0_11 = arith.constant 0 : index
    %10 = vector.load %arg5[%c0_10, %c0_11] : memref<128x128xbf16, #tpu.memory_space<vmem>>, vector<128x128xbf16>
    %cst_12 = arith.constant dense<0.000000e+00> : vector<16x128xf32>
    %11 = tpu.matmul %3, %10, %cst_12 {dimension_numbers = #tpu.dot_dimension_numbers<[1], [0], [0], [1], [0, 0, 1, 1], [], []>} : vector<16x128xbf16>, vector<128x128xbf16>, vector<16x128xf32> -> vector<16x128xf32>
    %12 = arith.addf %9, %11 : vector<16x128xf32>
    %c0_13 = arith.constant 0 : index
    %c0_14 = arith.constant 0 : index
    %13 = vector.load %arg10[%c0_13, %c0_14] : memref<16x128xf32, #tpu.memory_space<vmem>>, vector<16x128xf32>
    tpu.vector_store %arg10[%c0_13, %c0_14], %12 {strides = array<i32>} : memref<16x128xf32, #tpu.memory_space<vmem>>, vector<16x128xf32>,
    %c0_i32_15 = arith.constant 0 : i32
    %14 = arith.cmpi eq, %arg2, %c0_i32_15 : i32
    %15 = arith.extui %14 : i1 to i32
    %c0_i32_16 = arith.constant 0 : i32
    %16 = arith.cmpi ne, %15, %c0_i32_16 : i32
    scf.if %16 {
      %c0_17 = arith.constant 0 : index
      %c0_18 = arith.constant 0 : index
      %17 = vector.load %arg9[%c0_17, %c0_18] : memref<16x128xf32, #tpu.memory_space<vmem>>, vector<16x128xf32>
      %c0_19 = arith.constant 0 : index
      %c0_20 = arith.constant 0 : index
      %18 = vector.load %arg6[%c0_19, %c0_20] : memref<1x128xf32, #tpu.memory_space<vmem>>, vector<1x128xf32>
      %19 = vector.broadcast %18 : vector<1x128xf32> to vector<16x128xf32>
      %20 = arith.addf %17, %19 : vector<16x128xf32>
      %c0_21 = arith.constant 0 : index
      %c0_22 = arith.constant 0 : index
      %21 = vector.load %arg10[%c0_21, %c0_22] : memref<16x128xf32, #tpu.memory_space<vmem>>, vector<16x128xf32>
      %c0_23 = arith.constant 0 : index
      %c0_24 = arith.constant 0 : index
      %22 = vector.load %arg7[%c0_23, %c0_24] : memref<1x128xf32, #tpu.memory_space<vmem>>, vector<1x128xf32>
      %23 = vector.broadcast %22 : vector<1x128xf32> to vector<16x128xf32>
      %24 = arith.addf %21, %23 : vector<16x128xf32>
      %25 = arith.negf %24 : vector<16x128xf32>
      %26 = math.exp %25 : vector<16x128xf32>
      %cst_25 = arith.constant 1.000000e+00 : f32
      %27 = vector.broadcast %cst_25 : f32 to vector<16x128xf32>
      %28 = arith.addf %27, %26 : vector<16x128xf32>
      %29 = arith.divf %27, %28 : vector<16x128xf32>
      %30 = arith.mulf %20, %29 : vector<16x128xf32>
      %31 = arith.truncf %30 : vector<16x128xf32> to vector<16x128xbf16>
      %c0_26 = arith.constant 0 : index
      %c0_27 = arith.constant 0 : index
      %32 = vector.load %arg8[%c0_26, %c0_27] : memref<16x128xbf16, #tpu.memory_space<vmem>>, vector<16x128xbf16>
      tpu.vector_store %arg8[%c0_26, %c0_27], %31 {strides = array<i32>} : memref<16x128xbf16, #tpu.memory_space<vmem>>, vector<16x128xbf16>,
    } else {
    }
    return
  }
  func.func @transform_0(%arg0: i32, %arg1: i32, %arg2: i32) -> (i32, i32) {
    %c0_i32 = arith.constant 0 : i32
    return %arg0, %arg2 : i32, i32
  }
  func.func @transform_1(%arg0: i32, %arg1: i32, %arg2: i32) -> (i32, i32) {
    %c0_i32 = arith.constant 0 : i32
    return %arg2, %arg1 : i32, i32
  }
  func.func @transform_2(%arg0: i32, %arg1: i32, %arg2: i32) -> (i32, i32) {
    %c0_i32 = arith.constant 0 : i32
    return %arg2, %arg1 : i32, i32
  }
  func.func @transform_3(%arg0: i32, %arg1: i32, %arg2: i32) -> (i32, i32) {
    %c0_i32 = arith.constant 0 : i32
    %c0_i32_0 = arith.constant 0 : i32
    return %c0_i32, %arg1 : i32, i32
  }
  func.func @transform_4(%arg0: i32, %arg1: i32, %arg2: i32) -> (i32, i32) {
    %c0_i32 = arith.constant 0 : i32
    %c0_i32_0 = arith.constant 0 : i32
    return %c0_i32, %arg1 : i32, i32
  }
  func.func @transform_5(%arg0: i32, %arg1: i32, %arg2: i32) -> (i32, i32) {
    %c0_i32 = arith.constant 0 : i32
    return %arg0, %arg1 : i32, i32
  }
}

module attributes {stable_mosaic.version = 11 : i64} {
  func.func @_mm_res_ln_kernel(%arg0: i32, %arg1: i32, %arg2: memref<16x128xbf16, #tpu.memory_space<vmem>>, %arg3: memref<128x128xbf16, #tpu.memory_space<vmem>>, %arg4: memref<1x128xf32, #tpu.memory_space<vmem>>, %arg5: memref<16x128xbf16, #tpu.memory_space<vmem>>, %arg6: memref<1x128xf32, #tpu.memory_space<vmem>>, %arg7: memref<1x128xf32, #tpu.memory_space<vmem>>, %arg8: memref<16x128xbf16, #tpu.memory_space<vmem>>, %arg9: memref<16x128xf32, #tpu.memory_space<vmem>>) attributes {dimension_semantics = [#tpu.dimension_semantics<parallel>, #tpu.dimension_semantics<arbitrary>], iteration_bounds = array<i64: 3, 1>, scalar_prefetch = 0 : i64, scratch_operands = 1 : i64, tpu.core_type = #tpu.core_type<tc>, window_params = [{transform_indices = @transform_0, window_bounds = array<i64: 16, 128>}, {transform_indices = @transform_1, window_bounds = array<i64: 128, 128>}, {pipeline_mode = #tpu.pipeline_mode<synchronous>, transform_indices = @transform_2, window_bounds = array<i64: 1, 128>}, {transform_indices = @transform_3, window_bounds = array<i64: 16, 128>}, {pipeline_mode = #tpu.pipeline_mode<synchronous>, transform_indices = @transform_4, window_bounds = array<i64: 1, 128>}, {pipeline_mode = #tpu.pipeline_mode<synchronous>, transform_indices = @transform_5, window_bounds = array<i64: 1, 128>}, {transform_indices = @transform_6, window_bounds = array<i64: 16, 128>}]} {
    %c0_i32 = arith.constant 0 : i32
    %0 = arith.cmpi eq, %arg1, %c0_i32 : i32
    %1 = arith.extui %0 : i1 to i32
    %c0_i32_0 = arith.constant 0 : i32
    %2 = arith.cmpi ne, %1, %c0_i32_0 : i32
    scf.if %2 {
      %cst_10 = arith.constant 0.000000e+00 : f32
      %12 = vector.broadcast %cst_10 : f32 to vector<16x128xf32>
      %c0_11 = arith.constant 0 : index
      %c0_12 = arith.constant 0 : index
      %13 = vector.load %arg9[%c0_11, %c0_12] : memref<16x128xf32, #tpu.memory_space<vmem>>, vector<16x128xf32>
      tpu.vector_store %arg9[%c0_11, %c0_12], %12 {strides = array<i32>} : memref<16x128xf32, #tpu.memory_space<vmem>>, vector<16x128xf32>,
    } else {
    }
    %c0 = arith.constant 0 : index
    %c0_1 = arith.constant 0 : index
    %3 = vector.load %arg9[%c0, %c0_1] : memref<16x128xf32, #tpu.memory_space<vmem>>, vector<16x128xf32>
    %c0_2 = arith.constant 0 : index
    %c0_3 = arith.constant 0 : index
    %4 = vector.load %arg2[%c0_2, %c0_3] : memref<16x128xbf16, #tpu.memory_space<vmem>>, vector<16x128xbf16>
    %c0_4 = arith.constant 0 : index
    %c0_5 = arith.constant 0 : index
    %5 = vector.load %arg3[%c0_4, %c0_5] : memref<128x128xbf16, #tpu.memory_space<vmem>>, vector<128x128xbf16>
    %cst = arith.constant dense<0.000000e+00> : vector<16x128xf32>
    %6 = tpu.matmul %4, %5, %cst {dimension_numbers = #tpu.dot_dimension_numbers<[1], [0], [0], [1], [0, 0, 1, 1], [], []>} : vector<16x128xbf16>, vector<128x128xbf16>, vector<16x128xf32> -> vector<16x128xf32>
    %7 = arith.addf %3, %6 : vector<16x128xf32>
    %c0_6 = arith.constant 0 : index
    %c0_7 = arith.constant 0 : index
    %8 = vector.load %arg9[%c0_6, %c0_7] : memref<16x128xf32, #tpu.memory_space<vmem>>, vector<16x128xf32>
    tpu.vector_store %arg9[%c0_6, %c0_7], %7 {strides = array<i32>} : memref<16x128xf32, #tpu.memory_space<vmem>>, vector<16x128xf32>,
    %c0_i32_8 = arith.constant 0 : i32
    %9 = arith.cmpi eq, %arg1, %c0_i32_8 : i32
    %10 = arith.extui %9 : i1 to i32
    %c0_i32_9 = arith.constant 0 : i32
    %11 = arith.cmpi ne, %10, %c0_i32_9 : i32
    scf.if %11 {
      %c0_10 = arith.constant 0 : index
      %c0_11 = arith.constant 0 : index
      %12 = vector.load %arg9[%c0_10, %c0_11] : memref<16x128xf32, #tpu.memory_space<vmem>>, vector<16x128xf32>
      %c0_12 = arith.constant 0 : index
      %c0_13 = arith.constant 0 : index
      %13 = vector.load %arg4[%c0_12, %c0_13] : memref<1x128xf32, #tpu.memory_space<vmem>>, vector<1x128xf32>
      %14 = vector.broadcast %13 : vector<1x128xf32> to vector<16x128xf32>
      %15 = arith.addf %12, %14 : vector<16x128xf32>
      %c0_14 = arith.constant 0 : index
      %c0_15 = arith.constant 0 : index
      %16 = vector.load %arg5[%c0_14, %c0_15] : memref<16x128xbf16, #tpu.memory_space<vmem>>, vector<16x128xbf16>
      %17 = arith.extf %16 : vector<16x128xbf16> to vector<16x128xf32>
      %18 = arith.addf %15, %17 : vector<16x128xf32>
      %cst_16 = arith.constant dense<0.000000e+00> : vector<16xf32>
      %19 = vector.multi_reduction <add>, %18, %cst_16 [1] : vector<16x128xf32> to vector<16xf32>
      %20 = vector.shape_cast %19 : vector<16xf32> to vector<16x1xf32>
      %cst_17 = arith.constant 1.562500e-02 : f32
      %21 = vector.broadcast %cst_17 : f32 to vector<16x1xf32>
      %22 = arith.mulf %20, %21 : vector<16x1xf32>
      %23 = arith.mulf %18, %18 : vector<16x128xf32>
      %cst_18 = arith.constant dense<0.000000e+00> : vector<16xf32>
      %24 = vector.multi_reduction <add>, %23, %cst_18 [1] : vector<16x128xf32> to vector<16xf32>
      %25 = vector.shape_cast %24 : vector<16xf32> to vector<16x1xf32>
      %cst_19 = arith.constant 1.562500e-02 : f32
      %26 = vector.broadcast %cst_19 : f32 to vector<16x1xf32>
      %27 = arith.mulf %25, %26 : vector<16x1xf32>
      %28 = arith.mulf %22, %22 : vector<16x1xf32>
      %29 = arith.subf %27, %28 : vector<16x1xf32>
      %cst_20 = arith.constant 0.000000e+00 : f32
      %30 = vector.broadcast %cst_20 : f32 to vector<16x1xf32>
      %31 = arith.maximumf %29, %30 : vector<16x1xf32>
      %32 = vector.broadcast %22 : vector<16x1xf32> to vector<16x128xf32>
      %33 = arith.subf %18, %32 : vector<16x128xf32>
      %cst_21 = arith.constant 9.99999974E-6 : f32
      %34 = vector.broadcast %cst_21 : f32 to vector<16x1xf32>
      %35 = arith.addf %31, %34 : vector<16x1xf32>
      %36 = math.rsqrt %35 : vector<16x1xf32>
      %37 = vector.broadcast %36 : vector<16x1xf32> to vector<16x128xf32>
      %38 = arith.mulf %33, %37 : vector<16x128xf32>
      %c0_22 = arith.constant 0 : index
      %c0_23 = arith.constant 0 : index
      %39 = vector.load %arg6[%c0_22, %c0_23] : memref<1x128xf32, #tpu.memory_space<vmem>>, vector<1x128xf32>
      %40 = vector.broadcast %39 : vector<1x128xf32> to vector<16x128xf32>
      %41 = arith.mulf %38, %40 : vector<16x128xf32>
      %c0_24 = arith.constant 0 : index
      %c0_25 = arith.constant 0 : index
      %42 = vector.load %arg7[%c0_24, %c0_25] : memref<1x128xf32, #tpu.memory_space<vmem>>, vector<1x128xf32>
      %43 = vector.broadcast %42 : vector<1x128xf32> to vector<16x128xf32>
      %44 = arith.addf %41, %43 : vector<16x128xf32>
      %45 = arith.truncf %44 : vector<16x128xf32> to vector<16x128xbf16>
      %c0_26 = arith.constant 0 : index
      %c0_27 = arith.constant 0 : index
      %46 = vector.load %arg8[%c0_26, %c0_27] : memref<16x128xbf16, #tpu.memory_space<vmem>>, vector<16x128xbf16>
      tpu.vector_store %arg8[%c0_26, %c0_27], %45 {strides = array<i32>} : memref<16x128xbf16, #tpu.memory_space<vmem>>, vector<16x128xbf16>,
    } else {
    }
    return
  }
  func.func @transform_0(%arg0: i32, %arg1: i32) -> (i32, i32) {
    %c0_i32 = arith.constant 0 : i32
    return %arg0, %arg1 : i32, i32
  }
  func.func @transform_1(%arg0: i32, %arg1: i32) -> (i32, i32) {
    %c0_i32 = arith.constant 0 : i32
    %c0_i32_0 = arith.constant 0 : i32
    return %arg1, %c0_i32 : i32, i32
  }
  func.func @transform_2(%arg0: i32, %arg1: i32) -> (i32, i32) {
    %c0_i32 = arith.constant 0 : i32
    %c0_i32_0 = arith.constant 0 : i32
    %c0_i32_1 = arith.constant 0 : i32
    return %c0_i32, %c0_i32_0 : i32, i32
  }
  func.func @transform_3(%arg0: i32, %arg1: i32) -> (i32, i32) {
    %c0_i32 = arith.constant 0 : i32
    %c0_i32_0 = arith.constant 0 : i32
    return %arg0, %c0_i32 : i32, i32
  }
  func.func @transform_4(%arg0: i32, %arg1: i32) -> (i32, i32) {
    %c0_i32 = arith.constant 0 : i32
    %c0_i32_0 = arith.constant 0 : i32
    %c0_i32_1 = arith.constant 0 : i32
    return %c0_i32, %c0_i32_0 : i32, i32
  }
  func.func @transform_5(%arg0: i32, %arg1: i32) -> (i32, i32) {
    %c0_i32 = arith.constant 0 : i32
    %c0_i32_0 = arith.constant 0 : i32
    %c0_i32_1 = arith.constant 0 : i32
    return %c0_i32, %c0_i32_0 : i32, i32
  }
  func.func @transform_6(%arg0: i32, %arg1: i32) -> (i32, i32) {
    %c0_i32 = arith.constant 0 : i32
    %c0_i32_0 = arith.constant 0 : i32
    return %arg0, %c0_i32 : i32, i32
  }
}

module attributes {stable_mosaic.version = 11 : i64} {
  func.func @kernel(%arg0: i32, %arg1: i32, %arg2: i32, %arg3: memref<16x128xbf16, #tpu.memory_space<vmem>>, %arg4: memref<128x256xbf16, #tpu.memory_space<vmem>>, %arg5: memref<1x256xf32, #tpu.memory_space<vmem>>, %arg6: memref<16x256xbf16, #tpu.memory_space<vmem>>, %arg7: memref<16x256xf32, #tpu.memory_space<vmem>>) attributes {dimension_semantics = [#tpu.dimension_semantics<parallel>, #tpu.dimension_semantics<parallel>, #tpu.dimension_semantics<arbitrary>], iteration_bounds = array<i64: 3, 1, 1>, scalar_prefetch = 0 : i64, scratch_operands = 1 : i64, tpu.core_type = #tpu.core_type<tc>, window_params = [{transform_indices = @transform_0, window_bounds = array<i64: 16, 128>}, {transform_indices = @transform_1, window_bounds = array<i64: 128, 256>}, {transform_indices = @transform_2, window_bounds = array<i64: 1, 256>}, {transform_indices = @transform_3, window_bounds = array<i64: 16, 256>}]} {
    %c0_i32 = arith.constant 0 : i32
    %0 = arith.cmpi eq, %arg2, %c0_i32 : i32
    %1 = arith.extui %0 : i1 to i32
    %c0_i32_0 = arith.constant 0 : i32
    %2 = arith.cmpi ne, %1, %c0_i32_0 : i32
    scf.if %2 {
      %cst_10 = arith.constant 0.000000e+00 : f32
      %12 = vector.broadcast %cst_10 : f32 to vector<16x256xf32>
      %c0_11 = arith.constant 0 : index
      %c0_12 = arith.constant 0 : index
      %13 = vector.load %arg7[%c0_11, %c0_12] : memref<16x256xf32, #tpu.memory_space<vmem>>, vector<16x256xf32>
      tpu.vector_store %arg7[%c0_11, %c0_12], %12 {strides = array<i32>} : memref<16x256xf32, #tpu.memory_space<vmem>>, vector<16x256xf32>,
    } else {
    }
    %c0 = arith.constant 0 : index
    %c0_1 = arith.constant 0 : index
    %3 = vector.load %arg7[%c0, %c0_1] : memref<16x256xf32, #tpu.memory_space<vmem>>, vector<16x256xf32>
    %c0_2 = arith.constant 0 : index
    %c0_3 = arith.constant 0 : index
    %4 = vector.load %arg3[%c0_2, %c0_3] : memref<16x128xbf16, #tpu.memory_space<vmem>>, vector<16x128xbf16>
    %c0_4 = arith.constant 0 : index
    %c0_5 = arith.constant 0 : index
    %5 = vector.load %arg4[%c0_4, %c0_5] : memref<128x256xbf16, #tpu.memory_space<vmem>>, vector<128x256xbf16>
    %cst = arith.constant dense<0.000000e+00> : vector<16x256xf32>
    %6 = tpu.matmul %4, %5, %cst {dimension_numbers = #tpu.dot_dimension_numbers<[1], [0], [0], [1], [0, 0, 1, 1], [], []>} : vector<16x128xbf16>, vector<128x256xbf16>, vector<16x256xf32> -> vector<16x256xf32>
    %7 = arith.addf %3, %6 : vector<16x256xf32>
    %c0_6 = arith.constant 0 : index
    %c0_7 = arith.constant 0 : index
    %8 = vector.load %arg7[%c0_6, %c0_7] : memref<16x256xf32, #tpu.memory_space<vmem>>, vector<16x256xf32>
    tpu.vector_store %arg7[%c0_6, %c0_7], %7 {strides = array<i32>} : memref<16x256xf32, #tpu.memory_space<vmem>>, vector<16x256xf32>,
    %c0_i32_8 = arith.constant 0 : i32
    %9 = arith.cmpi eq, %arg2, %c0_i32_8 : i32
    %10 = arith.extui %9 : i1 to i32
    %c0_i32_9 = arith.constant 0 : i32
    %11 = arith.cmpi ne, %10, %c0_i32_9 : i32
    scf.if %11 {
      %c0_10 = arith.constant 0 : index
      %c0_11 = arith.constant 0 : index
      %12 = vector.load %arg7[%c0_10, %c0_11] : memref<16x256xf32, #tpu.memory_space<vmem>>, vector<16x256xf32>
      %c0_12 = arith.constant 0 : index
      %c0_13 = arith.constant 0 : index
      %13 = vector.load %arg5[%c0_12, %c0_13] : memref<1x256xf32, #tpu.memory_space<vmem>>, vector<1x256xf32>
      %14 = vector.broadcast %13 : vector<1x256xf32> to vector<16x256xf32>
      %15 = arith.addf %12, %14 : vector<16x256xf32>
      %16 = arith.truncf %15 : vector<16x256xf32> to vector<16x256xbf16>
      %c0_14 = arith.constant 0 : index
      %c0_15 = arith.constant 0 : index
      %17 = vector.load %arg6[%c0_14, %c0_15] : memref<16x256xbf16, #tpu.memory_space<vmem>>, vector<16x256xbf16>
      tpu.vector_store %arg6[%c0_14, %c0_15], %16 {strides = array<i32>} : memref<16x256xbf16, #tpu.memory_space<vmem>>, vector<16x256xbf16>,
    } else {
    }
    return
  }
  func.func @transform_0(%arg0: i32, %arg1: i32, %arg2: i32) -> (i32, i32) {
    %c0_i32 = arith.constant 0 : i32
    return %arg0, %arg2 : i32, i32
  }
  func.func @transform_1(%arg0: i32, %arg1: i32, %arg2: i32) -> (i32, i32) {
    %c0_i32 = arith.constant 0 : i32
    return %arg2, %arg1 : i32, i32
  }
  func.func @transform_2(%arg0: i32, %arg1: i32, %arg2: i32) -> (i32, i32) {
    %c0_i32 = arith.constant 0 : i32
    %c0_i32_0 = arith.constant 0 : i32
    return %c0_i32, %arg1 : i32, i32
  }
  func.func @transform_3(%arg0: i32, %arg1: i32, %arg2: i32) -> (i32, i32) {
    %c0_i32 = arith.constant 0 : i32
    return %arg0, %arg1 : i32, i32
  }
}

module attributes {stable_mosaic.version = 11 : i64} {
  func.func @_attn_kernel(%arg0: i32, %arg1: memref<1x24x192xbf16, #tpu.memory_space<vmem>>, %arg2: memref<1x24x64xbf16, #tpu.memory_space<vmem>>) attributes {dimension_semantics = [#tpu.dimension_semantics<parallel>], iteration_bounds = array<i64: 2>, scalar_prefetch = 0 : i64, scratch_operands = 0 : i64, tpu.core_type = #tpu.core_type<tc>, window_params = [{transform_indices = @transform_0, window_bounds = array<i64: 1, 24, 192>}, {transform_indices = @transform_1, window_bounds = array<i64: 1, 24, 64>}]} {
    %c0 = arith.constant 0 : index
    %c0_0 = arith.constant 0 : index
    %c0_1 = arith.constant 0 : index
    %0 = vector.load %arg1[%c0, %c0_0, %c0_1] : memref<1x24x192xbf16, #tpu.memory_space<vmem>>, vector<1x24x192xbf16>
    %1 = vector.shape_cast %0 : vector<1x24x192xbf16> to vector<24x192xbf16>
    %2 = vector.extract_strided_slice %1 {offsets = [0, 0], sizes = [24, 8], strides = [1, 1]} : vector<24x192xbf16> to vector<24x8xbf16>
    %3 = vector.extract_strided_slice %1 {offsets = [0, 64], sizes = [24, 8], strides = [1, 1]} : vector<24x192xbf16> to vector<24x8xbf16>
    %4 = vector.extract_strided_slice %1 {offsets = [0, 128], sizes = [24, 8], strides = [1, 1]} : vector<24x192xbf16> to vector<24x8xbf16>
    %5 = tpu.transpose %3, [1, 0] : vector<24x8xbf16> -> vector<8x24xbf16>
    %cst = arith.constant dense<0.000000e+00> : vector<24x24xf32>
    %6 = tpu.matmul %2, %5, %cst {dimension_numbers = #tpu.dot_dimension_numbers<[1], [0], [0], [1], [0, 0, 1, 1], [], []>} : vector<24x8xbf16>, vector<8x24xbf16>, vector<24x24xf32> -> vector<24x24xf32>
    %cst_2 = arith.constant 0.353553385 : f32
    %7 = vector.broadcast %cst_2 : f32 to vector<24x24xf32>
    %8 = arith.mulf %6, %7 : vector<24x24xf32>
    %cst_3 = arith.constant dense<0xFF800000> : vector<24xf32>
    %9 = vector.multi_reduction <maximumf>, %8, %cst_3 [1] : vector<24x24xf32> to vector<24xf32>
    %10 = vector.shape_cast %9 : vector<24xf32> to vector<24x1xf32>
    %11 = vector.broadcast %10 : vector<24x1xf32> to vector<24x24xf32>
    %12 = arith.subf %8, %11 : vector<24x24xf32>
    %13 = math.exp %12 : vector<24x24xf32>
    %cst_4 = arith.constant dense<0.000000e+00> : vector<24xf32>
    %14 = vector.multi_reduction <add>, %13, %cst_4 [1] : vector<24x24xf32> to vector<24xf32>
    %15 = vector.shape_cast %14 : vector<24xf32> to vector<24x1xf32>
    %16 = tpu.reciprocal %15 {approx = true} : vector<24x1xf32> -> vector<24x1xf32>
    %17 = vector.broadcast %16 : vector<24x1xf32> to vector<24x24xf32>
    %18 = arith.mulf %13, %17 : vector<24x24xf32>
    %19 = arith.truncf %18 : vector<24x24xf32> to vector<24x24xbf16>
    %cst_5 = arith.constant dense<0.000000e+00> : vector<24x8xf32>
    %20 = tpu.matmul %19, %4, %cst_5 {dimension_numbers = #tpu.dot_dimension_numbers<[1], [0], [0], [1], [0, 0, 1, 1], [], []>} : vector<24x24xbf16>, vector<24x8xbf16>, vector<24x8xf32> -> vector<24x8xf32>
    %21 = vector.extract_strided_slice %1 {offsets = [0, 8], sizes = [24, 8], strides = [1, 1]} : vector<24x192xbf16> to vector<24x8xbf16>
    %22 = vector.extract_strided_slice %1 {offsets = [0, 72], sizes = [24, 8], strides = [1, 1]} : vector<24x192xbf16> to vector<24x8xbf16>
    %23 = vector.extract_strided_slice %1 {offsets = [0, 136], sizes = [24, 8], strides = [1, 1]} : vector<24x192xbf16> to vector<24x8xbf16>
    %24 = tpu.transpose %22, [1, 0] : vector<24x8xbf16> -> vector<8x24xbf16>
    %cst_6 = arith.constant dense<0.000000e+00> : vector<24x24xf32>
    %25 = tpu.matmul %21, %24, %cst_6 {dimension_numbers = #tpu.dot_dimension_numbers<[1], [0], [0], [1], [0, 0, 1, 1], [], []>} : vector<24x8xbf16>, vector<8x24xbf16>, vector<24x24xf32> -> vector<24x24xf32>
    %cst_7 = arith.constant 0.353553385 : f32
    %26 = vector.broadcast %cst_7 : f32 to vector<24x24xf32>
    %27 = arith.mulf %25, %26 : vector<24x24xf32>
    %cst_8 = arith.constant dense<0xFF800000> : vector<24xf32>
    %28 = vector.multi_reduction <maximumf>, %27, %cst_8 [1] : vector<24x24xf32> to vector<24xf32>
    %29 = vector.shape_cast %28 : vector<24xf32> to vector<24x1xf32>
    %30 = vector.broadcast %29 : vector<24x1xf32> to vector<24x24xf32>
    %31 = arith.subf %27, %30 : vector<24x24xf32>
    %32 = math.exp %31 : vector<24x24xf32>
    %cst_9 = arith.constant dense<0.000000e+00> : vector<24xf32>
    %33 = vector.multi_reduction <add>, %32, %cst_9 [1] : vector<24x24xf32> to vector<24xf32>
    %34 = vector.shape_cast %33 : vector<24xf32> to vector<24x1xf32>
    %35 = tpu.reciprocal %34 {approx = true} : vector<24x1xf32> -> vector<24x1xf32>
    %36 = vector.broadcast %35 : vector<24x1xf32> to vector<24x24xf32>
    %37 = arith.mulf %32, %36 : vector<24x24xf32>
    %38 = arith.truncf %37 : vector<24x24xf32> to vector<24x24xbf16>
    %cst_10 = arith.constant dense<0.000000e+00> : vector<24x8xf32>
    %39 = tpu.matmul %38, %23, %cst_10 {dimension_numbers = #tpu.dot_dimension_numbers<[1], [0], [0], [1], [0, 0, 1, 1], [], []>} : vector<24x24xbf16>, vector<24x8xbf16>, vector<24x8xf32> -> vector<24x8xf32>
    %40 = vector.extract_strided_slice %1 {offsets = [0, 16], sizes = [24, 8], strides = [1, 1]} : vector<24x192xbf16> to vector<24x8xbf16>
    %41 = vector.extract_strided_slice %1 {offsets = [0, 80], sizes = [24, 8], strides = [1, 1]} : vector<24x192xbf16> to vector<24x8xbf16>
    %42 = vector.extract_strided_slice %1 {offsets = [0, 144], sizes = [24, 8], strides = [1, 1]} : vector<24x192xbf16> to vector<24x8xbf16>
    %43 = tpu.transpose %41, [1, 0] : vector<24x8xbf16> -> vector<8x24xbf16>
    %cst_11 = arith.constant dense<0.000000e+00> : vector<24x24xf32>
    %44 = tpu.matmul %40, %43, %cst_11 {dimension_numbers = #tpu.dot_dimension_numbers<[1], [0], [0], [1], [0, 0, 1, 1], [], []>} : vector<24x8xbf16>, vector<8x24xbf16>, vector<24x24xf32> -> vector<24x24xf32>
    %cst_12 = arith.constant 0.353553385 : f32
    %45 = vector.broadcast %cst_12 : f32 to vector<24x24xf32>
    %46 = arith.mulf %44, %45 : vector<24x24xf32>
    %cst_13 = arith.constant dense<0xFF800000> : vector<24xf32>
    %47 = vector.multi_reduction <maximumf>, %46, %cst_13 [1] : vector<24x24xf32> to vector<24xf32>
    %48 = vector.shape_cast %47 : vector<24xf32> to vector<24x1xf32>
    %49 = vector.broadcast %48 : vector<24x1xf32> to vector<24x24xf32>
    %50 = arith.subf %46, %49 : vector<24x24xf32>
    %51 = math.exp %50 : vector<24x24xf32>
    %cst_14 = arith.constant dense<0.000000e+00> : vector<24xf32>
    %52 = vector.multi_reduction <add>, %51, %cst_14 [1] : vector<24x24xf32> to vector<24xf32>
    %53 = vector.shape_cast %52 : vector<24xf32> to vector<24x1xf32>
    %54 = tpu.reciprocal %53 {approx = true} : vector<24x1xf32> -> vector<24x1xf32>
    %55 = vector.broadcast %54 : vector<24x1xf32> to vector<24x24xf32>
    %56 = arith.mulf %51, %55 : vector<24x24xf32>
    %57 = arith.truncf %56 : vector<24x24xf32> to vector<24x24xbf16>
    %cst_15 = arith.constant dense<0.000000e+00> : vector<24x8xf32>
    %58 = tpu.matmul %57, %42, %cst_15 {dimension_numbers = #tpu.dot_dimension_numbers<[1], [0], [0], [1], [0, 0, 1, 1], [], []>} : vector<24x24xbf16>, vector<24x8xbf16>, vector<24x8xf32> -> vector<24x8xf32>
    %59 = vector.extract_strided_slice %1 {offsets = [0, 24], sizes = [24, 8], strides = [1, 1]} : vector<24x192xbf16> to vector<24x8xbf16>
    %60 = vector.extract_strided_slice %1 {offsets = [0, 88], sizes = [24, 8], strides = [1, 1]} : vector<24x192xbf16> to vector<24x8xbf16>
    %61 = vector.extract_strided_slice %1 {offsets = [0, 152], sizes = [24, 8], strides = [1, 1]} : vector<24x192xbf16> to vector<24x8xbf16>
    %62 = tpu.transpose %60, [1, 0] : vector<24x8xbf16> -> vector<8x24xbf16>
    %cst_16 = arith.constant dense<0.000000e+00> : vector<24x24xf32>
    %63 = tpu.matmul %59, %62, %cst_16 {dimension_numbers = #tpu.dot_dimension_numbers<[1], [0], [0], [1], [0, 0, 1, 1], [], []>} : vector<24x8xbf16>, vector<8x24xbf16>, vector<24x24xf32> -> vector<24x24xf32>
    %cst_17 = arith.constant 0.353553385 : f32
    %64 = vector.broadcast %cst_17 : f32 to vector<24x24xf32>
    %65 = arith.mulf %63, %64 : vector<24x24xf32>
    %cst_18 = arith.constant dense<0xFF800000> : vector<24xf32>
    %66 = vector.multi_reduction <maximumf>, %65, %cst_18 [1] : vector<24x24xf32> to vector<24xf32>
    %67 = vector.shape_cast %66 : vector<24xf32> to vector<24x1xf32>
    %68 = vector.broadcast %67 : vector<24x1xf32> to vector<24x24xf32>
    %69 = arith.subf %65, %68 : vector<24x24xf32>
    %70 = math.exp %69 : vector<24x24xf32>
    %cst_19 = arith.constant dense<0.000000e+00> : vector<24xf32>
    %71 = vector.multi_reduction <add>, %70, %cst_19 [1] : vector<24x24xf32> to vector<24xf32>
    %72 = vector.shape_cast %71 : vector<24xf32> to vector<24x1xf32>
    %73 = tpu.reciprocal %72 {approx = true} : vector<24x1xf32> -> vector<24x1xf32>
    %74 = vector.broadcast %73 : vector<24x1xf32> to vector<24x24xf32>
    %75 = arith.mulf %70, %74 : vector<24x24xf32>
    %76 = arith.truncf %75 : vector<24x24xf32> to vector<24x24xbf16>
    %cst_20 = arith.constant dense<0.000000e+00> : vector<24x8xf32>
    %77 = tpu.matmul %76, %61, %cst_20 {dimension_numbers = #tpu.dot_dimension_numbers<[1], [0], [0], [1], [0, 0, 1, 1], [], []>} : vector<24x24xbf16>, vector<24x8xbf16>, vector<24x8xf32> -> vector<24x8xf32>
    %78 = vector.extract_strided_slice %1 {offsets = [0, 32], sizes = [24, 8], strides = [1, 1]} : vector<24x192xbf16> to vector<24x8xbf16>
    %79 = vector.extract_strided_slice %1 {offsets = [0, 96], sizes = [24, 8], strides = [1, 1]} : vector<24x192xbf16> to vector<24x8xbf16>
    %80 = vector.extract_strided_slice %1 {offsets = [0, 160], sizes = [24, 8], strides = [1, 1]} : vector<24x192xbf16> to vector<24x8xbf16>
    %81 = tpu.transpose %79, [1, 0] : vector<24x8xbf16> -> vector<8x24xbf16>
    %cst_21 = arith.constant dense<0.000000e+00> : vector<24x24xf32>
    %82 = tpu.matmul %78, %81, %cst_21 {dimension_numbers = #tpu.dot_dimension_numbers<[1], [0], [0], [1], [0, 0, 1, 1], [], []>} : vector<24x8xbf16>, vector<8x24xbf16>, vector<24x24xf32> -> vector<24x24xf32>
    %cst_22 = arith.constant 0.353553385 : f32
    %83 = vector.broadcast %cst_22 : f32 to vector<24x24xf32>
    %84 = arith.mulf %82, %83 : vector<24x24xf32>
    %cst_23 = arith.constant dense<0xFF800000> : vector<24xf32>
    %85 = vector.multi_reduction <maximumf>, %84, %cst_23 [1] : vector<24x24xf32> to vector<24xf32>
    %86 = vector.shape_cast %85 : vector<24xf32> to vector<24x1xf32>
    %87 = vector.broadcast %86 : vector<24x1xf32> to vector<24x24xf32>
    %88 = arith.subf %84, %87 : vector<24x24xf32>
    %89 = math.exp %88 : vector<24x24xf32>
    %cst_24 = arith.constant dense<0.000000e+00> : vector<24xf32>
    %90 = vector.multi_reduction <add>, %89, %cst_24 [1] : vector<24x24xf32> to vector<24xf32>
    %91 = vector.shape_cast %90 : vector<24xf32> to vector<24x1xf32>
    %92 = tpu.reciprocal %91 {approx = true} : vector<24x1xf32> -> vector<24x1xf32>
    %93 = vector.broadcast %92 : vector<24x1xf32> to vector<24x24xf32>
    %94 = arith.mulf %89, %93 : vector<24x24xf32>
    %95 = arith.truncf %94 : vector<24x24xf32> to vector<24x24xbf16>
    %cst_25 = arith.constant dense<0.000000e+00> : vector<24x8xf32>
    %96 = tpu.matmul %95, %80, %cst_25 {dimension_numbers = #tpu.dot_dimension_numbers<[1], [0], [0], [1], [0, 0, 1, 1], [], []>} : vector<24x24xbf16>, vector<24x8xbf16>, vector<24x8xf32> -> vector<24x8xf32>
    %97 = vector.extract_strided_slice %1 {offsets = [0, 40], sizes = [24, 8], strides = [1, 1]} : vector<24x192xbf16> to vector<24x8xbf16>
    %98 = vector.extract_strided_slice %1 {offsets = [0, 104], sizes = [24, 8], strides = [1, 1]} : vector<24x192xbf16> to vector<24x8xbf16>
    %99 = vector.extract_strided_slice %1 {offsets = [0, 168], sizes = [24, 8], strides = [1, 1]} : vector<24x192xbf16> to vector<24x8xbf16>
    %100 = tpu.transpose %98, [1, 0] : vector<24x8xbf16> -> vector<8x24xbf16>
    %cst_26 = arith.constant dense<0.000000e+00> : vector<24x24xf32>
    %101 = tpu.matmul %97, %100, %cst_26 {dimension_numbers = #tpu.dot_dimension_numbers<[1], [0], [0], [1], [0, 0, 1, 1], [], []>} : vector<24x8xbf16>, vector<8x24xbf16>, vector<24x24xf32> -> vector<24x24xf32>
    %cst_27 = arith.constant 0.353553385 : f32
    %102 = vector.broadcast %cst_27 : f32 to vector<24x24xf32>
    %103 = arith.mulf %101, %102 : vector<24x24xf32>
    %cst_28 = arith.constant dense<0xFF800000> : vector<24xf32>
    %104 = vector.multi_reduction <maximumf>, %103, %cst_28 [1] : vector<24x24xf32> to vector<24xf32>
    %105 = vector.shape_cast %104 : vector<24xf32> to vector<24x1xf32>
    %106 = vector.broadcast %105 : vector<24x1xf32> to vector<24x24xf32>
    %107 = arith.subf %103, %106 : vector<24x24xf32>
    %108 = math.exp %107 : vector<24x24xf32>
    %cst_29 = arith.constant dense<0.000000e+00> : vector<24xf32>
    %109 = vector.multi_reduction <add>, %108, %cst_29 [1] : vector<24x24xf32> to vector<24xf32>
    %110 = vector.shape_cast %109 : vector<24xf32> to vector<24x1xf32>
    %111 = tpu.reciprocal %110 {approx = true} : vector<24x1xf32> -> vector<24x1xf32>
    %112 = vector.broadcast %111 : vector<24x1xf32> to vector<24x24xf32>
    %113 = arith.mulf %108, %112 : vector<24x24xf32>
    %114 = arith.truncf %113 : vector<24x24xf32> to vector<24x24xbf16>
    %cst_30 = arith.constant dense<0.000000e+00> : vector<24x8xf32>
    %115 = tpu.matmul %114, %99, %cst_30 {dimension_numbers = #tpu.dot_dimension_numbers<[1], [0], [0], [1], [0, 0, 1, 1], [], []>} : vector<24x24xbf16>, vector<24x8xbf16>, vector<24x8xf32> -> vector<24x8xf32>
    %116 = vector.extract_strided_slice %1 {offsets = [0, 48], sizes = [24, 8], strides = [1, 1]} : vector<24x192xbf16> to vector<24x8xbf16>
    %117 = vector.extract_strided_slice %1 {offsets = [0, 112], sizes = [24, 8], strides = [1, 1]} : vector<24x192xbf16> to vector<24x8xbf16>
    %118 = vector.extract_strided_slice %1 {offsets = [0, 176], sizes = [24, 8], strides = [1, 1]} : vector<24x192xbf16> to vector<24x8xbf16>
    %119 = tpu.transpose %117, [1, 0] : vector<24x8xbf16> -> vector<8x24xbf16>
    %cst_31 = arith.constant dense<0.000000e+00> : vector<24x24xf32>
    %120 = tpu.matmul %116, %119, %cst_31 {dimension_numbers = #tpu.dot_dimension_numbers<[1], [0], [0], [1], [0, 0, 1, 1], [], []>} : vector<24x8xbf16>, vector<8x24xbf16>, vector<24x24xf32> -> vector<24x24xf32>
    %cst_32 = arith.constant 0.353553385 : f32
    %121 = vector.broadcast %cst_32 : f32 to vector<24x24xf32>
    %122 = arith.mulf %120, %121 : vector<24x24xf32>
    %cst_33 = arith.constant dense<0xFF800000> : vector<24xf32>
    %123 = vector.multi_reduction <maximumf>, %122, %cst_33 [1] : vector<24x24xf32> to vector<24xf32>
    %124 = vector.shape_cast %123 : vector<24xf32> to vector<24x1xf32>
    %125 = vector.broadcast %124 : vector<24x1xf32> to vector<24x24xf32>
    %126 = arith.subf %122, %125 : vector<24x24xf32>
    %127 = math.exp %126 : vector<24x24xf32>
    %cst_34 = arith.constant dense<0.000000e+00> : vector<24xf32>
    %128 = vector.multi_reduction <add>, %127, %cst_34 [1] : vector<24x24xf32> to vector<24xf32>
    %129 = vector.shape_cast %128 : vector<24xf32> to vector<24x1xf32>
    %130 = tpu.reciprocal %129 {approx = true} : vector<24x1xf32> -> vector<24x1xf32>
    %131 = vector.broadcast %130 : vector<24x1xf32> to vector<24x24xf32>
    %132 = arith.mulf %127, %131 : vector<24x24xf32>
    %133 = arith.truncf %132 : vector<24x24xf32> to vector<24x24xbf16>
    %cst_35 = arith.constant dense<0.000000e+00> : vector<24x8xf32>
    %134 = tpu.matmul %133, %118, %cst_35 {dimension_numbers = #tpu.dot_dimension_numbers<[1], [0], [0], [1], [0, 0, 1, 1], [], []>} : vector<24x24xbf16>, vector<24x8xbf16>, vector<24x8xf32> -> vector<24x8xf32>
    %135 = vector.extract_strided_slice %1 {offsets = [0, 56], sizes = [24, 8], strides = [1, 1]} : vector<24x192xbf16> to vector<24x8xbf16>
    %136 = vector.extract_strided_slice %1 {offsets = [0, 120], sizes = [24, 8], strides = [1, 1]} : vector<24x192xbf16> to vector<24x8xbf16>
    %137 = vector.extract_strided_slice %1 {offsets = [0, 184], sizes = [24, 8], strides = [1, 1]} : vector<24x192xbf16> to vector<24x8xbf16>
    %138 = tpu.transpose %136, [1, 0] : vector<24x8xbf16> -> vector<8x24xbf16>
    %cst_36 = arith.constant dense<0.000000e+00> : vector<24x24xf32>
    %139 = tpu.matmul %135, %138, %cst_36 {dimension_numbers = #tpu.dot_dimension_numbers<[1], [0], [0], [1], [0, 0, 1, 1], [], []>} : vector<24x8xbf16>, vector<8x24xbf16>, vector<24x24xf32> -> vector<24x24xf32>
    %cst_37 = arith.constant 0.353553385 : f32
    %140 = vector.broadcast %cst_37 : f32 to vector<24x24xf32>
    %141 = arith.mulf %139, %140 : vector<24x24xf32>
    %cst_38 = arith.constant dense<0xFF800000> : vector<24xf32>
    %142 = vector.multi_reduction <maximumf>, %141, %cst_38 [1] : vector<24x24xf32> to vector<24xf32>
    %143 = vector.shape_cast %142 : vector<24xf32> to vector<24x1xf32>
    %144 = vector.broadcast %143 : vector<24x1xf32> to vector<24x24xf32>
    %145 = arith.subf %141, %144 : vector<24x24xf32>
    %146 = math.exp %145 : vector<24x24xf32>
    %cst_39 = arith.constant dense<0.000000e+00> : vector<24xf32>
    %147 = vector.multi_reduction <add>, %146, %cst_39 [1] : vector<24x24xf32> to vector<24xf32>
    %148 = vector.shape_cast %147 : vector<24xf32> to vector<24x1xf32>
    %149 = tpu.reciprocal %148 {approx = true} : vector<24x1xf32> -> vector<24x1xf32>
    %150 = vector.broadcast %149 : vector<24x1xf32> to vector<24x24xf32>
    %151 = arith.mulf %146, %150 : vector<24x24xf32>
    %152 = arith.truncf %151 : vector<24x24xf32> to vector<24x24xbf16>
    %cst_40 = arith.constant dense<0.000000e+00> : vector<24x8xf32>
    %153 = tpu.matmul %152, %137, %cst_40 {dimension_numbers = #tpu.dot_dimension_numbers<[1], [0], [0], [1], [0, 0, 1, 1], [], []>} : vector<24x24xbf16>, vector<24x8xbf16>, vector<24x8xf32> -> vector<24x8xf32>
    %154 = tpu.concatenate %20, %39, %58, %77, %96, %115, %134, %153 in 1 : vector<24x8xf32>, vector<24x8xf32>, vector<24x8xf32>, vector<24x8xf32>, vector<24x8xf32>, vector<24x8xf32>, vector<24x8xf32>, vector<24x8xf32> -> vector<24x64xf32>
    %155 = arith.truncf %154 : vector<24x64xf32> to vector<24x64xbf16>
    %c0_41 = arith.constant 0 : index
    %c0_42 = arith.constant 0 : index
    %c0_43 = arith.constant 0 : index
    %156 = vector.load %arg2[%c0_41, %c0_42, %c0_43] : memref<1x24x64xbf16, #tpu.memory_space<vmem>>, vector<1x24x64xbf16>
    %157 = vector.shape_cast %156 : vector<1x24x64xbf16> to vector<24x64xbf16>
    %158 = vector.shape_cast %155 : vector<24x64xbf16> to vector<1x24x64xbf16>
    tpu.vector_store %arg2[%c0_41, %c0_42, %c0_43], %158 {strides = array<i32>} : memref<1x24x64xbf16, #tpu.memory_space<vmem>>, vector<1x24x64xbf16>,
    return
  }
  func.func @transform_0(%arg0: i32) -> (i32, i32, i32) {
    %c0_i32 = arith.constant 0 : i32
    %c0_i32_0 = arith.constant 0 : i32
    %c0_i32_1 = arith.constant 0 : i32
    return %arg0, %c0_i32, %c0_i32_0 : i32, i32, i32
  }
  func.func @transform_1(%arg0: i32) -> (i32, i32, i32) {
    %c0_i32 = arith.constant 0 : i32
    %c0_i32_0 = arith.constant 0 : i32
    %c0_i32_1 = arith.constant 0 : i32
    return %arg0, %c0_i32, %c0_i32_0 : i32, i32, i32
  }
}

module attributes {stable_mosaic.version = 11 : i64} {
  func.func @kernel(%arg0: i32, %arg1: i32, %arg2: i32, %arg3: memref<48x128xbf16, #tpu.memory_space<vmem>>, %arg4: memref<128x128xbf16, #tpu.memory_space<vmem>>, %arg5: memref<1x128xf32, #tpu.memory_space<vmem>>, %arg6: memref<48x128xbf16, #tpu.memory_space<vmem>>, %arg7: memref<48x128xf32, #tpu.memory_space<vmem>>) attributes {dimension_semantics = [#tpu.dimension_semantics<parallel>, #tpu.dimension_semantics<parallel>, #tpu.dimension_semantics<arbitrary>], iteration_bounds = array<i64: 1, 5, 1>, scalar_prefetch = 0 : i64, scratch_operands = 1 : i64, tpu.core_type = #tpu.core_type<tc>, window_params = [{transform_indices = @transform_0, window_bounds = array<i64: 48, 128>}, {transform_indices = @transform_1, window_bounds = array<i64: 128, 128>}, {transform_indices = @transform_2, window_bounds = array<i64: 1, 128>}, {transform_indices = @transform_3, window_bounds = array<i64: 48, 128>}]} {
    %c0_i32 = arith.constant 0 : i32
    %0 = arith.cmpi eq, %arg2, %c0_i32 : i32
    %1 = arith.extui %0 : i1 to i32
    %c0_i32_0 = arith.constant 0 : i32
    %2 = arith.cmpi ne, %1, %c0_i32_0 : i32
    scf.if %2 {
      %cst_10 = arith.constant 0.000000e+00 : f32
      %12 = vector.broadcast %cst_10 : f32 to vector<48x128xf32>
      %c0_11 = arith.constant 0 : index
      %c0_12 = arith.constant 0 : index
      %13 = vector.load %arg7[%c0_11, %c0_12] : memref<48x128xf32, #tpu.memory_space<vmem>>, vector<48x128xf32>
      tpu.vector_store %arg7[%c0_11, %c0_12], %12 {strides = array<i32>} : memref<48x128xf32, #tpu.memory_space<vmem>>, vector<48x128xf32>,
    } else {
    }
    %c0 = arith.constant 0 : index
    %c0_1 = arith.constant 0 : index
    %3 = vector.load %arg7[%c0, %c0_1] : memref<48x128xf32, #tpu.memory_space<vmem>>, vector<48x128xf32>
    %c0_2 = arith.constant 0 : index
    %c0_3 = arith.constant 0 : index
    %4 = vector.load %arg3[%c0_2, %c0_3] : memref<48x128xbf16, #tpu.memory_space<vmem>>, vector<48x128xbf16>
    %c0_4 = arith.constant 0 : index
    %c0_5 = arith.constant 0 : index
    %5 = vector.load %arg4[%c0_4, %c0_5] : memref<128x128xbf16, #tpu.memory_space<vmem>>, vector<128x128xbf16>
    %cst = arith.constant dense<0.000000e+00> : vector<48x128xf32>
    %6 = tpu.matmul %4, %5, %cst {dimension_numbers = #tpu.dot_dimension_numbers<[1], [0], [0], [1], [0, 0, 1, 1], [], []>} : vector<48x128xbf16>, vector<128x128xbf16>, vector<48x128xf32> -> vector<48x128xf32>
    %7 = arith.addf %3, %6 : vector<48x128xf32>
    %c0_6 = arith.constant 0 : index
    %c0_7 = arith.constant 0 : index
    %8 = vector.load %arg7[%c0_6, %c0_7] : memref<48x128xf32, #tpu.memory_space<vmem>>, vector<48x128xf32>
    tpu.vector_store %arg7[%c0_6, %c0_7], %7 {strides = array<i32>} : memref<48x128xf32, #tpu.memory_space<vmem>>, vector<48x128xf32>,
    %c0_i32_8 = arith.constant 0 : i32
    %9 = arith.cmpi eq, %arg2, %c0_i32_8 : i32
    %10 = arith.extui %9 : i1 to i32
    %c0_i32_9 = arith.constant 0 : i32
    %11 = arith.cmpi ne, %10, %c0_i32_9 : i32
    scf.if %11 {
      %c0_10 = arith.constant 0 : index
      %c0_11 = arith.constant 0 : index
      %12 = vector.load %arg7[%c0_10, %c0_11] : memref<48x128xf32, #tpu.memory_space<vmem>>, vector<48x128xf32>
      %c0_12 = arith.constant 0 : index
      %c0_13 = arith.constant 0 : index
      %13 = vector.load %arg5[%c0_12, %c0_13] : memref<1x128xf32, #tpu.memory_space<vmem>>, vector<1x128xf32>
      %14 = vector.broadcast %13 : vector<1x128xf32> to vector<48x128xf32>
      %15 = arith.addf %12, %14 : vector<48x128xf32>
      %cst_14 = arith.constant 0.000000e+00 : f32
      %16 = vector.broadcast %cst_14 : f32 to vector<48x128xf32>
      %17 = arith.maximumf %15, %16 : vector<48x128xf32>
      %18 = arith.truncf %17 : vector<48x128xf32> to vector<48x128xbf16>
      %c0_15 = arith.constant 0 : index
      %c0_16 = arith.constant 0 : index
      %19 = vector.load %arg6[%c0_15, %c0_16] : memref<48x128xbf16, #tpu.memory_space<vmem>>, vector<48x128xbf16>
      tpu.vector_store %arg6[%c0_15, %c0_16], %18 {strides = array<i32>} : memref<48x128xbf16, #tpu.memory_space<vmem>>, vector<48x128xbf16>,
    } else {
    }
    return
  }
  func.func @transform_0(%arg0: i32, %arg1: i32, %arg2: i32) -> (i32, i32) {
    %c0_i32 = arith.constant 0 : i32
    return %arg0, %arg2 : i32, i32
  }
  func.func @transform_1(%arg0: i32, %arg1: i32, %arg2: i32) -> (i32, i32) {
    %c0_i32 = arith.constant 0 : i32
    return %arg2, %arg1 : i32, i32
  }
  func.func @transform_2(%arg0: i32, %arg1: i32, %arg2: i32) -> (i32, i32) {
    %c0_i32 = arith.constant 0 : i32
    %c0_i32_0 = arith.constant 0 : i32
    return %c0_i32, %arg1 : i32, i32
  }
  func.func @transform_3(%arg0: i32, %arg1: i32, %arg2: i32) -> (i32, i32) {
    %c0_i32 = arith.constant 0 : i32
    return %arg0, %arg1 : i32, i32
  }
}

module attributes {stable_mosaic.version = 11 : i64} {
  func.func @_mm_res_ln_kernel(%arg0: i32, %arg1: i32, %arg2: memref<16x640xbf16, #tpu.memory_space<vmem>>, %arg3: memref<640x128xbf16, #tpu.memory_space<vmem>>, %arg4: memref<1x128xf32, #tpu.memory_space<vmem>>, %arg5: memref<16x128xbf16, #tpu.memory_space<vmem>>, %arg6: memref<1x128xf32, #tpu.memory_space<vmem>>, %arg7: memref<1x128xf32, #tpu.memory_space<vmem>>, %arg8: memref<16x128xbf16, #tpu.memory_space<vmem>>, %arg9: memref<16x128xf32, #tpu.memory_space<vmem>>) attributes {dimension_semantics = [#tpu.dimension_semantics<parallel>, #tpu.dimension_semantics<arbitrary>], iteration_bounds = array<i64: 3, 1>, scalar_prefetch = 0 : i64, scratch_operands = 1 : i64, tpu.core_type = #tpu.core_type<tc>, window_params = [{transform_indices = @transform_0, window_bounds = array<i64: 16, 640>}, {transform_indices = @transform_1, window_bounds = array<i64: 640, 128>}, {pipeline_mode = #tpu.pipeline_mode<synchronous>, transform_indices = @transform_2, window_bounds = array<i64: 1, 128>}, {transform_indices = @transform_3, window_bounds = array<i64: 16, 128>}, {pipeline_mode = #tpu.pipeline_mode<synchronous>, transform_indices = @transform_4, window_bounds = array<i64: 1, 128>}, {pipeline_mode = #tpu.pipeline_mode<synchronous>, transform_indices = @transform_5, window_bounds = array<i64: 1, 128>}, {transform_indices = @transform_6, window_bounds = array<i64: 16, 128>}]} {
    %c0_i32 = arith.constant 0 : i32
    %0 = arith.cmpi eq, %arg1, %c0_i32 : i32
    %1 = arith.extui %0 : i1 to i32
    %c0_i32_0 = arith.constant 0 : i32
    %2 = arith.cmpi ne, %1, %c0_i32_0 : i32
    scf.if %2 {
      %cst_10 = arith.constant 0.000000e+00 : f32
      %12 = vector.broadcast %cst_10 : f32 to vector<16x128xf32>
      %c0_11 = arith.constant 0 : index
      %c0_12 = arith.constant 0 : index
      %13 = vector.load %arg9[%c0_11, %c0_12] : memref<16x128xf32, #tpu.memory_space<vmem>>, vector<16x128xf32>
      tpu.vector_store %arg9[%c0_11, %c0_12], %12 {strides = array<i32>} : memref<16x128xf32, #tpu.memory_space<vmem>>, vector<16x128xf32>,
    } else {
    }
    %c0 = arith.constant 0 : index
    %c0_1 = arith.constant 0 : index
    %3 = vector.load %arg9[%c0, %c0_1] : memref<16x128xf32, #tpu.memory_space<vmem>>, vector<16x128xf32>
    %c0_2 = arith.constant 0 : index
    %c0_3 = arith.constant 0 : index
    %4 = vector.load %arg2[%c0_2, %c0_3] : memref<16x640xbf16, #tpu.memory_space<vmem>>, vector<16x640xbf16>
    %c0_4 = arith.constant 0 : index
    %c0_5 = arith.constant 0 : index
    %5 = vector.load %arg3[%c0_4, %c0_5] : memref<640x128xbf16, #tpu.memory_space<vmem>>, vector<640x128xbf16>
    %cst = arith.constant dense<0.000000e+00> : vector<16x128xf32>
    %6 = tpu.matmul %4, %5, %cst {dimension_numbers = #tpu.dot_dimension_numbers<[1], [0], [0], [1], [0, 0, 1, 1], [], []>} : vector<16x640xbf16>, vector<640x128xbf16>, vector<16x128xf32> -> vector<16x128xf32>
    %7 = arith.addf %3, %6 : vector<16x128xf32>
    %c0_6 = arith.constant 0 : index
    %c0_7 = arith.constant 0 : index
    %8 = vector.load %arg9[%c0_6, %c0_7] : memref<16x128xf32, #tpu.memory_space<vmem>>, vector<16x128xf32>
    tpu.vector_store %arg9[%c0_6, %c0_7], %7 {strides = array<i32>} : memref<16x128xf32, #tpu.memory_space<vmem>>, vector<16x128xf32>,
    %c0_i32_8 = arith.constant 0 : i32
    %9 = arith.cmpi eq, %arg1, %c0_i32_8 : i32
    %10 = arith.extui %9 : i1 to i32
    %c0_i32_9 = arith.constant 0 : i32
    %11 = arith.cmpi ne, %10, %c0_i32_9 : i32
    scf.if %11 {
      %c0_10 = arith.constant 0 : index
      %c0_11 = arith.constant 0 : index
      %12 = vector.load %arg9[%c0_10, %c0_11] : memref<16x128xf32, #tpu.memory_space<vmem>>, vector<16x128xf32>
      %c0_12 = arith.constant 0 : index
      %c0_13 = arith.constant 0 : index
      %13 = vector.load %arg4[%c0_12, %c0_13] : memref<1x128xf32, #tpu.memory_space<vmem>>, vector<1x128xf32>
      %14 = vector.broadcast %13 : vector<1x128xf32> to vector<16x128xf32>
      %15 = arith.addf %12, %14 : vector<16x128xf32>
      %c0_14 = arith.constant 0 : index
      %c0_15 = arith.constant 0 : index
      %16 = vector.load %arg5[%c0_14, %c0_15] : memref<16x128xbf16, #tpu.memory_space<vmem>>, vector<16x128xbf16>
      %17 = arith.extf %16 : vector<16x128xbf16> to vector<16x128xf32>
      %18 = arith.addf %15, %17 : vector<16x128xf32>
      %cst_16 = arith.constant dense<0.000000e+00> : vector<16xf32>
      %19 = vector.multi_reduction <add>, %18, %cst_16 [1] : vector<16x128xf32> to vector<16xf32>
      %20 = vector.shape_cast %19 : vector<16xf32> to vector<16x1xf32>
      %cst_17 = arith.constant 1.562500e-02 : f32
      %21 = vector.broadcast %cst_17 : f32 to vector<16x1xf32>
      %22 = arith.mulf %20, %21 : vector<16x1xf32>
      %23 = arith.mulf %18, %18 : vector<16x128xf32>
      %cst_18 = arith.constant dense<0.000000e+00> : vector<16xf32>
      %24 = vector.multi_reduction <add>, %23, %cst_18 [1] : vector<16x128xf32> to vector<16xf32>
      %25 = vector.shape_cast %24 : vector<16xf32> to vector<16x1xf32>
      %cst_19 = arith.constant 1.562500e-02 : f32
      %26 = vector.broadcast %cst_19 : f32 to vector<16x1xf32>
      %27 = arith.mulf %25, %26 : vector<16x1xf32>
      %28 = arith.mulf %22, %22 : vector<16x1xf32>
      %29 = arith.subf %27, %28 : vector<16x1xf32>
      %cst_20 = arith.constant 0.000000e+00 : f32
      %30 = vector.broadcast %cst_20 : f32 to vector<16x1xf32>
      %31 = arith.maximumf %29, %30 : vector<16x1xf32>
      %32 = vector.broadcast %22 : vector<16x1xf32> to vector<16x128xf32>
      %33 = arith.subf %18, %32 : vector<16x128xf32>
      %cst_21 = arith.constant 9.99999974E-6 : f32
      %34 = vector.broadcast %cst_21 : f32 to vector<16x1xf32>
      %35 = arith.addf %31, %34 : vector<16x1xf32>
      %36 = math.rsqrt %35 : vector<16x1xf32>
      %37 = vector.broadcast %36 : vector<16x1xf32> to vector<16x128xf32>
      %38 = arith.mulf %33, %37 : vector<16x128xf32>
      %c0_22 = arith.constant 0 : index
      %c0_23 = arith.constant 0 : index
      %39 = vector.load %arg6[%c0_22, %c0_23] : memref<1x128xf32, #tpu.memory_space<vmem>>, vector<1x128xf32>
      %40 = vector.broadcast %39 : vector<1x128xf32> to vector<16x128xf32>
      %41 = arith.mulf %38, %40 : vector<16x128xf32>
      %c0_24 = arith.constant 0 : index
      %c0_25 = arith.constant 0 : index
      %42 = vector.load %arg7[%c0_24, %c0_25] : memref<1x128xf32, #tpu.memory_space<vmem>>, vector<1x128xf32>
      %43 = vector.broadcast %42 : vector<1x128xf32> to vector<16x128xf32>
      %44 = arith.addf %41, %43 : vector<16x128xf32>
      %45 = arith.truncf %44 : vector<16x128xf32> to vector<16x128xbf16>
      %c0_26 = arith.constant 0 : index
      %c0_27 = arith.constant 0 : index
      %46 = vector.load %arg8[%c0_26, %c0_27] : memref<16x128xbf16, #tpu.memory_space<vmem>>, vector<16x128xbf16>
      tpu.vector_store %arg8[%c0_26, %c0_27], %45 {strides = array<i32>} : memref<16x128xbf16, #tpu.memory_space<vmem>>, vector<16x128xbf16>,
    } else {
    }
    return
  }
  func.func @transform_0(%arg0: i32, %arg1: i32) -> (i32, i32) {
    %c0_i32 = arith.constant 0 : i32
    return %arg0, %arg1 : i32, i32
  }
  func.func @transform_1(%arg0: i32, %arg1: i32) -> (i32, i32) {
    %c0_i32 = arith.constant 0 : i32
    %c0_i32_0 = arith.constant 0 : i32
    return %arg1, %c0_i32 : i32, i32
  }
  func.func @transform_2(%arg0: i32, %arg1: i32) -> (i32, i32) {
    %c0_i32 = arith.constant 0 : i32
    %c0_i32_0 = arith.constant 0 : i32
    %c0_i32_1 = arith.constant 0 : i32
    return %c0_i32, %c0_i32_0 : i32, i32
  }
  func.func @transform_3(%arg0: i32, %arg1: i32) -> (i32, i32) {
    %c0_i32 = arith.constant 0 : i32
    %c0_i32_0 = arith.constant 0 : i32
    return %arg0, %c0_i32 : i32, i32
  }
  func.func @transform_4(%arg0: i32, %arg1: i32) -> (i32, i32) {
    %c0_i32 = arith.constant 0 : i32
    %c0_i32_0 = arith.constant 0 : i32
    %c0_i32_1 = arith.constant 0 : i32
    return %c0_i32, %c0_i32_0 : i32, i32
  }
  func.func @transform_5(%arg0: i32, %arg1: i32) -> (i32, i32) {
    %c0_i32 = arith.constant 0 : i32
    %c0_i32_0 = arith.constant 0 : i32
    %c0_i32_1 = arith.constant 0 : i32
    return %c0_i32, %c0_i32_0 : i32, i32
  }
  func.func @transform_6(%arg0: i32, %arg1: i32) -> (i32, i32) {
    %c0_i32 = arith.constant 0 : i32
    %c0_i32_0 = arith.constant 0 : i32
    return %arg0, %c0_i32 : i32, i32
  }
}

module attributes {stable_mosaic.version = 11 : i64} {
  func.func @kernel(%arg0: i32, %arg1: i32, %arg2: i32, %arg3: memref<16x128xbf16, #tpu.memory_space<vmem>>, %arg4: memref<128x128xbf16, #tpu.memory_space<vmem>>, %arg5: memref<1x128xf32, #tpu.memory_space<vmem>>, %arg6: memref<16x128xbf16, #tpu.memory_space<vmem>>, %arg7: memref<16x128xf32, #tpu.memory_space<vmem>>) attributes {dimension_semantics = [#tpu.dimension_semantics<parallel>, #tpu.dimension_semantics<parallel>, #tpu.dimension_semantics<arbitrary>], iteration_bounds = array<i64: 3, 1, 1>, scalar_prefetch = 0 : i64, scratch_operands = 1 : i64, tpu.core_type = #tpu.core_type<tc>, window_params = [{transform_indices = @transform_0, window_bounds = array<i64: 16, 128>}, {transform_indices = @transform_1, window_bounds = array<i64: 128, 128>}, {transform_indices = @transform_2, window_bounds = array<i64: 1, 128>}, {transform_indices = @transform_3, window_bounds = array<i64: 16, 128>}]} {
    %c0_i32 = arith.constant 0 : i32
    %0 = arith.cmpi eq, %arg2, %c0_i32 : i32
    %1 = arith.extui %0 : i1 to i32
    %c0_i32_0 = arith.constant 0 : i32
    %2 = arith.cmpi ne, %1, %c0_i32_0 : i32
    scf.if %2 {
      %cst_10 = arith.constant 0.000000e+00 : f32
      %12 = vector.broadcast %cst_10 : f32 to vector<16x128xf32>
      %c0_11 = arith.constant 0 : index
      %c0_12 = arith.constant 0 : index
      %13 = vector.load %arg7[%c0_11, %c0_12] : memref<16x128xf32, #tpu.memory_space<vmem>>, vector<16x128xf32>
      tpu.vector_store %arg7[%c0_11, %c0_12], %12 {strides = array<i32>} : memref<16x128xf32, #tpu.memory_space<vmem>>, vector<16x128xf32>,
    } else {
    }
    %c0 = arith.constant 0 : index
    %c0_1 = arith.constant 0 : index
    %3 = vector.load %arg7[%c0, %c0_1] : memref<16x128xf32, #tpu.memory_space<vmem>>, vector<16x128xf32>
    %c0_2 = arith.constant 0 : index
    %c0_3 = arith.constant 0 : index
    %4 = vector.load %arg3[%c0_2, %c0_3] : memref<16x128xbf16, #tpu.memory_space<vmem>>, vector<16x128xbf16>
    %c0_4 = arith.constant 0 : index
    %c0_5 = arith.constant 0 : index
    %5 = vector.load %arg4[%c0_4, %c0_5] : memref<128x128xbf16, #tpu.memory_space<vmem>>, vector<128x128xbf16>
    %cst = arith.constant dense<0.000000e+00> : vector<16x128xf32>
    %6 = tpu.matmul %4, %5, %cst {dimension_numbers = #tpu.dot_dimension_numbers<[1], [0], [0], [1], [0, 0, 1, 1], [], []>} : vector<16x128xbf16>, vector<128x128xbf16>, vector<16x128xf32> -> vector<16x128xf32>
    %7 = arith.addf %3, %6 : vector<16x128xf32>
    %c0_6 = arith.constant 0 : index
    %c0_7 = arith.constant 0 : index
    %8 = vector.load %arg7[%c0_6, %c0_7] : memref<16x128xf32, #tpu.memory_space<vmem>>, vector<16x128xf32>
    tpu.vector_store %arg7[%c0_6, %c0_7], %7 {strides = array<i32>} : memref<16x128xf32, #tpu.memory_space<vmem>>, vector<16x128xf32>,
    %c0_i32_8 = arith.constant 0 : i32
    %9 = arith.cmpi eq, %arg2, %c0_i32_8 : i32
    %10 = arith.extui %9 : i1 to i32
    %c0_i32_9 = arith.constant 0 : i32
    %11 = arith.cmpi ne, %10, %c0_i32_9 : i32
    scf.if %11 {
      %c0_10 = arith.constant 0 : index
      %c0_11 = arith.constant 0 : index
      %12 = vector.load %arg7[%c0_10, %c0_11] : memref<16x128xf32, #tpu.memory_space<vmem>>, vector<16x128xf32>
      %c0_12 = arith.constant 0 : index
      %c0_13 = arith.constant 0 : index
      %13 = vector.load %arg5[%c0_12, %c0_13] : memref<1x128xf32, #tpu.memory_space<vmem>>, vector<1x128xf32>
      %14 = vector.broadcast %13 : vector<1x128xf32> to vector<16x128xf32>
      %15 = arith.addf %12, %14 : vector<16x128xf32>
      %16 = arith.truncf %15 : vector<16x128xf32> to vector<16x128xbf16>
      %c0_14 = arith.constant 0 : index
      %c0_15 = arith.constant 0 : index
      %17 = vector.load %arg6[%c0_14, %c0_15] : memref<16x128xbf16, #tpu.memory_space<vmem>>, vector<16x128xbf16>
      tpu.vector_store %arg6[%c0_14, %c0_15], %16 {strides = array<i32>} : memref<16x128xbf16, #tpu.memory_space<vmem>>, vector<16x128xbf16>,
    } else {
    }
    return
  }
  func.func @transform_0(%arg0: i32, %arg1: i32, %arg2: i32) -> (i32, i32) {
    %c0_i32 = arith.constant 0 : i32
    return %arg0, %arg2 : i32, i32
  }
  func.func @transform_1(%arg0: i32, %arg1: i32, %arg2: i32) -> (i32, i32) {
    %c0_i32 = arith.constant 0 : i32
    return %arg2, %arg1 : i32, i32
  }
  func.func @transform_2(%arg0: i32, %arg1: i32, %arg2: i32) -> (i32, i32) {
    %c0_i32 = arith.constant 0 : i32
    %c0_i32_0 = arith.constant 0 : i32
    return %c0_i32, %arg1 : i32, i32
  }
  func.func @transform_3(%arg0: i32, %arg1: i32, %arg2: i32) -> (i32, i32) {
    %c0_i32 = arith.constant 0 : i32
    return %arg0, %arg1 : i32, i32
  }
}

module attributes {stable_mosaic.version = 11 : i64} {
  func.func @kernel(%arg0: i32, %arg1: i32, %arg2: i32, %arg3: memref<16x128xbf16, #tpu.memory_space<vmem>>, %arg4: memref<128x128xbf16, #tpu.memory_space<vmem>>, %arg5: memref<16x128xf32, #tpu.memory_space<vmem>>, %arg6: memref<16x128xf32, #tpu.memory_space<vmem>>) attributes {dimension_semantics = [#tpu.dimension_semantics<parallel>, #tpu.dimension_semantics<parallel>, #tpu.dimension_semantics<arbitrary>], iteration_bounds = array<i64: 3, 1, 1>, scalar_prefetch = 0 : i64, scratch_operands = 1 : i64, tpu.core_type = #tpu.core_type<tc>, window_params = [{transform_indices = @transform_0, window_bounds = array<i64: 16, 128>}, {transform_indices = @transform_1, window_bounds = array<i64: 128, 128>}, {transform_indices = @transform_2, window_bounds = array<i64: 16, 128>}]} {
    %c0_i32 = arith.constant 0 : i32
    %0 = arith.cmpi eq, %arg2, %c0_i32 : i32
    %1 = arith.extui %0 : i1 to i32
    %c0_i32_0 = arith.constant 0 : i32
    %2 = arith.cmpi ne, %1, %c0_i32_0 : i32
    scf.if %2 {
      %cst_10 = arith.constant 0.000000e+00 : f32
      %12 = vector.broadcast %cst_10 : f32 to vector<16x128xf32>
      %c0_11 = arith.constant 0 : index
      %c0_12 = arith.constant 0 : index
      %13 = vector.load %arg6[%c0_11, %c0_12] : memref<16x128xf32, #tpu.memory_space<vmem>>, vector<16x128xf32>
      tpu.vector_store %arg6[%c0_11, %c0_12], %12 {strides = array<i32>} : memref<16x128xf32, #tpu.memory_space<vmem>>, vector<16x128xf32>,
    } else {
    }
    %c0 = arith.constant 0 : index
    %c0_1 = arith.constant 0 : index
    %3 = vector.load %arg6[%c0, %c0_1] : memref<16x128xf32, #tpu.memory_space<vmem>>, vector<16x128xf32>
    %c0_2 = arith.constant 0 : index
    %c0_3 = arith.constant 0 : index
    %4 = vector.load %arg3[%c0_2, %c0_3] : memref<16x128xbf16, #tpu.memory_space<vmem>>, vector<16x128xbf16>
    %c0_4 = arith.constant 0 : index
    %c0_5 = arith.constant 0 : index
    %5 = vector.load %arg4[%c0_4, %c0_5] : memref<128x128xbf16, #tpu.memory_space<vmem>>, vector<128x128xbf16>
    %cst = arith.constant dense<0.000000e+00> : vector<16x128xf32>
    %6 = tpu.matmul %4, %5, %cst {dimension_numbers = #tpu.dot_dimension_numbers<[1], [0], [0], [1], [0, 0, 1, 1], [], []>} : vector<16x128xbf16>, vector<128x128xbf16>, vector<16x128xf32> -> vector<16x128xf32>
    %7 = arith.addf %3, %6 : vector<16x128xf32>
    %c0_6 = arith.constant 0 : index
    %c0_7 = arith.constant 0 : index
    %8 = vector.load %arg6[%c0_6, %c0_7] : memref<16x128xf32, #tpu.memory_space<vmem>>, vector<16x128xf32>
    tpu.vector_store %arg6[%c0_6, %c0_7], %7 {strides = array<i32>} : memref<16x128xf32, #tpu.memory_space<vmem>>, vector<16x128xf32>,
    %c0_i32_8 = arith.constant 0 : i32
    %9 = arith.cmpi eq, %arg2, %c0_i32_8 : i32
    %10 = arith.extui %9 : i1 to i32
    %c0_i32_9 = arith.constant 0 : i32
    %11 = arith.cmpi ne, %10, %c0_i32_9 : i32
    scf.if %11 {
      %c0_10 = arith.constant 0 : index
      %c0_11 = arith.constant 0 : index
      %12 = vector.load %arg6[%c0_10, %c0_11] : memref<16x128xf32, #tpu.memory_space<vmem>>, vector<16x128xf32>
      %c0_12 = arith.constant 0 : index
      %c0_13 = arith.constant 0 : index
      %13 = vector.load %arg5[%c0_12, %c0_13] : memref<16x128xf32, #tpu.memory_space<vmem>>, vector<16x128xf32>
      tpu.vector_store %arg5[%c0_12, %c0_13], %12 {strides = array<i32>} : memref<16x128xf32, #tpu.memory_space<vmem>>, vector<16x128xf32>,
    } else {
    }
    return
  }
  func.func @transform_0(%arg0: i32, %arg1: i32, %arg2: i32) -> (i32, i32) {
    %c0_i32 = arith.constant 0 : i32
    return %arg0, %arg2 : i32, i32
  }
  func.func @transform_1(%arg0: i32, %arg1: i32, %arg2: i32) -> (i32, i32) {
    %c0_i32 = arith.constant 0 : i32
    return %arg2, %arg1 : i32, i32
  }
  func.func @transform_2(%arg0: i32, %arg1: i32, %arg2: i32) -> (i32, i32) {
    %c0_i32 = arith.constant 0 : i32
    return %arg0, %arg1 : i32, i32
  }
}

module attributes {stable_mosaic.version = 11 : i64} {
  func.func @kernel(%arg0: i32, %arg1: i32, %arg2: i32, %arg3: memref<80x128xbf16, #tpu.memory_space<vmem>>, %arg4: memref<128x128xbf16, #tpu.memory_space<vmem>>, %arg5: memref<80x128xf32, #tpu.memory_space<vmem>>, %arg6: memref<80x128xf32, #tpu.memory_space<vmem>>) attributes {dimension_semantics = [#tpu.dimension_semantics<parallel>, #tpu.dimension_semantics<parallel>, #tpu.dimension_semantics<arbitrary>], iteration_bounds = array<i64: 2, 1, 1>, scalar_prefetch = 0 : i64, scratch_operands = 1 : i64, tpu.core_type = #tpu.core_type<tc>, window_params = [{transform_indices = @transform_0, window_bounds = array<i64: 80, 128>}, {transform_indices = @transform_1, window_bounds = array<i64: 128, 128>}, {transform_indices = @transform_2, window_bounds = array<i64: 80, 128>}]} {
    %c0_i32 = arith.constant 0 : i32
    %0 = arith.cmpi eq, %arg2, %c0_i32 : i32
    %1 = arith.extui %0 : i1 to i32
    %c0_i32_0 = arith.constant 0 : i32
    %2 = arith.cmpi ne, %1, %c0_i32_0 : i32
    scf.if %2 {
      %cst_10 = arith.constant 0.000000e+00 : f32
      %12 = vector.broadcast %cst_10 : f32 to vector<80x128xf32>
      %c0_11 = arith.constant 0 : index
      %c0_12 = arith.constant 0 : index
      %13 = vector.load %arg6[%c0_11, %c0_12] : memref<80x128xf32, #tpu.memory_space<vmem>>, vector<80x128xf32>
      tpu.vector_store %arg6[%c0_11, %c0_12], %12 {strides = array<i32>} : memref<80x128xf32, #tpu.memory_space<vmem>>, vector<80x128xf32>,
    } else {
    }
    %c0 = arith.constant 0 : index
    %c0_1 = arith.constant 0 : index
    %3 = vector.load %arg6[%c0, %c0_1] : memref<80x128xf32, #tpu.memory_space<vmem>>, vector<80x128xf32>
    %c0_2 = arith.constant 0 : index
    %c0_3 = arith.constant 0 : index
    %4 = vector.load %arg3[%c0_2, %c0_3] : memref<80x128xbf16, #tpu.memory_space<vmem>>, vector<80x128xbf16>
    %c0_4 = arith.constant 0 : index
    %c0_5 = arith.constant 0 : index
    %5 = vector.load %arg4[%c0_4, %c0_5] : memref<128x128xbf16, #tpu.memory_space<vmem>>, vector<128x128xbf16>
    %cst = arith.constant dense<0.000000e+00> : vector<80x128xf32>
    %6 = tpu.matmul %4, %5, %cst {dimension_numbers = #tpu.dot_dimension_numbers<[1], [0], [0], [1], [0, 0, 1, 1], [], []>} : vector<80x128xbf16>, vector<128x128xbf16>, vector<80x128xf32> -> vector<80x128xf32>
    %7 = arith.addf %3, %6 : vector<80x128xf32>
    %c0_6 = arith.constant 0 : index
    %c0_7 = arith.constant 0 : index
    %8 = vector.load %arg6[%c0_6, %c0_7] : memref<80x128xf32, #tpu.memory_space<vmem>>, vector<80x128xf32>
    tpu.vector_store %arg6[%c0_6, %c0_7], %7 {strides = array<i32>} : memref<80x128xf32, #tpu.memory_space<vmem>>, vector<80x128xf32>,
    %c0_i32_8 = arith.constant 0 : i32
    %9 = arith.cmpi eq, %arg2, %c0_i32_8 : i32
    %10 = arith.extui %9 : i1 to i32
    %c0_i32_9 = arith.constant 0 : i32
    %11 = arith.cmpi ne, %10, %c0_i32_9 : i32
    scf.if %11 {
      %c0_10 = arith.constant 0 : index
      %c0_11 = arith.constant 0 : index
      %12 = vector.load %arg6[%c0_10, %c0_11] : memref<80x128xf32, #tpu.memory_space<vmem>>, vector<80x128xf32>
      %c0_12 = arith.constant 0 : index
      %c0_13 = arith.constant 0 : index
      %13 = vector.load %arg5[%c0_12, %c0_13] : memref<80x128xf32, #tpu.memory_space<vmem>>, vector<80x128xf32>
      tpu.vector_store %arg5[%c0_12, %c0_13], %12 {strides = array<i32>} : memref<80x128xf32, #tpu.memory_space<vmem>>, vector<80x128xf32>,
    } else {
    }
    return
  }
  func.func @transform_0(%arg0: i32, %arg1: i32, %arg2: i32) -> (i32, i32) {
    %c0_i32 = arith.constant 0 : i32
    return %arg0, %arg2 : i32, i32
  }
  func.func @transform_1(%arg0: i32, %arg1: i32, %arg2: i32) -> (i32, i32) {
    %c0_i32 = arith.constant 0 : i32
    return %arg2, %arg1 : i32, i32
  }
  func.func @transform_2(%arg0: i32, %arg1: i32, %arg2: i32) -> (i32, i32) {
    %c0_i32 = arith.constant 0 : i32
    return %arg0, %arg1 : i32, i32
  }
}

module attributes {stable_mosaic.version = 11 : i64} {
  func.func @kernel(%arg0: i32, %arg1: i32, %arg2: i32, %arg3: memref<160x128xbf16, #tpu.memory_space<vmem>>, %arg4: memref<128x128xbf16, #tpu.memory_space<vmem>>, %arg5: memref<160x128xf32, #tpu.memory_space<vmem>>, %arg6: memref<160x128xf32, #tpu.memory_space<vmem>>) attributes {dimension_semantics = [#tpu.dimension_semantics<parallel>, #tpu.dimension_semantics<parallel>, #tpu.dimension_semantics<arbitrary>], iteration_bounds = array<i64: 4, 1, 1>, scalar_prefetch = 0 : i64, scratch_operands = 1 : i64, tpu.core_type = #tpu.core_type<tc>, window_params = [{transform_indices = @transform_0, window_bounds = array<i64: 160, 128>}, {transform_indices = @transform_1, window_bounds = array<i64: 128, 128>}, {transform_indices = @transform_2, window_bounds = array<i64: 160, 128>}]} {
    %c0_i32 = arith.constant 0 : i32
    %0 = arith.cmpi eq, %arg2, %c0_i32 : i32
    %1 = arith.extui %0 : i1 to i32
    %c0_i32_0 = arith.constant 0 : i32
    %2 = arith.cmpi ne, %1, %c0_i32_0 : i32
    scf.if %2 {
      %cst_10 = arith.constant 0.000000e+00 : f32
      %12 = vector.broadcast %cst_10 : f32 to vector<160x128xf32>
      %c0_11 = arith.constant 0 : index
      %c0_12 = arith.constant 0 : index
      %13 = vector.load %arg6[%c0_11, %c0_12] : memref<160x128xf32, #tpu.memory_space<vmem>>, vector<160x128xf32>
      tpu.vector_store %arg6[%c0_11, %c0_12], %12 {strides = array<i32>} : memref<160x128xf32, #tpu.memory_space<vmem>>, vector<160x128xf32>,
    } else {
    }
    %c0 = arith.constant 0 : index
    %c0_1 = arith.constant 0 : index
    %3 = vector.load %arg6[%c0, %c0_1] : memref<160x128xf32, #tpu.memory_space<vmem>>, vector<160x128xf32>
    %c0_2 = arith.constant 0 : index
    %c0_3 = arith.constant 0 : index
    %4 = vector.load %arg3[%c0_2, %c0_3] : memref<160x128xbf16, #tpu.memory_space<vmem>>, vector<160x128xbf16>
    %c0_4 = arith.constant 0 : index
    %c0_5 = arith.constant 0 : index
    %5 = vector.load %arg4[%c0_4, %c0_5] : memref<128x128xbf16, #tpu.memory_space<vmem>>, vector<128x128xbf16>
    %cst = arith.constant dense<0.000000e+00> : vector<160x128xf32>
    %6 = tpu.matmul %4, %5, %cst {dimension_numbers = #tpu.dot_dimension_numbers<[1], [0], [0], [1], [0, 0, 1, 1], [], []>} : vector<160x128xbf16>, vector<128x128xbf16>, vector<160x128xf32> -> vector<160x128xf32>
    %7 = arith.addf %3, %6 : vector<160x128xf32>
    %c0_6 = arith.constant 0 : index
    %c0_7 = arith.constant 0 : index
    %8 = vector.load %arg6[%c0_6, %c0_7] : memref<160x128xf32, #tpu.memory_space<vmem>>, vector<160x128xf32>
    tpu.vector_store %arg6[%c0_6, %c0_7], %7 {strides = array<i32>} : memref<160x128xf32, #tpu.memory_space<vmem>>, vector<160x128xf32>,
    %c0_i32_8 = arith.constant 0 : i32
    %9 = arith.cmpi eq, %arg2, %c0_i32_8 : i32
    %10 = arith.extui %9 : i1 to i32
    %c0_i32_9 = arith.constant 0 : i32
    %11 = arith.cmpi ne, %10, %c0_i32_9 : i32
    scf.if %11 {
      %c0_10 = arith.constant 0 : index
      %c0_11 = arith.constant 0 : index
      %12 = vector.load %arg6[%c0_10, %c0_11] : memref<160x128xf32, #tpu.memory_space<vmem>>, vector<160x128xf32>
      %c0_12 = arith.constant 0 : index
      %c0_13 = arith.constant 0 : index
      %13 = vector.load %arg5[%c0_12, %c0_13] : memref<160x128xf32, #tpu.memory_space<vmem>>, vector<160x128xf32>
      tpu.vector_store %arg5[%c0_12, %c0_13], %12 {strides = array<i32>} : memref<160x128xf32, #tpu.memory_space<vmem>>, vector<160x128xf32>,
    } else {
    }
    return
  }
  func.func @transform_0(%arg0: i32, %arg1: i32, %arg2: i32) -> (i32, i32) {
    %c0_i32 = arith.constant 0 : i32
    return %arg0, %arg2 : i32, i32
  }
  func.func @transform_1(%arg0: i32, %arg1: i32, %arg2: i32) -> (i32, i32) {
    %c0_i32 = arith.constant 0 : i32
    return %arg2, %arg1 : i32, i32
  }
  func.func @transform_2(%arg0: i32, %arg1: i32, %arg2: i32) -> (i32, i32) {
    %c0_i32 = arith.constant 0 : i32
    return %arg0, %arg1 : i32, i32
  }
}

</mosaic_0001>

<bundles_post_ra>
// kernel: _lambda_.29
= control target key start
LH: loop header
LB: loop body
LE: loop exit
PB: predicated region body
PF: predicated region fallthrough
CT: control target
= control target key end

     0   :  { %s1167_s12 = smov 0   ;;  %s1169_s13 = smov 0   ;;  %s1280_s0 = inlined_call_operand.vmem [shape: bf16[640,128], index: 0, kind: input, shape index: {}]   ;;  %s1281_s1 = inlined_call_operand.vmem [shape: bf16[128,128], index: 1, kind: input, shape index: {}]   ;;  %s1282_s2 = inlined_call_operand.vmem [shape: f32[1,128], index: 2, kind: input, shape index: {}]   ;;  %s1283_s3 = inlined_call_operand.vmem [shape: bf16[640,128], index: 3, kind: output, shape index: {}]  }
   0x1   :  { %s1171_s14 = smov 0  }
   0x2 LB: > { %s32_s15 = sadd.s32 1, %s1141_s13  ;;  %p888_p0 = scmp.ge.s32.totalorder %s1145_s14, 1  ;;  %s1145_s14 = sphi %s1171_s14, %s13_s14   ;;  %s1141_s13 = sphi %s1169_s13, %s1285_s13   ;;  %s1137_s12 = sphi %s1167_s12, %s1284_s12  }
   0x3   : > { %p34_p1 = scmp.ge.s32.totalorder %s32_s15, 4  ;;  %p188_p2 = scmp.lt.s32.totalorder %s1145_s14, 5 }
   0x5   : > { %s1287_s15 = smov (%p34_p1, %s32_s15), 0  ;;  %p189_p3 = pnand %p888_p0, %p188_p2 }
   0x6   : > { %v1105_v0 = vld [vmem:[%s1281_s1] sm:$0xff] (!%p189_p3)   ;;  %s229_s18 = smul.u32 (!%p189_p3), 20, %s1137_s12  ;;  %v1106_v1 = vld [vmem:[%s1281_s1 + $0x8] sm:$0xff] (!%p189_p3)   ;;  %v1107_v2 = vld [vmem:[%s1281_s1 + $0x10] sm:$0xff] (!%p189_p3)  }
   0x7   : > { %192 = sbr.rel (%p189_p3) target bundleno = 277 (0x115), region = 32  ;;  %1029 = vmatprep.subr.bf16.mxu0 (!%p189_p3), %v1105_v0  ;;  %1065 = vmatprep.subr.bf16.mxu1 (!%p189_p3), %v1105_v0  ;;  %v1108_v3 = vld [vmem:[%s1281_s1 + $0x18] sm:$0xff] (!%p189_p3)   ;;  %v1109_v6 = vld [vmem:[%s1281_s1 + $0x20] sm:$0xff] (!%p189_p3)   ;;  %v1110_v7 = vld [vmem:[%s1281_s1 + $0x28] sm:$0xff] (!%p189_p3)  }
   0x8   : > { %p230_p4 = scmp.lt.s32.totalorder (!%p189_p3), %s229_s18, 79  ;;  %1030 = vmatpush3.bf16.msra.mxu0 (!%p189_p3), %v1105_v0  ;;  %1073 = vmatpush3.bf16.msra.mxu1 (!%p189_p3), %v1105_v0  ;;  %v1111_v8 = vld [vmem:[%s1281_s1 + $0x30] sm:$0xff] (!%p189_p3)   ;;  %v1112_v9 = vld [vmem:[%s1281_s1 + $0x38] sm:$0xff] (!%p189_p3)   ;;  %v1232_v18 = vld [vmem:[%s1282_s2] ss:$0 sm:$0xff] (!%p189_p3) }
   0x9   : > { %1031 = vmatprep.subr.bf16.mxu0 (!%p189_p3), %v1106_v1  ;;  %1066 = vmatprep.subr.bf16.mxu1 (!%p189_p3), %v1106_v1 }
   0xc   : > { %1032 = vmatpush3.bf16.msra.mxu0 (!%p189_p3), %v1106_v1  ;;  %1074 = vmatpush3.bf16.msra.mxu1 (!%p189_p3), %v1106_v1 }
   0xd   : > { %1033 = vmatprep.subr.bf16.mxu0 (!%p189_p3), %v1107_v2  ;;  %1067 = vmatprep.subr.bf16.mxu1 (!%p189_p3), %v1107_v2 }
   0xe   : > { %s1289_s18 = smov (!%p230_p4, %s229_s18), 79 }
   0xf   : > { %s889_s23 = sshll.u32 %s1289_s18, 2 }
  0x10   : > { %s1205_s28 = scalar_lea.vmem %s1280_s0, %s889_s23  ;;  %1034 = vmatpush3.bf16.msra.mxu0 %v1107_v2  ;;  %1075 = vmatpush3.bf16.msra.mxu1 %v1107_v2  ;;  %s1247_s17 = scalar_lea.vmem %s1283_s3, %s889_s23 }
  0x11   : > { %v1113_v4 = vld [vmem:[%s1205_s28] sm:$0xff]   ;;  %v1115_v5 = vld [vmem:[%s1205_s28 + $0x30] sm:$0xff]   ;;  %1035 = vmatprep.subr.bf16.mxu0 %v1108_v3  ;;  %1068 = vmatprep.subr.bf16.mxu1 %v1108_v3  ;;  %v1114_v10 = vld [vmem:[%s1205_s28 + $0x8] sm:$0xff]  }
  0x12   : > { %1045 = vmatprep.mubr.bf16.mxu0 %v1113_v4  ;;  %1057 = vmatprep.mubr.bf16.mxu1 %v1115_v5  ;;  %v1116_v11 = vld [vmem:[%s1205_s28 + $0x38] sm:$0xff]   ;;  %v1117_v12 = vld [vmem:[%s1205_s28 + $0x10] sm:$0xff]   ;;  %v1119_v13 = vld [vmem:[%s1205_s28 + $0x40] sm:$0xff]  }
  0x13   : > { %v1118_v14 = vld [vmem:[%s1205_s28 + $0x18] sm:$0xff]   ;;  %v1120_v15 = vld [vmem:[%s1205_s28 + $0x48] sm:$0xff]   ;;  %v1121_v16 = vld [vmem:[%s1205_s28 + $0x20] sm:$0xff]  }
  0x14   : > { %1036 = vmatpush3.bf16.msra.mxu0 %v1108_v3  ;;  %1076 = vmatpush3.bf16.msra.mxu1 %v1108_v3  ;;  %v1122_v17 = vld [vmem:[%s1205_s28 + $0x28] sm:$0xff]  }
  0x15   : > { %1037 = vmatprep.subr.bf16.mxu0 %v1109_v6  ;;  %1069 = vmatprep.subr.bf16.mxu1 %v1109_v6 }
  0x18   : > { %1038 = vmatpush3.bf16.msra.mxu0 %v1109_v6  ;;  %1077 = vmatpush3.bf16.msra.mxu1 %v1109_v6 }
  0x19   : > { %1039 = vmatprep.subr.bf16.mxu0 %v1110_v7  ;;  %1070 = vmatprep.subr.bf16.mxu1 %v1110_v7 }
  0x1c   : > { %1040 = vmatpush3.bf16.msra.mxu0 %v1110_v7  ;;  %1078 = vmatpush3.bf16.msra.mxu1 %v1110_v7 }
  0x1d   : > { %1041 = vmatprep.subr.bf16.mxu0 %v1111_v8  ;;  %1071 = vmatprep.subr.bf16.mxu1 %v1111_v8 }
  0x20   : > { %1042 = vmatpush3.bf16.msra.mxu0 %v1111_v8  ;;  %1079 = vmatpush3.bf16.msra.mxu1 %v1111_v8 }
  0x21   : > { %1043 = vmatprep.subr.bf16.mxu0 %v1112_v9  ;;  %1072 = vmatprep.subr.bf16.mxu1 %v1112_v9 }
  0x24   : > { %1044 = vmatpush3.bf16.msra.mxu0 %v1112_v9  ;;  %1080 = vmatpush3.bf16.msra.mxu1 %v1112_v9 }
  0x27   : > { %1046 = vmatmul.mubr.bf16.vlgmr.msra.gmra.mrb[0].mxu0 %v1114_v10  ;;  %1058 = vmatmul.mubr.bf16.vlgmr.msra.gmra.mrb[0].mxu1 %v1116_v11 }
  0x28   : > { %1049 = vmatprep.mubr.bf16.mxu0 %v1117_v12  ;;  %1061 = vmatprep.mubr.bf16.mxu1 %v1119_v13 }
  0x2f   : > { %1050 = vmatmul.mubr.bf16.gmra.mrb[4].mxu0 %v1118_v14  ;;  %1062 = vmatmul.mubr.bf16.gmra.mrb[4].mxu1 %v1120_v15 }
  0x30   : > { %1053 = vmatprep.mubr.bf16.mxu0 %v1121_v16 }
  0x37   : > { %1054 = vmatmul.mubr.bf16.gmra.mrb[8].mxu0 %v1122_v17 }
  0xfa   : > { %v1047_v19 = vpop.f32.mrb[0].mxu0  ;;  %v1059_v20 = vpop.f32.mrb[0].mxu1 }
  0xfb   : > { %v633_v21 = vadd.f32 %v1047_v19, %v1232_v18  ;;  %v482_v22 = vpop.f32.mrb[1].mxu0  ;;  %v645_v23 = vadd.f32 %v1059_v20, %v1232_v18  ;;  %v530_v24 = vpop.f32.mrb[1].mxu1 }
  0xfc   : > { %v631_v25 = vadd.f32 %v1232_v18, %v482_v22  ;;  %v1048_v26 = vpop.f32.mrb[2].mxu0  ;;  %v643_v27 = vadd.f32 %v1232_v18, %v530_v24  ;;  %v1060_v28 = vpop.f32.mrb[2].mxu1 }
  0xfd   : > { %v634_v29 = vadd.f32 %v1048_v26, %v1232_v18  ;;  %v485_v30 = vpop.f32.mrb[3].mxu0  ;;  %v665_v31 = vmax.f32 %v645_v23, 0.0  ;;  %v646_v32 = vadd.f32 %v1060_v28, %v1232_v18  ;;  %v533_v33 = vpop.f32.mrb[3].mxu1  ;;  %v653_v37 = vmax.f32 %v633_v21, 0.0 }
  0xfe   : > { %v632_v34 = vadd.f32 %v1232_v18, %v485_v30  ;;  %v663_v35 = vmax.f32 %v643_v27, 0.0  ;;  %v644_v36 = vadd.f32 %v1232_v18, %v533_v33  ;;  %v651_v40 = vmax.f32 %v631_v25, 0.0 }
  0xff   : > { %v654_v38 = vmax.f32 %v634_v29, 0.0  ;;  %v666_v39 = vmax.f32 %v646_v32, 0.0 }
 0x100   : > { %v652_v41 = vmax.f32 %v632_v34, 0.0  ;;  %v664_v42 = vmax.f32 %v644_v36, 0.0 }
 0x101   : > { %v960_v43 = vpack.c.bf16 %v654_v38, %v653_v37  ;;  %v990_v44 = vpack.c.bf16 %v666_v39, %v665_v31 }
 0x102   : > { %v955_v45 = vpack.c.bf16 %v652_v41, %v651_v40  ;;  %v1051_v46 = vpop.f32.mrb[4].mxu0  ;;  %v985_v47 = vpack.c.bf16 %v664_v42, %v663_v35  ;;  %v1063_v48 = vpop.f32.mrb[4].mxu1 }
 0x103   : > { %1002 = vst [vmem:[%s1247_s17 + $0x8] sm:$0xff] %v960_v43   ;;  %1008 = vst [vmem:[%s1247_s17 + $0x38] sm:$0xff] %v990_v44   ;;  %v637_v49 = vadd.f32 %v1051_v46, %v1232_v18  ;;  %v498_v50 = vpop.f32.mrb[5].mxu0  ;;  %v649_v51 = vadd.f32 %v1063_v48, %v1232_v18  ;;  %v546_v52 = vpop.f32.mrb[5].mxu1 }
 0x104   : > { %956 = vst [vmem:[%s1247_s17] sm:$0xff] %v955_v45   ;;  %1007 = vst [vmem:[%s1247_s17 + $0x30] sm:$0xff] %v985_v47   ;;  %v635_v53 = vadd.f32 %v1232_v18, %v498_v50  ;;  %v1052_v54 = vpop.f32.mrb[6].mxu0  ;;  %v647_v55 = vadd.f32 %v1232_v18, %v546_v52  ;;  %v1064_v56 = vpop.f32.mrb[6].mxu1 }
 0x105   : > { %v638_v57 = vadd.f32 %v1052_v54, %v1232_v18  ;;  %v501_v58 = vpop.f32.mrb[7].mxu0  ;;  %v669_v59 = vmax.f32 %v649_v51, 0.0  ;;  %v650_v60 = vadd.f32 %v1064_v56, %v1232_v18  ;;  %v549_v61 = vpop.f32.mrb[7].mxu1  ;;  %v657_v1 = vmax.f32 %v637_v49, 0.0 }
 0x106   : > { %v636_v62 = vadd.f32 %v1232_v18, %v501_v58  ;;  %v667_v63 = vmax.f32 %v647_v55, 0.0  ;;  %v648_v0 = vadd.f32 %v1232_v18, %v549_v61  ;;  %v655_v4 = vmax.f32 %v635_v53, 0.0 }
 0x107   : > { %v658_v2 = vmax.f32 %v638_v57, 0.0  ;;  %v670_v3 = vmax.f32 %v650_v60, 0.0 }
 0x108   : > { %v656_v5 = vmax.f32 %v636_v62, 0.0  ;;  %v668_v6 = vmax.f32 %v648_v0, 0.0 }
 0x109   : > { %v970_v7 = vpack.c.bf16 %v658_v2, %v657_v1  ;;  %v1000_v8 = vpack.c.bf16 %v670_v3, %v669_v59 }
 0x10a   : > { %v965_v9 = vpack.c.bf16 %v656_v5, %v655_v4  ;;  %v1055_v10 = vpop.f32.mrb[8].mxu0  ;;  %v995_v11 = vpack.c.bf16 %v668_v6, %v667_v63 }
 0x10b   : > { %1004 = vst [vmem:[%s1247_s17 + $0x18] sm:$0xff] %v970_v7   ;;  %1010 = vst [vmem:[%s1247_s17 + $0x48] sm:$0xff] %v1000_v8   ;;  %v641_v12 = vadd.f32 %v1055_v10, %v1232_v18  ;;  %v514_v13 = vpop.f32.mrb[9].mxu0 }
 0x10c   : > { %1003 = vst [vmem:[%s1247_s17 + $0x10] sm:$0xff] %v965_v9   ;;  %1009 = vst [vmem:[%s1247_s17 + $0x40] sm:$0xff] %v995_v11   ;;  %v639_v14 = vadd.f32 %v1232_v18, %v514_v13  ;;  %v1056_v15 = vpop.f32.mrb[10].mxu0 }
 0x10d   : > { %v642_v16 = vadd.f32 %v1056_v15, %v1232_v18  ;;  %v517_v17 = vpop.f32.mrb[11].mxu0  ;;  %v661_v20 = vmax.f32 %v641_v12, 0.0 }
 0x10e   : > { %v640_v19 = vadd.f32 %v1232_v18, %v517_v17  ;;  %v659_v22 = vmax.f32 %v639_v14, 0.0 }
 0x10f   : > { %v662_v21 = vmax.f32 %v642_v16, 0.0 }
 0x110   : > { %v660_v23 = vmax.f32 %v640_v19, 0.0 }
 0x111   : > { %v980_v24 = vpack.c.bf16 %v662_v21, %v661_v20 }
 0x112   : > { %v975_v25 = vpack.c.bf16 %v660_v23, %v659_v22 }
 0x113   : > { %1006 = vst [vmem:[%s1247_s17 + $0x28] sm:$0xff] %v980_v24  }
 0x114   : > { %1005 = vst [vmem:[%s1247_s17 + $0x20] sm:$0xff] %v975_v25  }
 0x115 PF: > { %s13_s14 = sadd.s32 1, %s1145_s14   ;;  %s1284_s12 = smov %s1141_s13 }
 0x116   : > { %p10_p5 = scmp.ge.s32.totalorder %s13_s14, 6   ;;  %s1285_s13 = smov %s1287_s15 }
 0x118   :  { %12 = sbr.rel (!%p10_p5) target bundleno = 2 (0x2), region = 76 }

// kernel: _lambda_.30
= control target key start
LH: loop header
LB: loop body
LE: loop exit
PB: predicated region body
PF: predicated region fallthrough
CT: control target
= control target key end

     0   :  { %s1889_s18 = smov 0   ;;  %s1891_s19 = smov 0   ;;  %s2111_s0 = inlined_call_operand.vmem [shape: bf16[640,128], index: 0, kind: input, shape index: {}]   ;;  %s2112_s1 = inlined_call_operand.vmem [shape: bf16[128,128], index: 1, kind: input, shape index: {}]   ;;  %s2113_s2 = inlined_call_operand.vmem [shape: bf16[128,128], index: 2, kind: input, shape index: {}]   ;;  %s2114_s3 = inlined_call_operand.vmem [shape: f32[1,128], index: 3, kind: input, shape index: {}]   ;;  %s2115_s4 = inlined_call_operand.vmem [shape: f32[1,128], index: 4, kind: input, shape index: {}]   ;;  %s2116_s5 = inlined_call_operand.vmem [shape: bf16[640,128], index: 5, kind: output, shape index: {}]  }
   0x1   :  { %s1893_s20 = smov 0  }
   0x2 LB: > { %s34_s21 = sadd.s32 1, %s1853_s19  ;;  %p1445_p0 = scmp.ge.s32.totalorder %s1857_s20, 1  ;;  %s1857_s20 = sphi %s1893_s20, %s15_s20   ;;  %s1853_s19 = sphi %s1891_s19, %s2118_s19   ;;  %s1849_s18 = sphi %s1889_s18, %s2117_s18  }
   0x3   : > { %p36_p1 = scmp.ge.s32.totalorder %s34_s21, 4  ;;  %p262_p2 = scmp.lt.s32.totalorder %s1857_s20, 5 }
   0x5   : > { %s2120_s21 = smov (%p36_p1, %s34_s21), 0  ;;  %p263_p3 = pnand %p1445_p0, %p262_p2 }
   0x6   : > { %v1729_v0 = vld [vmem:[%s2113_s2] sm:$0xff] (!%p263_p3)   ;;  %s318_s24 = smul.u32 (!%p263_p3), 20, %s1849_s18  ;;  %v1730_v1 = vld [vmem:[%s2113_s2 + $0x8] sm:$0xff] (!%p263_p3)   ;;  %v1731_v2 = vld [vmem:[%s2113_s2 + $0x10] sm:$0xff] (!%p263_p3)  }
   0x7   : > { %266 = sbr.rel (%p263_p3) target bundleno = 321 (0x141), region = 40  ;;  %1669 = vmatprep.subr.bf16.mxu1 (!%p263_p3), %v1729_v0  ;;  %v1735_v3 = vld [vmem:[%s2112_s1] sm:$0xff] (!%p263_p3)   ;;  %v1732_v4 = vld [vmem:[%s2113_s2 + $0x18] sm:$0xff] (!%p263_p3)   ;;  %v1737_v5 = vld [vmem:[%s2112_s1 + $0x8] sm:$0xff] (!%p263_p3)  }
   0x8   : > { %p319_p4 = scmp.lt.s32.totalorder (!%p263_p3), %s318_s24, 79  ;;  %1670 = vmatpush3.bf16.msra.mxu1 (!%p263_p3), %v1729_v0  ;;  %1633 = vmatprep.subr.bf16.mxu0 (!%p263_p3), %v1735_v3  ;;  %v1739_v6 = vld [vmem:[%s2112_s1 + $0x10] sm:$0xff] (!%p263_p3)   ;;  %v1733_v8 = vld [vmem:[%s2113_s2 + $0x20] sm:$0xff] (!%p263_p3)   ;;  %v1742_v9 = vld [vmem:[%s2112_s1 + $0x18] sm:$0xff] (!%p263_p3)  }
   0x9   : > { %1671 = vmatprep.subr.bf16.mxu1 (!%p263_p3), %v1730_v1  ;;  %1634 = vmatpush3.bf16.msra.mxu0 (!%p263_p3), %v1735_v3  ;;  %v1734_v10 = vld [vmem:[%s2113_s2 + $0x28] sm:$0xff] (!%p263_p3)   ;;  %v1743_v11 = vld [vmem:[%s2112_s1 + $0x20] sm:$0xff] (!%p263_p3)   ;;  %v1736_v12 = vld [vmem:[%s2113_s2 + $0x30] sm:$0xff] (!%p263_p3)  }
   0xa   : > { %1635 = vmatprep.subr.bf16.mxu0 (!%p263_p3), %v1737_v5  ;;  %v1746_v13 = vld [vmem:[%s2112_s1 + $0x28] sm:$0xff] (!%p263_p3)   ;;  %v1738_v14 = vld [vmem:[%s2113_s2 + $0x38] sm:$0xff] (!%p263_p3)   ;;  %v1747_v15 = vld [vmem:[%s2112_s1 + $0x30] sm:$0xff] (!%p263_p3)  }
   0xb   : > { %v1750_v17 = vld [vmem:[%s2112_s1 + $0x38] sm:$0xff] (!%p263_p3)   ;;  %v1978_v26 = vld [vmem:[%s2115_s4] ss:$0 sm:$0xff] (!%p263_p3) }
   0xc   : > { %1672 = vmatpush3.bf16.msra.mxu1 (!%p263_p3), %v1730_v1 }
   0xd   : > { %1673 = vmatprep.subr.bf16.mxu1 (!%p263_p3), %v1731_v2  ;;  %1636 = vmatpush3.bf16.msra.mxu0 (!%p263_p3), %v1737_v5 }
   0xe   : > { %s2122_s24 = smov (!%p319_p4, %s318_s24), 79  ;;  %1637 = vmatprep.subr.bf16.mxu0 %v1739_v6 }
   0xf   : > { %s1446_s6 = sshll.u32 %s2122_s24, 2 }
  0x10   : > { %s1933_s13 = scalar_lea.vmem %s2111_s0, %s1446_s6  ;;  %1674 = vmatpush3.bf16.msra.mxu1 %v1731_v2  ;;  %s2042_s23 = scalar_lea.vmem %s2116_s5, %s1446_s6 }
  0x11   : > { %v1740_v7 = vld [vmem:[%s1933_s13] sm:$0xff]   ;;  %1675 = vmatprep.subr.bf16.mxu1 %v1732_v4  ;;  %1638 = vmatpush3.bf16.msra.mxu0 %v1739_v6  ;;  %v1741_v16 = vld [vmem:[%s1933_s13 + $0x8] sm:$0xff]   ;;  %v1744_v18 = vld [vmem:[%s1933_s13 + $0x10] sm:$0xff]  }
  0x12   : > { %1685 = vmatprep.mubr.bf16.mxu1 %v1740_v7  ;;  %1649 = vmatprep.mubr.bf16.mxu0 %v1740_v7  ;;  %v1745_v19 = vld [vmem:[%s1933_s13 + $0x18] sm:$0xff]   ;;  %v1748_v20 = vld [vmem:[%s1933_s13 + $0x20] sm:$0xff]   ;;  %v1749_v21 = vld [vmem:[%s1933_s13 + $0x28] sm:$0xff]  }
  0x13   : > { %1639 = vmatprep.subr.bf16.mxu0 %v1742_v9  ;;  %v1751_v22 = vld [vmem:[%s1933_s13 + $0x30] sm:$0xff]   ;;  %v1752_v23 = vld [vmem:[%s1933_s13 + $0x38] sm:$0xff]   ;;  %v1753_v24 = vld [vmem:[%s1933_s13 + $0x40] sm:$0xff]  }
  0x14   : > { %1676 = vmatpush3.bf16.msra.mxu1 %v1732_v4  ;;  %v1754_v25 = vld [vmem:[%s1933_s13 + $0x48] sm:$0xff]  }
  0x15   : > { %1677 = vmatprep.subr.bf16.mxu1 %v1733_v8  ;;  %1640 = vmatpush3.bf16.msra.mxu0 %v1742_v9 }
  0x16   : > { %1641 = vmatprep.subr.bf16.mxu0 %v1743_v11 }
  0x18   : > { %1678 = vmatpush3.bf16.msra.mxu1 %v1733_v8 }
  0x19   : > { %1679 = vmatprep.subr.bf16.mxu1 %v1734_v10  ;;  %1642 = vmatpush3.bf16.msra.mxu0 %v1743_v11 }
  0x1a   : > { %1643 = vmatprep.subr.bf16.mxu0 %v1746_v13 }
  0x1c   : > { %1680 = vmatpush3.bf16.msra.mxu1 %v1734_v10 }
  0x1d   : > { %1681 = vmatprep.subr.bf16.mxu1 %v1736_v12  ;;  %1644 = vmatpush3.bf16.msra.mxu0 %v1746_v13 }
  0x1e   : > { %1645 = vmatprep.subr.bf16.mxu0 %v1747_v15 }
  0x20   : > { %1682 = vmatpush3.bf16.msra.mxu1 %v1736_v12 }
  0x21   : > { %1683 = vmatprep.subr.bf16.mxu1 %v1738_v14  ;;  %1646 = vmatpush3.bf16.msra.mxu0 %v1747_v15  ;;  %v2011_v15 = vld [vmem:[%s2114_s3] ss:$0 sm:$0xff] }
  0x22   : > { %1647 = vmatprep.subr.bf16.mxu0 %v1750_v17 }
  0x24   : > { %1684 = vmatpush3.bf16.msra.mxu1 %v1738_v14 }
  0x25   : > { %1648 = vmatpush3.bf16.msra.mxu0 %v1750_v17 }
  0x27   : > { %1686 = vmatmul.mubr.bf16.vlgmr.msra.gmra.mrb[0].mxu1 %v1741_v16 }
  0x28   : > { %1689 = vmatprep.mubr.bf16.mxu1 %v1744_v18  ;;  %1650 = vmatmul.mubr.bf16.vlgmr.msra.gmra.mrb[0].mxu0 %v1741_v16 }
  0x29   : > { %1653 = vmatprep.mubr.bf16.mxu0 %v1744_v18 }
  0x2f   : > { %1690 = vmatmul.mubr.bf16.gmra.mrb[4].mxu1 %v1745_v19 }
  0x30   : > { %1693 = vmatprep.mubr.bf16.mxu1 %v1748_v20  ;;  %1654 = vmatmul.mubr.bf16.gmra.mrb[4].mxu0 %v1745_v19 }
  0x31   : > { %1657 = vmatprep.mubr.bf16.mxu0 %v1748_v20 }
  0x37   : > { %1694 = vmatmul.mubr.bf16.gmra.mrb[8].mxu1 %v1749_v21 }
  0x38   : > { %1697 = vmatprep.mubr.bf16.mxu1 %v1751_v22  ;;  %1658 = vmatmul.mubr.bf16.gmra.mrb[8].mxu0 %v1749_v21 }
  0x39   : > { %1661 = vmatprep.mubr.bf16.mxu0 %v1751_v22 }
  0x3f   : > { %1698 = vmatmul.mubr.bf16.gmra.mrb[12].mxu1 %v1752_v23 }
  0x40   : > { %1701 = vmatprep.mubr.bf16.mxu1 %v1753_v24  ;;  %1662 = vmatmul.mubr.bf16.gmra.mrb[12].mxu0 %v1752_v23 }
  0x41   : > { %1665 = vmatprep.mubr.bf16.mxu0 %v1753_v24 }
  0x47   : > { %1702 = vmatmul.mubr.bf16.gmra.mrb[16].mxu1 %v1754_v25 }
  0x48   : > { %1666 = vmatmul.mubr.bf16.gmra.mrb[16].mxu0 %v1754_v25 }
  0xfa   : > { %v1687_v27 = vpop.f32.mrb[0].mxu1 }
  0xfb   : > { %v1038_v28 = vadd.f32 %v1687_v27, %v1978_v26  ;;  %v840_v29 = vpop.f32.mrb[1].mxu1  ;;  %v1984_v39 = vpop.f32.mrb[0].mxu0 }
  0xfc   : > { %v1036_v30 = vadd.f32 %v1978_v26, %v840_v29  ;;  %v1688_v31 = vpop.f32.mrb[2].mxu1  ;;  %v1986_v40 = vpop.f32.mrb[1].mxu0  ;;  %v991_v25 = vadd.f32 %v1984_v39, %v2011_v15 }
  0xfd   : > { %v1478_v32 = vmul.f32 -1.442695, %v1038_v28  ;;  %v1039_v33 = vadd.f32 %v1688_v31, %v1978_v26  ;;  %v843_v34 = vpop.f32.mrb[3].mxu1  ;;  %v1988_v42 = vpop.f32.mrb[2].mxu0 }
  0xfe   : > { %v1476_v35 = vmul.f32 -1.442695, %v1036_v30  ;;  %v1037_v36 = vadd.f32 %v1978_v26, %v843_v34  ;;  %v1991_v45 = vpop.f32.mrb[3].mxu0 }
  0xff   : > { %1755 = vpow2.f32 %v1478_v32  ;;  %v1479_v37 = vmul.f32 -1.442695, %v1039_v33  ;;  %v989_v32 = vadd.f32 %v2011_v15, %v1986_v40  ;;  %v992_v40 = vadd.f32 %v1988_v42, %v2011_v15 }
 0x100   : > { %1757 = vpow2.f32 %v1476_v35  ;;  %v1477_v38 = vmul.f32 -1.442695, %v1037_v36 }
 0x101   : > { %1759 = vpow2.f32 %v1479_v37 }
 0x102   : > { %1761 = vpow2.f32 %v1477_v38  ;;  %v1691_v41 = vpop.f32.mrb[4].mxu1 }
 0x103   : > { %v1042_v43 = vadd.f32 %v1691_v41, %v1978_v26  ;;  %v856_v44 = vpop.f32.mrb[5].mxu1  ;;  %v1996_v55 = vpop.f32.mrb[4].mxu0 }
 0x104   : > { %v1040_v46 = vadd.f32 %v1978_v26, %v856_v44  ;;  %v1692_v47 = vpop.f32.mrb[6].mxu1  ;;  %v1998_v57 = vpop.f32.mrb[5].mxu0 }
 0x105   : > { %v1482_v48 = vmul.f32 -1.442695, %v1042_v43  ;;  %v1043_v49 = vadd.f32 %v1692_v47, %v1978_v26  ;;  %v859_v50 = vpop.f32.mrb[7].mxu1  ;;  %v2000_v61 = vpop.f32.mrb[6].mxu0 }
 0x106   : > { %v1480_v51 = vmul.f32 -1.442695, %v1040_v46  ;;  %v1041_v52 = vadd.f32 %v1978_v26, %v859_v50  ;;  %v2003_v2 = vpop.f32.mrb[7].mxu0  ;;  %v990_v50 = vadd.f32 %v2011_v15, %v1991_v45  ;;  %v995_v45 = vadd.f32 %v1996_v55, %v2011_v15 }
 0x107   : > { %1763 = vpow2.f32 %v1482_v48  ;;  %v1483_v53 = vmul.f32 -1.442695, %v1043_v49  ;;  %v993_v55 = vadd.f32 %v2011_v15, %v1998_v57 }
 0x108   : > { %1765 = vpow2.f32 %v1480_v51  ;;  %v1481_v54 = vmul.f32 -1.442695, %v1041_v52 }
 0x109   : > { %v1756_v56 = vpop.eup %1755  ;;  %1767 = vpow2.f32 %v1483_v53 }
 0x10a   : > { %v1758_v58 = vpop.eup %1757  ;;  %v1118_v59 = vadd.f32 1.0, %v1756_v56  ;;  %1769 = vpow2.f32 %v1481_v54  ;;  %v1695_v60 = vpop.f32.mrb[8].mxu1 }
 0x10b   : > { %v1760_v62 = vpop.eup %1759  ;;  %v1116_v63 = vadd.f32 1.0, %v1758_v58  ;;  %v1046_v0 = vadd.f32 %v1695_v60, %v1978_v26  ;;  %v872_v1 = vpop.f32.mrb[9].mxu1 }
 0x10c   : > { %v1762_v3 = vpop.eup %1761  ;;  %1771 = vrcp.f32 %v1118_v59  ;;  %v1119_v4 = vadd.f32 1.0, %v1760_v62  ;;  %v1044_v5 = vadd.f32 %v1978_v26, %v872_v1  ;;  %v1696_v6 = vpop.f32.mrb[10].mxu1 }
 0x10d   : > { %1773 = vrcp.f32 %v1116_v63  ;;  %v1117_v7 = vadd.f32 1.0, %v1762_v3  ;;  %v1486_v8 = vmul.f32 -1.442695, %v1046_v0  ;;  %v1047_v9 = vadd.f32 %v1696_v6, %v1978_v26  ;;  %v875_v10 = vpop.f32.mrb[11].mxu1  ;;  %v2013_v16 = vpop.f32.mrb[8].mxu0 }
 0x10e   : > { %1775 = vrcp.f32 %v1119_v4  ;;  %v1484_v11 = vmul.f32 -1.442695, %v1044_v5  ;;  %v1045_v12 = vadd.f32 %v1978_v26, %v875_v10  ;;  %v2015_v18 = vpop.f32.mrb[9].mxu0 }
 0x10f   : > { %1777 = vrcp.f32 %v1117_v7  ;;  %v1487_v13 = vmul.f32 -1.442695, %v1047_v9  ;;  %v2017_v22 = vpop.f32.mrb[10].mxu0 }
 0x110   : > { %1779 = vpow2.f32 %v1486_v8  ;;  %v1485_v14 = vmul.f32 -1.442695, %v1045_v12  ;;  %v2022_v29 = vpop.f32.mrb[11].mxu0 }
 0x111   : > { %v1764_v17 = vpop.eup %1763  ;;  %1781 = vpow2.f32 %v1484_v11 }
 0x112   : > { %v1766_v19 = vpop.eup %1765  ;;  %v1122_v20 = vadd.f32 1.0, %v1764_v17  ;;  %1783 = vpow2.f32 %v1487_v13  ;;  %v1699_v21 = vpop.f32.mrb[12].mxu1 }
 0x113   : > { %v1768_v23 = vpop.eup %1767  ;;  %v1120_v24 = vadd.f32 1.0, %v1766_v19  ;;  %1785 = vpow2.f32 %v1485_v14  ;;  %v1050_v27 = vadd.f32 %v1699_v21, %v1978_v26  ;;  %v888_v28 = vpop.f32.mrb[13].mxu1 }
 0x114   : > { %v1770_v30 = vpop.eup %1769  ;;  %1787 = vrcp.f32 %v1122_v20  ;;  %v1123_v31 = vadd.f32 1.0, %v1768_v23  ;;  %v1048_v33 = vadd.f32 %v1978_v26, %v888_v28  ;;  %v1700_v34 = vpop.f32.mrb[14].mxu1 }
 0x115   : > { %1789 = vrcp.f32 %v1120_v24  ;;  %v1121_v35 = vadd.f32 1.0, %v1770_v30  ;;  %v1490_v36 = vmul.f32 -1.442695, %v1050_v27  ;;  %v1051_v37 = vadd.f32 %v1700_v34, %v1978_v26  ;;  %v891_v38 = vpop.f32.mrb[15].mxu1  ;;  %v2033_v52 = vpop.f32.mrb[12].mxu0 }
 0x116   : > { %v1772_v39 = vpop.eup %1771  ;;  %1791 = vrcp.f32 %v1123_v31  ;;  %v1488_v41 = vmul.f32 -1.442695, %v1048_v33  ;;  %v1049_v43 = vadd.f32 %v1978_v26, %v891_v38  ;;  %v2035_v56 = vpop.f32.mrb[13].mxu0  ;;  %v996_v24 = vadd.f32 %v2000_v61, %v2011_v15 }
 0x117   : > { %v1774_v44 = vpop.eup %1773  ;;  %1793 = vrcp.f32 %v1121_v35  ;;  %v1178_v46 = vmul.f32 %v1772_v39, %v991_v25  ;;  %v1491_v47 = vmul.f32 -1.442695, %v1051_v37  ;;  %v2046_v60 = vpop.f32.mrb[14].mxu0  ;;  %v994_v30 = vadd.f32 %v2011_v15, %v2003_v2 }
 0x118   : > { %v1776_v48 = vpop.eup %1775  ;;  %v1176_v49 = vmul.f32 %v1774_v44, %v989_v32  ;;  %1795 = vpow2.f32 %v1490_v36  ;;  %v1489_v51 = vmul.f32 -1.442695, %v1049_v43  ;;  %v2049_v4 = vpop.f32.mrb[15].mxu0 }
 0x119   : > { %v1778_v53 = vpop.eup %1777  ;;  %v1179_v54 = vmul.f32 %v1776_v48, %v992_v40  ;;  %1797 = vpow2.f32 %v1488_v41  ;;  %v997_v48 = vadd.f32 %v2011_v15, %v2015_v18 }
 0x11a   : > { %v1780_v58 = vpop.eup %1779  ;;  %v1177_v42 = vmul.f32 %v1778_v53, %v990_v50  ;;  %1799 = vpow2.f32 %v1491_v47  ;;  %v1703_v59 = vpop.f32.mrb[16].mxu1 }
 0x11b   : > { %v1782_v62 = vpop.eup %1781  ;;  %v1126_v63 = vadd.f32 1.0, %v1780_v58  ;;  %v1546_v0 = vpack.c.bf16 %v1179_v54, %v1178_v46  ;;  %1801 = vpow2.f32 %v1489_v51  ;;  %v1054_v1 = vadd.f32 %v1703_v59, %v1978_v26  ;;  %v904_v3 = vpop.f32.mrb[17].mxu1 }
 0x11c   : > { %v1784_v5 = vpop.eup %1783  ;;  %v1124_v6 = vadd.f32 1.0, %v1782_v62  ;;  %v1541_v7 = vpack.c.bf16 %v1177_v42, %v1176_v49  ;;  %v1052_v8 = vadd.f32 %v1978_v26, %v904_v3  ;;  %v1704_v9 = vpop.f32.mrb[18].mxu1  ;;  %v999_v46 = vadd.f32 %v2013_v16, %v2011_v15 }
 0x11d   : > { %v1786_v10 = vpop.eup %1785  ;;  %1803 = vrcp.f32 %v1126_v63  ;;  %v1127_v11 = vadd.f32 1.0, %v1784_v5  ;;  %1588 = vst [vmem:[%s2042_s23 + $0x8] sm:$0xff] %v1546_v0   ;;  %v1494_v12 = vmul.f32 -1.442695, %v1054_v1  ;;  %v1055_v13 = vadd.f32 %v1704_v9, %v1978_v26  ;;  %v907_v14 = vpop.f32.mrb[19].mxu1 }
 0x11e   : > { %v1788_v17 = vpop.eup %1787  ;;  %1805 = vrcp.f32 %v1124_v6  ;;  %v1125_v19 = vadd.f32 1.0, %v1786_v10  ;;  %1542 = vst [vmem:[%s2042_s23] sm:$0xff] %v1541_v7   ;;  %v1492_v20 = vmul.f32 -1.442695, %v1052_v8  ;;  %v1053_v21 = vadd.f32 %v1978_v26, %v907_v14  ;;  %v2062_v32 = vpop.f32.mrb[16].mxu0 }
 0x11f   : > { %v1790_v23 = vpop.eup %1789  ;;  %1807 = vrcp.f32 %v1127_v11  ;;  %v1182_v57 = vmul.f32 %v1788_v17, %v995_v45  ;;  %v1495_v25 = vmul.f32 -1.442695, %v1055_v13  ;;  %v2064_v26 = vpop.f32.mrb[17].mxu0  ;;  %v1000_v54 = vadd.f32 %v2017_v22, %v2011_v15 }
 0x120   : > { %v1792_v27 = vpop.eup %1791  ;;  %1809 = vrcp.f32 %v1125_v19  ;;  %v1180_v28 = vmul.f32 %v1790_v23, %v993_v55  ;;  %v1493_v31 = vmul.f32 -1.442695, %v1053_v21  ;;  %v2066_v61 = vpop.f32.mrb[18].mxu0  ;;  %v998_v42 = vadd.f32 %v2011_v15, %v2022_v29 }
 0x121   : > { %v1794_v33 = vpop.eup %1793  ;;  %1811 = vpow2.f32 %v1494_v12  ;;  %v1183_v34 = vmul.f32 %v1792_v27, %v996_v24  ;;  %v2068_v2 = vpop.f32.mrb[19].mxu0  ;;  %v1003_v3 = vadd.f32 %v2033_v52, %v2011_v15  ;;  %v1001_v7 = vadd.f32 %v2011_v15, %v2035_v56 }
 0x122   : > { %v1796_v35 = vpop.eup %1795  ;;  %1813 = vpow2.f32 %v1492_v20  ;;  %v1181_v36 = vmul.f32 %v1794_v33, %v994_v30  ;;  %v1004_v52 = vadd.f32 %v2046_v60, %v2011_v15  ;;  %v1002_v56 = vadd.f32 %v2011_v15, %v2049_v4 }
 0x123   : > { %v1798_v37 = vpop.eup %1797  ;;  %v1130_v38 = vadd.f32 1.0, %v1796_v35  ;;  %v1556_v39 = vpack.c.bf16 %v1183_v34, %v1182_v57  ;;  %1815 = vpow2.f32 %v1495_v25  ;;  %v1007_v23 = vadd.f32 %v2062_v32, %v2011_v15 }
 0x124   : > { %v1800_v41 = vpop.eup %1799  ;;  %v1128_v43 = vadd.f32 1.0, %v1798_v37  ;;  %v1551_v44 = vpack.c.bf16 %v1181_v36, %v1180_v28  ;;  %1817 = vpow2.f32 %v1493_v31  ;;  %v1005_v60 = vadd.f32 %v2011_v15, %v2064_v26 }
 0x125   : > { %v1802_v40 = vpop.eup %1801  ;;  %1819 = vrcp.f32 %v1130_v38  ;;  %v1131_v47 = vadd.f32 1.0, %v1800_v41  ;;  %1590 = vst [vmem:[%s2042_s23 + $0x18] sm:$0xff] %v1556_v39   ;;  %v1008_v4 = vadd.f32 %v2066_v61, %v2011_v15  ;;  %v1006_v30 = vadd.f32 %v2011_v15, %v2068_v2 }
 0x126   : > { %1821 = vrcp.f32 %v1128_v43  ;;  %v1129_v49 = vadd.f32 1.0, %v1802_v40  ;;  %1589 = vst [vmem:[%s2042_s23 + $0x10] sm:$0xff] %v1551_v44  }
 0x127   : > { %v1804_v50 = vpop.eup %1803  ;;  %1823 = vrcp.f32 %v1131_v47 }
 0x128   : > { %v1806_v51 = vpop.eup %1805  ;;  %1825 = vrcp.f32 %v1129_v49  ;;  %v1186_v53 = vmul.f32 %v1804_v50, %v999_v46 }
 0x129   : > { %v1808_v58 = vpop.eup %1807  ;;  %v1184_v16 = vmul.f32 %v1806_v51, %v997_v48 }
 0x12a   : > { %v1810_v45 = vpop.eup %1809  ;;  %v1187_v59 = vmul.f32 %v1808_v58, %v1000_v54 }
 0x12b   : > { %v1812_v18 = vpop.eup %1811  ;;  %v1185_v62 = vmul.f32 %v1810_v45, %v998_v42 }
 0x12c   : > { %v1814_v63 = vpop.eup %1813  ;;  %v1134_v0 = vadd.f32 1.0, %v1812_v18  ;;  %v1566_v1 = vpack.c.bf16 %v1187_v59, %v1186_v53 }
 0x12d   : > { %v1816_v5 = vpop.eup %1815  ;;  %v1132_v6 = vadd.f32 1.0, %v1814_v63  ;;  %v1561_v22 = vpack.c.bf16 %v1185_v62, %v1184_v16 }
 0x12e   : > { %v1818_v55 = vpop.eup %1817  ;;  %1827 = vrcp.f32 %v1134_v0  ;;  %v1135_v29 = vadd.f32 1.0, %v1816_v5  ;;  %1592 = vst [vmem:[%s2042_s23 + $0x28] sm:$0xff] %v1566_v1  }
 0x12f   : > { %v1820_v8 = vpop.eup %1819  ;;  %1829 = vrcp.f32 %v1132_v6  ;;  %v1133_v9 = vadd.f32 1.0, %v1818_v55  ;;  %1591 = vst [vmem:[%s2042_s23 + $0x20] sm:$0xff] %v1561_v22  }
 0x130   : > { %v1822_v10 = vpop.eup %1821  ;;  %1831 = vrcp.f32 %v1135_v29  ;;  %v1190_v11 = vmul.f32 %v1820_v8, %v1003_v3 }
 0x131   : > { %v1824_v12 = vpop.eup %1823  ;;  %1833 = vrcp.f32 %v1133_v9  ;;  %v1188_v13 = vmul.f32 %v1822_v10, %v1001_v7 }
 0x132   : > { %v1826_v14 = vpop.eup %1825  ;;  %v1191_v17 = vmul.f32 %v1824_v12, %v1004_v52 }
 0x133   : > { %v1189_v19 = vmul.f32 %v1826_v14, %v1002_v56 }
 0x134   : > { %v1576_v20 = vpack.c.bf16 %v1191_v17, %v1190_v11 }
 0x135   : > { %v1571_v21 = vpack.c.bf16 %v1189_v19, %v1188_v13 }
 0x136   : > { %1594 = vst [vmem:[%s2042_s23 + $0x38] sm:$0xff] %v1576_v20  }
 0x137   : > { %1593 = vst [vmem:[%s2042_s23 + $0x30] sm:$0xff] %v1571_v21  }
 0x138   : > { %v1828_v57 = vpop.eup %1827 }
 0x139   : > { %v1830_v24 = vpop.eup %1829  ;;  %v1194_v25 = vmul.f32 %v1828_v57, %v1007_v23 }
 0x13a   : > { %v1832_v27 = vpop.eup %1831  ;;  %v1192_v28 = vmul.f32 %v1830_v24, %v1005_v60 }
 0x13b   : > { %v1834_v31 = vpop.eup %1833  ;;  %v1195_v32 = vmul.f32 %v1832_v27, %v1008_v4 }
 0x13c   : > { %v1193_v33 = vmul.f32 %v1834_v31, %v1006_v30 }
 0x13d   : > { %v1586_v34 = vpack.c.bf16 %v1195_v32, %v1194_v25 }
 0x13e   : > { %v1581_v35 = vpack.c.bf16 %v1193_v33, %v1192_v28 }
 0x13f   : > { %1596 = vst [vmem:[%s2042_s23 + $0x48] sm:$0xff] %v1586_v34  }
 0x140   : > { %1595 = vst [vmem:[%s2042_s23 + $0x40] sm:$0xff] %v1581_v35  }
 0x141 PF: > { %s15_s20 = sadd.s32 1, %s1857_s20   ;;  %s2117_s18 = smov %s1853_s19 }
 0x142   : > { %p12_p5 = scmp.ge.s32.totalorder %s15_s20, 6   ;;  %s2118_s19 = smov %s2120_s21 }
 0x144   :  { %14 = sbr.rel (!%p12_p5) target bundleno = 2 (0x2), region = 90 }

// kernel: _lambda_.31
= control target key start
LH: loop header
LB: loop body
LE: loop exit
PB: predicated region body
PF: predicated region fallthrough
CT: control target
= control target key end

     0   :  { %s906_s12 = smov 0   ;;  %s908_s13 = smov 0   ;;  %s992_s0 = inlined_call_operand.vmem [shape: bf16[160,128], index: 0, kind: input, shape index: {}]   ;;  %s993_s1 = inlined_call_operand.vmem [shape: bf16[128,128], index: 1, kind: input, shape index: {}]   ;;  %s994_s2 = inlined_call_operand.vmem [shape: f32[1,128], index: 2, kind: input, shape index: {}]   ;;  %s995_s3 = inlined_call_operand.vmem [shape: bf16[160,128], index: 3, kind: output, shape index: {}]  }
   0x1   :  { %s910_s14 = smov 0  }
   0x2 LB: > { %s32_s15 = sadd.s32 1, %s878_s13  ;;  %p688_p0 = scmp.ge.s32.totalorder %s882_s14, 1  ;;  %s882_s14 = sphi %s910_s14, %s13_s14   ;;  %s878_s13 = sphi %s908_s13, %s997_s13   ;;  %s874_s12 = sphi %s906_s12, %s996_s12  }
   0x3   : > { %p34_p1 = scmp.ge.s32.totalorder %s32_s15, 2  ;;  %p188_p2 = scmp.lt.s32.totalorder %s882_s14, 3 }
   0x5   : > { %s999_s15 = smov (%p34_p1, %s32_s15), 0  ;;  %p189_p3 = pnand %p688_p0, %p188_p2 }
   0x6   : > { %v847_v0 = vld [vmem:[%s993_s1] sm:$0xff] (!%p189_p3)   ;;  %v884_v1 = vmov (!%p189_p3), 0.0   ;;  %v848_v2 = vld [vmem:[%s993_s1 + $0x8] sm:$0xff] (!%p189_p3)   ;;  %s229_s20 = smul.u32 (!%p189_p3), 10, %s874_s12  ;;  %vm885_vm0 = vmmov (!%p189_p3), 0   ;;  %v849_v3 = vld [vmem:[%s993_s1 + $0x10] sm:$0xff] (!%p189_p3)  }
   0x7   : > { %192 = sbr.rel (%p189_p3) target bundleno = 276 (0x114), region = 32  ;;  %769 = vmatprep.subr.bf16.mxu0 (!%p189_p3), %v884_v1  ;;  %805 = vmatprep.subr.bf16.mxu1 (!%p189_p3), %v884_v1  ;;  %v850_v4 = vld [vmem:[%s993_s1 + $0x18] sm:$0xff] (!%p189_p3)   ;;  %v851_v5 = vld [vmem:[%s993_s1 + $0x20] sm:$0xff] (!%p189_p3)   ;;  %v852_v6 = vld [vmem:[%s993_s1 + $0x28] sm:$0xff] (!%p189_p3)  }
   0x8   : > { %770 = vmatpush3.bf16.msra.mxu0 (!%p189_p3), %v847_v0  ;;  %813 = vmatpush3.bf16.msra.mxu1 (!%p189_p3), %v847_v0  ;;  %p230_p4 = scmp.lt.s32.totalorder (!%p189_p3), %s229_s20, 19  ;;  %v853_v7 = vld [vmem:[%s993_s1 + $0x30] sm:$0xff] (!%p189_p3)   ;;  %v854_v8 = vld [vmem:[%s993_s1 + $0x38] sm:$0xff] (!%p189_p3)   ;;  %v704_v14 = vld [vmem:[%s994_s2] ss:$0 sm:$0xff] (!%p189_p3) }
   0x9   : > { %771 = vmatprep.subr.bf16.mxu0 (!%p189_p3), %v884_v1  ;;  %806 = vmatprep.subr.bf16.mxu1 (!%p189_p3), %v884_v1 }
   0xa   : > { %785 = vmatprep.mubr.msk.bf16.mxu0 (!%p189_p3), %vm885_vm0, %v884_v1  ;;  %797 = vmatprep.mubr.msk.bf16.mxu1 (!%p189_p3), %vm885_vm0, %v884_v1 }
   0xc   : > { %772 = vmatpush3.bf16.msra.mxu0 (!%p189_p3), %v848_v2  ;;  %814 = vmatpush3.bf16.msra.mxu1 (!%p189_p3), %v848_v2 }
   0xd   : > { %773 = vmatprep.subr.bf16.mxu0 (!%p189_p3), %v884_v1  ;;  %807 = vmatprep.subr.bf16.mxu1 (!%p189_p3), %v884_v1 }
   0xe   : > { %s1001_s20 = smov (!%p230_p4, %s229_s20), 19 }
   0xf   : > { %s689_s23 = sshll.u32 %s1001_s20, 2 }
  0x10   : > { %s943_s26 = scalar_lea.vmem %s992_s0, %s689_s23  ;;  %774 = vmatpush3.bf16.msra.mxu0 %v849_v3  ;;  %815 = vmatpush3.bf16.msra.mxu1 %v849_v3  ;;  %s976_s17 = scalar_lea.vmem %s995_s3, %s689_s23 }
  0x11   : > { %775 = vmatprep.subr.bf16.mxu0 %v884_v1  ;;  %808 = vmatprep.subr.bf16.mxu1 %v884_v1  ;;  %v855_v9 = vld [vmem:[%s943_s26] sm:$0xff]   ;;  %v856_v10 = vld [vmem:[%s943_s26 + $0x18] sm:$0xff]   ;;  %v857_v11 = vld [vmem:[%s943_s26 + $0x8] sm:$0xff]  }
  0x12   : > { %v858_v12 = vld [vmem:[%s943_s26 + $0x20] sm:$0xff]   ;;  %v859_v13 = vld [vmem:[%s943_s26 + $0x10] sm:$0xff]  }
  0x14   : > { %776 = vmatpush3.bf16.msra.mxu0 %v850_v4  ;;  %816 = vmatpush3.bf16.msra.mxu1 %v850_v4 }
  0x15   : > { %777 = vmatprep.subr.bf16.mxu0 %v884_v1  ;;  %809 = vmatprep.subr.bf16.mxu1 %v884_v1 }
  0x18   : > { %778 = vmatpush3.bf16.msra.mxu0 %v851_v5  ;;  %817 = vmatpush3.bf16.msra.mxu1 %v851_v5 }
  0x19   : > { %779 = vmatprep.subr.bf16.mxu0 %v884_v1  ;;  %810 = vmatprep.subr.bf16.mxu1 %v884_v1 }
  0x1c   : > { %780 = vmatpush3.bf16.msra.mxu0 %v852_v6  ;;  %818 = vmatpush3.bf16.msra.mxu1 %v852_v6 }
  0x1d   : > { %781 = vmatprep.subr.bf16.mxu0 %v884_v1  ;;  %811 = vmatprep.subr.bf16.mxu1 %v884_v1 }
  0x20   : > { %782 = vmatpush3.bf16.msra.mxu0 %v853_v7  ;;  %819 = vmatpush3.bf16.msra.mxu1 %v853_v7 }
  0x21   : > { %783 = vmatprep.subr.bf16.mxu0 %v884_v1  ;;  %812 = vmatprep.subr.bf16.mxu1 %v884_v1 }
  0x24   : > { %784 = vmatpush3.bf16.msra.mxu0 %v854_v8  ;;  %820 = vmatpush3.bf16.msra.mxu1 %v854_v8 }
  0x27   : > { %786 = vmatmul.mubr.bf16.vlgmr.msra.gmra.mrb[0].mxu0 %v855_v9  ;;  %798 = vmatmul.mubr.bf16.vlgmr.msra.gmra.mrb[0].mxu1 %v856_v10 }
  0x28   : > { %789 = vmatprep.mubr.msk.bf16.mxu0 %vm885_vm0, %v884_v1  ;;  %801 = vmatprep.mubr.msk.bf16.mxu1 %vm885_vm0, %v884_v1 }
  0x2f   : > { %790 = vmatmul.mubr.bf16.gmra.mrb[4].mxu0 %v857_v11  ;;  %802 = vmatmul.mubr.bf16.gmra.mrb[4].mxu1 %v858_v12 }
  0x30   : > { %793 = vmatprep.mubr.msk.bf16.mxu0 %vm885_vm0, %v884_v1 }
  0x37   : > { %794 = vmatmul.mubr.bf16.gmra.mrb[8].mxu0 %v859_v13 }
  0xfa   : > { %v422_v15 = vpop.f32.mrb[0].mxu0  ;;  %v446_v16 = vpop.f32.mrb[0].mxu1 }
  0xfb   : > { %v501_v17 = vadd.f32 %v704_v14, %v422_v15  ;;  %v787_v18 = vpop.f32.mrb[1].mxu0  ;;  %v507_v19 = vadd.f32 %v704_v14, %v446_v16  ;;  %v799_v20 = vpop.f32.mrb[1].mxu1 }
  0xfc   : > { %v425_v21 = vpop.f32.mrb[2].mxu0  ;;  %v449_v22 = vpop.f32.mrb[2].mxu1 }
  0xfd   : > { %v502_v23 = vadd.f32 %v704_v14, %v425_v21  ;;  %v788_v24 = vpop.f32.mrb[3].mxu0  ;;  %v517_v25 = vmax.f32 %v507_v19, 0.0  ;;  %v508_v26 = vadd.f32 %v704_v14, %v449_v22  ;;  %v800_v27 = vpop.f32.mrb[3].mxu1  ;;  %v511_v28 = vmax.f32 %v501_v17, 0.0 }
  0xff   : > { %v512_v29 = vmax.f32 %v502_v23, 0.0  ;;  %v518_v30 = vmax.f32 %v508_v26, 0.0 }
 0x101   : > { %v730_v31 = vpack.c.bf16 %v512_v29, %v511_v28  ;;  %v745_v32 = vpack.c.bf16 %v518_v30, %v517_v25 }
 0x102   : > { %v430_v33 = vpop.f32.mrb[4].mxu0  ;;  %v454_v34 = vpop.f32.mrb[4].mxu1 }
 0x103   : > { %731 = vst [vmem:[%s976_s17] sm:$0xff] %v730_v31   ;;  %754 = vst [vmem:[%s976_s17 + $0x18] sm:$0xff] %v745_v32   ;;  %v503_v35 = vadd.f32 %v704_v14, %v430_v33  ;;  %v791_v36 = vpop.f32.mrb[5].mxu0  ;;  %v509_v37 = vadd.f32 %v704_v14, %v454_v34  ;;  %v803_v38 = vpop.f32.mrb[5].mxu1 }
 0x104   : > { %v433_v39 = vpop.f32.mrb[6].mxu0  ;;  %v457_v40 = vpop.f32.mrb[6].mxu1 }
 0x105   : > { %v504_v41 = vadd.f32 %v704_v14, %v433_v39  ;;  %v792_v42 = vpop.f32.mrb[7].mxu0  ;;  %v519_v43 = vmax.f32 %v509_v37, 0.0  ;;  %v510_v44 = vadd.f32 %v704_v14, %v457_v40  ;;  %v804_v45 = vpop.f32.mrb[7].mxu1  ;;  %v513_v46 = vmax.f32 %v503_v35, 0.0 }
 0x107   : > { %v514_v47 = vmax.f32 %v504_v41, 0.0  ;;  %v520_v48 = vmax.f32 %v510_v44, 0.0 }
 0x109   : > { %v735_v49 = vpack.c.bf16 %v514_v47, %v513_v46  ;;  %v750_v50 = vpack.c.bf16 %v520_v48, %v519_v43 }
 0x10a   : > { %v438_v51 = vpop.f32.mrb[8].mxu0 }
 0x10b   : > { %752 = vst [vmem:[%s976_s17 + $0x8] sm:$0xff] %v735_v49   ;;  %755 = vst [vmem:[%s976_s17 + $0x20] sm:$0xff] %v750_v50   ;;  %v505_v52 = vadd.f32 %v704_v14, %v438_v51  ;;  %v795_v53 = vpop.f32.mrb[9].mxu0 }
 0x10c   : > { %v441_v54 = vpop.f32.mrb[10].mxu0 }
 0x10d   : > { %v506_v55 = vadd.f32 %v704_v14, %v441_v54  ;;  %v796_v56 = vpop.f32.mrb[11].mxu0  ;;  %v515_v57 = vmax.f32 %v505_v52, 0.0 }
 0x10f   : > { %v516_v58 = vmax.f32 %v506_v55, 0.0 }
 0x111   : > { %v740_v59 = vpack.c.bf16 %v516_v58, %v515_v57 }
 0x113   : > { %753 = vst [vmem:[%s976_s17 + $0x10] sm:$0xff] %v740_v59  }
 0x114 PF: > { %s13_s14 = sadd.s32 1, %s882_s14   ;;  %s996_s12 = smov %s878_s13 }
 0x115   : > { %p10_p5 = scmp.ge.s32.totalorder %s13_s14, 4   ;;  %s997_s13 = smov %s999_s15 }
 0x117   :  { %12 = sbr.rel (!%p10_p5) target bundleno = 2 (0x2), region = 76 }

// kernel: _lambda_.32
= control target key start
LH: loop header
LB: loop body
LE: loop exit
PB: predicated region body
PF: predicated region fallthrough
CT: control target
= control target key end

     0   :  { %s1413_s18 = smov 0   ;;  %s1415_s19 = smov 0   ;;  %s1590_s0 = inlined_call_operand.vmem [shape: bf16[160,128], index: 0, kind: input, shape index: {}]   ;;  %s1591_s1 = inlined_call_operand.vmem [shape: bf16[128,128], index: 1, kind: input, shape index: {}]   ;;  %s1592_s2 = inlined_call_operand.vmem [shape: bf16[128,128], index: 2, kind: input, shape index: {}]   ;;  %s1593_s3 = inlined_call_operand.vmem [shape: f32[1,128], index: 3, kind: input, shape index: {}]   ;;  %s1594_s4 = inlined_call_operand.vmem [shape: f32[1,128], index: 4, kind: input, shape index: {}]   ;;  %s1595_s5 = inlined_call_operand.vmem [shape: bf16[160,128], index: 5, kind: output, shape index: {}]  }
   0x1   :  { %s1417_s20 = smov 0  }
   0x2 LB: > { %s34_s21 = sadd.s32 1, %s1375_s19  ;;  %p1085_p0 = scmp.ge.s32.totalorder %s1379_s20, 1  ;;  %s1379_s20 = sphi %s1417_s20, %s15_s20   ;;  %s1375_s19 = sphi %s1415_s19, %s1597_s19   ;;  %s1371_s18 = sphi %s1413_s18, %s1596_s18  }
   0x3   : > { %p36_p1 = scmp.ge.s32.totalorder %s34_s21, 2  ;;  %p262_p2 = scmp.lt.s32.totalorder %s1379_s20, 3 }
   0x5   : > { %s1599_s21 = smov (%p36_p1, %s34_s21), 0  ;;  %p263_p3 = pnand %p1085_p0, %p262_p2 }
   0x6   : > { %v1296_v0 = vld [vmem:[%s1592_s2] sm:$0xff] (!%p263_p3)   ;;  %v1381_v1 = vmov (!%p263_p3), 0.0   ;;  %v1297_v2 = vld [vmem:[%s1592_s2 + $0x8] sm:$0xff] (!%p263_p3)   ;;  %vm1382_vm0 = vmmov (!%p263_p3), 0   ;;  %s318_s26 = smul.u32 (!%p263_p3), 10, %s1371_s18  ;;  %v1298_v3 = vld [vmem:[%s1592_s2 + $0x10] sm:$0xff] (!%p263_p3)  }
   0x7   : > { %266 = sbr.rel (%p263_p3) target bundleno = 318 (0x13e), region = 40  ;;  %1234 = vmatprep.subr.bf16.mxu1 (!%p263_p3), %v1381_v1  ;;  %1198 = vmatprep.subr.bf16.mxu0 (!%p263_p3), %v1381_v1  ;;  %v1302_v4 = vld [vmem:[%s1591_s1] sm:$0xff] (!%p263_p3)   ;;  %v1304_v5 = vld [vmem:[%s1591_s1 + $0x8] sm:$0xff] (!%p263_p3)   ;;  %v1299_v6 = vld [vmem:[%s1592_s2 + $0x18] sm:$0xff] (!%p263_p3)  }
   0x8   : > { %1235 = vmatpush3.bf16.msra.mxu1 (!%p263_p3), %v1296_v0  ;;  %1250 = vmatprep.mubr.msk.bf16.mxu1 (!%p263_p3), %vm1382_vm0, %v1381_v1  ;;  %p319_p4 = scmp.lt.s32.totalorder (!%p263_p3), %s318_s26, 19  ;;  %v1306_v7 = vld [vmem:[%s1591_s1 + $0x10] sm:$0xff] (!%p263_p3)   ;;  %v1300_v8 = vld [vmem:[%s1592_s2 + $0x20] sm:$0xff] (!%p263_p3)   ;;  %v1308_v9 = vld [vmem:[%s1591_s1 + $0x18] sm:$0xff] (!%p263_p3)  }
   0x9   : > { %1236 = vmatprep.subr.bf16.mxu1 (!%p263_p3), %v1381_v1  ;;  %1214 = vmatprep.mubr.msk.bf16.mxu0 (!%p263_p3), %vm1382_vm0, %v1381_v1  ;;  %v1301_v10 = vld [vmem:[%s1592_s2 + $0x28] sm:$0xff] (!%p263_p3)   ;;  %v1309_v11 = vld [vmem:[%s1591_s1 + $0x20] sm:$0xff] (!%p263_p3)   ;;  %v1303_v12 = vld [vmem:[%s1592_s2 + $0x30] sm:$0xff] (!%p263_p3)  }
   0xa   : > { %1199 = vmatpush3.bf16.msra.mxu0 (!%p263_p3), %v1302_v4  ;;  %v1311_v13 = vld [vmem:[%s1591_s1 + $0x28] sm:$0xff] (!%p263_p3)   ;;  %v1305_v14 = vld [vmem:[%s1592_s2 + $0x38] sm:$0xff] (!%p263_p3)   ;;  %v1312_v15 = vld [vmem:[%s1591_s1 + $0x30] sm:$0xff] (!%p263_p3)  }
   0xb   : > { %1200 = vmatprep.subr.bf16.mxu0 (!%p263_p3), %v1381_v1  ;;  %v1314_v17 = vld [vmem:[%s1591_s1 + $0x38] sm:$0xff] (!%p263_p3)   ;;  %v1533_v22 = vld [vmem:[%s1594_s4] ss:$0 sm:$0xff] (!%p263_p3) }
   0xc   : > { %1237 = vmatpush3.bf16.msra.mxu1 (!%p263_p3), %v1297_v2  ;;  %v1546_v59 = vld [vmem:[%s1593_s3] ss:$0 sm:$0xff] (!%p263_p3) }
   0xd   : > { %1238 = vmatprep.subr.bf16.mxu1 (!%p263_p3), %v1381_v1 }
   0xe   : > { %s1601_s26 = smov (!%p319_p4, %s318_s26), 19  ;;  %1201 = vmatpush3.bf16.msra.mxu0 %v1304_v5 }
   0xf   : > { %s1086_s8 = sshll.u32 %s1601_s26, 2  ;;  %1202 = vmatprep.subr.bf16.mxu0 %v1381_v1 }
  0x10   : > { %1239 = vmatpush3.bf16.msra.mxu1 %v1298_v3  ;;  %s1466_s13 = scalar_lea.vmem %s1590_s0, %s1086_s8  ;;  %s1561_s23 = scalar_lea.vmem %s1595_s5, %s1086_s8 }
  0x11   : > { %1240 = vmatprep.subr.bf16.mxu1 %v1381_v1  ;;  %v1307_v16 = vld [vmem:[%s1466_s13] sm:$0xff]   ;;  %v1310_v18 = vld [vmem:[%s1466_s13 + $0x8] sm:$0xff]   ;;  %v1313_v19 = vld [vmem:[%s1466_s13 + $0x10] sm:$0xff]  }
  0x12   : > { %1203 = vmatpush3.bf16.msra.mxu0 %v1306_v7  ;;  %v1315_v20 = vld [vmem:[%s1466_s13 + $0x18] sm:$0xff]   ;;  %v1316_v21 = vld [vmem:[%s1466_s13 + $0x20] sm:$0xff]  }
  0x13   : > { %1204 = vmatprep.subr.bf16.mxu0 %v1381_v1 }
  0x14   : > { %1241 = vmatpush3.bf16.msra.mxu1 %v1299_v6 }
  0x15   : > { %1242 = vmatprep.subr.bf16.mxu1 %v1381_v1 }
  0x16   : > { %1205 = vmatpush3.bf16.msra.mxu0 %v1308_v9 }
  0x17   : > { %1206 = vmatprep.subr.bf16.mxu0 %v1381_v1 }
  0x18   : > { %1243 = vmatpush3.bf16.msra.mxu1 %v1300_v8 }
  0x19   : > { %1244 = vmatprep.subr.bf16.mxu1 %v1381_v1 }
  0x1a   : > { %1207 = vmatpush3.bf16.msra.mxu0 %v1309_v11 }
  0x1b   : > { %1208 = vmatprep.subr.bf16.mxu0 %v1381_v1 }
  0x1c   : > { %1245 = vmatpush3.bf16.msra.mxu1 %v1301_v10 }
  0x1d   : > { %1246 = vmatprep.subr.bf16.mxu1 %v1381_v1 }
  0x1e   : > { %1209 = vmatpush3.bf16.msra.mxu0 %v1311_v13 }
  0x1f   : > { %1210 = vmatprep.subr.bf16.mxu0 %v1381_v1 }
  0x20   : > { %1247 = vmatpush3.bf16.msra.mxu1 %v1303_v12 }
  0x21   : > { %1248 = vmatprep.subr.bf16.mxu1 %v1381_v1 }
  0x22   : > { %1211 = vmatpush3.bf16.msra.mxu0 %v1312_v15 }
  0x23   : > { %1212 = vmatprep.subr.bf16.mxu0 %v1381_v1 }
  0x24   : > { %1249 = vmatpush3.bf16.msra.mxu1 %v1305_v14 }
  0x26   : > { %1213 = vmatpush3.bf16.msra.mxu0 %v1314_v17 }
  0x27   : > { %1251 = vmatmul.mubr.bf16.vlgmr.msra.gmra.mrb[0].mxu1 %v1307_v16 }
  0x28   : > { %1254 = vmatprep.mubr.msk.bf16.mxu1 %vm1382_vm0, %v1381_v1 }
  0x29   : > { %1215 = vmatmul.mubr.bf16.vlgmr.msra.gmra.mrb[0].mxu0 %v1307_v16 }
  0x2a   : > { %1218 = vmatprep.mubr.msk.bf16.mxu0 %vm1382_vm0, %v1381_v1 }
  0x2f   : > { %1255 = vmatmul.mubr.bf16.gmra.mrb[4].mxu1 %v1310_v18 }
  0x30   : > { %1258 = vmatprep.mubr.msk.bf16.mxu1 %vm1382_vm0, %v1381_v1 }
  0x31   : > { %1219 = vmatmul.mubr.bf16.gmra.mrb[4].mxu0 %v1310_v18 }
  0x32   : > { %1222 = vmatprep.mubr.msk.bf16.mxu0 %vm1382_vm0, %v1381_v1 }
  0x37   : > { %1259 = vmatmul.mubr.bf16.gmra.mrb[8].mxu1 %v1313_v19 }
  0x38   : > { %1262 = vmatprep.mubr.msk.bf16.mxu1 %vm1382_vm0, %v1381_v1 }
  0x39   : > { %1223 = vmatmul.mubr.bf16.gmra.mrb[8].mxu0 %v1313_v19 }
  0x3a   : > { %1226 = vmatprep.mubr.msk.bf16.mxu0 %vm1382_vm0, %v1381_v1 }
  0x3f   : > { %1263 = vmatmul.mubr.bf16.gmra.mrb[12].mxu1 %v1315_v20 }
  0x40   : > { %1266 = vmatprep.mubr.msk.bf16.mxu1 %vm1382_vm0, %v1381_v1 }
  0x41   : > { %1227 = vmatmul.mubr.bf16.gmra.mrb[12].mxu0 %v1315_v20 }
  0x42   : > { %1230 = vmatprep.mubr.msk.bf16.mxu0 %vm1382_vm0, %v1381_v1 }
  0x47   : > { %1267 = vmatmul.mubr.bf16.gmra.mrb[16].mxu1 %v1316_v21 }
  0x49   : > { %1231 = vmatmul.mubr.bf16.gmra.mrb[16].mxu0 %v1316_v21 }
  0xfa   : > { %v700_v23 = vpop.f32.mrb[0].mxu1 }
  0xfb   : > { %v806_v24 = vadd.f32 %v1533_v22, %v700_v23  ;;  %v1252_v25 = vpop.f32.mrb[1].mxu1 }
  0xfc   : > { %v703_v26 = vpop.f32.mrb[2].mxu1  ;;  %v533_v31 = vpop.f32.mrb[0].mxu0 }
  0xfd   : > { %v1111_v27 = vmul.f32 -1.442695, %v806_v24  ;;  %v807_v28 = vadd.f32 %v1533_v22, %v703_v26  ;;  %v1253_v29 = vpop.f32.mrb[3].mxu1  ;;  %v1216_v32 = vpop.f32.mrb[1].mxu0  ;;  %v779_v3 = vadd.f32 %v1546_v59, %v533_v31 }
  0xfe   : > { %v536_v34 = vpop.f32.mrb[2].mxu0 }
  0xff   : > { %1317 = vpow2.f32 %v1111_v27  ;;  %v1112_v30 = vmul.f32 -1.442695, %v807_v28  ;;  %v1217_v37 = vpop.f32.mrb[3].mxu0  ;;  %v780_v14 = vadd.f32 %v1546_v59, %v536_v34 }
 0x101   : > { %1319 = vpow2.f32 %v1112_v30 }
 0x102   : > { %v708_v33 = vpop.f32.mrb[4].mxu1 }
 0x103   : > { %v808_v35 = vadd.f32 %v1533_v22, %v708_v33  ;;  %v1256_v36 = vpop.f32.mrb[5].mxu1 }
 0x104   : > { %v711_v38 = vpop.f32.mrb[6].mxu1  ;;  %v541_v43 = vpop.f32.mrb[4].mxu0 }
 0x105   : > { %v1113_v39 = vmul.f32 -1.442695, %v808_v35  ;;  %v809_v40 = vadd.f32 %v1533_v22, %v711_v38  ;;  %v1257_v41 = vpop.f32.mrb[7].mxu1  ;;  %v1220_v45 = vpop.f32.mrb[5].mxu0  ;;  %v781_v27 = vadd.f32 %v1546_v59, %v541_v43 }
 0x106   : > { %v1539_v48 = vpop.f32.mrb[6].mxu0 }
 0x107   : > { %1321 = vpow2.f32 %v1113_v39  ;;  %v1114_v42 = vmul.f32 -1.442695, %v809_v40  ;;  %v1221_v52 = vpop.f32.mrb[7].mxu0  ;;  %v782_v38 = vadd.f32 %v1546_v59, %v1539_v48 }
 0x109   : > { %v1318_v44 = vpop.eup %1317  ;;  %1323 = vpow2.f32 %v1114_v42 }
 0x10a   : > { %v846_v46 = vadd.f32 1.0, %v1318_v44  ;;  %v716_v47 = vpop.f32.mrb[8].mxu1 }
 0x10b   : > { %v1320_v49 = vpop.eup %1319  ;;  %v810_v50 = vadd.f32 %v1533_v22, %v716_v47  ;;  %v1260_v51 = vpop.f32.mrb[9].mxu1 }
 0x10c   : > { %1325 = vrcp.f32 %v846_v46  ;;  %v847_v53 = vadd.f32 1.0, %v1320_v49  ;;  %v719_v54 = vpop.f32.mrb[10].mxu1  ;;  %v1548_v60 = vpop.f32.mrb[8].mxu0 }
 0x10d   : > { %v1115_v55 = vmul.f32 -1.442695, %v810_v50  ;;  %v811_v56 = vadd.f32 %v1533_v22, %v719_v54  ;;  %v1261_v57 = vpop.f32.mrb[11].mxu1  ;;  %v1224_v62 = vpop.f32.mrb[9].mxu0  ;;  %v783_v49 = vadd.f32 %v1546_v59, %v1548_v60 }
 0x10e   : > { %1327 = vrcp.f32 %v847_v53  ;;  %v1550_v1 = vpop.f32.mrb[10].mxu0 }
 0x10f   : > { %1329 = vpow2.f32 %v1115_v55  ;;  %v1116_v58 = vmul.f32 -1.442695, %v811_v56  ;;  %v1225_v6 = vpop.f32.mrb[11].mxu0  ;;  %v784_v53 = vadd.f32 %v1546_v59, %v1550_v1 }
 0x111   : > { %v1322_v61 = vpop.eup %1321  ;;  %1331 = vpow2.f32 %v1116_v58 }
 0x112   : > { %v848_v63 = vadd.f32 1.0, %v1322_v61  ;;  %v724_v0 = vpop.f32.mrb[12].mxu1 }
 0x113   : > { %v1324_v2 = vpop.eup %1323  ;;  %v812_v4 = vadd.f32 %v1533_v22, %v724_v0  ;;  %v1264_v5 = vpop.f32.mrb[13].mxu1 }
 0x114   : > { %1333 = vrcp.f32 %v848_v63  ;;  %v849_v7 = vadd.f32 1.0, %v1324_v2  ;;  %v727_v8 = vpop.f32.mrb[14].mxu1  ;;  %v557_v17 = vpop.f32.mrb[12].mxu0 }
 0x115   : > { %v1117_v9 = vmul.f32 -1.442695, %v812_v4  ;;  %v813_v10 = vadd.f32 %v1533_v22, %v727_v8  ;;  %v1265_v11 = vpop.f32.mrb[15].mxu1  ;;  %v1228_v20 = vpop.f32.mrb[13].mxu0  ;;  %v785_v60 = vadd.f32 %v1546_v59, %v557_v17 }
 0x116   : > { %v1326_v12 = vpop.eup %1325  ;;  %1335 = vrcp.f32 %v849_v7  ;;  %v560_v24 = vpop.f32.mrb[14].mxu0 }
 0x117   : > { %v876_v13 = vmul.f32 %v1326_v12, %v779_v3  ;;  %1337 = vpow2.f32 %v1117_v9  ;;  %v1118_v15 = vmul.f32 -1.442695, %v813_v10  ;;  %v1229_v30 = vpop.f32.mrb[15].mxu0  ;;  %v786_v2 = vadd.f32 %v1546_v59, %v560_v24 }
 0x118   : > { %v1328_v16 = vpop.eup %1327 }
 0x119   : > { %v1330_v18 = vpop.eup %1329  ;;  %v877_v19 = vmul.f32 %v1328_v16, %v780_v14  ;;  %1339 = vpow2.f32 %v1118_v15 }
 0x11a   : > { %v850_v21 = vadd.f32 1.0, %v1330_v18  ;;  %v732_v23 = vpop.f32.mrb[16].mxu1 }
 0x11b   : > { %v1332_v25 = vpop.eup %1331  ;;  %v1146_v26 = vpack.c.bf16 %v877_v19, %v876_v13  ;;  %v814_v28 = vadd.f32 %v1533_v22, %v732_v23  ;;  %v1268_v29 = vpop.f32.mrb[17].mxu1 }
 0x11c   : > { %1341 = vrcp.f32 %v850_v21  ;;  %v851_v31 = vadd.f32 1.0, %v1332_v25  ;;  %v735_v32 = vpop.f32.mrb[18].mxu1  ;;  %v565_v41 = vpop.f32.mrb[16].mxu0 }
 0x11d   : > { %1147 = vst [vmem:[%s1561_s23] sm:$0xff] %v1146_v26   ;;  %v1119_v33 = vmul.f32 -1.442695, %v814_v28  ;;  %v815_v34 = vadd.f32 %v1533_v22, %v735_v32  ;;  %v1269_v35 = vpop.f32.mrb[19].mxu1  ;;  %v1232_v44 = vpop.f32.mrb[17].mxu0  ;;  %v787_v5 = vadd.f32 %v1546_v59, %v565_v41 }
 0x11e   : > { %v1334_v36 = vpop.eup %1333  ;;  %1343 = vrcp.f32 %v851_v31  ;;  %v568_v46 = vpop.f32.mrb[18].mxu0 }
 0x11f   : > { %v878_v37 = vmul.f32 %v1334_v36, %v781_v27  ;;  %1345 = vpow2.f32 %v1119_v33  ;;  %v1120_v39 = vmul.f32 -1.442695, %v815_v34  ;;  %v1233_v50 = vpop.f32.mrb[19].mxu0  ;;  %v788_v8 = vadd.f32 %v1546_v59, %v568_v46 }
 0x120   : > { %v1336_v40 = vpop.eup %1335 }
 0x121   : > { %v1338_v42 = vpop.eup %1337  ;;  %v879_v43 = vmul.f32 %v1336_v40, %v782_v38  ;;  %1347 = vpow2.f32 %v1120_v39 }
 0x122   : > { %v852_v45 = vadd.f32 1.0, %v1338_v42 }
 0x123   : > { %v1340_v47 = vpop.eup %1339  ;;  %v1151_v22 = vpack.c.bf16 %v879_v43, %v878_v37 }
 0x124   : > { %1349 = vrcp.f32 %v852_v45  ;;  %v853_v51 = vadd.f32 1.0, %v1340_v47 }
 0x125   : > { %1168 = vst [vmem:[%s1561_s23 + $0x8] sm:$0xff] %v1151_v22  }
 0x126   : > { %v1342_v48 = vpop.eup %1341  ;;  %1351 = vrcp.f32 %v853_v51 }
 0x127   : > { %v880_v52 = vmul.f32 %v1342_v48, %v783_v49 }
 0x128   : > { %v1344_v54 = vpop.eup %1343 }
 0x129   : > { %v1346_v55 = vpop.eup %1345  ;;  %v881_v56 = vmul.f32 %v1344_v54, %v784_v53 }
 0x12a   : > { %v854_v57 = vadd.f32 1.0, %v1346_v55 }
 0x12b   : > { %v1348_v58 = vpop.eup %1347  ;;  %v1156_v61 = vpack.c.bf16 %v881_v56, %v880_v52 }
 0x12c   : > { %1353 = vrcp.f32 %v854_v57  ;;  %v855_v62 = vadd.f32 1.0, %v1348_v58 }
 0x12d   : > { %1169 = vst [vmem:[%s1561_s23 + $0x10] sm:$0xff] %v1156_v61  }
 0x12e   : > { %v1350_v63 = vpop.eup %1349  ;;  %1355 = vrcp.f32 %v855_v62 }
 0x12f   : > { %v882_v0 = vmul.f32 %v1350_v63, %v785_v60 }
 0x130   : > { %v1352_v3 = vpop.eup %1351 }
 0x131   : > { %v883_v1 = vmul.f32 %v1352_v3, %v786_v2 }
 0x133   : > { %v1161_v4 = vpack.c.bf16 %v883_v1, %v882_v0 }
 0x135   : > { %1170 = vst [vmem:[%s1561_s23 + $0x18] sm:$0xff] %v1161_v4  }
 0x136   : > { %v1354_v6 = vpop.eup %1353 }
 0x137   : > { %v884_v7 = vmul.f32 %v1354_v6, %v787_v5 }
 0x138   : > { %v1356_v9 = vpop.eup %1355 }
 0x139   : > { %v885_v10 = vmul.f32 %v1356_v9, %v788_v8 }
 0x13b   : > { %v1166_v11 = vpack.c.bf16 %v885_v10, %v884_v7 }
 0x13d   : > { %1171 = vst [vmem:[%s1561_s23 + $0x20] sm:$0xff] %v1166_v11  }
 0x13e PF: > { %s15_s20 = sadd.s32 1, %s1379_s20   ;;  %s1596_s18 = smov %s1375_s19 }
 0x13f   : > { %p12_p5 = scmp.ge.s32.totalorder %s15_s20, 4   ;;  %s1597_s19 = smov %s1599_s21 }
 0x141   :  { %14 = sbr.rel (!%p12_p5) target bundleno = 2 (0x2), region = 90 }

// kernel: _lambda_.33
= control target key start
LH: loop header
LB: loop body
LE: loop exit
PB: predicated region body
PF: predicated region fallthrough
CT: control target
= control target key end

     0   :  { %s664_s12 = smov 0   ;;  %s666_s13 = smov 0   ;;  %s731_s0 = inlined_call_operand.vmem [shape: bf16[48,128], index: 0, kind: input, shape index: {}]   ;;  %s732_s1 = inlined_call_operand.vmem [shape: bf16[128,128], index: 1, kind: input, shape index: {}]   ;;  %s733_s2 = inlined_call_operand.vmem [shape: f32[1,128], index: 2, kind: input, shape index: {}]   ;;  %s734_s3 = inlined_call_operand.vmem [shape: bf16[48,128], index: 3, kind: output, shape index: {}]  }
   0x1   :  { %s668_s14 = smov 0  }
   0x2 LB: > { %s32_s15 = sadd.s32 1, %s636_s13  ;;  %p528_p0 = scmp.ge.s32.totalorder %s640_s14, 1  ;;  %s640_s14 = sphi %s668_s14, %s13_s14   ;;  %s636_s13 = sphi %s666_s13, %s736_s13   ;;  %s632_s12 = sphi %s664_s12, %s735_s12  }
   0x3   : > { %p34_p1 = scmp.ge.s32.totalorder %s32_s15, 3  ;;  %p188_p2 = scmp.lt.s32.totalorder %s640_s14, 4 }
   0x5   : > { %s738_s15 = smov (%p34_p1, %s32_s15), 0  ;;  %p189_p3 = pnand %p528_p0, %p188_p2 }
   0x6   : > { %v609_v0 = vld [vmem:[%s732_s1] sm:$0xff] (!%p189_p3)   ;;  %v642_v1 = vmov (!%p189_p3), 0.0   ;;  %v610_v2 = vld [vmem:[%s732_s1 + $0x8] sm:$0xff] (!%p189_p3)   ;;  %vm643_vm0 = vmmov (!%p189_p3), 0   ;;  %s529_s20 = sshll.u32 (!%p189_p3), %s632_s12, 1  ;;  %v611_v3 = vld [vmem:[%s732_s1 + $0x10] sm:$0xff] (!%p189_p3)  }
   0x7   : > { %192 = sbr.rel (%p189_p3) target bundleno = 260 (0x104), region = 32  ;;  %563 = vmatprep.subr.bf16.mxu0 (!%p189_p3), %v642_v1  ;;  %579 = vmatprep.mubr.msk.bf16.mxu0 (!%p189_p3), %vm643_vm0, %v642_v1  ;;  %p230_p4 = scmp.lt.s32.totalorder (!%p189_p3), %s529_s20, 5  ;;  %v612_v4 = vld [vmem:[%s732_s1 + $0x18] sm:$0xff] (!%p189_p3)   ;;  %v613_v5 = vld [vmem:[%s732_s1 + $0x20] sm:$0xff] (!%p189_p3)   ;;  %v614_v6 = vld [vmem:[%s732_s1 + $0x28] sm:$0xff] (!%p189_p3)  }
   0x8   : > { %564 = vmatpush3.bf16.msra.mxu0 (!%p189_p3), %v609_v0  ;;  %v615_v7 = vld [vmem:[%s732_s1 + $0x30] sm:$0xff] (!%p189_p3)   ;;  %v616_v8 = vld [vmem:[%s732_s1 + $0x38] sm:$0xff] (!%p189_p3)   ;;  %v542_v10 = vld [vmem:[%s733_s2] ss:$0 sm:$0xff] (!%p189_p3) }
   0x9   : > { %565 = vmatprep.subr.bf16.mxu0 (!%p189_p3), %v642_v1 }
   0xc   : > { %566 = vmatpush3.bf16.msra.mxu0 (!%p189_p3), %v610_v2 }
   0xd   : > { %567 = vmatprep.subr.bf16.mxu0 (!%p189_p3), %v642_v1 }
   0xe   : > { %s740_s20 = smov (!%p230_p4, %s529_s20), 5 }
   0xf   : > { %s530_s23 = sshll.u32 %s740_s20, 2 }
  0x10   : > { %s236_s26 = scalar_lea.vmem %s731_s0, %s530_s23  ;;  %568 = vmatpush3.bf16.msra.mxu0 %v611_v3  ;;  %s257_s17 = scalar_lea.vmem %s734_s3, %s530_s23 }
  0x11   : > { %569 = vmatprep.subr.bf16.mxu0 %v642_v1  ;;  %v617_v9 = vld [vmem:[%s236_s26] sm:$0xff]  }
  0x14   : > { %570 = vmatpush3.bf16.msra.mxu0 %v612_v4 }
  0x15   : > { %571 = vmatprep.subr.bf16.mxu0 %v642_v1 }
  0x18   : > { %572 = vmatpush3.bf16.msra.mxu0 %v613_v5 }
  0x19   : > { %573 = vmatprep.subr.bf16.mxu0 %v642_v1 }
  0x1c   : > { %574 = vmatpush3.bf16.msra.mxu0 %v614_v6 }
  0x1d   : > { %575 = vmatprep.subr.bf16.mxu0 %v642_v1 }
  0x20   : > { %576 = vmatpush3.bf16.msra.mxu0 %v615_v7 }
  0x21   : > { %577 = vmatprep.subr.bf16.mxu0 %v642_v1 }
  0x24   : > { %578 = vmatpush3.bf16.msra.mxu0 %v616_v8 }
  0x27   : > { %580 = vmatmul.mubr.bf16.vlgmr.msra.gmra.mrb[0].mxu0 %v617_v9 }
  0xfa   : > { %v374_v11 = vpop.f32.mrb[0].mxu0 }
  0xfb   : > { %v397_v12 = vadd.f32 %v542_v10, %v374_v11  ;;  %v581_v13 = vpop.f32.mrb[1].mxu0 }
  0xfc   : > { %v377_v14 = vpop.f32.mrb[2].mxu0 }
  0xfd   : > { %v398_v15 = vadd.f32 %v542_v10, %v377_v14  ;;  %v582_v16 = vpop.f32.mrb[3].mxu0  ;;  %v399_v17 = vmax.f32 %v397_v12, 0.0 }
  0xff   : > { %v400_v18 = vmax.f32 %v398_v15, 0.0 }
 0x101   : > { %v552_v19 = vpack.c.bf16 %v400_v18, %v399_v17 }
 0x103   : > { %553 = vst [vmem:[%s257_s17] sm:$0xff] %v552_v19  }
 0x104 PF: > { %s13_s14 = sadd.s32 1, %s640_s14   ;;  %s735_s12 = smov %s636_s13 }
 0x105   : > { %p10_p5 = scmp.ge.s32.totalorder %s13_s14, 5   ;;  %s736_s13 = smov %s738_s15 }
 0x107   :  { %12 = sbr.rel (!%p10_p5) target bundleno = 2 (0x2), region = 76 }

// kernel: _lambda_.35
= control target key start
LH: loop header
LB: loop body
LE: loop exit
PB: predicated region body
PF: predicated region fallthrough
CT: control target
= control target key end

     0   :  { %s645_s12 = smov 0   ;;  %s647_s13 = smov 0   ;;  %s705_s0 = inlined_call_operand.vmem [shape: bf16[48,128], index: 0, kind: input, shape index: {}]   ;;  %s706_s1 = inlined_call_operand.vmem [shape: bf16[128,128], index: 1, kind: input, shape index: {}]   ;;  %s707_s2 = inlined_call_operand.vmem [shape: f32[1,128], index: 2, kind: input, shape index: {}]   ;;  %s708_s3 = inlined_call_operand.vmem [shape: f32[48,128], index: 3, kind: output, shape index: {}]  }
   0x1   :  { %s649_s14 = smov 0  }
   0x2 LB: > { %s32_s15 = sadd.s32 1, %s617_s13  ;;  %p518_p0 = scmp.ge.s32.totalorder %s621_s14, 1  ;;  %s621_s14 = sphi %s649_s14, %s13_s14   ;;  %s617_s13 = sphi %s647_s13, %s710_s13   ;;  %s613_s12 = sphi %s645_s12, %s709_s12  }
   0x3   : > { %p34_p1 = scmp.ge.s32.totalorder %s32_s15, 3  ;;  %p188_p2 = scmp.lt.s32.totalorder %s621_s14, 4 }
   0x5   : > { %s712_s15 = smov (%p34_p1, %s32_s15), 0  ;;  %p189_p3 = pnand %p518_p0, %p188_p2 }
   0x6   : > { %v590_v0 = vld [vmem:[%s706_s1] sm:$0xff] (!%p189_p3)   ;;  %v623_v1 = vmov (!%p189_p3), 0.0   ;;  %v591_v2 = vld [vmem:[%s706_s1 + $0x8] sm:$0xff] (!%p189_p3)   ;;  %vm624_vm0 = vmmov (!%p189_p3), 0   ;;  %s519_s20 = sshll.u32 (!%p189_p3), %s613_s12, 1  ;;  %v592_v3 = vld [vmem:[%s706_s1 + $0x10] sm:$0xff] (!%p189_p3)  }
   0x7   : > { %192 = sbr.rel (%p189_p3) target bundleno = 256 (0x100), region = 32  ;;  %544 = vmatprep.subr.bf16.mxu0 (!%p189_p3), %v623_v1  ;;  %560 = vmatprep.mubr.msk.bf16.mxu0 (!%p189_p3), %vm624_vm0, %v623_v1  ;;  %p230_p4 = scmp.lt.s32.totalorder (!%p189_p3), %s519_s20, 5  ;;  %v593_v4 = vld [vmem:[%s706_s1 + $0x18] sm:$0xff] (!%p189_p3)   ;;  %v594_v5 = vld [vmem:[%s706_s1 + $0x20] sm:$0xff] (!%p189_p3)   ;;  %v595_v6 = vld [vmem:[%s706_s1 + $0x28] sm:$0xff] (!%p189_p3)  }
   0x8   : > { %545 = vmatpush3.bf16.msra.mxu0 (!%p189_p3), %v590_v0  ;;  %v596_v7 = vld [vmem:[%s706_s1 + $0x30] sm:$0xff] (!%p189_p3)   ;;  %v597_v8 = vld [vmem:[%s706_s1 + $0x38] sm:$0xff] (!%p189_p3)   ;;  %v532_v10 = vld [vmem:[%s707_s2] ss:$0 sm:$0xff] (!%p189_p3) }
   0x9   : > { %546 = vmatprep.subr.bf16.mxu0 (!%p189_p3), %v623_v1 }
   0xc   : > { %547 = vmatpush3.bf16.msra.mxu0 (!%p189_p3), %v591_v2 }
   0xd   : > { %548 = vmatprep.subr.bf16.mxu0 (!%p189_p3), %v623_v1 }
   0xe   : > { %s714_s20 = smov (!%p230_p4, %s519_s20), 5 }
   0xf   : > { %s520_s23 = sshll.u32 %s714_s20, 2  ;;  %s522_s10 = sshll.u32 %s714_s20, 3 }
  0x10   : > { %s236_s26 = scalar_lea.vmem %s705_s0, %s520_s23  ;;  %549 = vmatpush3.bf16.msra.mxu0 %v592_v3  ;;  %s257_s18 = scalar_lea.vmem %s708_s3, %s522_s10 }
  0x11   : > { %550 = vmatprep.subr.bf16.mxu0 %v623_v1  ;;  %v598_v9 = vld [vmem:[%s236_s26] sm:$0xff]  }
  0x14   : > { %551 = vmatpush3.bf16.msra.mxu0 %v593_v4 }
  0x15   : > { %552 = vmatprep.subr.bf16.mxu0 %v623_v1 }
  0x18   : > { %553 = vmatpush3.bf16.msra.mxu0 %v594_v5 }
  0x19   : > { %554 = vmatprep.subr.bf16.mxu0 %v623_v1 }
  0x1c   : > { %555 = vmatpush3.bf16.msra.mxu0 %v595_v6 }
  0x1d   : > { %556 = vmatprep.subr.bf16.mxu0 %v623_v1 }
  0x20   : > { %557 = vmatpush3.bf16.msra.mxu0 %v596_v7 }
  0x21   : > { %558 = vmatprep.subr.bf16.mxu0 %v623_v1 }
  0x24   : > { %559 = vmatpush3.bf16.msra.mxu0 %v597_v8 }
  0x27   : > { %561 = vmatmul.mubr.bf16.vlgmr.msra.gmra.mrb[0].mxu0 %v598_v9 }
  0xfa   : > { %v374_v11 = vpop.f32.mrb[0].mxu0 }
  0xfb   : > { %v397_v12 = vadd.f32 %v532_v10, %v374_v11  ;;  %v562_v13 = vpop.f32.mrb[1].mxu0 }
  0xfc   : > { %v377_v14 = vpop.f32.mrb[2].mxu0 }
  0xfd   : > { %399 = vst [vmem:[%s257_s18] sm:$0xff] %v397_v12  ;;  %v398_v15 = vadd.f32 %v532_v10, %v377_v14  ;;  %v563_v16 = vpop.f32.mrb[3].mxu0 }
  0xff   : > { %400 = vst [vmem:[%s257_s18 + $0x8] sm:$0xff] %v398_v15 }
 0x100 PF: > { %s13_s14 = sadd.s32 1, %s621_s14   ;;  %s709_s12 = smov %s617_s13 }
 0x101   : > { %p10_p5 = scmp.ge.s32.totalorder %s13_s14, 5   ;;  %s710_s13 = smov %s712_s15 }
 0x103   :  { %12 = sbr.rel (!%p10_p5) target bundleno = 2 (0x2), region = 76 }

// kernel: _lambda_.34
= control target key start
LH: loop header
LB: loop body
LE: loop exit
PB: predicated region body
PF: predicated region fallthrough
CT: control target
= control target key end

     0   :  { %s999_s18 = smov 0   ;;  %s1001_s19 = smov 0   ;;  %s1093_s0 = inlined_call_operand.vmem [shape: bf16[48,128], index: 0, kind: input, shape index: {}]   ;;  %s1094_s1 = inlined_call_operand.vmem [shape: bf16[128,128], index: 1, kind: input, shape index: {}]   ;;  %s1095_s2 = inlined_call_operand.vmem [shape: bf16[128,128], index: 2, kind: input, shape index: {}]   ;;  %s1096_s3 = inlined_call_operand.vmem [shape: f32[1,128], index: 3, kind: input, shape index: {}]   ;;  %s1097_s4 = inlined_call_operand.vmem [shape: f32[1,128], index: 4, kind: input, shape index: {}]   ;;  %s1098_s5 = inlined_call_operand.vmem [shape: bf16[48,128], index: 5, kind: output, shape index: {}]  }
   0x1   :  { %s1003_s20 = smov 0  }
   0x2 LB: > { %s34_s21 = sadd.s32 1, %s961_s19  ;;  %p797_p0 = scmp.ge.s32.totalorder %s965_s20, 1  ;;  %s965_s20 = sphi %s1003_s20, %s15_s20   ;;  %s961_s19 = sphi %s1001_s19, %s1100_s19   ;;  %s957_s18 = sphi %s999_s18, %s1099_s18  }
   0x3   : > { %p36_p1 = scmp.ge.s32.totalorder %s34_s21, 3  ;;  %p262_p2 = scmp.lt.s32.totalorder %s965_s20, 4 }
   0x5   : > { %s1102_s21 = smov (%p36_p1, %s34_s21), 0  ;;  %p263_p3 = pnand %p797_p0, %p262_p2 }
   0x6   : > { %v918_v0 = vld [vmem:[%s1095_s2] sm:$0xff] (!%p263_p3)   ;;  %v967_v1 = vmov (!%p263_p3), 0.0   ;;  %v919_v2 = vld [vmem:[%s1095_s2 + $0x8] sm:$0xff] (!%p263_p3)   ;;  %vm968_vm0 = vmmov (!%p263_p3), 0   ;;  %s798_s26 = sshll.u32 (!%p263_p3), %s957_s18, 1  ;;  %v920_v3 = vld [vmem:[%s1095_s2 + $0x10] sm:$0xff] (!%p263_p3)  }
   0x7   : > { %266 = sbr.rel (%p263_p3) target bundleno = 286 (0x11e), region = 40  ;;  %872 = vmatprep.subr.bf16.mxu1 (!%p263_p3), %v967_v1  ;;  %852 = vmatprep.subr.bf16.mxu0 (!%p263_p3), %v967_v1  ;;  %p319_p4 = scmp.lt.s32.totalorder (!%p263_p3), %s798_s26, 5  ;;  %v924_v4 = vld [vmem:[%s1094_s1] sm:$0xff] (!%p263_p3)   ;;  %v926_v5 = vld [vmem:[%s1094_s1 + $0x8] sm:$0xff] (!%p263_p3)   ;;  %v921_v6 = vld [vmem:[%s1095_s2 + $0x18] sm:$0xff] (!%p263_p3)  }
   0x8   : > { %873 = vmatpush3.bf16.msra.mxu1 (!%p263_p3), %v918_v0  ;;  %888 = vmatprep.mubr.msk.bf16.mxu1 (!%p263_p3), %vm968_vm0, %v967_v1  ;;  %v928_v7 = vld [vmem:[%s1094_s1 + $0x10] sm:$0xff] (!%p263_p3)   ;;  %v922_v8 = vld [vmem:[%s1095_s2 + $0x20] sm:$0xff] (!%p263_p3)   ;;  %v930_v9 = vld [vmem:[%s1094_s1 + $0x18] sm:$0xff] (!%p263_p3)  }
   0x9   : > { %874 = vmatprep.subr.bf16.mxu1 (!%p263_p3), %v967_v1  ;;  %868 = vmatprep.mubr.msk.bf16.mxu0 (!%p263_p3), %vm968_vm0, %v967_v1  ;;  %v923_v10 = vld [vmem:[%s1095_s2 + $0x28] sm:$0xff] (!%p263_p3)   ;;  %v931_v11 = vld [vmem:[%s1094_s1 + $0x20] sm:$0xff] (!%p263_p3)   ;;  %v925_v12 = vld [vmem:[%s1095_s2 + $0x30] sm:$0xff] (!%p263_p3)  }
   0xa   : > { %853 = vmatpush3.bf16.msra.mxu0 (!%p263_p3), %v924_v4  ;;  %v932_v13 = vld [vmem:[%s1094_s1 + $0x28] sm:$0xff] (!%p263_p3)   ;;  %v927_v14 = vld [vmem:[%s1095_s2 + $0x38] sm:$0xff] (!%p263_p3)   ;;  %v933_v15 = vld [vmem:[%s1094_s1 + $0x30] sm:$0xff] (!%p263_p3)  }
   0xb   : > { %854 = vmatprep.subr.bf16.mxu0 (!%p263_p3), %v967_v1  ;;  %v934_v17 = vld [vmem:[%s1094_s1 + $0x38] sm:$0xff] (!%p263_p3)   ;;  %v820_v18 = vld [vmem:[%s1097_s4] ss:$0 sm:$0xff] (!%p263_p3) }
   0xc   : > { %875 = vmatpush3.bf16.msra.mxu1 (!%p263_p3), %v919_v2  ;;  %v819_v35 = vld [vmem:[%s1096_s3] ss:$0 sm:$0xff] (!%p263_p3) }
   0xd   : > { %876 = vmatprep.subr.bf16.mxu1 (!%p263_p3), %v967_v1 }
   0xe   : > { %s1104_s26 = smov (!%p319_p4, %s798_s26), 5  ;;  %855 = vmatpush3.bf16.msra.mxu0 %v926_v5 }
   0xf   : > { %s799_s6 = sshll.u32 %s1104_s26, 2  ;;  %856 = vmatprep.subr.bf16.mxu0 %v967_v1 }
  0x10   : > { %877 = vmatpush3.bf16.msra.mxu1 %v920_v3  ;;  %s325_s13 = scalar_lea.vmem %s1093_s0, %s799_s6  ;;  %s358_s23 = scalar_lea.vmem %s1098_s5, %s799_s6 }
  0x11   : > { %878 = vmatprep.subr.bf16.mxu1 %v967_v1  ;;  %v929_v16 = vld [vmem:[%s325_s13] sm:$0xff]  }
  0x12   : > { %857 = vmatpush3.bf16.msra.mxu0 %v928_v7 }
  0x13   : > { %858 = vmatprep.subr.bf16.mxu0 %v967_v1 }
  0x14   : > { %879 = vmatpush3.bf16.msra.mxu1 %v921_v6 }
  0x15   : > { %880 = vmatprep.subr.bf16.mxu1 %v967_v1 }
  0x16   : > { %859 = vmatpush3.bf16.msra.mxu0 %v930_v9 }
  0x17   : > { %860 = vmatprep.subr.bf16.mxu0 %v967_v1 }
  0x18   : > { %881 = vmatpush3.bf16.msra.mxu1 %v922_v8 }
  0x19   : > { %882 = vmatprep.subr.bf16.mxu1 %v967_v1 }
  0x1a   : > { %861 = vmatpush3.bf16.msra.mxu0 %v931_v11 }
  0x1b   : > { %862 = vmatprep.subr.bf16.mxu0 %v967_v1 }
  0x1c   : > { %883 = vmatpush3.bf16.msra.mxu1 %v923_v10 }
  0x1d   : > { %884 = vmatprep.subr.bf16.mxu1 %v967_v1 }
  0x1e   : > { %863 = vmatpush3.bf16.msra.mxu0 %v932_v13 }
  0x1f   : > { %864 = vmatprep.subr.bf16.mxu0 %v967_v1 }
  0x20   : > { %885 = vmatpush3.bf16.msra.mxu1 %v925_v12 }
  0x21   : > { %886 = vmatprep.subr.bf16.mxu1 %v967_v1 }
  0x22   : > { %865 = vmatpush3.bf16.msra.mxu0 %v933_v15 }
  0x23   : > { %866 = vmatprep.subr.bf16.mxu0 %v967_v1 }
  0x24   : > { %887 = vmatpush3.bf16.msra.mxu1 %v927_v14 }
  0x26   : > { %867 = vmatpush3.bf16.msra.mxu0 %v934_v17 }
  0x27   : > { %889 = vmatmul.mubr.bf16.vlgmr.msra.gmra.mrb[0].mxu1 %v929_v16 }
  0x29   : > { %869 = vmatmul.mubr.bf16.vlgmr.msra.gmra.mrb[0].mxu0 %v929_v16 }
  0xfa   : > { %v588_v19 = vpop.f32.mrb[0].mxu1 }
  0xfb   : > { %v622_v20 = vadd.f32 %v820_v18, %v588_v19  ;;  %v890_v21 = vpop.f32.mrb[1].mxu1 }
  0xfc   : > { %v591_v22 = vpop.f32.mrb[2].mxu1  ;;  %v477_v27 = vpop.f32.mrb[0].mxu0 }
  0xfd   : > { %v821_v23 = vmul.f32 -1.442695, %v622_v20  ;;  %v623_v24 = vadd.f32 %v820_v18, %v591_v22  ;;  %v891_v25 = vpop.f32.mrb[3].mxu1  ;;  %v870_v28 = vpop.f32.mrb[1].mxu0  ;;  %v611_v36 = vadd.f32 %v819_v35, %v477_v27 }
  0xfe   : > { %v480_v29 = vpop.f32.mrb[2].mxu0 }
  0xff   : > { %935 = vpow2.f32 %v821_v23  ;;  %v822_v26 = vmul.f32 -1.442695, %v623_v24  ;;  %v871_v30 = vpop.f32.mrb[3].mxu0  ;;  %v612_v39 = vadd.f32 %v819_v35, %v480_v29 }
 0x101   : > { %937 = vpow2.f32 %v822_v26 }
 0x109   : > { %v936_v31 = vpop.eup %935 }
 0x10a   : > { %v630_v32 = vadd.f32 1.0, %v936_v31 }
 0x10b   : > { %v938_v33 = vpop.eup %937 }
 0x10c   : > { %939 = vrcp.f32 %v630_v32  ;;  %v631_v34 = vadd.f32 1.0, %v938_v33 }
 0x10e   : > { %941 = vrcp.f32 %v631_v34 }
 0x116   : > { %v940_v37 = vpop.eup %939 }
 0x117   : > { %v636_v38 = vmul.f32 %v940_v37, %v611_v36 }
 0x118   : > { %v942_v40 = vpop.eup %941 }
 0x119   : > { %v637_v41 = vmul.f32 %v942_v40, %v612_v39 }
 0x11b   : > { %v832_v42 = vpack.c.bf16 %v637_v41, %v636_v38 }
 0x11d   : > { %833 = vst [vmem:[%s358_s23] sm:$0xff] %v832_v42  }
 0x11e PF: > { %s15_s20 = sadd.s32 1, %s965_s20   ;;  %s1099_s18 = smov %s961_s19 }
 0x11f   : > { %p12_p5 = scmp.ge.s32.totalorder %s15_s20, 5   ;;  %s1100_s19 = smov %s1102_s21 }
 0x121   :  { %14 = sbr.rel (!%p12_p5) target bundleno = 2 (0x2), region = 90 }

// kernel: _lambda_.38
= control target key start
LH: loop header
LB: loop body
LE: loop exit
PB: predicated region body
PF: predicated region fallthrough
CT: control target
= control target key end

     0   :  { %s787_s21 = smov 0   ;;  %s789_s22 = smov 0   ;;  %s861_s0 = inlined_call_operand.vmem [shape: bf16[48,128], index: 0, kind: input, shape index: {}]   ;;  %s862_s1 = inlined_call_operand.vmem [shape: bf16[128,128], index: 1, kind: input, shape index: {}]   ;;  %s863_s2 = inlined_call_operand.vmem [shape: f32[1,128], index: 2, kind: input, shape index: {}]   ;;  %s864_s3 = inlined_call_operand.vmem [shape: bf16[48,128], index: 3, kind: input, shape index: {}]   ;;  %s865_s4 = inlined_call_operand.vmem [shape: f32[1,128], index: 4, kind: input, shape index: {}]   ;;  %s866_s5 = inlined_call_operand.vmem [shape: f32[1,128], index: 5, kind: input, shape index: {}]   ;;  %s867_s6 = inlined_call_operand.vmem [shape: bf16[48,128], index: 6, kind: output, shape index: {}]  }
   0x1   :  { %s791_s23 = smov 0  }
   0x2 LB: > { %s28_s24 = sadd.s32 1, %s744_s22  ;;  %p624_p0 = scmp.ge.s32.totalorder %s748_s23, 1  ;;  %s748_s23 = sphi %s791_s23, %s16_s23   ;;  %s744_s22 = sphi %s789_s22, %s869_s22   ;;  %s740_s21 = sphi %s787_s21, %s868_s21  }
   0x3   : > { %p30_p1 = scmp.ge.s32.totalorder %s28_s24, 3  ;;  %p252_p2 = scmp.lt.s32.totalorder %s748_s23, 4 }
   0x5   : > { %s871_s24 = smov (%p30_p1, %s28_s24), 0  ;;  %p253_p3 = pnand %p624_p0, %p252_p2 }
   0x6   : > { %v713_v0 = vld [vmem:[%s862_s1] sm:$0xff] (!%p253_p3)   ;;  %v750_v1 = vmov (!%p253_p3), 0.0   ;;  %v714_v2 = vld [vmem:[%s862_s1 + $0x8] sm:$0xff] (!%p253_p3)   ;;  %vm751_vm0 = vmmov (!%p253_p3), 0   ;;  %s625_s29 = sshll.u32 (!%p253_p3), %s740_s21, 1  ;;  %v715_v3 = vld [vmem:[%s862_s1 + $0x10] sm:$0xff] (!%p253_p3)  }
   0x7   : > { %256 = sbr.rel (%p253_p3) target bundleno = 431 (0x1af), region = 44  ;;  %667 = vmatprep.subr.bf16.mxu0 (!%p253_p3), %v750_v1  ;;  %683 = vmatprep.mubr.msk.bf16.mxu0 (!%p253_p3), %vm751_vm0, %v750_v1  ;;  %p296_p4 = scmp.lt.s32.totalorder (!%p253_p3), %s625_s29, 5  ;;  %v716_v4 = vld [vmem:[%s862_s1 + $0x18] sm:$0xff] (!%p253_p3)   ;;  %v717_v5 = vld [vmem:[%s862_s1 + $0x20] sm:$0xff] (!%p253_p3)   ;;  %v718_v6 = vld [vmem:[%s862_s1 + $0x28] sm:$0xff] (!%p253_p3)  }
   0x8   : > { %668 = vmatpush3.bf16.msra.mxu0 (!%p253_p3), %v713_v0  ;;  %v719_v7 = vld [vmem:[%s862_s1 + $0x30] sm:$0xff] (!%p253_p3)   ;;  %v720_v8 = vld [vmem:[%s862_s1 + $0x38] sm:$0xff] (!%p253_p3)   ;;  %v640_v11 = vld [vmem:[%s863_s2] ss:$0 sm:$0xff] (!%p253_p3) }
   0x9   : > { %669 = vmatprep.subr.bf16.mxu0 (!%p253_p3), %v750_v1  ;;  %v641_v43 = vld [vmem:[%s865_s4] ss:$0 sm:$0xff] (!%p253_p3) }
   0xa   : > { %v642_v48 = vld [vmem:[%s866_s5] ss:$0 sm:$0xff] (!%p253_p3) }
   0xc   : > { %670 = vmatpush3.bf16.msra.mxu0 (!%p253_p3), %v714_v2 }
   0xd   : > { %671 = vmatprep.subr.bf16.mxu0 (!%p253_p3), %v750_v1 }
   0xe   : > { %s873_s29 = smov (!%p296_p4, %s625_s29), 5 }
   0xf   : > { %s814_s8 = sshll.u32 %s873_s29, 2 }
  0x10   : > { %s302_s11 = scalar_lea.vmem %s861_s0, %s814_s8  ;;  %672 = vmatpush3.bf16.msra.mxu0 %v715_v3  ;;  %s314_s27 = scalar_lea.vmem %s864_s3, %s814_s8 }
  0x11   : > { %673 = vmatprep.subr.bf16.mxu0 %v750_v1  ;;  %v721_v9 = vld [vmem:[%s302_s11] sm:$0xff]   ;;  %s320_s13 = scalar_lea.vmem %s867_s6, %s814_s8 }
  0x12   : > { %v650_v10 = vld [vmem:[%s314_s27] sm:$0xff]  }
  0x13   : > { %v651_v12 = vunpack.c.l.bf16 %v650_v10  ;;  %v652_v16 = vunpack.c.h.bf16 %v650_v10 }
  0x14   : > { %674 = vmatpush3.bf16.msra.mxu0 %v716_v4 }
  0x15   : > { %675 = vmatprep.subr.bf16.mxu0 %v750_v1 }
  0x18   : > { %676 = vmatpush3.bf16.msra.mxu0 %v717_v5 }
  0x19   : > { %677 = vmatprep.subr.bf16.mxu0 %v750_v1 }
  0x1c   : > { %678 = vmatpush3.bf16.msra.mxu0 %v718_v6 }
  0x1d   : > { %679 = vmatprep.subr.bf16.mxu0 %v750_v1 }
  0x20   : > { %680 = vmatpush3.bf16.msra.mxu0 %v719_v7 }
  0x21   : > { %681 = vmatprep.subr.bf16.mxu0 %v750_v1 }
  0x24   : > { %682 = vmatpush3.bf16.msra.mxu0 %v720_v8 }
  0x27   : > { %684 = vmatmul.mubr.bf16.vlgmr.msra.gmra.mrb[0].mxu0 %v721_v9 }
  0xfa   : > { %v437_v13 = vpop.f32.mrb[0].mxu0 }
  0xfb   : > { %v460_v14 = vadd.f32 %v640_v11, %v437_v13  ;;  %v685_v15 = vpop.f32.mrb[1].mxu0 }
  0xfc   : > { %v440_v17 = vpop.f32.mrb[2].mxu0 }
  0xfd   : > { %v466_v18 = vadd.f32 %v651_v12, %v460_v14  ;;  %v461_v19 = vadd.f32 %v640_v11, %v440_v17  ;;  %v686_v20 = vpop.f32.mrb[3].mxu0 }
  0xff   : > { %v467_v21 = vadd.f32 %v652_v16, %v461_v19  ;;  %468 = vadd.xlane.f32.xlu0 %v466_v18  ;;  %v474_v22 = vmul.f32 %v466_v18, %v466_v18 }
 0x101   : > { %476 = vadd.xlane.f32.xlu1 %v474_v22  ;;  %v475_v23 = vmul.f32 %v467_v21, %v467_v21 }
 0x103   : > { %470 = vadd.xlane.f32.xlu0 %v467_v21 }
 0x105   : > { %478 = vadd.xlane.f32.xlu1 %v475_v23 }
 0x18c   : > { %v469_v24 = vpop.xlane.xlu0 %468 }
 0x18d   : > { %v472_v25 = vmul.f32 0.015625, %v469_v24 }
 0x18e   : > { %v477_v26 = vpop.xlane.xlu1 %476 }
 0x18f   : > { %v482_v27 = vmul.f32 %v472_v25, %v472_v25  ;;  %v480_v28 = vmul.f32 0.015625, %v477_v26  ;;  %v488_v40 = vsub.f32 %v466_v18, %v472_v25 }
 0x190   : > { %v471_v29 = vpop.xlane.xlu0 %470 }
 0x191   : > { %v484_v30 = vsub.f32 %v480_v28, %v482_v27  ;;  %v473_v31 = vmul.f32 0.015625, %v471_v29 }
 0x192   : > { %v479_v32 = vpop.xlane.xlu1 %478 }
 0x193   : > { %v486_v33 = vmax.f32 %v484_v30, 0.0  ;;  %v483_v34 = vmul.f32 %v473_v31, %v473_v31  ;;  %v481_v35 = vmul.f32 0.015625, %v479_v32  ;;  %v489_v44 = vsub.f32 %v467_v21, %v473_v31 }
 0x195   : > { %v490_v36 = vadd.f32 1e-05, %v486_v33  ;;  %v485_v37 = vsub.f32 %v481_v35, %v483_v34 }
 0x197   : > { %722 = vrsqrt.f32 %v490_v36  ;;  %v487_v38 = vmax.f32 %v485_v37, 0.0 }
 0x199   : > { %v491_v39 = vadd.f32 1e-05, %v487_v38 }
 0x19b   : > { %724 = vrsqrt.f32 %v491_v39 }
 0x1a1   : > { %v723_v41 = vpop.eup %722 }
 0x1a2   : > { %v494_v42 = vmul.f32 %v723_v41, %v488_v40 }
 0x1a4   : > { %v503_v46 = vmul.f32 %v641_v43, %v494_v42 }
 0x1a5   : > { %v725_v45 = vpop.eup %724 }
 0x1a6   : > { %v495_v47 = vmul.f32 %v725_v45, %v489_v44  ;;  %v512_v50 = vadd.f32 %v642_v48, %v503_v46 }
 0x1a8   : > { %v504_v49 = vmul.f32 %v641_v43, %v495_v47 }
 0x1aa   : > { %v513_v51 = vadd.f32 %v642_v48, %v504_v49 }
 0x1ac   : > { %v656_v52 = vpack.c.bf16 %v513_v51, %v512_v50 }
 0x1ae   : > { %657 = vst [vmem:[%s320_s13] sm:$0xff] %v656_v52  }
 0x1af PF: > { %s16_s23 = sadd.s32 1, %s748_s23   ;;  %s868_s21 = smov %s744_s22 }
 0x1b0   : > { %p13_p5 = scmp.ge.s32.totalorder %s16_s23, 5   ;;  %s869_s22 = smov %s871_s24 }
 0x1b2   :  { %15 = sbr.rel (!%p13_p5) target bundleno = 2 (0x2), region = 88 }

// kernel: _lambda_.36
= control target key start
LH: loop header
LB: loop body
LE: loop exit
PB: predicated region body
PF: predicated region fallthrough
CT: control target
= control target key end

     0   :  { %s736_s12 = smov 0   ;;  %s738_s13 = smov 0   ;;  %s824_s0 = inlined_call_operand.vmem [shape: bf16[48,128], index: 0, kind: input, shape index: {}]   ;;  %s825_s1 = inlined_call_operand.vmem [shape: bf16[128,256], index: 1, kind: input, shape index: {}]   ;;  %s826_s2 = inlined_call_operand.vmem [shape: f32[1,256], index: 2, kind: input, shape index: {}]   ;;  %s827_s3 = inlined_call_operand.vmem [shape: bf16[48,256], index: 3, kind: output, shape index: {}]  }
   0x1   :  { %s740_s14 = smov 0  }
   0x2 LB: > { %s32_s15 = sadd.s32 1, %s709_s13  ;;  %p611_p0 = scmp.ge.s32.totalorder %s713_s14, 1  ;;  %s713_s14 = sphi %s740_s14, %s13_s14   ;;  %s709_s13 = sphi %s738_s13, %s829_s13   ;;  %s705_s12 = sphi %s736_s12, %s828_s12  }
   0x3   : > { %p34_p1 = scmp.ge.s32.totalorder %s32_s15, 3  ;;  %p193_p2 = scmp.lt.s32.totalorder %s713_s14, 4 }
   0x5   : > { %s831_s15 = smov (%p34_p1, %s32_s15), 0  ;;  %p194_p3 = pnand %p611_p0, %p193_p2 }
   0x6   : > { %v666_v0 = vld [vmem:[%s825_s1 + $0x4] ss:$8 sps:$4 sm:$0xff] (!%p194_p3)   ;;  %s612_s18 = sshll.u32 (!%p194_p3), %s705_s12, 1  ;;  %v668_v1 = vld [vmem:[%s825_s1] ss:$8 sps:$4 sm:$0xff] (!%p194_p3)   ;;  %v715_v2 = vmov (!%p194_p3), 0   ;;  %v454_v18 = vlaneseq (!%p194_p3) }
   0x7   : > { %197 = sbr.rel (%p194_p3) target bundleno = 259 (0x103), region = 32  ;;  %426 = vmatprep.mubr.bf16.mxu0 (!%p194_p3), %v715_v2  ;;  %p240_p4 = scmp.lt.s32.totalorder (!%p194_p3), %s612_s18, 5  ;;  %394 = vmatprep.subr.bf16.mxu0 (!%p194_p3), %v666_v0  ;;  %v669_v3 = vld [vmem:[%s825_s1 + $0x14] ss:$8 sps:$4 sm:$0xff] (!%p194_p3)   ;;  %v671_v4 = vld [vmem:[%s825_s1 + $0x10] ss:$8 sps:$4 sm:$0xff] (!%p194_p3)  }
   0x8   : > { %395 = vmatpush1.bf16.msra.mxu0 (!%p194_p3), %v668_v1  ;;  %v672_v5 = vld [vmem:[%s825_s1 + $0x24] ss:$8 sps:$4 sm:$0xff] (!%p194_p3)   ;;  %v674_v6 = vld [vmem:[%s825_s1 + $0x20] ss:$8 sps:$4 sm:$0xff] (!%p194_p3)   ;;  %v675_v7 = vld [vmem:[%s825_s1 + $0x34] ss:$8 sps:$4 sm:$0xff] (!%p194_p3)  }
   0x9   : > { %396 = vmatprep.subr.bf16.mxu0 (!%p194_p3), %v669_v3  ;;  %v677_v8 = vld [vmem:[%s825_s1 + $0x30] ss:$8 sps:$4 sm:$0xff] (!%p194_p3)   ;;  %v678_v9 = vld [vmem:[%s825_s1 + $0x44] ss:$8 sps:$4 sm:$0xff] (!%p194_p3)   ;;  %v680_v10 = vld [vmem:[%s825_s1 + $0x40] ss:$8 sps:$4 sm:$0xff] (!%p194_p3)  }
   0xa   : > { %v681_v11 = vld [vmem:[%s825_s1 + $0x54] ss:$8 sps:$4 sm:$0xff] (!%p194_p3)   ;;  %v683_v12 = vld [vmem:[%s825_s1 + $0x50] ss:$8 sps:$4 sm:$0xff] (!%p194_p3)   ;;  %v684_v13 = vld [vmem:[%s825_s1 + $0x64] ss:$8 sps:$4 sm:$0xff] (!%p194_p3)  }
   0xb   : > { %v686_v14 = vld [vmem:[%s825_s1 + $0x60] ss:$8 sps:$4 sm:$0xff] (!%p194_p3)   ;;  %v687_v15 = vld [vmem:[%s825_s1 + $0x74] ss:$8 sps:$4 sm:$0xff] (!%p194_p3)   ;;  %v689_v16 = vld [vmem:[%s825_s1 + $0x70] ss:$8 sps:$4 sm:$0xff] (!%p194_p3)  }
   0xc   : > { %397 = vmatpush1.bf16.msra.mxu0 (!%p194_p3), %v671_v4  ;;  %v455_v19 = vshrl.u32 (!%p194_p3), %v454_v18, 7  ;;  %v452_v21 = vld [vmem:[%s826_s2] sm:$0x3] (!%p194_p3) }
   0xd   : > { %398 = vmatprep.subr.bf16.mxu0 (!%p194_p3), %v672_v5 }
   0xe   : > { %s833_s18 = smov (!%p240_p4, %s612_s18), 5  ;;  %v456_v20 = vsub.s32 0, %v455_v19  ;;  %v460_v22 = vsub.s32 1, %v455_v19 }
   0xf   : > { %s613_s27 = sshll.u32 %s833_s18, 2  ;;  %s638_s5 = sshll.u32 %s833_s18, 3 }
  0x10   : > { %s246_s7 = scalar_lea.vmem %s824_s0, %s613_s27  ;;  %399 = vmatpush1.bf16.msra.mxu0 %v674_v6  ;;  %v457_v23 = vrot.slane %v452_v21, %v456_v20  ;;  %v461_v24 = vrot.slane %v452_v21, %v460_v22  ;;  %s274_s8 = scalar_lea.vmem %s827_s3, %s638_s5 }
  0x11   : > { %400 = vmatprep.subr.bf16.mxu0 %v675_v7  ;;  %v690_v17 = vld [vmem:[%s246_s7] sm:$0xff]  }
  0x14   : > { %401 = vmatpush1.bf16.msra.mxu0 %v677_v8 }
  0x15   : > { %402 = vmatprep.subr.bf16.mxu0 %v678_v9 }
  0x18   : > { %403 = vmatpush1.bf16.msra.mxu0 %v680_v10 }
  0x19   : > { %404 = vmatprep.subr.bf16.mxu0 %v681_v11 }
  0x1c   : > { %405 = vmatpush1.bf16.msra.mxu0 %v683_v12 }
  0x1d   : > { %406 = vmatprep.subr.bf16.mxu0 %v684_v13 }
  0x20   : > { %407 = vmatpush1.bf16.msra.mxu0 %v686_v14 }
  0x21   : > { %408 = vmatprep.subr.bf16.mxu0 %v687_v15 }
  0x24   : > { %409 = vmatpush1.bf16.msra.mxu0 %v689_v16 }
  0x27   : > { %427 = vmatmul.mubr.bf16.vlgmr.msra.gmra.mrb[0].mxu0 %v690_v17 }
  0xfa   : > { %v428_v25 = vpop.f32.mrb[0].mxu0 }
  0xfb   : > { %v464_v26 = vadd.f32 %v457_v23, %v428_v25  ;;  %v430_v27 = vpop.f32.mrb[1].mxu0 }
  0xfc   : > { %v465_v28 = vadd.f32 %v461_v24, %v430_v27  ;;  %v432_v29 = vpop.f32.mrb[2].mxu0 }
  0xfd   : > { %v466_v30 = vadd.f32 %v457_v23, %v432_v29  ;;  %v434_v31 = vpop.f32.mrb[3].mxu0 }
  0xfe   : > { %v639_v32 = vpack.c.bf16 %v465_v28, %v464_v26  ;;  %v467_v33 = vadd.f32 %v461_v24, %v434_v31 }
 0x100   : > { %480 = vst [vmem:[%s274_s8] sm:$0xff] %v639_v32  ;;  %v640_v34 = vpack.c.bf16 %v467_v33, %v466_v30 }
 0x102   : > { %481 = vst [vmem:[%s274_s8 + $0x8] sm:$0xff] %v640_v34 }
 0x103 PF: > { %s13_s14 = sadd.s32 1, %s713_s14   ;;  %s828_s12 = smov %s709_s13 }
 0x104   : > { %p10_p5 = scmp.ge.s32.totalorder %s13_s14, 5   ;;  %s829_s13 = smov %s831_s15 }
 0x106   :  { %12 = sbr.rel (!%p10_p5) target bundleno = 2 (0x2), region = 76 }

// kernel: _lambda_.39
= control target key start
LH: loop header
LB: loop body
LE: loop exit
PB: predicated region body
PF: predicated region fallthrough
CT: control target
= control target key end

     0   :  { %s967_s12 = smov 0   ;;  %s969_s13 = smov 0   ;;  %s1088_s0 = inlined_call_operand.vmem [shape: bf16[48,128], index: 0, kind: input, shape index: {}]   ;;  %s1089_s1 = inlined_call_operand.vmem [shape: bf16[128,640], index: 1, kind: input, shape index: {}]   ;;  %s1090_s2 = inlined_call_operand.vmem [shape: f32[1,640], index: 2, kind: input, shape index: {}]   ;;  %s1091_s3 = inlined_call_operand.vmem [shape: bf16[48,640], index: 3, kind: output, shape index: {}]  }
   0x1   :  { %s971_s14 = smov 0   ;;  %s973_s15 = smov 0  }
   0x2   :  { %s975_s16 = smov 0  }
   0x3 LB: > { %s28_s17 = sadd.s32 1, %s939_s15  ;;  %s743_s18 = sadd.s32 4294967295, %s943_s16   ;;  %s943_s16 = sphi %s975_s16, %s13_s16   ;;  %s939_s15 = sphi %s973_s15, %s1096_s15   ;;  %s935_s14 = sphi %s971_s14, %s1095_s14   ;;  %s931_s13 = sphi %s969_s13, %s1094_s13   ;;  %s927_s12 = sphi %s967_s12, %s1093_s12  }
   0x4   : > { %p30_p0 = scmp.ge.s32.totalorder %s28_s17, 5  ;;  %p76_p1 = scmp.ne.s32.totalorder %s931_s13, %s927_s12 }
   0x5   : > { %p77_p2 = scmp.eq.s32.totalorder %s943_s16, 0  ;;  %p134_p4 = scmp.eq.s32.totalorder %s743_s18, 4 }
   0x6   : > { %s1098_s17 = smov (%p30_p0, %s28_s17), 0  ;;  %s69_s20 = sadd.s32 1, %s931_s13 }
   0x7   : > { %p78_p3 = por %p77_p2, %p76_p1  ;;  %s65_s19 = ssub.s32 %s939_s15, %s1098_s17 }
   0x8   : > { %p67_p5 = scmp.eq.s32.totalorder %s65_s19, 0  ;;  %p1002_p6 = por %p134_p4, %p76_p1 }
   0x9   : > { %p747_p7 = scmp.ge.s32.totalorder %s943_s16, 5 }
   0xa   : > { %s1007_s22 = scalar_select %p67_p5, %s931_s13, %s69_s20  }
   0xb   : > { %168 = sbr.rel (%p747_p7) target bundleno = 32 (0x20), region = 20 }
  0x12   : > { %171 = sbr.rel (!%p78_p3) target bundleno = 32 (0x20), region = 24  ;;  %s173_s23 = sand.u32 (%p78_p3), 1, %s931_s13  }
  0x13   : > { %s749_s24 = sshll.u32 (%p78_p3), %s939_s15, 2  ;;  %s748_s25 = sshll.u32 (%p78_p3), %s173_s23, 6 }
  0x14   : > { %s1015_s28 = scalar_lea.vmem (%p78_p3), %s1089_s1, %s749_s24  ;;  %s175_s29 = scalar_lea.vmem (%p78_p3), [#allocation3], %s748_s25 }
  0x15   : > { %v196_v0 = vld [vmem:[%s1015_s28] sm:$0xf] (%p78_p3)  ;;  %v198_v1 = vld [vmem:[%s1015_s28 + $0x14] sm:$0xf] (%p78_p3)  ;;  %v200_v2 = vld [vmem:[%s1015_s28 + $0x28] sm:$0xf] (%p78_p3) }
  0x16   : > { %197 = vst [vmem:[%s175_s29] sm:$0xf] (%p78_p3), %v196_v0  ;;  %199 = vst [vmem:[%s175_s29 + $0x4] sm:$0xf] (%p78_p3), %v198_v1  ;;  %v202_v3 = vld [vmem:[%s1015_s28 + $0x3c] sm:$0xf] (%p78_p3) }
  0x17   : > { %v204_v4 = vld [vmem:[%s1015_s28 + $0x50] sm:$0xf] (%p78_p3)  ;;  %201 = vst [vmem:[%s175_s29 + $0x8] sm:$0xf] (%p78_p3), %v200_v2  ;;  %203 = vst [vmem:[%s175_s29 + $0xc] sm:$0xf] (%p78_p3), %v202_v3 }
  0x18   : > { %205 = vst [vmem:[%s175_s29 + $0x10] sm:$0xf] (%p78_p3), %v204_v4  ;;  %v206_v5 = vld [vmem:[%s1015_s28 + $0x64] sm:$0xf] (%p78_p3)  ;;  %v208_v6 = vld [vmem:[%s1015_s28 + $0x78] sm:$0xf] (%p78_p3) }
  0x19   : > { %v210_v7 = vld [vmem:[%s1015_s28 + $0x8c] sm:$0xf]  ;;  %207 = vst [vmem:[%s175_s29 + $0x14] sm:$0xf] %v206_v5  ;;  %209 = vst [vmem:[%s175_s29 + $0x18] sm:$0xf] %v208_v6 }
  0x1a   : > { %211 = vst [vmem:[%s175_s29 + $0x1c] sm:$0xf] %v210_v7  ;;  %v212_v8 = vld [vmem:[%s1015_s28 + $0xa0] sm:$0xf]  ;;  %v214_v9 = vld [vmem:[%s1015_s28 + $0xb4] sm:$0xf] }
  0x1b   : > { %v216_v10 = vld [vmem:[%s1015_s28 + $0xc8] sm:$0xf]  ;;  %213 = vst [vmem:[%s175_s29 + $0x20] sm:$0xf] %v212_v8  ;;  %215 = vst [vmem:[%s175_s29 + $0x24] sm:$0xf] %v214_v9 }
  0x1c   : > { %217 = vst [vmem:[%s175_s29 + $0x28] sm:$0xf] %v216_v10  ;;  %v218_v11 = vld [vmem:[%s1015_s28 + $0xdc] sm:$0xf]  ;;  %v220_v12 = vld [vmem:[%s1015_s28 + $0xf0] sm:$0xf] }
  0x1d   : > { %v222_v13 = vld [vmem:[%s1015_s28 + $0x104] sm:$0xf]  ;;  %219 = vst [vmem:[%s175_s29 + $0x2c] sm:$0xf] %v218_v11  ;;  %221 = vst [vmem:[%s175_s29 + $0x30] sm:$0xf] %v220_v12 }
  0x1e   : > { %223 = vst [vmem:[%s175_s29 + $0x34] sm:$0xf] %v222_v13  ;;  %v224_v14 = vld [vmem:[%s1015_s28 + $0x118] sm:$0xf]  ;;  %v226_v15 = vld [vmem:[%s1015_s28 + $0x12c] sm:$0xf] }
  0x1f   : > { %225 = vst [vmem:[%s175_s29 + $0x38] sm:$0xf] %v224_v14  ;;  %227 = vst [vmem:[%s175_s29 + $0x3c] sm:$0xf] %v226_v15 }
  0x20 PF: > { %p750_p8 = scmp.ge.s32.totalorder %s943_s16, 1  ;;  %p287_p9 = scmp.lt.s32.totalorder %s943_s16, 6 }
  0x22   : > { %p288_p10 = pnand %p750_p8, %p287_p9 }
  0x23   : > { %s294_s30 = sand.u32 (!%p288_p10), 1, %s927_s12   ;;  %v945_v16 = vmov (!%p288_p10), 0.0   ;;  %vm946_vm0 = vmmov (!%p288_p10), 0   ;;  %v902_v25 = vld [vmem:[%s1088_s0 + $0x8] sm:$0xff] (!%p288_p10)   ;;  %v903_v26 = vld [vmem:[%s1088_s0] sm:$0xff] (!%p288_p10)   ;;  %v904_v27 = vld [vmem:[%s1088_s0 + $0x10] sm:$0xff] (!%p288_p10)  }
  0x24   : > { %291 = sbr.rel (%p288_p10) target bundleno = 307 (0x133), region = 69  ;;  %835 = vmatprep.subr.bf16.mxu1 (!%p288_p10), %v945_v16  ;;  %s751_s4 = sshll.u32 (!%p288_p10), %s294_s30, 6  ;;  %807 = vmatprep.subr.bf16.mxu0 (!%p288_p10), %v945_v16 }
  0x25   : > { %827 = vmatprep.mubr.msk.bf16.mxu1 (!%p288_p10), %vm946_vm0, %v945_v16  ;;  %823 = vmatprep.mubr.msk.bf16.mxu0 (!%p288_p10), %vm946_vm0, %v945_v16  ;;  %s1040_s5 = scalar_lea.vmem (!%p288_p10), [#allocation3], %s751_s4  ;;  %p337_p11 = scmp.lt.s32.totalorder (!%p288_p10), %s935_s14, 4 }
  0x26   : > { %v894_v17 = vld [vmem:[%s1040_s5] sm:$0xff] (!%p288_p10)   ;;  %v895_v18 = vld [vmem:[%s1040_s5 + $0x8] sm:$0xff] (!%p288_p10)   ;;  %v896_v19 = vld [vmem:[%s1040_s5 + $0x10] sm:$0xff] (!%p288_p10)   ;;  %s851_s24 = smul.u32 (!%p288_p10), 24, %s294_s30 }
  0x27   : > { %843 = vmatpush3.bf16.msra.mxu1 (!%p288_p10), %v894_v17  ;;  %808 = vmatpush3.bf16.msra.mxu0 (!%p288_p10), %v894_v17  ;;  %v897_v20 = vld [vmem:[%s1040_s5 + $0x18] sm:$0xff] (!%p288_p10)   ;;  %v898_v21 = vld [vmem:[%s1040_s5 + $0x20] sm:$0xff] (!%p288_p10)   ;;  %v899_v22 = vld [vmem:[%s1040_s5 + $0x28] sm:$0xff] (!%p288_p10)  }
  0x28   : > { %836 = vmatprep.subr.bf16.mxu1 (!%p288_p10), %v945_v16  ;;  %809 = vmatprep.subr.bf16.mxu0 (!%p288_p10), %v945_v16  ;;  %v900_v23 = vld [vmem:[%s1040_s5 + $0x30] sm:$0xff] (!%p288_p10)   ;;  %v901_v24 = vld [vmem:[%s1040_s5 + $0x38] sm:$0xff] (!%p288_p10)   ;;  %s326_s25 = scalar_lea.vmem (!%p288_p10), [#allocation4], %s851_s24 }
  0x2b   : > { %844 = vmatpush3.bf16.msra.mxu1 %v895_v18  ;;  %810 = vmatpush3.bf16.msra.mxu0 %v895_v18  ;;  %s338_s18 = scalar_select %p337_p11, %s935_s14, 4 }
  0x2c   : > { %837 = vmatprep.subr.bf16.mxu1 %v945_v16  ;;  %811 = vmatprep.subr.bf16.mxu0 %v945_v16  ;;  %s770_s12 = sshll.u32 (%p1002_p6), %s935_s14, 2 }
  0x2d   : > { %s339_s23 = scalar_lea.vmem %s1090_s2, %s338_s18  ;;  %s584_s28 = scalar_lea.vmem (%p1002_p6), %s1091_s3, %s770_s12 }
  0x2e   : > { %v763_v28 = vld [vmem:[%s339_s23] ss:$0 sm:$0xff] }
  0x2f   : > { %845 = vmatpush3.bf16.msra.mxu1 %v896_v19  ;;  %812 = vmatpush3.bf16.msra.mxu0 %v896_v19 }
  0x30   : > { %838 = vmatprep.subr.bf16.mxu1 %v945_v16  ;;  %813 = vmatprep.subr.bf16.mxu0 %v945_v16 }
  0x33   : > { %846 = vmatpush3.bf16.msra.mxu1 %v897_v20  ;;  %814 = vmatpush3.bf16.msra.mxu0 %v897_v20 }
  0x34   : > { %839 = vmatprep.subr.bf16.mxu1 %v945_v16  ;;  %815 = vmatprep.subr.bf16.mxu0 %v945_v16 }
  0x37   : > { %847 = vmatpush3.bf16.msra.mxu1 %v898_v21  ;;  %816 = vmatpush3.bf16.msra.mxu0 %v898_v21 }
  0x38   : > { %840 = vmatprep.subr.bf16.mxu1 %v945_v16  ;;  %817 = vmatprep.subr.bf16.mxu0 %v945_v16 }
  0x3b   : > { %848 = vmatpush3.bf16.msra.mxu1 %v899_v22  ;;  %818 = vmatpush3.bf16.msra.mxu0 %v899_v22 }
  0x3c   : > { %841 = vmatprep.subr.bf16.mxu1 %v945_v16  ;;  %819 = vmatprep.subr.bf16.mxu0 %v945_v16 }
  0x3f   : > { %849 = vmatpush3.bf16.msra.mxu1 %v900_v23  ;;  %820 = vmatpush3.bf16.msra.mxu0 %v900_v23 }
  0x40   : > { %842 = vmatprep.subr.bf16.mxu1 %v945_v16  ;;  %821 = vmatprep.subr.bf16.mxu0 %v945_v16 }
  0x43   : > { %850 = vmatpush3.bf16.msra.mxu1 %v901_v24  ;;  %822 = vmatpush3.bf16.msra.mxu0 %v901_v24 }
  0x46   : > { %828 = vmatmul.mubr.bf16.vlgmr.msra.gmra.mrb[0].mxu1 %v902_v25  ;;  %824 = vmatmul.mubr.bf16.vlgmr.msra.gmra.mrb[0].mxu0 %v903_v26 }
  0x47   : > { %831 = vmatprep.mubr.msk.bf16.mxu1 %vm946_vm0, %v945_v16 }
  0x4e   : > { %832 = vmatmul.mubr.bf16.gmra.mrb[4].mxu1 %v904_v27 }
 0x119   : > { %v488_v29 = vpop.f32.mrb[0].mxu1  ;;  %v480_v30 = vpop.f32.mrb[0].mxu0 }
 0x11a   : > { %v533_v31 = vadd.f32 %v763_v28, %v488_v29  ;;  %v829_v32 = vpop.f32.mrb[1].mxu1  ;;  %v531_v33 = vadd.f32 %v763_v28, %v480_v30  ;;  %v825_v34 = vpop.f32.mrb[1].mxu0 }
 0x11b   : > { %v491_v35 = vpop.f32.mrb[2].mxu1  ;;  %v483_v36 = vpop.f32.mrb[2].mxu0 }
 0x11c   : > { %v534_v37 = vadd.f32 %v763_v28, %v491_v35  ;;  %v830_v38 = vpop.f32.mrb[3].mxu1  ;;  %v537_v39 = vmax.f32 %v531_v33, 0.0  ;;  %v532_v40 = vadd.f32 %v763_v28, %v483_v36  ;;  %v826_v41 = vpop.f32.mrb[3].mxu0  ;;  %v539_v42 = vmax.f32 %v533_v31, 0.0 }
 0x11e   : > { %v540_v43 = vmax.f32 %v534_v37, 0.0  ;;  %v538_v44 = vmax.f32 %v532_v40, 0.0 }
 0x120   : > { %v787_v45 = vpack.c.bf16 %v540_v43, %v539_v42  ;;  %v782_v46 = vpack.c.bf16 %v538_v44, %v537_v39 }
 0x121   : > { %v496_v47 = vpop.f32.mrb[4].mxu1 }
 0x122   : > { %794 = vst [vmem:[%s326_s25 + $0x8] sm:$0xff] %v787_v45   ;;  %783 = vst [vmem:[%s326_s25] sm:$0xff] %v782_v46   ;;  %v535_v48 = vadd.f32 %v763_v28, %v496_v47  ;;  %v833_v49 = vpop.f32.mrb[5].mxu1 }
 0x123   : > { %v499_v50 = vpop.f32.mrb[6].mxu1 }
 0x124   : > { %v536_v51 = vadd.f32 %v763_v28, %v499_v50  ;;  %v834_v52 = vpop.f32.mrb[7].mxu1  ;;  %v541_v53 = vmax.f32 %v535_v48, 0.0  ;;  %579 = sbr.rel (!%p1002_p6) target bundleno = 307 (0x133), region = 85 }
 0x126   : > { %v542_v54 = vmax.f32 %v536_v51, 0.0 }
 0x128   : > { %v792_v55 = vpack.c.bf16 %v542_v54, %v541_v53 }
 0x129   : > { %v600_v56 = vld [vmem:[%s326_s25] sm:$0xf] (%p1002_p6)  ;;  %v602_v57 = vld [vmem:[%s326_s25 + $0x4] sm:$0xf] (%p1002_p6)  ;;  %v604_v58 = vld [vmem:[%s326_s25 + $0x8] sm:$0xf] (%p1002_p6) }
 0x12a   : > { %795 = vst [vmem:[%s326_s25 + $0x10] sm:$0xff] %v792_v55   ;;  %v606_v59 = vld [vmem:[%s326_s25 + $0xc] sm:$0xf] (%p1002_p6)  ;;  %601 = vst [vmem:[%s584_s28] sm:$0xf] (%p1002_p6), %v600_v56 }
 0x12b   : > { %603 = vst [vmem:[%s584_s28 + $0x14] sm:$0xf] %v602_v57  ;;  %605 = vst [vmem:[%s584_s28 + $0x28] sm:$0xf] %v604_v58 }
 0x12c   : > { %607 = vst [vmem:[%s584_s28 + $0x3c] sm:$0xf] %v606_v59 }
 0x131   : > { %v608_v60 = vld [vmem:[%s326_s25 + $0x10] sm:$0xf]  ;;  %v610_v61 = vld [vmem:[%s326_s25 + $0x14] sm:$0xf] }
 0x132   : > { %609 = vst [vmem:[%s584_s28 + $0x50] sm:$0xf] %v608_v60  ;;  %611 = vst [vmem:[%s584_s28 + $0x64] sm:$0xf] %v610_v61 }
 0x133 PF: > { %s13_s16 = sadd.s32 1, %s943_s16   ;;  %s1093_s12 = smov %s931_s13 }
 0x134   : > { %p10_p12 = scmp.ge.s32.totalorder %s13_s16, 7   ;;  %s1094_s13 = smov %s1007_s22 }
 0x135   : > { %s1095_s14 = smov %s939_s15  ;;  %s1096_s15 = smov %s1098_s17 }
 0x136   :  { %12 = sbr.rel (!%p10_p12) target bundleno = 3 (0x3), region = 163 }

// kernel: _lambda_.37
= control target key start
LH: loop header
LB: loop body
LE: loop exit
PB: predicated region body
PF: predicated region fallthrough
CT: control target
= control target key end

     0   :  { %s2118_s6 = smov 0   ;;  %s2478_s0 = inlined_call_operand.vmem [shape: bf16[2,24,192], index: 0, kind: input, shape index: {}]   ;;  %s2479_s1 = inlined_call_operand.vmem [shape: bf16[2,24,64], index: 1, kind: output, shape index: {}]  }
   0x1 LB: > { %s1655_s7 = sadd.s32 4294967295, %s2091_s6   ;;  %p1659_p0 = scmp.ge.s32.totalorder %s2091_s6, 1  ;;  %s2091_s6 = sphi %s2118_s6, %s11_s6  }
   0x2   : > { %p87_p1 = scmp.lt.s32.totalorder %s2091_s6, 3 }
   0x4   : > { %p88_p2 = pnand %p1659_p0, %p87_p1 }
   0x5   : > { %p107_p3 = scmp.lt.s32.totalorder (!%p88_p2), %s1655_s7, 1  ;;  %vm133_vm0 = vcmask (!%p88_p2), 64512   ;;  %s2093_s12 = smov (!%p88_p2), 64   ;;  %vm197_vm1 = vcmask (!%p88_p2), 195584   ;;  %vm245_vm2 = vcmask (!%p88_p2), 1043456   ;;  %vm1560_vm3 = vcmask (!%p88_p2), 130048  }
   0x6   : > { %91 = sbr.rel (%p88_p2) target bundleno = 4914 (0x1332), region = 24  ;;  %s2094_s13 = smov (!%p88_p2), 120   ;;  %vm1567_vm4 = vcmask (!%p88_p2), 261120   ;;  %vm1571_vm5 = vcmask (!%p88_p2), 326656   ;;  %vm1575_vm6 = vcmask (!%p88_p2), 392192   ;;  %vm1579_vm7 = vcmask (!%p88_p2), 457728  }
   0x7   : > { %s2095_s14 = smov (!%p88_p2), 56   ;;  %s2096_s15 = smov (!%p88_p2), 48   ;;  %vm1596_vm8 = vcmask (!%p88_p2), 519168  }
   0x8   : > { %s2097_s16 = smov (!%p88_p2), 112   ;;  %s2098_s17 = smov (!%p88_p2), 40  }
   0x9   : > { %s2099_s18 = smov (!%p88_p2), 104   ;;  %s2100_s19 = smov (!%p88_p2), 32  }
   0xa   : > { %s2101_s20 = smov (!%p88_p2), 96   ;;  %s2102_s21 = smov (!%p88_p2), 24  }
   0xb   : > { %s2103_s22 = smov (!%p88_p2), 88   ;;  %s2104_s23 = smov (!%p88_p2), 16  }
   0xc   : > { %s2105_s24 = smov (!%p88_p2), 80   ;;  %s2106_s25 = smov (!%p88_p2), 8  }
   0xd   : > { %s2481_s7 = smov (!%p107_p3, %s1655_s7), 1  ;;  %s2107_s26 = smov 72  }
   0xe   : > { %s1922_s8 = smul.u32 24, %s2481_s7 }
   0xf   : > { %s1923_s27 = smul.u32 12, %s2481_s7 }
  0x10   : > { %s2132_s11 = scalar_lea.vmem %s2478_s0, %s1922_s8 }
  0x11   : > { %v2135_v0 = vld [vmem:[%s2132_s11] ss:$8 sps:$4 sm:$0xff]   ;;  %v120_v1 = vld [vmem:[%s2132_s11 + $0x10] sm:$0xff]  ;;  %v2159_v32 = vld [vmem:[%s2132_s11 + $0x4] ss:$8 sps:$4 sm:$0xff]   ;;  %s116_s30 = scalar_lea.vmem %s2479_s1, %s1923_s27 }
  0x12   : > { %129 = vrot.lane.b32.xlu0 %v2135_v0, %s2093_s12  ;;  %v2139_v2 = vcombine.low %v120_v1, %v120_v1  ;;  %1774 = vmatprep.mubr.msk.bf16.mxu0 %vm133_vm0, %v2135_v0  ;;  %v2161_v33 = vcombine.high %v120_v1, %v120_v1 }
  0x13   : > { %1778 = vmatprep.subr.bf16.mxu1 %v2159_v32 }
  0x14   : > { %1779 = vmatpush3.bf16.msra.mxu1 %v2159_v32  ;;  %v247_v34 = vsel %vm245_vm2, %v2161_v33, 0 }
  0x15   : > { %1900 = vmatprep.subr.msk.bf16.mxu1 %vm245_vm2, %v2161_v33 }
  0x16   : > { %131 = vrot.lane.b32.xlu0 %v2139_v2, %s2093_s12 }
  0x18   : > { %1781 = vmatpush3.bf16.msra.mxu1 %v247_v34 }
  0x84   : > { %v130_v3 = vpop.permute.xlu0 %129 }
  0x85   : > { %1898 = vmatprep.subr.msk.bf16.mxu0 %vm133_vm0, %v130_v3  ;;  %v141_v4 = vsel %vm133_vm0, %v130_v3, 0 }
  0x86   : > { %1771 = vmatpush3.bf16.xpose.msra.mxu0 %v141_v4 }
  0x88   : > { %v132_v5 = vpop.permute.xlu0 %131 }
  0x89   : > { %1899 = vmatprep.subr.msk.bf16.mxu0 %vm133_vm0, %v132_v5  ;;  %v144_v6 = vsel %vm133_vm0, %v132_v5, 0 }
  0x8e   : > { %1773 = vmatpush3.bf16.xpose.msra.mxu0 %v144_v6 }
  0x95   : > { %1775 = vmatmul.mubr.msk.bf16.vlgmr.msra.gmra.mrb[0].mxu0 %vm133_vm0, %v2139_v2 }
 0x168   : > { %v1776_v7 = vpop.f32.mrb[0].mxu0 }
 0x169   : > { %v196_v8 = vmul.f32 0.35355338, %v1776_v7  ;;  %v180_v9 = vpop.f32.mrb[1].mxu0 }
 0x16a   : > { %v194_v10 = vmul.f32 0.35355338, %v180_v9  ;;  %v1777_v11 = vpop.f32.mrb[2].mxu0 }
 0x16b   : > { %v183_v12 = vpop.f32.mrb[3].mxu0  ;;  %v204_v13 = vsel %vm197_vm1, %v196_v8, -inf }
 0x16c   : > { %v195_v14 = vmul.f32 0.35355338, %v183_v12  ;;  %205 = vmax.xlane.f32.xlu0 %v204_v13  ;;  %v198_v15 = vsel %vm197_vm1, %v194_v10, -inf }
 0x16d   : > { %199 = vmax.xlane.f32.xlu1 %v198_v15 }
 0x16e   : > { %v201_v16 = vsel %vm197_vm1, %v195_v14, -inf }
 0x171   : > { %202 = vmax.xlane.f32.xlu1 %v201_v16 }
 0x182   : > { %297 = vrot.lane.b32.xlu0 %v2135_v0, %s2094_s13 }
 0x1f9   : > { %v206_v17 = vpop.xlane.xlu0 %205 }
 0x1fa   : > { %v209_v18 = vsub.f32 %v196_v8, %v206_v17  ;;  %v200_v19 = vpop.xlane.xlu1 %199 }
 0x1fb   : > { %v207_v20 = vsub.f32 %v194_v10, %v200_v19 }
 0x1fc   : > { %v214_v21 = vmul.f32 1.442695, %v209_v18 }
 0x1fd   : > { %v210_v22 = vmul.f32 1.442695, %v207_v20  ;;  %v298_v48 = vpop.permute.xlu0 %297 }
 0x1fe   : > { %1987 = vpow2.f32 %v214_v21  ;;  %v203_v23 = vpop.xlane.xlu1 %202 }
 0x1ff   : > { %v208_v24 = vsub.f32 %v195_v14, %v203_v23  ;;  %1989 = vpow2.f32 %v210_v22 }
 0x201   : > { %v212_v25 = vmul.f32 1.442695, %v208_v24 }
 0x203   : > { %1991 = vpow2.f32 %v212_v25 }
 0x208   : > { %v1988_v26 = vpop.eup %1987 }
 0x209   : > { %v222_v27 = vsel %vm197_vm1, %v1988_v26, 0.0  ;;  %v1990_v28 = vpop.eup %1989 }
 0x20a   : > { %223 = vadd.xlane.f32.xlu1 %v222_v27  ;;  %v216_v29 = vsel %vm197_vm1, %v1990_v28, 0.0 }
 0x20d   : > { %v1992_v30 = vpop.eup %1991 }
 0x20e   : > { %217 = vadd.xlane.f32.xlu1 %v216_v29  ;;  %v219_v31 = vsel %vm197_vm1, %v1992_v30, 0.0 }
 0x212   : > { %220 = vadd.xlane.f32.xlu1 %v219_v31 }
 0x223   : > { %301 = vrot.lane.b32.xlu1 %v2135_v0, %s2095_s14 }
 0x227   : > { %303 = vrot.lane.b32.xlu1 %v2139_v2, %s2095_s14 }
 0x22b   : > { %299 = vrot.lane.b32.xlu1 %v2139_v2, %s2094_s13 }
 0x297   : > { %v224_v35 = vpop.xlane.xlu1 %223 }
 0x298   : > { %1993 = vrcp.f32 %v224_v35 }
 0x29b   : > { %v218_v36 = vpop.xlane.xlu1 %217 }
 0x29c   : > { %1995 = vrcp.f32 %v218_v36 }
 0x29f   : > { %v221_v37 = vpop.xlane.xlu1 %220 }
 0x2a0   : > { %1997 = vrcp.f32 %v221_v37 }
 0x2a2   : > { %v1994_v39 = vpop.eup %1993 }
 0x2a3   : > { %v302_v38 = vpop.permute.xlu1 %301  ;;  %v230_v42 = vmul.f32 %v1994_v39, %v1988_v26 }
 0x2a4   : > { %1901 = vmatprep.subr.msk.bf16.mxu1 %vm133_vm0, %v302_v38  ;;  %v312_v47 = vsel %vm133_vm0, %v302_v38, 0 }
 0x2a5   : > { %v232_v46 = vpack.c.bf16 %v230_v42, %v230_v42 }
 0x2a6   : > { %v1996_v40 = vpop.eup %1995 }
 0x2a7   : > { %v228_v43 = vmul.f32 %v1996_v40, %v1990_v28  ;;  %v304_v49 = vpop.permute.xlu1 %303 }
 0x2a8   : > { %v315_v50 = vsel %vm133_vm0, %v304_v49, 0 }
 0x2aa   : > { %v1998_v41 = vpop.eup %1997 }
 0x2ab   : > { %v229_v44 = vmul.f32 %v1998_v41, %v1992_v30  ;;  %v300_v51 = vpop.permute.xlu1 %299 }
 0x2ad   : > { %v231_v45 = vpack.c.bf16 %v229_v44, %v228_v43 }
 0x2af   : > { %1782 = vmatprep.mubr.msk.bf16.mxu1 %vm197_vm1, %v231_v45 }
 0x2b0   : > { %1783 = vmatmul.mubr.msk.bf16.vlgmr.msra.gmra.mrb[0].mxu1 %vm197_vm1, %v232_v46 }
 0x2b1   : > { %1787 = vmatpush3.bf16.xpose.msra.mxu1 %v312_v47  ;;  %1790 = vmatprep.mubr.msk.bf16.mxu1 %vm133_vm0, %v298_v48 }
 0x2b2   : > { %1902 = vmatprep.subr.msk.bf16.mxu1 %vm133_vm0, %v304_v49 }
 0x2b9   : > { %1789 = vmatpush3.bf16.xpose.msra.mxu1 %v315_v50 }
 0x2c0   : > { %1791 = vmatmul.mubr.msk.bf16.vlgmr.msra.gmra.mrb[4].mxu1 %vm133_vm0, %v300_v51 }
 0x383   : > { %v2183_v52 = vpop.f32.mrb[0].mxu1 }
 0x384   : > { %v2185_v53 = vpop.f32.mrb[1].mxu1 }
 0x385   : > { %v1785_v54 = vpop.f32.mrb[2].mxu1 }
 0x386   : > { %v2187_v55 = vpop.f32.mrb[3].mxu1 }
 0x393   : > { %v1792_v56 = vpop.f32.mrb[4].mxu1 }
 0x394   : > { %v351_v57 = vpop.f32.mrb[5].mxu1  ;;  %v367_v61 = vmul.f32 0.35355338, %v1792_v56 }
 0x395   : > { %v365_v58 = vmul.f32 0.35355338, %v351_v57  ;;  %v1793_v59 = vpop.f32.mrb[6].mxu1 }
 0x396   : > { %v354_v60 = vpop.f32.mrb[7].mxu1  ;;  %v374_v3 = vsel %vm197_vm1, %v367_v61, -inf }
 0x397   : > { %v366_v62 = vmul.f32 0.35355338, %v354_v60  ;;  %v368_v63 = vsel %vm197_vm1, %v365_v58, -inf }
 0x398   : > { %369 = vmax.xlane.f32.xlu1 %v368_v63 }
 0x399   : > { %v371_v1 = vsel %vm197_vm1, %v366_v62, -inf }
 0x39a   : > { %372 = vmax.xlane.f32.xlu0 %v371_v1 }
 0x39c   : > { %375 = vmax.xlane.f32.xlu1 %v374_v3 }
 0x3ad   : > { %403 = vrot.lane.b32.xlu1 %v2159_v32, %s2094_s13 }
 0x425   : > { %v370_v4 = vpop.xlane.xlu1 %369 }
 0x426   : > { %v377_v5 = vsub.f32 %v365_v58, %v370_v4 }
 0x427   : > { %v373_v6 = vpop.xlane.xlu0 %372 }
 0x428   : > { %v380_v7 = vmul.f32 1.442695, %v377_v5  ;;  %v378_v8 = vsub.f32 %v366_v62, %v373_v6 }
 0x429   : > { %v376_v9 = vpop.xlane.xlu1 %375 }
 0x42a   : > { %1999 = vpow2.f32 %v380_v7  ;;  %v382_v10 = vmul.f32 1.442695, %v378_v8  ;;  %v379_v11 = vsub.f32 %v367_v61, %v376_v9 }
 0x42c   : > { %2001 = vpow2.f32 %v382_v10  ;;  %v384_v12 = vmul.f32 1.442695, %v379_v11 }
 0x42d   : > { %v404_v13 = vpop.permute.xlu1 %403 }
 0x42e   : > { %2003 = vpow2.f32 %v384_v12  ;;  %1794 = vmatprep.subr.bf16.mxu0 %v404_v13 }
 0x42f   : > { %1795 = vmatpush3.bf16.msra.mxu0 %v404_v13 }
 0x434   : > { %v2000_v14 = vpop.eup %1999 }
 0x435   : > { %v386_v15 = vsel %vm197_vm1, %v2000_v14, 0.0 }
 0x436   : > { %v2002_v16 = vpop.eup %2001  ;;  %387 = vadd.xlane.f32.xlu1 %v386_v15 }
 0x437   : > { %v389_v19 = vsel %vm197_vm1, %v2002_v16, 0.0 }
 0x438   : > { %v2004_v17 = vpop.eup %2003 }
 0x439   : > { %v392_v18 = vsel %vm197_vm1, %v2004_v17, 0.0 }
 0x43a   : > { %393 = vadd.xlane.f32.xlu0 %v392_v18  ;;  %390 = vadd.xlane.f32.xlu1 %v389_v19 }
 0x44b   : > { %469 = vrot.lane.b32.xlu1 %v2135_v0, %s2096_s15 }
 0x44f   : > { %471 = vrot.lane.b32.xlu1 %v2139_v2, %s2096_s15 }
 0x450   : > { %405 = vrot.lane.b32.xlu0 %v2161_v33, %s2094_s13 }
 0x453   : > { %467 = vrot.lane.b32.xlu1 %v2139_v2, %s2097_s16 }
 0x454   : > { %465 = vrot.lane.b32.xlu0 %v2135_v0, %s2097_s16 }
 0x4c3   : > { %v388_v20 = vpop.xlane.xlu1 %387 }
 0x4c4   : > { %2005 = vrcp.f32 %v388_v20 }
 0x4c7   : > { %v391_v21 = vpop.xlane.xlu1 %390  ;;  %v394_v22 = vpop.xlane.xlu0 %393 }
 0x4c8   : > { %2007 = vrcp.f32 %v391_v21 }
 0x4c9   : > { %2009 = vrcp.f32 %v394_v22 }
 0x4cb   : > { %v406_v23 = vpop.permute.xlu0 %405  ;;  %v470_v24 = vpop.permute.xlu1 %469 }
 0x4cc   : > { %v415_v25 = vsel %vm245_vm2, %v406_v23, 0  ;;  %1903 = vmatprep.subr.msk.bf16.mxu0 %vm245_vm2, %v406_v23  ;;  %v480_v35 = vsel %vm133_vm0, %v470_v24, 0 }
 0x4cd   : > { %1797 = vmatpush3.bf16.msra.mxu0 %v415_v25 }
 0x4ce   : > { %1904 = vmatprep.subr.msk.bf16.mxu0 %vm133_vm0, %v470_v24  ;;  %v2006_v26 = vpop.eup %2005 }
 0x4cf   : > { %v398_v29 = vmul.f32 %v2006_v26, %v2000_v14  ;;  %v466_v37 = vpop.permute.xlu0 %465  ;;  %v472_v38 = vpop.permute.xlu1 %471 }
 0x4d0   : > { %v483_v39 = vsel %vm133_vm0, %v472_v38, 0 }
 0x4d2   : > { %v2008_v27 = vpop.eup %2007 }
 0x4d3   : > { %v2010_v28 = vpop.eup %2009  ;;  %v399_v30 = vmul.f32 %v2008_v27, %v2002_v16  ;;  %v468_v40 = vpop.permute.xlu1 %467 }
 0x4d4   : > { %v400_v31 = vmul.f32 %v2010_v28, %v2004_v17 }
 0x4d5   : > { %v401_v34 = vpack.c.bf16 %v399_v30, %v398_v29 }
 0x4d6   : > { %v402_v36 = vpack.c.bf16 %v400_v31, %v400_v31 }
 0x4d7   : > { %1798 = vmatprep.mubr.msk.bf16.mxu0 %vm197_vm1, %v401_v34 }
 0x4d8   : > { %1799 = vmatmul.mubr.msk.bf16.vlgmr.msra.gmra.mrb[4].mxu0 %vm197_vm1, %v402_v36 }
 0x4d9   : > { %1803 = vmatpush3.bf16.xpose.msra.mxu0 %v480_v35  ;;  %1806 = vmatprep.mubr.msk.bf16.mxu0 %vm133_vm0, %v466_v37 }
 0x4da   : > { %1905 = vmatprep.subr.msk.bf16.mxu0 %vm133_vm0, %v472_v38 }
 0x4e1   : > { %1805 = vmatpush3.bf16.xpose.msra.mxu0 %v483_v39 }
 0x4e8   : > { %1807 = vmatmul.mubr.msk.bf16.vlgmr.msra.gmra.mrb[8].mxu0 %vm133_vm0, %v468_v40 }
 0x5ab   : > { %v2217_v41 = vpop.f32.mrb[4].mxu0 }
 0x5ac   : > { %v2219_v42 = vpop.f32.mrb[5].mxu0 }
 0x5ad   : > { %v1801_v43 = vpop.f32.mrb[6].mxu0 }
 0x5ae   : > { %v2221_v44 = vpop.f32.mrb[7].mxu0 }
 0x5af   : > { %v1947_v45 = vpack.i.bf16 %v2221_v44, %v2219_v42 }
 0x5bb   : > { %v1808_v46 = vpop.f32.mrb[8].mxu0 }
 0x5bc   : > { %v519_v47 = vpop.f32.mrb[9].mxu0  ;;  %v535_v51 = vmul.f32 0.35355338, %v1808_v46 }
 0x5bd   : > { %v533_v48 = vmul.f32 0.35355338, %v519_v47  ;;  %v1809_v49 = vpop.f32.mrb[10].mxu0 }
 0x5be   : > { %v522_v50 = vpop.f32.mrb[11].mxu0  ;;  %v542_v58 = vsel %vm197_vm1, %v535_v51, -inf }
 0x5bf   : > { %v534_v54 = vmul.f32 0.35355338, %v522_v50  ;;  %v536_v56 = vsel %vm197_vm1, %v533_v48, -inf }
 0x5c0   : > { %537 = vmax.xlane.f32.xlu0 %v536_v56 }
 0x5c1   : > { %v539_v57 = vsel %vm197_vm1, %v534_v54, -inf }
 0x5c2   : > { %540 = vmax.xlane.f32.xlu1 %v539_v57 }
 0x5c4   : > { %543 = vmax.xlane.f32.xlu0 %v542_v58 }
 0x5d3   : > { %571 = vrot.lane.b32.xlu1 %v2159_v32, %s2097_s16 }
 0x64d   : > { %v538_v59 = vpop.xlane.xlu0 %537 }
 0x64e   : > { %v545_v61 = vsub.f32 %v533_v48, %v538_v59 }
 0x64f   : > { %v541_v60 = vpop.xlane.xlu1 %540 }
 0x650   : > { %v546_v62 = vsub.f32 %v534_v54, %v541_v60  ;;  %v548_v5 = vmul.f32 1.442695, %v545_v61 }
 0x651   : > { %v544_v63 = vpop.xlane.xlu0 %543 }
 0x652   : > { %v550_v1 = vmul.f32 1.442695, %v546_v62  ;;  %v547_v3 = vsub.f32 %v535_v51, %v544_v63 }
 0x653   : > { %v572_v4 = vpop.permute.xlu1 %571 }
 0x654   : > { %2011 = vpow2.f32 %v550_v1  ;;  %v552_v6 = vmul.f32 1.442695, %v547_v3  ;;  %1810 = vmatprep.subr.bf16.mxu1 %v572_v4 }
 0x655   : > { %1811 = vmatpush3.bf16.msra.mxu1 %v572_v4 }
 0x656   : > { %2013 = vpow2.f32 %v552_v6 }
 0x657   : > { %2015 = vpow2.f32 %v548_v5 }
 0x65e   : > { %v2012_v7 = vpop.eup %2011 }
 0x65f   : > { %v557_v8 = vsel %vm197_vm1, %v2012_v7, 0.0 }
 0x660   : > { %v2014_v9 = vpop.eup %2013  ;;  %558 = vadd.xlane.f32.xlu1 %v557_v8 }
 0x661   : > { %v560_v10 = vsel %vm197_vm1, %v2014_v9, 0.0  ;;  %v2016_v11 = vpop.eup %2015 }
 0x662   : > { %561 = vadd.xlane.f32.xlu0 %v560_v10  ;;  %v554_v12 = vsel %vm197_vm1, %v2016_v11, 0.0 }
 0x666   : > { %555 = vadd.xlane.f32.xlu0 %v554_v12 }
 0x671   : > { %637 = vrot.lane.b32.xlu1 %v2135_v0, %s2098_s17 }
 0x675   : > { %639 = vrot.lane.b32.xlu1 %v2139_v2, %s2098_s17 }
 0x679   : > { %635 = vrot.lane.b32.xlu1 %v2139_v2, %s2099_s18 }
 0x67c   : > { %573 = vrot.lane.b32.xlu0 %v2161_v33, %s2097_s16 }
 0x680   : > { %633 = vrot.lane.b32.xlu0 %v2135_v0, %s2099_s18 }
 0x6ed   : > { %v559_v13 = vpop.xlane.xlu1 %558 }
 0x6ef   : > { %v562_v14 = vpop.xlane.xlu0 %561 }
 0x6f0   : > { %2017 = vrcp.f32 %v562_v14 }
 0x6f1   : > { %2019 = vrcp.f32 %v559_v13  ;;  %v638_v17 = vpop.permute.xlu1 %637 }
 0x6f2   : > { %v648_v26 = vsel %vm133_vm0, %v638_v17, 0 }
 0x6f3   : > { %v556_v15 = vpop.xlane.xlu0 %555 }
 0x6f4   : > { %2021 = vrcp.f32 %v556_v15 }
 0x6f5   : > { %v640_v29 = vpop.permute.xlu1 %639 }
 0x6f6   : > { %v651_v30 = vsel %vm133_vm0, %v640_v29, 0 }
 0x6f7   : > { %v574_v16 = vpop.permute.xlu0 %573 }
 0x6f8   : > { %v583_v18 = vsel %vm245_vm2, %v574_v16, 0  ;;  %1906 = vmatprep.subr.msk.bf16.mxu1 %vm245_vm2, %v574_v16 }
 0x6f9   : > { %1813 = vmatpush3.bf16.msra.mxu1 %v583_v18  ;;  %v636_v31 = vpop.permute.xlu1 %635 }
 0x6fa   : > { %1907 = vmatprep.subr.msk.bf16.mxu1 %vm133_vm0, %v638_v17  ;;  %v2018_v19 = vpop.eup %2017 }
 0x6fb   : > { %v2020_v20 = vpop.eup %2019  ;;  %v568_v22 = vmul.f32 %v2018_v19, %v2014_v9  ;;  %v634_v28 = vpop.permute.xlu0 %633 }
 0x6fc   : > { %v567_v24 = vmul.f32 %v2020_v20, %v2012_v7 }
 0x6fd   : > { %v570_v27 = vpack.c.bf16 %v568_v22, %v568_v22 }
 0x6fe   : > { %v2022_v21 = vpop.eup %2021 }
 0x6ff   : > { %v566_v23 = vmul.f32 %v2022_v21, %v2016_v11 }
 0x701   : > { %v569_v25 = vpack.c.bf16 %v567_v24, %v566_v23 }
 0x703   : > { %1814 = vmatprep.mubr.msk.bf16.mxu1 %vm197_vm1, %v569_v25 }
 0x704   : > { %1815 = vmatmul.mubr.msk.bf16.vlgmr.msra.gmra.mrb[8].mxu1 %vm197_vm1, %v570_v27 }
 0x705   : > { %1819 = vmatpush3.bf16.xpose.msra.mxu1 %v648_v26  ;;  %1822 = vmatprep.mubr.msk.bf16.mxu1 %vm133_vm0, %v634_v28 }
 0x706   : > { %1908 = vmatprep.subr.msk.bf16.mxu1 %vm133_vm0, %v640_v29 }
 0x70d   : > { %1821 = vmatpush3.bf16.xpose.msra.mxu1 %v651_v30 }
 0x714   : > { %1823 = vmatmul.mubr.msk.bf16.vlgmr.msra.gmra.mrb[12].mxu1 %vm133_vm0, %v636_v31 }
 0x7d7   : > { %v2253_v34 = vpop.f32.mrb[8].mxu1 }
 0x7d8   : > { %v2255_v35 = vpop.f32.mrb[9].mxu1 }
 0x7d9   : > { %v1817_v36 = vpop.f32.mrb[10].mxu1 }
 0x7da   : > { %v2257_v37 = vpop.f32.mrb[11].mxu1 }
 0x7db   : > { %v1952_v38 = vpack.i.bf16 %v2257_v37, %v2255_v35 }
 0x7e7   : > { %v1824_v39 = vpop.f32.mrb[12].mxu1 }
 0x7e8   : > { %v687_v40 = vpop.f32.mrb[13].mxu1  ;;  %v703_v48 = vmul.f32 0.35355338, %v1824_v39 }
 0x7e9   : > { %v701_v43 = vmul.f32 0.35355338, %v687_v40  ;;  %v1825_v46 = vpop.f32.mrb[14].mxu1 }
 0x7ea   : > { %v690_v47 = vpop.f32.mrb[15].mxu1  ;;  %v710_v54 = vsel %vm197_vm1, %v703_v48, -inf }
 0x7eb   : > { %v702_v49 = vmul.f32 0.35355338, %v690_v47  ;;  %v704_v50 = vsel %vm197_vm1, %v701_v43, -inf }
 0x7ec   : > { %705 = vmax.xlane.f32.xlu0 %v704_v50 }
 0x7ed   : > { %v707_v51 = vsel %vm197_vm1, %v702_v49, -inf }
 0x7ee   : > { %708 = vmax.xlane.f32.xlu1 %v707_v51 }
 0x7f0   : > { %711 = vmax.xlane.f32.xlu0 %v710_v54 }
 0x7ff   : > { %739 = vrot.lane.b32.xlu1 %v2159_v32, %s2099_s18 }
 0x879   : > { %v706_v56 = vpop.xlane.xlu0 %705 }
 0x87a   : > { %v713_v58 = vsub.f32 %v701_v43, %v706_v56 }
 0x87b   : > { %v709_v57 = vpop.xlane.xlu1 %708 }
 0x87c   : > { %v714_v59 = vsub.f32 %v702_v49, %v709_v57  ;;  %v716_v1 = vmul.f32 1.442695, %v713_v58 }
 0x87d   : > { %v712_v60 = vpop.xlane.xlu0 %711 }
 0x87e   : > { %v718_v61 = vmul.f32 1.442695, %v714_v59  ;;  %v715_v62 = vsub.f32 %v703_v48, %v712_v60 }
 0x87f   : > { %v740_v63 = vpop.permute.xlu1 %739 }
 0x880   : > { %2023 = vpow2.f32 %v718_v61  ;;  %v720_v3 = vmul.f32 1.442695, %v715_v62  ;;  %1826 = vmatprep.subr.bf16.mxu0 %v740_v63 }
 0x881   : > { %1827 = vmatpush3.bf16.msra.mxu0 %v740_v63 }
 0x882   : > { %2025 = vpow2.f32 %v720_v3 }
 0x883   : > { %2027 = vpow2.f32 %v716_v1 }
 0x88a   : > { %v2024_v4 = vpop.eup %2023 }
 0x88b   : > { %v725_v5 = vsel %vm197_vm1, %v2024_v4, 0.0 }
 0x88c   : > { %v2026_v6 = vpop.eup %2025  ;;  %726 = vadd.xlane.f32.xlu1 %v725_v5 }
 0x88d   : > { %v728_v7 = vsel %vm197_vm1, %v2026_v6, 0.0  ;;  %v2028_v8 = vpop.eup %2027 }
 0x88e   : > { %729 = vadd.xlane.f32.xlu0 %v728_v7  ;;  %v722_v9 = vsel %vm197_vm1, %v2028_v8, 0.0 }
 0x892   : > { %723 = vadd.xlane.f32.xlu0 %v722_v9 }
 0x89d   : > { %805 = vrot.lane.b32.xlu1 %v2135_v0, %s2100_s19 }
 0x8a1   : > { %807 = vrot.lane.b32.xlu1 %v2139_v2, %s2100_s19 }
 0x8a5   : > { %803 = vrot.lane.b32.xlu1 %v2139_v2, %s2101_s20 }
 0x8a8   : > { %741 = vrot.lane.b32.xlu0 %v2161_v33, %s2099_s18 }
 0x8ac   : > { %801 = vrot.lane.b32.xlu0 %v2135_v0, %s2101_s20 }
 0x919   : > { %v727_v10 = vpop.xlane.xlu1 %726 }
 0x91b   : > { %v730_v11 = vpop.xlane.xlu0 %729 }
 0x91c   : > { %2029 = vrcp.f32 %v730_v11 }
 0x91d   : > { %2031 = vrcp.f32 %v727_v10  ;;  %v806_v14 = vpop.permute.xlu1 %805 }
 0x91e   : > { %v816_v23 = vsel %vm133_vm0, %v806_v14, 0 }
 0x91f   : > { %v724_v12 = vpop.xlane.xlu0 %723 }
 0x920   : > { %2033 = vrcp.f32 %v724_v12 }
 0x921   : > { %v808_v26 = vpop.permute.xlu1 %807 }
 0x922   : > { %v819_v27 = vsel %vm133_vm0, %v808_v26, 0 }
 0x923   : > { %v742_v13 = vpop.permute.xlu0 %741 }
 0x924   : > { %v751_v15 = vsel %vm245_vm2, %v742_v13, 0  ;;  %1909 = vmatprep.subr.msk.bf16.mxu0 %vm245_vm2, %v742_v13 }
 0x925   : > { %1829 = vmatpush3.bf16.msra.mxu0 %v751_v15  ;;  %v804_v28 = vpop.permute.xlu1 %803 }
 0x926   : > { %1910 = vmatprep.subr.msk.bf16.mxu0 %vm133_vm0, %v806_v14  ;;  %v2030_v16 = vpop.eup %2029 }
 0x927   : > { %v2032_v17 = vpop.eup %2031  ;;  %v736_v19 = vmul.f32 %v2030_v16, %v2026_v6  ;;  %v802_v25 = vpop.permute.xlu0 %801 }
 0x928   : > { %v735_v21 = vmul.f32 %v2032_v17, %v2024_v4 }
 0x929   : > { %v738_v24 = vpack.c.bf16 %v736_v19, %v736_v19 }
 0x92a   : > { %v2034_v18 = vpop.eup %2033 }
 0x92b   : > { %v734_v20 = vmul.f32 %v2034_v18, %v2028_v8 }
 0x92d   : > { %v737_v22 = vpack.c.bf16 %v735_v21, %v734_v20 }
 0x92f   : > { %1830 = vmatprep.mubr.msk.bf16.mxu0 %vm197_vm1, %v737_v22 }
 0x930   : > { %1831 = vmatmul.mubr.msk.bf16.vlgmr.msra.gmra.mrb[12].mxu0 %vm197_vm1, %v738_v24 }
 0x931   : > { %1835 = vmatpush3.bf16.xpose.msra.mxu0 %v816_v23  ;;  %1838 = vmatprep.mubr.msk.bf16.mxu0 %vm133_vm0, %v802_v25 }
 0x932   : > { %1911 = vmatprep.subr.msk.bf16.mxu0 %vm133_vm0, %v808_v26 }
 0x939   : > { %1837 = vmatpush3.bf16.xpose.msra.mxu0 %v819_v27 }
 0x940   : > { %1839 = vmatmul.mubr.msk.bf16.vlgmr.msra.gmra.mrb[16].mxu0 %vm133_vm0, %v804_v28 }
 0xa03   : > { %v2289_v29 = vpop.f32.mrb[12].mxu0 }
 0xa04   : > { %v2291_v30 = vpop.f32.mrb[13].mxu0 }
 0xa05   : > { %v1833_v31 = vpop.f32.mrb[14].mxu0 }
 0xa06   : > { %v2293_v36 = vpop.f32.mrb[15].mxu0 }
 0xa07   : > { %v1957_v39 = vpack.i.bf16 %v2293_v36, %v2291_v30 }
 0xa13   : > { %v1840_v40 = vpop.f32.mrb[16].mxu0 }
 0xa14   : > { %v855_v43 = vpop.f32.mrb[17].mxu0  ;;  %v871_v49 = vmul.f32 0.35355338, %v1840_v40 }
 0xa15   : > { %v869_v46 = vmul.f32 0.35355338, %v855_v43  ;;  %v1841_v47 = vpop.f32.mrb[18].mxu0 }
 0xa16   : > { %v858_v48 = vpop.f32.mrb[19].mxu0  ;;  %v878_v56 = vsel %vm197_vm1, %v871_v49, -inf }
 0xa17   : > { %v870_v50 = vmul.f32 0.35355338, %v858_v48  ;;  %v872_v51 = vsel %vm197_vm1, %v869_v46, -inf }
 0xa18   : > { %873 = vmax.xlane.f32.xlu0 %v872_v51 }
 0xa19   : > { %v875_v54 = vsel %vm197_vm1, %v870_v50, -inf }
 0xa1a   : > { %876 = vmax.xlane.f32.xlu1 %v875_v54 }
 0xa1c   : > { %879 = vmax.xlane.f32.xlu0 %v878_v56 }
 0xa2b   : > { %907 = vrot.lane.b32.xlu1 %v2159_v32, %s2101_s20 }
 0xaa5   : > { %v874_v57 = vpop.xlane.xlu0 %873 }
 0xaa6   : > { %v881_v59 = vsub.f32 %v869_v46, %v874_v57 }
 0xaa7   : > { %v877_v58 = vpop.xlane.xlu1 %876 }
 0xaa8   : > { %v882_v60 = vsub.f32 %v870_v50, %v877_v58  ;;  %v884_v3 = vmul.f32 1.442695, %v881_v59 }
 0xaa9   : > { %v880_v61 = vpop.xlane.xlu0 %879 }
 0xaaa   : > { %v886_v62 = vmul.f32 1.442695, %v882_v60  ;;  %v883_v63 = vsub.f32 %v871_v49, %v880_v61 }
 0xaab   : > { %v908_v1 = vpop.permute.xlu1 %907 }
 0xaac   : > { %2035 = vpow2.f32 %v886_v62  ;;  %v888_v4 = vmul.f32 1.442695, %v883_v63  ;;  %1842 = vmatprep.subr.bf16.mxu1 %v908_v1 }
 0xaad   : > { %1843 = vmatpush3.bf16.msra.mxu1 %v908_v1 }
 0xaae   : > { %2037 = vpow2.f32 %v888_v4 }
 0xaaf   : > { %2039 = vpow2.f32 %v884_v3 }
 0xab6   : > { %v2036_v5 = vpop.eup %2035 }
 0xab7   : > { %v893_v6 = vsel %vm197_vm1, %v2036_v5, 0.0 }
 0xab8   : > { %v2038_v7 = vpop.eup %2037  ;;  %894 = vadd.xlane.f32.xlu1 %v893_v6 }
 0xab9   : > { %v896_v8 = vsel %vm197_vm1, %v2038_v7, 0.0  ;;  %v2040_v9 = vpop.eup %2039 }
 0xaba   : > { %897 = vadd.xlane.f32.xlu0 %v896_v8  ;;  %v890_v10 = vsel %vm197_vm1, %v2040_v9, 0.0 }
 0xabe   : > { %891 = vadd.xlane.f32.xlu0 %v890_v10 }
 0xac9   : > { %973 = vrot.lane.b32.xlu1 %v2135_v0, %s2102_s21 }
 0xacd   : > { %975 = vrot.lane.b32.xlu1 %v2139_v2, %s2102_s21 }
 0xad1   : > { %971 = vrot.lane.b32.xlu1 %v2139_v2, %s2103_s22 }
 0xad4   : > { %909 = vrot.lane.b32.xlu0 %v2161_v33, %s2101_s20 }
 0xad8   : > { %969 = vrot.lane.b32.xlu0 %v2135_v0, %s2103_s22 }
 0xb45   : > { %v895_v11 = vpop.xlane.xlu1 %894 }
 0xb47   : > { %v898_v12 = vpop.xlane.xlu0 %897 }
 0xb48   : > { %2041 = vrcp.f32 %v898_v12 }
 0xb49   : > { %2043 = vrcp.f32 %v895_v11  ;;  %v974_v15 = vpop.permute.xlu1 %973 }
 0xb4a   : > { %v984_v24 = vsel %vm133_vm0, %v974_v15, 0 }
 0xb4b   : > { %v892_v13 = vpop.xlane.xlu0 %891 }
 0xb4c   : > { %2045 = vrcp.f32 %v892_v13 }
 0xb4d   : > { %v976_v27 = vpop.permute.xlu1 %975 }
 0xb4e   : > { %v987_v28 = vsel %vm133_vm0, %v976_v27, 0 }
 0xb4f   : > { %v910_v14 = vpop.permute.xlu0 %909 }
 0xb50   : > { %v919_v16 = vsel %vm245_vm2, %v910_v14, 0  ;;  %1912 = vmatprep.subr.msk.bf16.mxu1 %vm245_vm2, %v910_v14 }
 0xb51   : > { %1845 = vmatpush3.bf16.msra.mxu1 %v919_v16  ;;  %v972_v31 = vpop.permute.xlu1 %971 }
 0xb52   : > { %1913 = vmatprep.subr.msk.bf16.mxu1 %vm133_vm0, %v974_v15  ;;  %v2042_v17 = vpop.eup %2041 }
 0xb53   : > { %v2044_v18 = vpop.eup %2043  ;;  %v904_v20 = vmul.f32 %v2042_v17, %v2038_v7  ;;  %v970_v26 = vpop.permute.xlu0 %969 }
 0xb54   : > { %v903_v22 = vmul.f32 %v2044_v18, %v2036_v5 }
 0xb55   : > { %v906_v25 = vpack.c.bf16 %v904_v20, %v904_v20 }
 0xb56   : > { %v2046_v19 = vpop.eup %2045 }
 0xb57   : > { %v902_v21 = vmul.f32 %v2046_v19, %v2040_v9 }
 0xb59   : > { %v905_v23 = vpack.c.bf16 %v903_v22, %v902_v21 }
 0xb5b   : > { %1846 = vmatprep.mubr.msk.bf16.mxu1 %vm197_vm1, %v905_v23 }
 0xb5c   : > { %1847 = vmatmul.mubr.msk.bf16.vlgmr.msra.gmra.mrb[16].mxu1 %vm197_vm1, %v906_v25 }
 0xb5d   : > { %1851 = vmatpush3.bf16.xpose.msra.mxu1 %v984_v24  ;;  %1854 = vmatprep.mubr.msk.bf16.mxu1 %vm133_vm0, %v970_v26 }
 0xb5e   : > { %1914 = vmatprep.subr.msk.bf16.mxu1 %vm133_vm0, %v976_v27 }
 0xb65   : > { %1853 = vmatpush3.bf16.xpose.msra.mxu1 %v987_v28 }
 0xb6c   : > { %1855 = vmatmul.mubr.msk.bf16.vlgmr.msra.gmra.mrb[20].mxu1 %vm133_vm0, %v972_v31 }
 0xc2f   : > { %v2325_v40 = vpop.f32.mrb[16].mxu1 }
 0xc30   : > { %v2327_v43 = vpop.f32.mrb[17].mxu1 }
 0xc31   : > { %v1849_v46 = vpop.f32.mrb[18].mxu1 }
 0xc32   : > { %v2329_v47 = vpop.f32.mrb[19].mxu1 }
 0xc33   : > { %v1962_v48 = vpack.i.bf16 %v2329_v47, %v2327_v43 }
 0xc3f   : > { %v1856_v49 = vpop.f32.mrb[20].mxu1 }
 0xc40   : > { %v1023_v50 = vpop.f32.mrb[21].mxu1  ;;  %v1039_v57 = vmul.f32 0.35355338, %v1856_v49 }
 0xc41   : > { %v1037_v51 = vmul.f32 0.35355338, %v1023_v50  ;;  %v1857_v54 = vpop.f32.mrb[22].mxu1 }
 0xc42   : > { %v1026_v56 = vpop.f32.mrb[23].mxu1  ;;  %v1046_v61 = vsel %vm197_vm1, %v1039_v57, -inf }
 0xc43   : > { %v1038_v58 = vmul.f32 0.35355338, %v1026_v56  ;;  %v1040_v59 = vsel %vm197_vm1, %v1037_v51, -inf }
 0xc44   : > { %1041 = vmax.xlane.f32.xlu0 %v1040_v59 }
 0xc45   : > { %v1043_v60 = vsel %vm197_vm1, %v1038_v58, -inf }
 0xc46   : > { %1044 = vmax.xlane.f32.xlu1 %v1043_v60 }
 0xc48   : > { %1047 = vmax.xlane.f32.xlu0 %v1046_v61 }
 0xc57   : > { %1075 = vrot.lane.b32.xlu1 %v2159_v32, %s2103_s22 }
 0xcd1   : > { %v1042_v62 = vpop.xlane.xlu0 %1041 }
 0xcd2   : > { %v1049_v1 = vsub.f32 %v1037_v51, %v1042_v62 }
 0xcd3   : > { %v1045_v63 = vpop.xlane.xlu1 %1044 }
 0xcd4   : > { %v1050_v3 = vsub.f32 %v1038_v58, %v1045_v63  ;;  %v1052_v8 = vmul.f32 1.442695, %v1049_v1 }
 0xcd5   : > { %v1048_v4 = vpop.xlane.xlu0 %1047 }
 0xcd6   : > { %v1054_v5 = vmul.f32 1.442695, %v1050_v3  ;;  %v1051_v6 = vsub.f32 %v1039_v57, %v1048_v4 }
 0xcd7   : > { %v1076_v7 = vpop.permute.xlu1 %1075 }
 0xcd8   : > { %2047 = vpow2.f32 %v1054_v5  ;;  %v1056_v9 = vmul.f32 1.442695, %v1051_v6  ;;  %1858 = vmatprep.subr.bf16.mxu0 %v1076_v7 }
 0xcd9   : > { %1859 = vmatpush3.bf16.msra.mxu0 %v1076_v7 }
 0xcda   : > { %2049 = vpow2.f32 %v1056_v9 }
 0xcdb   : > { %2051 = vpow2.f32 %v1052_v8 }
 0xce2   : > { %v2048_v10 = vpop.eup %2047 }
 0xce3   : > { %v1061_v11 = vsel %vm197_vm1, %v2048_v10, 0.0 }
 0xce4   : > { %v2050_v12 = vpop.eup %2049  ;;  %1062 = vadd.xlane.f32.xlu1 %v1061_v11 }
 0xce5   : > { %v1064_v13 = vsel %vm197_vm1, %v2050_v12, 0.0  ;;  %v2052_v14 = vpop.eup %2051 }
 0xce6   : > { %1065 = vadd.xlane.f32.xlu0 %v1064_v13  ;;  %v1058_v15 = vsel %vm197_vm1, %v2052_v14, 0.0 }
 0xcea   : > { %1059 = vadd.xlane.f32.xlu0 %v1058_v15 }
 0xcf5   : > { %1141 = vrot.lane.b32.xlu1 %v2135_v0, %s2104_s23 }
 0xcf9   : > { %1143 = vrot.lane.b32.xlu1 %v2139_v2, %s2104_s23 }
 0xcfd   : > { %1139 = vrot.lane.b32.xlu1 %v2139_v2, %s2105_s24 }
 0xd00   : > { %1077 = vrot.lane.b32.xlu0 %v2161_v33, %s2103_s22 }
 0xd04   : > { %1137 = vrot.lane.b32.xlu0 %v2135_v0, %s2105_s24 }
 0xd71   : > { %v1063_v16 = vpop.xlane.xlu1 %1062 }
 0xd73   : > { %v1066_v17 = vpop.xlane.xlu0 %1065 }
 0xd74   : > { %2053 = vrcp.f32 %v1066_v17 }
 0xd75   : > { %2055 = vrcp.f32 %v1063_v16  ;;  %v1142_v20 = vpop.permute.xlu1 %1141 }
 0xd76   : > { %v1152_v28 = vsel %vm133_vm0, %v1142_v20, 0 }
 0xd77   : > { %v1060_v18 = vpop.xlane.xlu0 %1059 }
 0xd78   : > { %2057 = vrcp.f32 %v1060_v18 }
 0xd79   : > { %v1144_v49 = vpop.permute.xlu1 %1143 }
 0xd7a   : > { %v1155_v50 = vsel %vm133_vm0, %v1144_v49, 0 }
 0xd7b   : > { %v1078_v19 = vpop.permute.xlu0 %1077 }
 0xd7c   : > { %v1087_v21 = vsel %vm245_vm2, %v1078_v19, 0  ;;  %1915 = vmatprep.subr.msk.bf16.mxu0 %vm245_vm2, %v1078_v19 }
 0xd7d   : > { %1861 = vmatpush3.bf16.msra.mxu0 %v1087_v21  ;;  %v1140_v51 = vpop.permute.xlu1 %1139 }
 0xd7e   : > { %1916 = vmatprep.subr.msk.bf16.mxu0 %vm133_vm0, %v1142_v20  ;;  %v2054_v22 = vpop.eup %2053 }
 0xd7f   : > { %v2056_v23 = vpop.eup %2055  ;;  %v1072_v25 = vmul.f32 %v2054_v22, %v2050_v12  ;;  %v1138_v46 = vpop.permute.xlu0 %1137 }
 0xd80   : > { %v1071_v26 = vmul.f32 %v2056_v23, %v2048_v10  ;;  %v2083_v23 = vld [vmem:[%s2132_s11] ss:$8 sps:$4 sm:$0xff]  }
 0xd81   : > { %v1074_v31 = vpack.c.bf16 %v1072_v25, %v1072_v25 }
 0xd82   : > { %v2058_v24 = vpop.eup %2057 }
 0xd83   : > { %v1070_v0 = vmul.f32 %v2058_v24, %v2052_v14 }
 0xd85   : > { %v1073_v27 = vpack.c.bf16 %v1071_v26, %v1070_v0 }
 0xd87   : > { %1862 = vmatprep.mubr.msk.bf16.mxu0 %vm197_vm1, %v1073_v27 }
 0xd88   : > { %1863 = vmatmul.mubr.msk.bf16.vlgmr.msra.gmra.mrb[20].mxu0 %vm197_vm1, %v1074_v31 }
 0xd89   : > { %1867 = vmatpush3.bf16.xpose.msra.mxu0 %v1152_v28  ;;  %1870 = vmatprep.mubr.msk.bf16.mxu0 %vm133_vm0, %v1138_v46 }
 0xd8a   : > { %1917 = vmatprep.subr.msk.bf16.mxu0 %vm133_vm0, %v1144_v49 }
 0xd91   : > { %1869 = vmatpush3.bf16.xpose.msra.mxu0 %v1155_v50 }
 0xd98   : > { %1871 = vmatmul.mubr.msk.bf16.vlgmr.msra.gmra.mrb[24].mxu0 %vm133_vm0, %v1140_v51 }
 0xe5b   : > { %v2361_v54 = vpop.f32.mrb[20].mxu0 }
 0xe5c   : > { %v2363_v56 = vpop.f32.mrb[21].mxu0 }
 0xe5d   : > { %v1865_v57 = vpop.f32.mrb[22].mxu0 }
 0xe5e   : > { %v2365_v58 = vpop.f32.mrb[23].mxu0 }
 0xe5f   : > { %v1967_v59 = vpack.i.bf16 %v2365_v58, %v2363_v56 }
 0xe6b   : > { %v1872_v60 = vpop.f32.mrb[24].mxu0 }
 0xe6c   : > { %v1191_v61 = vpop.f32.mrb[25].mxu0  ;;  %v1207_v3 = vmul.f32 0.35355338, %v1872_v60 }
 0xe6d   : > { %v1205_v62 = vmul.f32 0.35355338, %v1191_v61  ;;  %v1873_v63 = vpop.f32.mrb[26].mxu0 }
 0xe6e   : > { %v1194_v1 = vpop.f32.mrb[27].mxu0  ;;  %v1214_v7 = vsel %vm197_vm1, %v1207_v3, -inf }
 0xe6f   : > { %v1206_v4 = vmul.f32 0.35355338, %v1194_v1  ;;  %v1208_v5 = vsel %vm197_vm1, %v1205_v62, -inf }
 0xe70   : > { %1209 = vmax.xlane.f32.xlu0 %v1208_v5 }
 0xe71   : > { %v1211_v6 = vsel %vm197_vm1, %v1206_v4, -inf }
 0xe72   : > { %1212 = vmax.xlane.f32.xlu1 %v1211_v6 }
 0xe74   : > { %1215 = vmax.xlane.f32.xlu0 %v1214_v7 }
 0xe83   : > { %1243 = vrot.lane.b32.xlu1 %v2159_v32, %s2105_s24 }
 0xefd   : > { %v1210_v8 = vpop.xlane.xlu0 %1209 }
 0xefe   : > { %v1217_v10 = vsub.f32 %v1205_v62, %v1210_v8 }
 0xeff   : > { %v1213_v9 = vpop.xlane.xlu1 %1212 }
 0xf00   : > { %v1218_v11 = vsub.f32 %v1206_v4, %v1213_v9  ;;  %v1220_v16 = vmul.f32 1.442695, %v1217_v10 }
 0xf01   : > { %v1216_v12 = vpop.xlane.xlu0 %1215 }
 0xf02   : > { %v1222_v13 = vmul.f32 1.442695, %v1218_v11  ;;  %v1219_v14 = vsub.f32 %v1207_v3, %v1216_v12 }
 0xf03   : > { %v1244_v15 = vpop.permute.xlu1 %1243 }
 0xf04   : > { %2059 = vpow2.f32 %v1222_v13  ;;  %v1224_v17 = vmul.f32 1.442695, %v1219_v14  ;;  %1874 = vmatprep.subr.bf16.mxu1 %v1244_v15 }
 0xf05   : > { %1875 = vmatpush3.bf16.msra.mxu1 %v1244_v15 }
 0xf06   : > { %2061 = vpow2.f32 %v1224_v17 }
 0xf07   : > { %2063 = vpow2.f32 %v1220_v16 }
 0xf0e   : > { %v2060_v18 = vpop.eup %2059 }
 0xf0f   : > { %v1229_v19 = vsel %vm197_vm1, %v2060_v18, 0.0 }
 0xf10   : > { %v2062_v32 = vpop.eup %2061  ;;  %1230 = vadd.xlane.f32.xlu1 %v1229_v19 }
 0xf11   : > { %v1232_v20 = vsel %vm197_vm1, %v2062_v32, 0.0  ;;  %v2064_v21 = vpop.eup %2063 }
 0xf12   : > { %1233 = vadd.xlane.f32.xlu0 %v1232_v20  ;;  %v1226_v22 = vsel %vm197_vm1, %v2064_v21, 0.0 }
 0xf16   : > { %1227 = vadd.xlane.f32.xlu0 %v1226_v22 }
 0xf21   : > { %1309 = vrot.lane.b32.xlu1 %v2083_v23, %s2106_s25 }
 0xf25   : > { %1311 = vrot.lane.b32.xlu1 %v2139_v2, %s2106_s25 }
 0xf29   : > { %1307 = vrot.lane.b32.xlu1 %v2139_v2, %s2107_s26 }
 0xf2c   : > { %1245 = vrot.lane.b32.xlu0 %v2161_v33, %s2105_s24 }
 0xf30   : > { %1305 = vrot.lane.b32.xlu0 %v2083_v23, %s2107_s26 }
 0xf9d   : > { %v1231_v24 = vpop.xlane.xlu1 %1230 }
 0xf9f   : > { %v1234_v25 = vpop.xlane.xlu0 %1233 }
 0xfa0   : > { %2065 = vrcp.f32 %v1234_v25 }
 0xfa1   : > { %2067 = vrcp.f32 %v1231_v24  ;;  %v1310_v27 = vpop.permute.xlu1 %1309 }
 0xfa2   : > { %v1320_v60 = vsel %vm133_vm0, %v1310_v27, 0 }
 0xfa3   : > { %v1228_v0 = vpop.xlane.xlu0 %1227 }
 0xfa4   : > { %2069 = vrcp.f32 %v1228_v0 }
 0xfa5   : > { %v1312_v63 = vpop.permute.xlu1 %1311 }
 0xfa6   : > { %v1323_v1 = vsel %vm133_vm0, %v1312_v63, 0 }
 0xfa7   : > { %v1246_v26 = vpop.permute.xlu0 %1245 }
 0xfa8   : > { %v1255_v28 = vsel %vm245_vm2, %v1246_v26, 0  ;;  %1918 = vmatprep.subr.msk.bf16.mxu1 %vm245_vm2, %v1246_v26 }
 0xfa9   : > { %1877 = vmatpush3.bf16.msra.mxu1 %v1255_v28  ;;  %v1308_v3 = vpop.permute.xlu1 %1307 }
 0xfaa   : > { %1919 = vmatprep.subr.msk.bf16.mxu1 %vm133_vm0, %v1310_v27  ;;  %v2066_v2 = vpop.eup %2065 }
 0xfab   : > { %v2068_v31 = vpop.eup %2067  ;;  %v1240_v49 = vmul.f32 %v2066_v2, %v2062_v32  ;;  %v1306_v62 = vpop.permute.xlu0 %1305 }
 0xfac   : > { %v1239_v51 = vmul.f32 %v2068_v31, %v2060_v18 }
 0xfad   : > { %v1242_v61 = vpack.c.bf16 %v1240_v49, %v1240_v49  ;;  %v2084_v49 = vld [vmem:[%s2132_s11 + $0x4] ss:$8 sps:$4 sm:$0xff]  }
 0xfae   : > { %v2070_v46 = vpop.eup %2069 }
 0xfaf   : > { %v1238_v50 = vmul.f32 %v2070_v46, %v2064_v21 }
 0xfb1   : > { %v1241_v57 = vpack.c.bf16 %v1239_v51, %v1238_v50 }
 0xfb3   : > { %1878 = vmatprep.mubr.msk.bf16.mxu1 %vm197_vm1, %v1241_v57 }
 0xfb4   : > { %1879 = vmatmul.mubr.msk.bf16.vlgmr.msra.gmra.mrb[24].mxu1 %vm197_vm1, %v1242_v61 }
 0xfb5   : > { %1883 = vmatpush3.bf16.xpose.msra.mxu1 %v1320_v60  ;;  %1886 = vmatprep.mubr.msk.bf16.mxu1 %vm133_vm0, %v1306_v62 }
 0xfb6   : > { %1920 = vmatprep.subr.msk.bf16.mxu1 %vm133_vm0, %v1312_v63 }
 0xfbd   : > { %1885 = vmatpush3.bf16.xpose.msra.mxu1 %v1323_v1 }
 0xfc4   : > { %1887 = vmatmul.mubr.msk.bf16.vlgmr.msra.gmra.mrb[28].mxu1 %vm133_vm0, %v1308_v3 }
0x1087   : > { %v1880_v4 = vpop.f32.mrb[24].mxu1 }
0x1088   : > { %v1291_v5 = vpop.f32.mrb[25].mxu1 }
0x1089   : > { %v1881_v6 = vpop.f32.mrb[26].mxu1 }
0x108a   : > { %v1294_v7 = vpop.f32.mrb[27].mxu1 }
0x108b   : > { %v1972_v8 = vpack.i.bf16 %v1294_v7, %v1291_v5 }
0x1097   : > { %v1888_v9 = vpop.f32.mrb[28].mxu1 }
0x1098   : > { %v1359_v10 = vpop.f32.mrb[29].mxu1  ;;  %v1375_v14 = vmul.f32 0.35355338, %v1888_v9 }
0x1099   : > { %v1373_v11 = vmul.f32 0.35355338, %v1359_v10  ;;  %v1889_v12 = vpop.f32.mrb[30].mxu1 }
0x109a   : > { %v1362_v13 = vpop.f32.mrb[31].mxu1  ;;  %v1382_v18 = vsel %vm197_vm1, %v1375_v14, -inf }
0x109b   : > { %v1374_v15 = vmul.f32 0.35355338, %v1362_v13  ;;  %v1376_v16 = vsel %vm197_vm1, %v1373_v11, -inf }
0x109c   : > { %1377 = vmax.xlane.f32.xlu0 %v1376_v16 }
0x109d   : > { %v1379_v17 = vsel %vm197_vm1, %v1374_v15, -inf }
0x109e   : > { %1380 = vmax.xlane.f32.xlu1 %v1379_v17 }
0x10a0   : > { %1383 = vmax.xlane.f32.xlu0 %v1382_v18 }
0x1129   : > { %v1378_v19 = vpop.xlane.xlu0 %1377 }
0x112a   : > { %v1385_v20 = vsub.f32 %v1373_v11, %v1378_v19 }
0x112b   : > { %v1381_v32 = vpop.xlane.xlu1 %1380 }
0x112c   : > { %v1386_v21 = vsub.f32 %v1374_v15, %v1381_v32  ;;  %v1388_v25 = vmul.f32 1.442695, %v1385_v20 }
0x112d   : > { %v1384_v22 = vpop.xlane.xlu0 %1383 }
0x112e   : > { %v1390_v23 = vmul.f32 1.442695, %v1386_v21  ;;  %v1387_v24 = vsub.f32 %v1375_v14, %v1384_v22 }
0x1130   : > { %2071 = vpow2.f32 %v1390_v23  ;;  %v1392_v0 = vmul.f32 1.442695, %v1387_v24 }
0x1132   : > { %2073 = vpow2.f32 %v1392_v0 }
0x1133   : > { %2075 = vpow2.f32 %v1388_v25 }
0x113a   : > { %v2072_v26 = vpop.eup %2071 }
0x113b   : > { %v1397_v27 = vsel %vm197_vm1, %v2072_v26, 0.0 }
0x113c   : > { %v2074_v28 = vpop.eup %2073  ;;  %1398 = vadd.xlane.f32.xlu1 %v1397_v27 }
0x113d   : > { %v1400_v2 = vsel %vm197_vm1, %v2074_v28, 0.0  ;;  %v2076_v31 = vpop.eup %2075 }
0x113e   : > { %1401 = vadd.xlane.f32.xlu0 %v1400_v2  ;;  %v1394_v46 = vsel %vm197_vm1, %v2076_v31, 0.0 }
0x1142   : > { %1395 = vadd.xlane.f32.xlu0 %v1394_v46 }
0x114d   : > { %1411 = vrot.lane.b32.xlu1 %v2084_v49, %s2107_s26 }
0x1151   : > { %1948 = vrot.lane.b32.xlu1 %v1947_v45, %s2106_s25 }
0x1155   : > { %1480 = vrot.lane.b32.xlu1 %v2217_v41, %s2106_s25 }
0x1158   : > { %1413 = vrot.lane.b32.xlu0 %v2161_v33, %s2107_s26 }
0x1159   : > { %1492 = vrot.lane.b32.xlu1 %v2253_v34, %s2104_s23 }
0x115c   : > { %1953 = vrot.lane.b32.xlu0 %v1952_v38, %s2104_s23 }
0x115d   : > { %1504 = vrot.lane.b32.xlu1 %v2289_v29, %s2102_s21 }
0x1160   : > { %1958 = vrot.lane.b32.xlu0 %v1957_v39, %s2102_s21 }
0x1161   : > { %1516 = vrot.lane.b32.xlu1 %v2325_v40, %s2100_s19 }
0x1164   : > { %1963 = vrot.lane.b32.xlu0 %v1962_v48, %s2100_s19 }
0x1165   : > { %1528 = vrot.lane.b32.xlu1 %v2361_v54, %s2098_s17 }
0x1168   : > { %1968 = vrot.lane.b32.xlu0 %v1967_v59, %s2098_s17 }
0x1169   : > { %1540 = vrot.lane.b32.xlu1 %v1880_v4, %s2096_s15 }
0x116c   : > { %1973 = vrot.lane.b32.xlu0 %v1972_v8, %s2096_s15 }
0x11c9   : > { %v1399_v33 = vpop.xlane.xlu1 %1398 }
0x11cb   : > { %v1402_v41 = vpop.xlane.xlu0 %1401 }
0x11cc   : > { %2077 = vrcp.f32 %v1402_v41 }
0x11cd   : > { %v1412_v42 = vpop.permute.xlu1 %1411  ;;  %2079 = vrcp.f32 %v1399_v33 }
0x11ce   : > { %1890 = vmatprep.subr.bf16.mxu0 %v1412_v42 }
0x11cf   : > { %v1396_v44 = vpop.xlane.xlu0 %1395  ;;  %1891 = vmatpush3.bf16.msra.mxu0 %v1412_v42 }
0x11d0   : > { %2081 = vrcp.f32 %v1396_v44 }
0x11d1   : > { %v1949_v58 = vpop.permute.xlu1 %1948 }
0x11d2   : > { %v1951_v4 = vunpack.i.h.bf16 %v1949_v58  ;;  %v1950_v8 = vunpack.i.l.bf16 %v1949_v58 }
0x11d3   : > { %v1414_v45 = vpop.permute.xlu0 %1413 }
0x11d4   : > { %v1423_v34 = vsel %vm245_vm2, %v1414_v45, 0  ;;  %1921 = vmatprep.subr.msk.bf16.mxu0 %vm245_vm2, %v1414_v45  ;;  %v1557_v20 = vsel %vm133_vm0, %v2185_v53, %v1950_v8 }
0x11d5   : > { %1893 = vmatpush3.bf16.msra.mxu0 %v1423_v34  ;;  %v1481_v59 = vpop.permute.xlu1 %1480 }
0x11d6   : > { %v2078_v35 = vpop.eup %2077  ;;  %v1559_v3 = vsel %vm133_vm0, %v2183_v52, %v1481_v59  ;;  %v1558_v52 = vsel %vm133_vm0, %v2187_v55, %v1951_v4 }
0x11d7   : > { %v2080_v37 = vpop.eup %2079  ;;  %v1408_v29 = vmul.f32 %v2078_v35, %v2074_v28  ;;  %v1954_v51 = vpop.permute.xlu0 %1953 }
0x11d8   : > { %v1407_v36 = vmul.f32 %v2080_v37, %v2072_v26  ;;  %v1956_v10 = vunpack.i.h.bf16 %v1954_v51  ;;  %v1955_v11 = vunpack.i.l.bf16 %v1954_v51 }
0x11d9   : > { %v1410_v40 = vpack.c.bf16 %v1408_v29, %v1408_v29  ;;  %v1493_v50 = vpop.permute.xlu1 %1492 }
0x11da   : > { %v2082_v38 = vpop.eup %2081  ;;  %v1563_v5 = vsel %vm1560_vm3, %v1559_v3, %v1493_v50  ;;  %v1561_v23 = vsel %vm1560_vm3, %v1557_v20, %v1955_v11  ;;  %v1562_v24 = vsel %vm1560_vm3, %v1558_v52, %v1956_v10 }
0x11db   : > { %v1406_v30 = vmul.f32 %v2082_v38, %v2076_v31  ;;  %v1959_v60 = vpop.permute.xlu0 %1958 }
0x11dc   : > { %v1961_v13 = vunpack.i.h.bf16 %v1959_v60  ;;  %v1960_v14 = vunpack.i.l.bf16 %v1959_v60 }
0x11dd   : > { %v1409_v39 = vpack.c.bf16 %v1407_v36, %v1406_v30  ;;  %v1505_v57 = vpop.permute.xlu1 %1504 }
0x11de   : > { %v1566_v7 = vsel %vm197_vm1, %v1563_v5, %v1505_v57  ;;  %v1564_v26 = vsel %vm197_vm1, %v1561_v23, %v1960_v14  ;;  %v1565_v27 = vsel %vm197_vm1, %v1562_v24, %v1961_v13 }
0x11df   : > { %1894 = vmatprep.mubr.msk.bf16.mxu0 %vm197_vm1, %v1409_v39  ;;  %v1964_v62 = vpop.permute.xlu0 %1963 }
0x11e0   : > { %1895 = vmatmul.mubr.msk.bf16.vlgmr.msra.gmra.mrb[28].mxu0 %vm197_vm1, %v1410_v40  ;;  %v1966_v18 = vunpack.i.h.bf16 %v1964_v62  ;;  %v1965_v19 = vunpack.i.l.bf16 %v1964_v62 }
0x11e1   : > { %v1517_v61 = vpop.permute.xlu1 %1516 }
0x11e2   : > { %v1570_v9 = vsel %vm1567_vm4, %v1566_v7, %v1517_v61  ;;  %v1568_v28 = vsel %vm1567_vm4, %v1564_v26, %v1965_v19  ;;  %v1569_v2 = vsel %vm1567_vm4, %v1565_v27, %v1966_v18 }
0x11e3   : > { %v1969_v1 = vpop.permute.xlu0 %1968 }
0x11e4   : > { %v1971_v21 = vunpack.i.h.bf16 %v1969_v1  ;;  %v1970_v55 = vunpack.i.l.bf16 %v1969_v1 }
0x11e5   : > { %v1529_v63 = vpop.permute.xlu1 %1528 }
0x11e6   : > { %v1574_v12 = vsel %vm1571_vm5, %v1570_v9, %v1529_v63  ;;  %v1572_v31 = vsel %vm1571_vm5, %v1568_v28, %v1970_v55  ;;  %v1573_v46 = vsel %vm1571_vm5, %v1569_v2, %v1971_v21 }
0x11e7   : > { %v1974_v15 = vpop.permute.xlu0 %1973 }
0x11e8   : > { %v1976_v25 = vunpack.i.h.bf16 %v1974_v15  ;;  %v1975_v0 = vunpack.i.l.bf16 %v1974_v15 }
0x11e9   : > { %v1541_v6 = vpop.permute.xlu1 %1540 }
0x11ea   : > { %v1578_v16 = vsel %vm1575_vm6, %v1574_v12, %v1541_v6  ;;  %v1576_v41 = vsel %vm1575_vm6, %v1572_v31, %v1975_v0  ;;  %v1577_v42 = vsel %vm1575_vm6, %v1573_v46, %v1976_v25 }
0x12b3   : > { %v1896_v43 = vpop.f32.mrb[28].mxu0 }
0x12b4   : > { %1552 = vrot.lane.b32.xlu1 %v1896_v43, %s2095_s14  ;;  %v1459_v47 = vpop.f32.mrb[29].mxu0 }
0x12b5   : > { %v1897_v48 = vpop.f32.mrb[30].mxu0 }
0x12b6   : > { %v1462_v54 = vpop.f32.mrb[31].mxu0 }
0x12b7   : > { %v1977_v56 = vpack.i.bf16 %v1462_v54, %v1459_v47 }
0x12b9   : > { %1978 = vrot.lane.b32.xlu0 %v1977_v56, %s2095_s14 }
0x1326   : > { %v1553_v17 = vpop.permute.xlu1 %1552 }
0x1327   : > { %v1582_v32 = vsel %vm1579_vm7, %v1578_v16, %v1553_v17 }
0x1328   : > { %v1705_v22 = vpack.c.bf16 %v1582_v32, %v1582_v32 }
0x132a   : > { %1599 = vst.msk [vmem:[%s116_s30 + $0x8] sm:$0xf] %vm1596_vm8, %v1705_v22 }
0x132b   : > { %v1979_v53 = vpop.permute.xlu0 %1978 }
0x132c   : > { %v1981_v49 = vunpack.i.h.bf16 %v1979_v53  ;;  %v1980_v33 = vunpack.i.l.bf16 %v1979_v53 }
0x132e   : > { %v1580_v44 = vsel %vm1579_vm7, %v1576_v41, %v1980_v33  ;;  %v1581_v45 = vsel %vm1579_vm7, %v1577_v42, %v1981_v49 }
0x132f   : > { %v1703_v34 = vpack.c.bf16 %v1580_v44, %v1580_v44  ;;  %v1704_v35 = vpack.c.bf16 %v1581_v45, %v1581_v45 }
0x1331   : > { %1597 = vst.msk [vmem:[%s116_s30] sm:$0xf] %vm1596_vm8, %v1703_v34  ;;  %1598 = vst.msk [vmem:[%s116_s30 + $0x4] sm:$0xf] %vm1596_vm8, %v1704_v35 }
0x1332 PF: > { %s11_s6 = sadd.s32 1, %s2091_s6  }
0x1333   : > { %p8_p4 = scmp.ge.s32.totalorder %s11_s6, 4  }
0x1335   :  { %10 = sbr.rel (!%p8_p4) target bundleno = 1 (0x1), region = 54 }

// kernel: _lambda_.51
= control target key start
LH: loop header
LB: loop body
LE: loop exit
PB: predicated region body
PF: predicated region fallthrough
CT: control target
= control target key end

     0   :  { %s662_s12 = smov 0   ;;  %s664_s13 = smov 0   ;;  %s725_s0 = inlined_call_operand.vmem [shape: bf16[48,128], index: 0, kind: input, shape index: {}]   ;;  %s726_s1 = inlined_call_operand.vmem [shape: bf16[128,128], index: 1, kind: input, shape index: {}]   ;;  %s727_s2 = inlined_call_operand.vmem [shape: f32[1,128], index: 2, kind: input, shape index: {}]   ;;  %s728_s3 = inlined_call_operand.vmem [shape: bf16[48,128], index: 3, kind: output, shape index: {}]  }
   0x1   :  { %s666_s14 = smov 0  }
   0x2 LB: > { %s32_s15 = sadd.s32 1, %s634_s13  ;;  %p526_p0 = scmp.ge.s32.totalorder %s638_s14, 1  ;;  %s638_s14 = sphi %s666_s14, %s13_s14   ;;  %s634_s13 = sphi %s664_s13, %s730_s13   ;;  %s630_s12 = sphi %s662_s12, %s729_s12  }
   0x3   : > { %p34_p1 = scmp.ge.s32.totalorder %s32_s15, 3  ;;  %p188_p2 = scmp.lt.s32.totalorder %s638_s14, 4 }
   0x5   : > { %s732_s15 = smov (%p34_p1, %s32_s15), 0  ;;  %p189_p3 = pnand %p526_p0, %p188_p2 }
   0x6   : > { %v607_v0 = vld [vmem:[%s726_s1] sm:$0xff] (!%p189_p3)   ;;  %v640_v1 = vmov (!%p189_p3), 0.0   ;;  %v608_v2 = vld [vmem:[%s726_s1 + $0x8] sm:$0xff] (!%p189_p3)   ;;  %vm641_vm0 = vmmov (!%p189_p3), 0   ;;  %s527_s20 = sshll.u32 (!%p189_p3), %s630_s12, 1  ;;  %v609_v3 = vld [vmem:[%s726_s1 + $0x10] sm:$0xff] (!%p189_p3)  }
   0x7   : > { %192 = sbr.rel (%p189_p3) target bundleno = 258 (0x102), region = 32  ;;  %561 = vmatprep.subr.bf16.mxu0 (!%p189_p3), %v640_v1  ;;  %577 = vmatprep.mubr.msk.bf16.mxu0 (!%p189_p3), %vm641_vm0, %v640_v1  ;;  %p230_p4 = scmp.lt.s32.totalorder (!%p189_p3), %s527_s20, 5  ;;  %v610_v4 = vld [vmem:[%s726_s1 + $0x18] sm:$0xff] (!%p189_p3)   ;;  %v611_v5 = vld [vmem:[%s726_s1 + $0x20] sm:$0xff] (!%p189_p3)   ;;  %v612_v6 = vld [vmem:[%s726_s1 + $0x28] sm:$0xff] (!%p189_p3)  }
   0x8   : > { %562 = vmatpush3.bf16.msra.mxu0 (!%p189_p3), %v607_v0  ;;  %v613_v7 = vld [vmem:[%s726_s1 + $0x30] sm:$0xff] (!%p189_p3)   ;;  %v614_v8 = vld [vmem:[%s726_s1 + $0x38] sm:$0xff] (!%p189_p3)   ;;  %v540_v11 = vld [vmem:[%s727_s2] ss:$0 sm:$0xff] (!%p189_p3) }
   0x9   : > { %563 = vmatprep.subr.bf16.mxu0 (!%p189_p3), %v640_v1 }
   0xc   : > { %564 = vmatpush3.bf16.msra.mxu0 (!%p189_p3), %v608_v2 }
   0xd   : > { %565 = vmatprep.subr.bf16.mxu0 (!%p189_p3), %v640_v1 }
   0xe   : > { %s734_s20 = smov (!%p230_p4, %s527_s20), 5 }
   0xf   : > { %s528_s23 = sshll.u32 %s734_s20, 2 }
  0x10   : > { %s236_s26 = scalar_lea.vmem %s725_s0, %s528_s23  ;;  %566 = vmatpush3.bf16.msra.mxu0 %v609_v3  ;;  %s257_s17 = scalar_lea.vmem %s728_s3, %s528_s23 }
  0x11   : > { %567 = vmatprep.subr.bf16.mxu0 %v640_v1  ;;  %v615_v9 = vld [vmem:[%s236_s26] sm:$0xff]  }
  0x14   : > { %568 = vmatpush3.bf16.msra.mxu0 %v610_v4 }
  0x15   : > { %569 = vmatprep.subr.bf16.mxu0 %v640_v1 }
  0x18   : > { %570 = vmatpush3.bf16.msra.mxu0 %v611_v5 }
  0x19   : > { %571 = vmatprep.subr.bf16.mxu0 %v640_v1 }
  0x1c   : > { %572 = vmatpush3.bf16.msra.mxu0 %v612_v6 }
  0x1d   : > { %573 = vmatprep.subr.bf16.mxu0 %v640_v1 }
  0x20   : > { %574 = vmatpush3.bf16.msra.mxu0 %v613_v7 }
  0x21   : > { %575 = vmatprep.subr.bf16.mxu0 %v640_v1 }
  0x24   : > { %576 = vmatpush3.bf16.msra.mxu0 %v614_v8 }
  0x27   : > { %578 = vmatmul.mubr.bf16.vlgmr.msra.gmra.mrb[0].mxu0 %v615_v9 }
  0xfa   : > { %v374_v10 = vpop.f32.mrb[0].mxu0 }
  0xfb   : > { %v579_v12 = vpop.f32.mrb[1].mxu0  ;;  %v397_v14 = vadd.f32 %v540_v11, %v374_v10 }
  0xfc   : > { %v377_v13 = vpop.f32.mrb[2].mxu0 }
  0xfd   : > { %v398_v15 = vadd.f32 %v540_v11, %v377_v13  ;;  %v580_v16 = vpop.f32.mrb[3].mxu0 }
  0xff   : > { %v550_v17 = vpack.c.bf16 %v398_v15, %v397_v14 }
 0x101   : > { %551 = vst [vmem:[%s257_s17] sm:$0xff] %v550_v17  }
 0x102 PF: > { %s13_s14 = sadd.s32 1, %s638_s14   ;;  %s729_s12 = smov %s634_s13 }
 0x103   : > { %p10_p5 = scmp.ge.s32.totalorder %s13_s14, 5   ;;  %s730_s13 = smov %s732_s15 }
 0x105   :  { %12 = sbr.rel (!%p10_p5) target bundleno = 2 (0x2), region = 76 }

// kernel: _lambda_.40
= control target key start
LH: loop header
LB: loop body
LE: loop exit
PB: predicated region body
PF: predicated region fallthrough
CT: control target
= control target key end

     0   :  { %s1279_s21 = smov 0   ;;  %s1281_s22 = smov 0   ;;  %s1462_s0 = inlined_call_operand.vmem [shape: bf16[48,640], index: 0, kind: input, shape index: {}]   ;;  %s1463_s1 = inlined_call_operand.vmem [shape: bf16[640,128], index: 1, kind: input, shape index: {}]   ;;  %s1464_s2 = inlined_call_operand.vmem [shape: f32[1,128], index: 2, kind: input, shape index: {}]   ;;  %s1465_s3 = inlined_call_operand.vmem [shape: bf16[48,128], index: 3, kind: input, shape index: {}]   ;;  %s1466_s4 = inlined_call_operand.vmem [shape: f32[1,128], index: 4, kind: input, shape index: {}]   ;;  %s1467_s5 = inlined_call_operand.vmem [shape: f32[1,128], index: 5, kind: input, shape index: {}]   ;;  %s1468_s6 = inlined_call_operand.vmem [shape: bf16[48,128], index: 6, kind: output, shape index: {}]  }
   0x1   :  { %s1283_s23 = smov 0  }
   0x2 LB: > { %s28_s24 = sadd.s32 1, %s1236_s22  ;;  %p997_p0 = scmp.ge.s32.totalorder %s1240_s23, 1  ;;  %s1240_s23 = sphi %s1283_s23, %s16_s23   ;;  %s1236_s22 = sphi %s1281_s22, %s1470_s22   ;;  %s1232_s21 = sphi %s1279_s21, %s1469_s21  }
   0x3   : > { %p30_p1 = scmp.ge.s32.totalorder %s28_s24, 3  ;;  %p255_p2 = scmp.lt.s32.totalorder %s1240_s23, 4 }
   0x5   : > { %s1472_s24 = smov (%p30_p1, %s28_s24), 0  ;;  %p256_p3 = pnand %p997_p0, %p255_p2 }
   0x6   : > { %v1167_v0 = vld [vmem:[%s1463_s1 + $0x40] sm:$0xff] (!%p256_p3)   ;;  %v1171_v4 = vld [vmem:[%s1463_s1 + $0x48] sm:$0xff] (!%p256_p3)   ;;  %v1175_v8 = vld [vmem:[%s1463_s1 + $0x50] sm:$0xff] (!%p256_p3)   ;;  %s998_s11 = sshll.u32 (!%p256_p3), %s1232_s21, 1  ;;  %v1242_v34 = vmov (!%p256_p3), 0.0   ;;  %vm1243_vm0 = vmmov (!%p256_p3), 0  }
   0x7   : > { %259 = sbr.rel (%p256_p3) target bundleno = 466 (0x1d2), region = 44  ;;  %v1168_v1 = vld [vmem:[%s1463_s1 + $0xc0] sm:$0xff] (!%p256_p3)   ;;  %1067 = vmatprep.subr.bf16.mxu0 (!%p256_p3), %v1167_v0  ;;  %v1172_v5 = vld [vmem:[%s1463_s1 + $0xc8] sm:$0xff] (!%p256_p3)   ;;  %v1176_v9 = vld [vmem:[%s1463_s1 + $0xd0] sm:$0xff] (!%p256_p3)   ;;  %p302_p4 = scmp.lt.s32.totalorder (!%p256_p3), %s998_s11, 5 }
   0x8   : > { %v1169_v2 = vld [vmem:[%s1463_s1] sm:$0xff] (!%p256_p3)   ;;  %1089 = vmatprep.subr.bf16.mxu1 (!%p256_p3), %v1168_v1  ;;  %v1173_v6 = vld [vmem:[%s1463_s1 + $0x8] sm:$0xff] (!%p256_p3)   ;;  %v1177_v10 = vld [vmem:[%s1463_s1 + $0x10] sm:$0xff] (!%p256_p3)  }
   0x9   : > { %v1170_v3 = vld [vmem:[%s1463_s1 + $0x80] sm:$0xff] (!%p256_p3)   ;;  %1068 = vmatpush3.bf16.msra.mxu0 (!%p256_p3), %v1169_v2  ;;  %v1174_v7 = vld [vmem:[%s1463_s1 + $0x88] sm:$0xff] (!%p256_p3)   ;;  %v1178_v11 = vld [vmem:[%s1463_s1 + $0x90] sm:$0xff] (!%p256_p3)  }
   0xa   : > { %1090 = vmatpush3.bf16.msra.mxu1 (!%p256_p3), %v1170_v3  ;;  %1069 = vmatprep.subr.bf16.mxu0 (!%p256_p3), %v1171_v4  ;;  %v1179_v12 = vld [vmem:[%s1463_s1 + $0x58] sm:$0xff] (!%p256_p3)   ;;  %v1183_v16 = vld [vmem:[%s1463_s1 + $0x60] sm:$0xff] (!%p256_p3)   ;;  %v1187_v20 = vld [vmem:[%s1463_s1 + $0x68] sm:$0xff] (!%p256_p3)  }
   0xb   : > { %1091 = vmatprep.subr.bf16.mxu1 (!%p256_p3), %v1172_v5  ;;  %v1180_v13 = vld [vmem:[%s1463_s1 + $0xd8] sm:$0xff] (!%p256_p3)   ;;  %v1184_v17 = vld [vmem:[%s1463_s1 + $0xe0] sm:$0xff] (!%p256_p3)   ;;  %v1188_v21 = vld [vmem:[%s1463_s1 + $0xe8] sm:$0xff] (!%p256_p3)  }
   0xc   : > { %v1181_v14 = vld [vmem:[%s1463_s1 + $0x18] sm:$0xff] (!%p256_p3)   ;;  %v1185_v18 = vld [vmem:[%s1463_s1 + $0x20] sm:$0xff] (!%p256_p3)   ;;  %v1189_v22 = vld [vmem:[%s1463_s1 + $0x28] sm:$0xff] (!%p256_p3)  }
   0xd   : > { %1070 = vmatpush3.bf16.msra.mxu0 (!%p256_p3), %v1173_v6  ;;  %v1182_v15 = vld [vmem:[%s1463_s1 + $0x98] sm:$0xff] (!%p256_p3)   ;;  %v1186_v19 = vld [vmem:[%s1463_s1 + $0xa0] sm:$0xff] (!%p256_p3)   ;;  %v1190_v23 = vld [vmem:[%s1463_s1 + $0xa8] sm:$0xff] (!%p256_p3)  }
   0xe   : > { %1092 = vmatpush3.bf16.msra.mxu1 %v1174_v7  ;;  %1071 = vmatprep.subr.bf16.mxu0 %v1175_v8  ;;  %s1474_s11 = smov (!%p302_p4, %s998_s11), 5  ;;  %v1191_v24 = vld [vmem:[%s1463_s1 + $0x70] sm:$0xff]   ;;  %v1195_v28 = vld [vmem:[%s1463_s1 + $0x78] sm:$0xff]   ;;  %v1205_v37 = vld [vmem:[%s1463_s1 + $0x100] sm:$0xff]  }
   0xf   : > { %1093 = vmatprep.subr.bf16.mxu1 %v1176_v9  ;;  %v1192_v25 = vld [vmem:[%s1463_s1 + $0xf0] sm:$0xff]   ;;  %s1140_s14 = smul.u32 20, %s1474_s11  ;;  %v1196_v29 = vld [vmem:[%s1463_s1 + $0xf8] sm:$0xff]   ;;  %v1206_v38 = vld [vmem:[%s1463_s1 + $0x108] sm:$0xff]   ;;  %s1001_s30 = sshll.u32 %s1474_s11, 2 }
  0x10   : > { %v1193_v26 = vld [vmem:[%s1463_s1 + $0x30] sm:$0xff]   ;;  %v1197_v30 = vld [vmem:[%s1463_s1 + $0x38] sm:$0xff]   ;;  %v1209_v41 = vld [vmem:[%s1463_s1 + $0x120] sm:$0xff]   ;;  %s322_s8 = scalar_lea.vmem %s1465_s3, %s1001_s30  ;;  %s328_s18 = scalar_lea.vmem %s1468_s6, %s1001_s30 }
  0x11   : > { %1072 = vmatpush3.bf16.msra.mxu0 %v1177_v10  ;;  %v1194_v27 = vld [vmem:[%s1463_s1 + $0xb0] sm:$0xff]   ;;  %s1396_s28 = scalar_lea.vmem %s1462_s0, %s1140_s14  ;;  %v1198_v31 = vld [vmem:[%s1463_s1 + $0xb8] sm:$0xff]   ;;  %v1210_v42 = vld [vmem:[%s1463_s1 + $0x128] sm:$0xff]  }
  0x12   : > { %1094 = vmatpush3.bf16.msra.mxu1 %v1178_v11  ;;  %1073 = vmatprep.subr.bf16.mxu0 %v1179_v12  ;;  %v1199_v32 = vld [vmem:[%s1396_s28] ss:$20 sps:$4 sm:$0xff]   ;;  %v1201_v33 = vld [vmem:[%s1396_s28 + $0x4] ss:$20 sps:$4 sm:$0xff]   ;;  %v1202_v35 = vld [vmem:[%s1396_s28 + $0x8] ss:$20 sps:$4 sm:$0xff]  }
  0x13   : > { %1095 = vmatprep.subr.bf16.mxu1 %v1180_v13  ;;  %v1204_v36 = vld [vmem:[%s1396_s28 + $0xc] ss:$20 sps:$4 sm:$0xff]   ;;  %723 = vmatprep.mubr.bf16.mxu0 %v1201_v33  ;;  %v1207_v39 = vld [vmem:[%s1463_s1 + $0x110] sm:$0xff]   ;;  %v1208_v40 = vld [vmem:[%s1463_s1 + $0x118] sm:$0xff]  }
  0x14   : > { %764 = vmatprep.mubr.bf16.mxu1 %v1204_v36  ;;  %v1211_v43 = vld [vmem:[%s1463_s1 + $0x130] sm:$0xff]   ;;  %v1212_v44 = vld [vmem:[%s1463_s1 + $0x138] sm:$0xff]   ;;  %v1059_v60 = vld [vmem:[%s322_s8] sm:$0xff]  }
  0x15   : > { %1074 = vmatpush3.bf16.msra.mxu0 %v1181_v14  ;;  %v1213_v45 = vld [vmem:[%s1396_s28 + $0x10] ss:$20 sps:$4 sm:$0xff]   ;;  %v1049_v62 = vld [vmem:[%s1464_s2] ss:$0 sm:$0xff]  ;;  %v1060_v1 = vunpack.c.l.bf16 %v1059_v60  ;;  %v1061_v6 = vunpack.c.h.bf16 %v1059_v60 }
  0x16   : > { %1096 = vmatpush3.bf16.msra.mxu1 %v1182_v15  ;;  %1075 = vmatprep.subr.bf16.mxu0 %v1183_v16  ;;  %v1051_v36 = vld [vmem:[%s1467_s5] ss:$0 sm:$0xff] }
  0x17   : > { %1097 = vmatprep.subr.bf16.mxu1 %v1184_v17 }
  0x19   : > { %1076 = vmatpush3.bf16.msra.mxu0 %v1185_v18 }
  0x1a   : > { %1098 = vmatpush3.bf16.msra.mxu1 %v1186_v19  ;;  %1077 = vmatprep.subr.bf16.mxu0 %v1187_v20 }
  0x1b   : > { %1099 = vmatprep.subr.bf16.mxu1 %v1188_v21 }
  0x1d   : > { %1078 = vmatpush3.bf16.msra.mxu0 %v1189_v22 }
  0x1e   : > { %1100 = vmatpush3.bf16.msra.mxu1 %v1190_v23  ;;  %1079 = vmatprep.subr.bf16.mxu0 %v1191_v24 }
  0x1f   : > { %1101 = vmatprep.subr.bf16.mxu1 %v1192_v25 }
  0x21   : > { %1080 = vmatpush3.bf16.msra.mxu0 %v1193_v26 }
  0x22   : > { %1102 = vmatpush3.bf16.msra.mxu1 %v1194_v27  ;;  %1081 = vmatprep.subr.bf16.mxu0 %v1195_v28 }
  0x23   : > { %1103 = vmatprep.subr.bf16.mxu1 %v1196_v29 }
  0x25   : > { %1082 = vmatpush3.bf16.msra.mxu0 %v1197_v30 }
  0x26   : > { %1104 = vmatpush3.bf16.msra.mxu1 %v1198_v31  ;;  %1120 = vmatprep.subr.bf16.mxu0 %v1242_v34  ;;  %v1050_v31 = vld [vmem:[%s1466_s4] ss:$0 sm:$0xff] }
  0x28   : > { %724 = vmatmul.mubr.bf16.vlgmr.msra.gmra.mrb[0].mxu0 %v1199_v32 }
  0x29   : > { %765 = vmatmul.mubr.bf16.vlgmr.msra.gmra.mrb[0].mxu1 %v1202_v35  ;;  %1121 = vmatpush3.bf16.msra.mxu0 %v1205_v37 }
  0x2a   : > { %1122 = vmatprep.subr.bf16.mxu0 %v1242_v34  ;;  %1136 = vmatprep.mubr.msk.bf16.mxu0 %vm1243_vm0, %v1242_v34 }
  0x2d   : > { %1123 = vmatpush3.bf16.msra.mxu0 %v1206_v38 }
  0x2e   : > { %1124 = vmatprep.subr.bf16.mxu0 %v1242_v34 }
  0x31   : > { %1125 = vmatpush3.bf16.msra.mxu0 %v1207_v39 }
  0x32   : > { %1126 = vmatprep.subr.bf16.mxu0 %v1242_v34 }
  0x35   : > { %1127 = vmatpush3.bf16.msra.mxu0 %v1208_v40 }
  0x36   : > { %1128 = vmatprep.subr.bf16.mxu0 %v1242_v34 }
  0x39   : > { %1129 = vmatpush3.bf16.msra.mxu0 %v1209_v41 }
  0x3a   : > { %1130 = vmatprep.subr.bf16.mxu0 %v1242_v34 }
  0x3d   : > { %1131 = vmatpush3.bf16.msra.mxu0 %v1210_v42 }
  0x3e   : > { %1132 = vmatprep.subr.bf16.mxu0 %v1242_v34 }
  0x41   : > { %1133 = vmatpush3.bf16.msra.mxu0 %v1211_v43 }
  0x42   : > { %1134 = vmatprep.subr.bf16.mxu0 %v1242_v34 }
  0x45   : > { %1135 = vmatpush3.bf16.msra.mxu0 %v1212_v44 }
  0x48   : > { %1137 = vmatmul.mubr.bf16.vlgmr.msra.gmra.mrb[4].mxu0 %v1213_v45 }
  0xfb   : > { %v1083_v46 = vpop.f32.mrb[0].mxu0 }
  0xfc   : > { %v1105_v47 = vpop.f32.mrb[0].mxu1  ;;  %v1084_v48 = vpop.f32.mrb[1].mxu0 }
  0xfd   : > { %v1085_v49 = vadd.f32 %v1084_v48, %v1083_v46  ;;  %v1106_v50 = vpop.f32.mrb[1].mxu1  ;;  %v1086_v51 = vpop.f32.mrb[2].mxu0 }
  0xfe   : > { %v1107_v52 = vadd.f32 %v1106_v50, %v1105_v47  ;;  %v1108_v53 = vpop.f32.mrb[2].mxu1  ;;  %v1087_v54 = vpop.f32.mrb[3].mxu0 }
  0xff   : > { %v1088_v55 = vadd.f32 %v1087_v54, %v1086_v51  ;;  %v1109_v56 = vpop.f32.mrb[3].mxu1 }
 0x100   : > { %v1110_v57 = vadd.f32 %v1109_v56, %v1108_v53  ;;  %v767_v58 = vadd.f32 %v1107_v52, %v1085_v49 }
 0x102   : > { %v770_v59 = vadd.f32 %v1110_v57, %v1088_v55 }
 0x11b   : > { %v807_v61 = vpop.f32.mrb[4].mxu0 }
 0x11c   : > { %v808_v63 = vadd.f32 %v807_v61, %v767_v58  ;;  %v1138_v0 = vpop.f32.mrb[5].mxu0 }
 0x11d   : > { %v810_v2 = vpop.f32.mrb[6].mxu0 }
 0x11e   : > { %v830_v3 = vadd.f32 %v1049_v62, %v808_v63  ;;  %v811_v4 = vadd.f32 %v810_v2, %v770_v59  ;;  %v1139_v5 = vpop.f32.mrb[7].mxu0 }
 0x120   : > { %v831_v7 = vadd.f32 %v1049_v62, %v811_v4  ;;  %v836_v8 = vadd.f32 %v1060_v1, %v830_v3 }
 0x122   : > { %838 = vadd.xlane.f32.xlu0 %v836_v8  ;;  %v844_v9 = vmul.f32 %v836_v8, %v836_v8  ;;  %v837_v10 = vadd.f32 %v1061_v6, %v831_v7 }
 0x124   : > { %846 = vadd.xlane.f32.xlu1 %v844_v9  ;;  %v845_v11 = vmul.f32 %v837_v10, %v837_v10 }
 0x126   : > { %840 = vadd.xlane.f32.xlu0 %v837_v10 }
 0x128   : > { %848 = vadd.xlane.f32.xlu1 %v845_v11 }
 0x1af   : > { %v839_v12 = vpop.xlane.xlu0 %838 }
 0x1b0   : > { %v842_v13 = vmul.f32 0.015625, %v839_v12 }
 0x1b1   : > { %v847_v14 = vpop.xlane.xlu1 %846 }
 0x1b2   : > { %v852_v15 = vmul.f32 %v842_v13, %v842_v13  ;;  %v850_v16 = vmul.f32 0.015625, %v847_v14  ;;  %v858_v28 = vsub.f32 %v836_v8, %v842_v13 }
 0x1b3   : > { %v841_v17 = vpop.xlane.xlu0 %840 }
 0x1b4   : > { %v854_v18 = vsub.f32 %v850_v16, %v852_v15  ;;  %v843_v19 = vmul.f32 0.015625, %v841_v17 }
 0x1b5   : > { %v849_v20 = vpop.xlane.xlu1 %848 }
 0x1b6   : > { %v856_v21 = vmax.f32 %v854_v18, 0.0  ;;  %v853_v22 = vmul.f32 %v843_v19, %v843_v19  ;;  %v851_v23 = vmul.f32 0.015625, %v849_v20  ;;  %v859_v32 = vsub.f32 %v837_v10, %v843_v19 }
 0x1b8   : > { %v860_v24 = vadd.f32 1e-05, %v856_v21  ;;  %v855_v25 = vsub.f32 %v851_v23, %v853_v22 }
 0x1ba   : > { %1214 = vrsqrt.f32 %v860_v24  ;;  %v857_v26 = vmax.f32 %v855_v25, 0.0 }
 0x1bc   : > { %v861_v27 = vadd.f32 1e-05, %v857_v26 }
 0x1be   : > { %1216 = vrsqrt.f32 %v861_v27 }
 0x1c4   : > { %v1215_v29 = vpop.eup %1214 }
 0x1c5   : > { %v864_v30 = vmul.f32 %v1215_v29, %v858_v28 }
 0x1c7   : > { %v873_v34 = vmul.f32 %v1050_v31, %v864_v30 }
 0x1c8   : > { %v1217_v33 = vpop.eup %1216 }
 0x1c9   : > { %v865_v35 = vmul.f32 %v1217_v33, %v859_v32  ;;  %v882_v38 = vadd.f32 %v1051_v36, %v873_v34 }
 0x1cb   : > { %v874_v37 = vmul.f32 %v1050_v31, %v865_v35 }
 0x1cd   : > { %v883_v39 = vadd.f32 %v1051_v36, %v874_v37 }
 0x1cf   : > { %v1065_v40 = vpack.c.bf16 %v883_v39, %v882_v38 }
 0x1d1   : > { %1066 = vst [vmem:[%s328_s18] sm:$0xff] %v1065_v40  }
 0x1d2 PF: > { %s16_s23 = sadd.s32 1, %s1240_s23   ;;  %s1469_s21 = smov %s1236_s22 }
 0x1d3   : > { %p13_p5 = scmp.ge.s32.totalorder %s16_s23, 5   ;;  %s1470_s22 = smov %s1472_s24 }
 0x1d5   :  { %15 = sbr.rel (!%p13_p5) target bundleno = 2 (0x2), region = 88 }

// kernel: _lambda_.53
= control target key start
LH: loop header
LB: loop body
LE: loop exit
PB: predicated region body
PF: predicated region fallthrough
CT: control target
= control target key end

     0   :  { %s576_s9 = smov 0   ;;  %s578_s10 = smov 0   ;;  %s633_s0 = inlined_call_operand.vmem [shape: bf16[48,128], index: 0, kind: input, shape index: {}]   ;;  %s634_s1 = inlined_call_operand.vmem [shape: bf16[128,128], index: 1, kind: input, shape index: {}]   ;;  %s635_s2 = inlined_call_operand.vmem [shape: f32[48,128], index: 2, kind: output, shape index: {}]  }
   0x1   :  { %s580_s11 = smov 0  }
   0x2 LB: > { %s31_s12 = sadd.s32 1, %s553_s10  ;;  %p455_p0 = scmp.ge.s32.totalorder %s557_s11, 1  ;;  %s557_s11 = sphi %s580_s11, %s12_s11   ;;  %s553_s10 = sphi %s578_s10, %s637_s10   ;;  %s549_s9 = sphi %s576_s9, %s636_s9  }
   0x3   : > { %p33_p1 = scmp.ge.s32.totalorder %s31_s12, 3  ;;  %p155_p2 = scmp.lt.s32.totalorder %s557_s11, 4 }
   0x5   : > { %s639_s12 = smov (%p33_p1, %s31_s12), 0  ;;  %p156_p3 = pnand %p455_p0, %p155_p2 }
   0x6   : > { %v526_v0 = vld [vmem:[%s634_s1] sm:$0xff] (!%p156_p3)   ;;  %v559_v1 = vmov (!%p156_p3), 0.0   ;;  %v527_v2 = vld [vmem:[%s634_s1 + $0x8] sm:$0xff] (!%p156_p3)   ;;  %vm560_vm0 = vmmov (!%p156_p3), 0   ;;  %s456_s17 = sshll.u32 (!%p156_p3), %s549_s9, 1  ;;  %v528_v3 = vld [vmem:[%s634_s1 + $0x10] sm:$0xff] (!%p156_p3)  }
   0x7   : > { %159 = sbr.rel (%p156_p3) target bundleno = 254 (0xfe), region = 28  ;;  %480 = vmatprep.subr.bf16.mxu0 (!%p156_p3), %v559_v1  ;;  %496 = vmatprep.mubr.msk.bf16.mxu0 (!%p156_p3), %vm560_vm0, %v559_v1  ;;  %p192_p4 = scmp.lt.s32.totalorder (!%p156_p3), %s456_s17, 5  ;;  %v529_v4 = vld [vmem:[%s634_s1 + $0x18] sm:$0xff] (!%p156_p3)   ;;  %v530_v5 = vld [vmem:[%s634_s1 + $0x20] sm:$0xff] (!%p156_p3)   ;;  %v531_v6 = vld [vmem:[%s634_s1 + $0x28] sm:$0xff] (!%p156_p3)  }
   0x8   : > { %481 = vmatpush3.bf16.msra.mxu0 (!%p156_p3), %v526_v0  ;;  %v532_v7 = vld [vmem:[%s634_s1 + $0x30] sm:$0xff] (!%p156_p3)   ;;  %v533_v8 = vld [vmem:[%s634_s1 + $0x38] sm:$0xff] (!%p156_p3)  }
   0x9   : > { %482 = vmatprep.subr.bf16.mxu0 (!%p156_p3), %v559_v1 }
   0xc   : > { %483 = vmatpush3.bf16.msra.mxu0 (!%p156_p3), %v527_v2 }
   0xd   : > { %484 = vmatprep.subr.bf16.mxu0 (!%p156_p3), %v559_v1 }
   0xe   : > { %s641_s17 = smov (!%p192_p4, %s456_s17), 5 }
   0xf   : > { %s457_s20 = sshll.u32 %s641_s17, 2  ;;  %s459_s6 = sshll.u32 %s641_s17, 3 }
  0x10   : > { %s198_s23 = scalar_lea.vmem %s633_s0, %s457_s20  ;;  %485 = vmatpush3.bf16.msra.mxu0 %v528_v3  ;;  %s216_s9 = scalar_lea.vmem %s635_s2, %s459_s6 }
  0x11   : > { %486 = vmatprep.subr.bf16.mxu0 %v559_v1  ;;  %v534_v9 = vld [vmem:[%s198_s23] sm:$0xff]  }
  0x14   : > { %487 = vmatpush3.bf16.msra.mxu0 %v529_v4 }
  0x15   : > { %488 = vmatprep.subr.bf16.mxu0 %v559_v1 }
  0x18   : > { %489 = vmatpush3.bf16.msra.mxu0 %v530_v5 }
  0x19   : > { %490 = vmatprep.subr.bf16.mxu0 %v559_v1 }
  0x1c   : > { %491 = vmatpush3.bf16.msra.mxu0 %v531_v6 }
  0x1d   : > { %492 = vmatprep.subr.bf16.mxu0 %v559_v1 }
  0x20   : > { %493 = vmatpush3.bf16.msra.mxu0 %v532_v7 }
  0x21   : > { %494 = vmatprep.subr.bf16.mxu0 %v559_v1 }
  0x24   : > { %495 = vmatpush3.bf16.msra.mxu0 %v533_v8 }
  0x27   : > { %497 = vmatmul.mubr.bf16.vlgmr.msra.gmra.mrb[0].mxu0 %v534_v9 }
  0xfa   : > { %v333_v10 = vpop.f32.mrb[0].mxu0 }
  0xfb   : > { %349 = vst [vmem:[%s216_s9] sm:$0xff] %v333_v10  ;;  %v498_v11 = vpop.f32.mrb[1].mxu0 }
  0xfc   : > { %v336_v12 = vpop.f32.mrb[2].mxu0 }
  0xfd   : > { %350 = vst [vmem:[%s216_s9 + $0x8] sm:$0xff] %v336_v12  ;;  %v499_v13 = vpop.f32.mrb[3].mxu0 }
  0xfe PF: > { %s12_s11 = sadd.s32 1, %s557_s11   ;;  %s636_s9 = smov %s553_s10 }
  0xff   : > { %p9_p5 = scmp.ge.s32.totalorder %s12_s11, 5   ;;  %s637_s10 = smov %s639_s12 }
 0x101   :  { %11 = sbr.rel (!%p9_p5) target bundleno = 2 (0x2), region = 69 }

// kernel: _lambda_.55
= control target key start
LH: loop header
LB: loop body
LE: loop exit
PB: predicated region body
PF: predicated region fallthrough
CT: control target
= control target key end

     0   :  { %s730_s9 = smov 0   ;;  %s732_s10 = smov 0   ;;  %s803_s0 = inlined_call_operand.vmem [shape: bf16[160,128], index: 0, kind: input, shape index: {}]   ;;  %s804_s1 = inlined_call_operand.vmem [shape: bf16[128,128], index: 1, kind: input, shape index: {}]   ;;  %s805_s2 = inlined_call_operand.vmem [shape: f32[160,128], index: 2, kind: output, shape index: {}]  }
   0x1   :  { %s734_s11 = smov 0  }
   0x2 LB: > { %s31_s12 = sadd.s32 1, %s707_s10  ;;  %p567_p0 = scmp.ge.s32.totalorder %s711_s11, 1  ;;  %s711_s11 = sphi %s734_s11, %s12_s11   ;;  %s707_s10 = sphi %s732_s10, %s807_s10   ;;  %s703_s9 = sphi %s730_s9, %s806_s9  }
   0x3   : > { %p33_p1 = scmp.ge.s32.totalorder %s31_s12, 2  ;;  %p155_p2 = scmp.lt.s32.totalorder %s711_s11, 3 }
   0x5   : > { %s809_s12 = smov (%p33_p1, %s31_s12), 0  ;;  %p156_p3 = pnand %p567_p0, %p155_p2 }
   0x6   : > { %v676_v0 = vld [vmem:[%s804_s1] sm:$0xff] (!%p156_p3)   ;;  %v713_v1 = vmov (!%p156_p3), 0.0   ;;  %v677_v2 = vld [vmem:[%s804_s1 + $0x8] sm:$0xff] (!%p156_p3)   ;;  %s191_s17 = smul.u32 (!%p156_p3), 10, %s703_s9  ;;  %vm714_vm0 = vmmov (!%p156_p3), 0   ;;  %v678_v3 = vld [vmem:[%s804_s1 + $0x10] sm:$0xff] (!%p156_p3)  }
   0x7   : > { %159 = sbr.rel (%p156_p3) target bundleno = 270 (0x10e), region = 28  ;;  %598 = vmatprep.subr.bf16.mxu0 (!%p156_p3), %v713_v1  ;;  %634 = vmatprep.subr.bf16.mxu1 (!%p156_p3), %v713_v1  ;;  %v679_v4 = vld [vmem:[%s804_s1 + $0x18] sm:$0xff] (!%p156_p3)   ;;  %v680_v5 = vld [vmem:[%s804_s1 + $0x20] sm:$0xff] (!%p156_p3)   ;;  %v681_v6 = vld [vmem:[%s804_s1 + $0x28] sm:$0xff] (!%p156_p3)  }
   0x8   : > { %599 = vmatpush3.bf16.msra.mxu0 (!%p156_p3), %v676_v0  ;;  %642 = vmatpush3.bf16.msra.mxu1 (!%p156_p3), %v676_v0  ;;  %p192_p4 = scmp.lt.s32.totalorder (!%p156_p3), %s191_s17, 19  ;;  %v682_v7 = vld [vmem:[%s804_s1 + $0x30] sm:$0xff] (!%p156_p3)   ;;  %v683_v8 = vld [vmem:[%s804_s1 + $0x38] sm:$0xff] (!%p156_p3)  }
   0x9   : > { %600 = vmatprep.subr.bf16.mxu0 (!%p156_p3), %v713_v1  ;;  %635 = vmatprep.subr.bf16.mxu1 (!%p156_p3), %v713_v1 }
   0xa   : > { %614 = vmatprep.mubr.msk.bf16.mxu0 (!%p156_p3), %vm714_vm0, %v713_v1  ;;  %626 = vmatprep.mubr.msk.bf16.mxu1 (!%p156_p3), %vm714_vm0, %v713_v1 }
   0xc   : > { %601 = vmatpush3.bf16.msra.mxu0 (!%p156_p3), %v677_v2  ;;  %643 = vmatpush3.bf16.msra.mxu1 (!%p156_p3), %v677_v2 }
   0xd   : > { %602 = vmatprep.subr.bf16.mxu0 (!%p156_p3), %v713_v1  ;;  %636 = vmatprep.subr.bf16.mxu1 (!%p156_p3), %v713_v1 }
   0xe   : > { %s811_s17 = smov (!%p192_p4, %s191_s17), 19 }
   0xf   : > { %s568_s20 = sshll.u32 %s811_s17, 2  ;;  %s569_s6 = sshll.u32 %s811_s17, 3 }
  0x10   : > { %s765_s23 = scalar_lea.vmem %s803_s0, %s568_s20  ;;  %603 = vmatpush3.bf16.msra.mxu0 %v678_v3  ;;  %644 = vmatpush3.bf16.msra.mxu1 %v678_v3  ;;  %s216_s9 = scalar_lea.vmem %s805_s2, %s569_s6 }
  0x11   : > { %604 = vmatprep.subr.bf16.mxu0 %v713_v1  ;;  %637 = vmatprep.subr.bf16.mxu1 %v713_v1  ;;  %v684_v9 = vld [vmem:[%s765_s23] sm:$0xff]   ;;  %v685_v10 = vld [vmem:[%s765_s23 + $0x18] sm:$0xff]   ;;  %v686_v11 = vld [vmem:[%s765_s23 + $0x8] sm:$0xff]  }
  0x12   : > { %v687_v12 = vld [vmem:[%s765_s23 + $0x20] sm:$0xff]   ;;  %v688_v13 = vld [vmem:[%s765_s23 + $0x10] sm:$0xff]  }
  0x14   : > { %605 = vmatpush3.bf16.msra.mxu0 %v679_v4  ;;  %645 = vmatpush3.bf16.msra.mxu1 %v679_v4 }
  0x15   : > { %606 = vmatprep.subr.bf16.mxu0 %v713_v1  ;;  %638 = vmatprep.subr.bf16.mxu1 %v713_v1 }
  0x18   : > { %607 = vmatpush3.bf16.msra.mxu0 %v680_v5  ;;  %646 = vmatpush3.bf16.msra.mxu1 %v680_v5 }
  0x19   : > { %608 = vmatprep.subr.bf16.mxu0 %v713_v1  ;;  %639 = vmatprep.subr.bf16.mxu1 %v713_v1 }
  0x1c   : > { %609 = vmatpush3.bf16.msra.mxu0 %v681_v6  ;;  %647 = vmatpush3.bf16.msra.mxu1 %v681_v6 }
  0x1d   : > { %610 = vmatprep.subr.bf16.mxu0 %v713_v1  ;;  %640 = vmatprep.subr.bf16.mxu1 %v713_v1 }
  0x20   : > { %611 = vmatpush3.bf16.msra.mxu0 %v682_v7  ;;  %648 = vmatpush3.bf16.msra.mxu1 %v682_v7 }
  0x21   : > { %612 = vmatprep.subr.bf16.mxu0 %v713_v1  ;;  %641 = vmatprep.subr.bf16.mxu1 %v713_v1 }
  0x24   : > { %613 = vmatpush3.bf16.msra.mxu0 %v683_v8  ;;  %649 = vmatpush3.bf16.msra.mxu1 %v683_v8 }
  0x27   : > { %615 = vmatmul.mubr.bf16.vlgmr.msra.gmra.mrb[0].mxu0 %v684_v9  ;;  %627 = vmatmul.mubr.bf16.vlgmr.msra.gmra.mrb[0].mxu1 %v685_v10 }
  0x28   : > { %618 = vmatprep.mubr.msk.bf16.mxu0 %vm714_vm0, %v713_v1  ;;  %630 = vmatprep.mubr.msk.bf16.mxu1 %vm714_vm0, %v713_v1 }
  0x2f   : > { %619 = vmatmul.mubr.bf16.gmra.mrb[4].mxu0 %v686_v11  ;;  %631 = vmatmul.mubr.bf16.gmra.mrb[4].mxu1 %v687_v12 }
  0x30   : > { %622 = vmatprep.mubr.msk.bf16.mxu0 %vm714_vm0, %v713_v1 }
  0x37   : > { %623 = vmatmul.mubr.bf16.gmra.mrb[8].mxu0 %v688_v13 }
  0xfa   : > { %v381_v14 = vpop.f32.mrb[0].mxu0  ;;  %v405_v15 = vpop.f32.mrb[0].mxu1 }
  0xfb   : > { %453 = vst [vmem:[%s216_s9] sm:$0xff] %v381_v14  ;;  %v616_v16 = vpop.f32.mrb[1].mxu0  ;;  %459 = vst [vmem:[%s216_s9 + $0x30] sm:$0xff] %v405_v15  ;;  %v628_v17 = vpop.f32.mrb[1].mxu1 }
  0xfc   : > { %v384_v18 = vpop.f32.mrb[2].mxu0  ;;  %v408_v19 = vpop.f32.mrb[2].mxu1 }
  0xfd   : > { %454 = vst [vmem:[%s216_s9 + $0x8] sm:$0xff] %v384_v18  ;;  %v617_v20 = vpop.f32.mrb[3].mxu0  ;;  %460 = vst [vmem:[%s216_s9 + $0x38] sm:$0xff] %v408_v19  ;;  %v629_v21 = vpop.f32.mrb[3].mxu1 }
 0x102   : > { %v389_v22 = vpop.f32.mrb[4].mxu0  ;;  %v413_v23 = vpop.f32.mrb[4].mxu1 }
 0x103   : > { %455 = vst [vmem:[%s216_s9 + $0x10] sm:$0xff] %v389_v22  ;;  %v620_v24 = vpop.f32.mrb[5].mxu0  ;;  %461 = vst [vmem:[%s216_s9 + $0x40] sm:$0xff] %v413_v23  ;;  %v632_v25 = vpop.f32.mrb[5].mxu1 }
 0x104   : > { %v392_v26 = vpop.f32.mrb[6].mxu0  ;;  %v416_v27 = vpop.f32.mrb[6].mxu1 }
 0x105   : > { %456 = vst [vmem:[%s216_s9 + $0x18] sm:$0xff] %v392_v26  ;;  %v621_v28 = vpop.f32.mrb[7].mxu0  ;;  %462 = vst [vmem:[%s216_s9 + $0x48] sm:$0xff] %v416_v27  ;;  %v633_v29 = vpop.f32.mrb[7].mxu1 }
 0x10a   : > { %v397_v30 = vpop.f32.mrb[8].mxu0 }
 0x10b   : > { %457 = vst [vmem:[%s216_s9 + $0x20] sm:$0xff] %v397_v30  ;;  %v624_v31 = vpop.f32.mrb[9].mxu0 }
 0x10c   : > { %v400_v32 = vpop.f32.mrb[10].mxu0 }
 0x10d   : > { %458 = vst [vmem:[%s216_s9 + $0x28] sm:$0xff] %v400_v32  ;;  %v625_v33 = vpop.f32.mrb[11].mxu0 }
 0x10e PF: > { %s12_s11 = sadd.s32 1, %s711_s11   ;;  %s806_s9 = smov %s707_s10 }
 0x10f   : > { %p9_p5 = scmp.ge.s32.totalorder %s12_s11, 4   ;;  %s807_s10 = smov %s809_s12 }
 0x111   :  { %11 = sbr.rel (!%p9_p5) target bundleno = 2 (0x2), region = 69 }

// kernel: _lambda_.57
= control target key start
LH: loop header
LB: loop body
LE: loop exit
PB: predicated region body
PF: predicated region fallthrough
CT: control target
= control target key end

     0   :  { %s881_s9 = smov 0   ;;  %s883_s10 = smov 0   ;;  %s976_s0 = inlined_call_operand.vmem [shape: bf16[640,128], index: 0, kind: input, shape index: {}]   ;;  %s977_s1 = inlined_call_operand.vmem [shape: bf16[128,128], index: 1, kind: input, shape index: {}]   ;;  %s978_s2 = inlined_call_operand.vmem [shape: f32[640,128], index: 2, kind: output, shape index: {}]  }
   0x1   :  { %s885_s11 = smov 0  }
   0x2 LB: > { %s31_s12 = sadd.s32 1, %s860_s10  ;;  %p707_p0 = scmp.ge.s32.totalorder %s864_s11, 1  ;;  %s864_s11 = sphi %s885_s11, %s12_s11   ;;  %s860_s10 = sphi %s883_s10, %s980_s10   ;;  %s856_s9 = sphi %s881_s9, %s979_s9  }
   0x3   : > { %p33_p1 = scmp.ge.s32.totalorder %s31_s12, 4  ;;  %p155_p2 = scmp.lt.s32.totalorder %s864_s11, 5 }
   0x5   : > { %s982_s12 = smov (%p33_p1, %s31_s12), 0  ;;  %p156_p3 = pnand %p707_p0, %p155_p2 }
   0x6   : > { %v824_v0 = vld [vmem:[%s977_s1] sm:$0xff] (!%p156_p3)   ;;  %s191_s15 = smul.u32 (!%p156_p3), 20, %s856_s9  ;;  %v825_v1 = vld [vmem:[%s977_s1 + $0x8] sm:$0xff] (!%p156_p3)   ;;  %v826_v2 = vld [vmem:[%s977_s1 + $0x10] sm:$0xff] (!%p156_p3)  }
   0x7   : > { %159 = sbr.rel (%p156_p3) target bundleno = 271 (0x10f), region = 28  ;;  %748 = vmatprep.subr.bf16.mxu0 (!%p156_p3), %v824_v0  ;;  %784 = vmatprep.subr.bf16.mxu1 (!%p156_p3), %v824_v0  ;;  %v827_v3 = vld [vmem:[%s977_s1 + $0x18] sm:$0xff] (!%p156_p3)   ;;  %v828_v6 = vld [vmem:[%s977_s1 + $0x20] sm:$0xff] (!%p156_p3)   ;;  %v829_v7 = vld [vmem:[%s977_s1 + $0x28] sm:$0xff] (!%p156_p3)  }
   0x8   : > { %p192_p4 = scmp.lt.s32.totalorder (!%p156_p3), %s191_s15, 79  ;;  %749 = vmatpush3.bf16.msra.mxu0 (!%p156_p3), %v824_v0  ;;  %792 = vmatpush3.bf16.msra.mxu1 (!%p156_p3), %v824_v0  ;;  %v830_v8 = vld [vmem:[%s977_s1 + $0x30] sm:$0xff] (!%p156_p3)   ;;  %v831_v9 = vld [vmem:[%s977_s1 + $0x38] sm:$0xff] (!%p156_p3)  }
   0x9   : > { %750 = vmatprep.subr.bf16.mxu0 (!%p156_p3), %v825_v1  ;;  %785 = vmatprep.subr.bf16.mxu1 (!%p156_p3), %v825_v1 }
   0xc   : > { %751 = vmatpush3.bf16.msra.mxu0 (!%p156_p3), %v825_v1  ;;  %793 = vmatpush3.bf16.msra.mxu1 (!%p156_p3), %v825_v1 }
   0xd   : > { %752 = vmatprep.subr.bf16.mxu0 (!%p156_p3), %v826_v2  ;;  %786 = vmatprep.subr.bf16.mxu1 (!%p156_p3), %v826_v2 }
   0xe   : > { %s984_s15 = smov (!%p192_p4, %s191_s15), 79 }
   0xf   : > { %s708_s20 = sshll.u32 %s984_s15, 2  ;;  %s709_s6 = sshll.u32 %s984_s15, 3 }
  0x10   : > { %s917_s25 = scalar_lea.vmem %s976_s0, %s708_s20  ;;  %753 = vmatpush3.bf16.msra.mxu0 %v826_v2  ;;  %794 = vmatpush3.bf16.msra.mxu1 %v826_v2  ;;  %s945_s9 = scalar_lea.vmem %s978_s2, %s709_s6 }
  0x11   : > { %v832_v4 = vld [vmem:[%s917_s25] sm:$0xff]   ;;  %v834_v5 = vld [vmem:[%s917_s25 + $0x30] sm:$0xff]   ;;  %754 = vmatprep.subr.bf16.mxu0 %v827_v3  ;;  %787 = vmatprep.subr.bf16.mxu1 %v827_v3  ;;  %v833_v10 = vld [vmem:[%s917_s25 + $0x8] sm:$0xff]  }
  0x12   : > { %764 = vmatprep.mubr.bf16.mxu0 %v832_v4  ;;  %776 = vmatprep.mubr.bf16.mxu1 %v834_v5  ;;  %v835_v11 = vld [vmem:[%s917_s25 + $0x38] sm:$0xff]   ;;  %v836_v12 = vld [vmem:[%s917_s25 + $0x10] sm:$0xff]   ;;  %v838_v13 = vld [vmem:[%s917_s25 + $0x40] sm:$0xff]  }
  0x13   : > { %v837_v14 = vld [vmem:[%s917_s25 + $0x18] sm:$0xff]   ;;  %v839_v15 = vld [vmem:[%s917_s25 + $0x48] sm:$0xff]   ;;  %v840_v16 = vld [vmem:[%s917_s25 + $0x20] sm:$0xff]  }
  0x14   : > { %755 = vmatpush3.bf16.msra.mxu0 %v827_v3  ;;  %795 = vmatpush3.bf16.msra.mxu1 %v827_v3  ;;  %v841_v17 = vld [vmem:[%s917_s25 + $0x28] sm:$0xff]  }
  0x15   : > { %756 = vmatprep.subr.bf16.mxu0 %v828_v6  ;;  %788 = vmatprep.subr.bf16.mxu1 %v828_v6 }
  0x18   : > { %757 = vmatpush3.bf16.msra.mxu0 %v828_v6  ;;  %796 = vmatpush3.bf16.msra.mxu1 %v828_v6 }
  0x19   : > { %758 = vmatprep.subr.bf16.mxu0 %v829_v7  ;;  %789 = vmatprep.subr.bf16.mxu1 %v829_v7 }
  0x1c   : > { %759 = vmatpush3.bf16.msra.mxu0 %v829_v7  ;;  %797 = vmatpush3.bf16.msra.mxu1 %v829_v7 }
  0x1d   : > { %760 = vmatprep.subr.bf16.mxu0 %v830_v8  ;;  %790 = vmatprep.subr.bf16.mxu1 %v830_v8 }
  0x20   : > { %761 = vmatpush3.bf16.msra.mxu0 %v830_v8  ;;  %798 = vmatpush3.bf16.msra.mxu1 %v830_v8 }
  0x21   : > { %762 = vmatprep.subr.bf16.mxu0 %v831_v9  ;;  %791 = vmatprep.subr.bf16.mxu1 %v831_v9 }
  0x24   : > { %763 = vmatpush3.bf16.msra.mxu0 %v831_v9  ;;  %799 = vmatpush3.bf16.msra.mxu1 %v831_v9 }
  0x27   : > { %765 = vmatmul.mubr.bf16.vlgmr.msra.gmra.mrb[0].mxu0 %v833_v10  ;;  %777 = vmatmul.mubr.bf16.vlgmr.msra.gmra.mrb[0].mxu1 %v835_v11 }
  0x28   : > { %768 = vmatprep.mubr.bf16.mxu0 %v836_v12  ;;  %780 = vmatprep.mubr.bf16.mxu1 %v838_v13 }
  0x2f   : > { %769 = vmatmul.mubr.bf16.gmra.mrb[4].mxu0 %v837_v14  ;;  %781 = vmatmul.mubr.bf16.gmra.mrb[4].mxu1 %v839_v15 }
  0x30   : > { %772 = vmatprep.mubr.bf16.mxu0 %v840_v16 }
  0x37   : > { %773 = vmatmul.mubr.bf16.gmra.mrb[8].mxu0 %v841_v17 }
  0xfa   : > { %v766_v18 = vpop.f32.mrb[0].mxu0  ;;  %v778_v19 = vpop.f32.mrb[0].mxu1 }
  0xfb   : > { %585 = vst [vmem:[%s945_s9 + $0x10] sm:$0xff] %v766_v18  ;;  %v441_v20 = vpop.f32.mrb[1].mxu0  ;;  %597 = vst [vmem:[%s945_s9 + $0x70] sm:$0xff] %v778_v19  ;;  %v489_v21 = vpop.f32.mrb[1].mxu1 }
  0xfc   : > { %583 = vst [vmem:[%s945_s9] sm:$0xff] %v441_v20  ;;  %v767_v22 = vpop.f32.mrb[2].mxu0  ;;  %595 = vst [vmem:[%s945_s9 + $0x60] sm:$0xff] %v489_v21  ;;  %v779_v23 = vpop.f32.mrb[2].mxu1 }
  0xfd   : > { %586 = vst [vmem:[%s945_s9 + $0x18] sm:$0xff] %v767_v22  ;;  %v444_v24 = vpop.f32.mrb[3].mxu0  ;;  %598 = vst [vmem:[%s945_s9 + $0x78] sm:$0xff] %v779_v23  ;;  %v492_v25 = vpop.f32.mrb[3].mxu1 }
  0xfe   : > { %584 = vst [vmem:[%s945_s9 + $0x8] sm:$0xff] %v444_v24  ;;  %596 = vst [vmem:[%s945_s9 + $0x68] sm:$0xff] %v492_v25 }
 0x102   : > { %v770_v26 = vpop.f32.mrb[4].mxu0  ;;  %v782_v27 = vpop.f32.mrb[4].mxu1 }
 0x103   : > { %589 = vst [vmem:[%s945_s9 + $0x30] sm:$0xff] %v770_v26  ;;  %v457_v28 = vpop.f32.mrb[5].mxu0  ;;  %601 = vst [vmem:[%s945_s9 + $0x90] sm:$0xff] %v782_v27  ;;  %v505_v29 = vpop.f32.mrb[5].mxu1 }
 0x104   : > { %587 = vst [vmem:[%s945_s9 + $0x20] sm:$0xff] %v457_v28  ;;  %v771_v30 = vpop.f32.mrb[6].mxu0  ;;  %599 = vst [vmem:[%s945_s9 + $0x80] sm:$0xff] %v505_v29  ;;  %v783_v31 = vpop.f32.mrb[6].mxu1 }
 0x105   : > { %590 = vst [vmem:[%s945_s9 + $0x38] sm:$0xff] %v771_v30  ;;  %v460_v32 = vpop.f32.mrb[7].mxu0  ;;  %602 = vst [vmem:[%s945_s9 + $0x98] sm:$0xff] %v783_v31  ;;  %v508_v33 = vpop.f32.mrb[7].mxu1 }
 0x106   : > { %588 = vst [vmem:[%s945_s9 + $0x28] sm:$0xff] %v460_v32  ;;  %600 = vst [vmem:[%s945_s9 + $0x88] sm:$0xff] %v508_v33 }
 0x10a   : > { %v774_v34 = vpop.f32.mrb[8].mxu0 }
 0x10b   : > { %593 = vst [vmem:[%s945_s9 + $0x50] sm:$0xff] %v774_v34  ;;  %v473_v35 = vpop.f32.mrb[9].mxu0 }
 0x10c   : > { %591 = vst [vmem:[%s945_s9 + $0x40] sm:$0xff] %v473_v35  ;;  %v775_v36 = vpop.f32.mrb[10].mxu0 }
 0x10d   : > { %594 = vst [vmem:[%s945_s9 + $0x58] sm:$0xff] %v775_v36  ;;  %v476_v37 = vpop.f32.mrb[11].mxu0 }
 0x10e   : > { %592 = vst [vmem:[%s945_s9 + $0x48] sm:$0xff] %v476_v37 }
 0x10f PF: > { %s12_s11 = sadd.s32 1, %s864_s11   ;;  %s979_s9 = smov %s860_s10 }
 0x110   : > { %p9_p5 = scmp.ge.s32.totalorder %s12_s11, 6   ;;  %s980_s10 = smov %s982_s12 }
 0x112   :  { %11 = sbr.rel (!%p9_p5) target bundleno = 2 (0x2), region = 69 }

</bundles_post_ra>
